<compile_context>
chip_gen: v6e
topology: v6e:2x2x1
jax: 0.10.0
libtpu: 0.0.40
codegen_flags: <defaults>
</compile_context>

<pallas_src>
import jax
import jax.numpy as jnp
from jax.experimental import pallas as pl
from jax.experimental.pallas import tpu as pltpu

EPS = 1e-8
LANE = 128


# ----------------------------------------------------------------------------
# Fused kernel: GCN stack + node-graph matching + BiLSTM readout + prediction
# ----------------------------------------------------------------------------
def ngmn_fused_kernel(lap_ref, h_ref, gcn_w_ref, gcn_b_ref, wm2t_ref,
                      wih_cat_ref, whh_blk_ref, b_cat_ref, sim_ref):
    TWO_B, N, HP = h_ref.shape          # 2B graphs: [0:B]=graph1 batch, [B:2B]=graph2 batch
    B = TWO_B // 2
    BN = B * N
    num_layers = gcn_w_ref.shape[0]
    R = sim_ref.shape[0]
    f32, bf16 = jnp.float32, jnp.bfloat16

    use_blockdiag = (len(lap_ref.shape) == 2)   # static: (2B*N, 2B*N) vs (2B, N, N)

    h_flat = h_ref[...].reshape(TWO_B * N, HP)  # (2B*N, HP) f32

    # ---------------- GCN stack:  h = relu(L @ (h @ W) + b)  -----------------
    for l in range(num_layers):                 # static, small layer count
        w = gcn_w_ref[l]                        # (HP, HP) bf16
        b = gcn_b_ref[l]                        # (1, HP)  f32
        hw = jnp.dot(h_flat.astype(bf16), w, preferred_element_type=f32)
        if use_blockdiag:
            lh = jnp.dot(lap_ref[...], hw.astype(bf16), preferred_element_type=f32)
        else:
            lh = jnp.einsum("bij,bjh->bih", lap_ref[...],
                            hw.reshape(TWO_B, N, HP).astype(bf16),
                            preferred_element_type=f32).reshape(TWO_B * N, HP)
        h_flat = jnp.maximum(lh + b, 0.0)

    # ---------------- node-graph matching ------------------------------------
    h3 = h_flat.reshape(TWO_B, N, HP)
    h1 = h3[:B]                                 # (B, N, HP)
    h2 = h3[B:]
    n1 = jnp.maximum(jnp.sqrt(jnp.sum(h1 * h1, axis=-1, keepdims=True)), EPS)
    n2 = jnp.maximum(jnp.sqrt(jnp.sum(h2 * h2, axis=-1, keepdims=True)), EPS)
    h1n = (h1 / n1).astype(bf16)
    h2n = (h2 / n2).astype(bf16)
    # alpha[b,i,j] = cos(h1_i, h2_j) ; beta == transpose(alpha) (not recomputed)
    alpha = jnp.einsum("bid,bjd->bij", h1n, h2n, preferred_element_type=f32)   # (B,N,N)
    alpha_bf = alpha.astype(bf16)
    alpha_t_bf = jnp.transpose(alpha, (0, 2, 1)).astype(bf16)                  # == beta
    h1_bf = h1.astype(bf16)
    h2_bf = h2.astype(bf16)
    hg2 = jnp.einsum("bij,bjh->bih", alpha_bf, h2_bf, preferred_element_type=f32)
    hg1 = jnp.einsum("bji,bih->bjh", alpha_t_bf, h1_bf, preferred_element_type=f32)

    # multi-perspective cosine f_m: one stacked matmul against (w_m*w_m).T
    ops = jnp.concatenate([
        (h1 * hg2).reshape(BN, HP), (h1 * h1).reshape(BN, HP), (hg2 * hg2).reshape(BN, HP),
        (h2 * hg1).reshape(BN, HP), (h2 * h2).reshape(BN, HP), (hg1 * hg1).reshape(BN, HP),
    ], axis=0)                                   # (6*B*N, HP)
    prods = jnp.dot(ops.astype(bf16), wm2t_ref[...], preferred_element_type=f32)
    d1 = prods[0 * BN:1 * BN]
    s11 = prods[1 * BN:2 * BN]
    s22 = prods[2 * BN:3 * BN]
    d2 = prods[3 * BN:4 * BN]
    s2b = prods[4 * BN:5 * BN]
    s1b = prods[5 * BN:6 * BN]
    m1 = d1 / (jnp.maximum(jnp.sqrt(s11), EPS) * jnp.maximum(jnp.sqrt(s22), EPS))
    m2 = d2 / (jnp.maximum(jnp.sqrt(s2b), EPS) * jnp.maximum(jnp.sqrt(s1b), EPS))
    m_flat = jnp.concatenate([m1, m2], axis=0)   # (2B*N, HP)

    # ---------------- shared BiLSTM readout ----------------------------------
    # Hoisted input projections: one MXU pass for both directions, all steps.
    x_proj = jnp.dot(m_flat.astype(bf16), wih_cat_ref[...],
                     preferred_element_type=f32).reshape(TWO_B, N, 8 * HP)
    whh_blk = whh_blk_ref[...]                   # (2HP, 8HP) bf16, block-diag fwd/bwd
    b_cat = b_cat_ref[...]                       # (1, 8HP)   f32

    def cell(g, c_prev):                         # PyTorch gate order: i, f, g, o
        i_g = jax.nn.sigmoid(g[:, 0:HP])
        f_g = jax.nn.sigmoid(g[:, HP:2 * HP])
        g_g = jnp.tanh(g[:, 2 * HP:3 * HP])
        o_g = jax.nn.sigmoid(g[:, 3 * HP:4 * HP])
        c = f_g * c_prev + i_g * g_g
        return o_g * jnp.tanh(c), c

    h_cat = jnp.zeros((TWO_B, 2 * HP), f32)      # [h_f | h_b]
    c_f = jnp.zeros((TWO_B, HP), f32)
    c_b = jnp.zeros((TWO_B, HP), f32)
    # static unroll; fine at small N. TODO(synk): switch to lax.fori_loop if N > ~16.
    for t in range(N):
        gates_h = jnp.dot(h_cat.astype(bf16), whh_blk,
                          preferred_element_type=f32) + b_cat       # (2B, 8HP)
        g_f = gates_h[:, :4 * HP] + x_proj[:, t, :4 * HP]
        g_b = gates_h[:, 4 * HP:] + x_proj[:, N - 1 - t, 4 * HP:]
        h_f, c_f = cell(g_f, c_f)
        h_b, c_b = cell(g_b, c_b)
        h_cat = jnp.concatenate([h_f, h_b], axis=1)

    # forward-dir final hidden (t=N-1) | backward-dir final hidden (t=0)
    ht1 = h_cat[:B]                              # (B, 2HP)
    ht2 = h_cat[B:]

    # ---------------- prediction: cosine similarity --------------------------
    dot = jnp.sum(ht1 * ht2, axis=1, keepdims=True)
    nn1 = jnp.maximum(jnp.sqrt(jnp.sum(ht1 * ht1, axis=1, keepdims=True)), EPS)
    nn2 = jnp.maximum(jnp.sqrt(jnp.sum(ht2 * ht2, axis=1, keepdims=True)), EPS)
    sim = dot / (nn1 * nn2)                      # (B, 1)
    if R > B:
        sim = jnp.concatenate([sim, jnp.zeros((R - B, 1), f32)], axis=0)
    sim_ref[...] = jnp.broadcast_to(sim, (R, LANE))   # unmasked (8,128)-aligned store


# ----------------------------------------------------------------------------
# Plain-JAX glue
# ----------------------------------------------------------------------------
def norm_laplacian(adj):
    # matches reference norm_laplace_transform: L = I - D^{-1/4} A D^{-1/4}
    B, N, _ = adj.shape
    deg = jnp.maximum(jnp.sum(adj, axis=-2), EPS)          # in-degrees (EPS-clamped)
    d_q = deg ** (-0.25)
    eye = jnp.eye(N, dtype=adj.dtype)[None]
    return eye - d_q[:, :, None] * adj * d_q[:, None, :]


def make_block_diag(lap):
    # (2B, N, N) -> (2B*N, 2B*N) block-diagonal (constant across GCN layers)
    TWO_B, N, _ = lap.shape
    eye = jnp.eye(TWO_B, dtype=lap.dtype)
    return jnp.einsum("bij,bc->bicj", lap, eye).reshape(TWO_B * N, TWO_B * N)


def ngmn_forward(params, h1, adj1, h2, adj2):
    B, N, H = h1.shape
    TWO_B = 2 * B
    HP = ((H + LANE - 1) // LANE) * LANE                   # lane-pad hidden size

    lap = norm_laplacian(jnp.concatenate([adj1, adj2], axis=0))        # (2B, N, N)
    h = jnp.concatenate([h1, h2], axis=0)                              # (2B, N, H)
    h = jnp.pad(h, ((0, 0), (0, 0), (0, HP - H)))                      # (2B, N, HP)

    # Block-diagonal flattened Laplacian for small graphs (one MXU pass / layer);
    # keep batched form otherwise (VMEM grows O((2B*N)^2)).
    if TWO_B * N <= 512:
        lap_in = make_block_diag(lap).astype(jnp.bfloat16)
    else:
        lap_in = lap.astype(jnp.bfloat16)

    pad2 = lambda w: jnp.pad(w, ((0, HP - H), (0, HP - H)))
    gcn_w = jnp.stack([pad2(w) for w, _ in params["gcn"]], axis=0).astype(jnp.bfloat16)
    gcn_b = jnp.stack([jnp.pad(b, ((0, 0), (0, HP - H))) for _, b in params["gcn"]], axis=0)
    wm2t = pad2(jnp.transpose(params["w_m"] * params["w_m"])).astype(jnp.bfloat16)

    def pad_gate_cols(m):                                   # (R, 4H) -> (R, 4HP), gates i,f,g,o
        parts = [jnp.pad(m[:, k * H:(k + 1) * H], ((0, 0), (0, HP - H))) for k in range(4)]
        return jnp.concatenate(parts, axis=1)

    def pad_dir(wih, whh, b):
        wih_p = jnp.pad(pad_gate_cols(wih), ((0, HP - H), (0, 0)))     # (HP, 4HP)
        whh_p = jnp.pad(pad_gate_cols(whh), ((0, HP - H), (0, 0)))     # (HP, 4HP)
        return wih_p, whh_p, pad_gate_cols(b)                          # b: (1, 4HP)

    wih_f, whh_f, b_f = pad_dir(*params["lstm"]["fwd"])
    wih_b, whh_b, b_b = pad_dir(*params["lstm"]["bwd"])

    wih_cat = jnp.concatenate([wih_f, wih_b], axis=1).astype(jnp.bfloat16)       # (HP, 8HP)
    zero = jnp.zeros((HP, 4 * HP), jnp.float32)
    whh_blk = jnp.concatenate(
        [jnp.concatenate([whh_f, zero], axis=1),
         jnp.concatenate([zero, whh_b], axis=1)], axis=0).astype(jnp.bfloat16)   # (2HP, 8HP)
    b_cat = jnp.concatenate([b_f, b_b], axis=1)                                  # (1, 8HP) f32

    R = ((max(B, 8) + 7) // 8) * 8
    vmem = pl.BlockSpec(memory_space=pltpu.MemorySpace.VMEM)
    sim = pl.pallas_call(
        ngmn_fused_kernel,
        out_shape=jax.ShapeDtypeStruct((R, LANE), jnp.float32),
        in_specs=[vmem] * 8,
        out_specs=vmem,
    )(lap_in, h, gcn_w, gcn_b, wm2t, wih_cat, whh_blk, b_cat)
    return sim[:B, 0]                                       # (B,) cosine similarities


def init_params(key, hidden_size, gnn_num_layer):
    keys = jax.random.split(key, gnn_num_layer + 3)
    scale = 1.0 / jnp.sqrt(hidden_size)
    gcn = []
    for l in range(gnn_num_layer):
        w = jax.random.normal(keys[l], (hidden_size, hidden_size), jnp.float32) * scale
        b = jnp.zeros((1, hidden_size), jnp.float32)
        gcn.append((w, b))
    w_m = jax.random.normal(keys[gnn_num_layer], (hidden_size, hidden_size), jnp.float32)

    def lstm_dir_params(k):
        k1, k2, k3, k4 = jax.random.split(k, 4)
        u = lambda kk, shp: jax.random.uniform(kk, shp, jnp.float32, -scale, scale)
        wih = u(k1, (4 * hidden_size, hidden_size))
        whh = u(k2, (4 * hidden_size, hidden_size))
        bih = u(k3, (4 * hidden_size,))
        bhh = u(k4, (4 * hidden_size,))
        return wih.T, whh.T, (bih + bhh)[None, :]            # pre-transposed, bias combined

    lstm = {"fwd": lstm_dir_params(keys[gnn_num_layer + 1]),
            "bwd": lstm_dir_params(keys[gnn_num_layer + 2])}
    return {"gcn": gcn, "w_m": w_m, "lstm": lstm}


if __name__ == "__main__":
    B, N, H = 2, 8, 32
    GNN_LAYERS = 2

    key = jax.random.PRNGKey(0)
    k1, k2, k3, k4, kp = jax.random.split(key, 5)

    h1 = jax.random.normal(k1, (B, N, H), jnp.float32)
    h2 = jax.random.normal(k2, (B, N, H), jnp.float32)

    def make_adj(k):
        a = (jax.random.uniform(k, (B, N, N)) > 0.6).astype(jnp.float32)
        a = jnp.maximum(a, jnp.transpose(a, (0, 2, 1)))
        a = a * (1.0 - jnp.eye(N, dtype=jnp.float32))[None]
        ring = jnp.roll(jnp.eye(N, dtype=jnp.float32), 1, axis=1)
        ring = jnp.maximum(ring, ring.T)[None]
        return jnp.maximum(a, ring)                          # every node has degree >= 2

    adj1 = make_adj(k3)
    adj2 = make_adj(k4)

    params = init_params(kp, H, GNN_LAYERS)

    fwd = jax.jit(ngmn_forward)
    out = fwd(params, h1, adj1, h2, adj2)                    # (B,) cosine similarities
    jax.block_until_ready(out)
    assert out.shape == (B,)
    assert bool(jnp.all(jnp.isfinite(out)))
    print("KERNEL_OK")
</pallas_src>

<mosaic_0001>
module attributes {stable_mosaic.version = 11 : i64} {
  func.func @ngmn_fused_kernel(%arg0: memref<32x32xbf16, #tpu.memory_space<vmem>>, %arg1: memref<4x8x128xf32, #tpu.memory_space<vmem>>, %arg2: memref<2x128x128xbf16, #tpu.memory_space<vmem>>, %arg3: memref<2x1x128xf32, #tpu.memory_space<vmem>>, %arg4: memref<128x128xbf16, #tpu.memory_space<vmem>>, %arg5: memref<128x1024xbf16, #tpu.memory_space<vmem>>, %arg6: memref<256x1024xbf16, #tpu.memory_space<vmem>>, %arg7: memref<1x1024xf32, #tpu.memory_space<vmem>>, %arg8: memref<8x128xf32, #tpu.memory_space<vmem>>) attributes {dimension_semantics = [], scalar_prefetch = 0 : i64, scratch_operands = 0 : i64, tpu.core_type = #tpu.core_type<tc>} {
    %c0 = arith.constant 0 : index
    %c0_0 = arith.constant 0 : index
    %c0_1 = arith.constant 0 : index
    %0 = vector.load %arg1[%c0, %c0_0, %c0_1] : memref<4x8x128xf32, #tpu.memory_space<vmem>>, vector<4x8x128xf32>
    %1 = vector.shape_cast %0 : vector<4x8x128xf32> to vector<32x128xf32>
    %c0_2 = arith.constant 0 : index
    %c0_3 = arith.constant 0 : index
    %c0_4 = arith.constant 0 : index
    %2 = vector.load %arg2[%c0_2, %c0_3, %c0_4] : memref<2x128x128xbf16, #tpu.memory_space<vmem>>, vector<1x128x128xbf16>
    %3 = vector.shape_cast %2 : vector<1x128x128xbf16> to vector<128x128xbf16>
    %c0_5 = arith.constant 0 : index
    %c0_6 = arith.constant 0 : index
    %c0_7 = arith.constant 0 : index
    %4 = vector.load %arg3[%c0_5, %c0_6, %c0_7] : memref<2x1x128xf32, #tpu.memory_space<vmem>>, vector<1x1x128xf32>
    %5 = vector.shape_cast %4 : vector<1x1x128xf32> to vector<1x128xf32>
    %6 = arith.truncf %1 : vector<32x128xf32> to vector<32x128xbf16>
    %cst = arith.constant dense<0.000000e+00> : vector<32x128xf32>
    %7 = tpu.matmul %6, %3, %cst {dimension_numbers = #tpu.dot_dimension_numbers<[1], [0], [0], [1], [0, 0, 1, 1], [], []>} : vector<32x128xbf16>, vector<128x128xbf16>, vector<32x128xf32> -> vector<32x128xf32>
    %c0_8 = arith.constant 0 : index
    %c0_9 = arith.constant 0 : index
    %8 = vector.load %arg0[%c0_8, %c0_9] : memref<32x32xbf16, #tpu.memory_space<vmem>>, vector<32x32xbf16>
    %9 = arith.truncf %7 : vector<32x128xf32> to vector<32x128xbf16>
    %cst_10 = arith.constant dense<0.000000e+00> : vector<32x128xf32>
    %10 = tpu.matmul %8, %9, %cst_10 {dimension_numbers = #tpu.dot_dimension_numbers<[1], [0], [0], [1], [0, 0, 1, 1], [], []>} : vector<32x32xbf16>, vector<32x128xbf16>, vector<32x128xf32> -> vector<32x128xf32>
    %11 = vector.broadcast %5 : vector<1x128xf32> to vector<32x128xf32>
    %12 = arith.addf %10, %11 : vector<32x128xf32>
    %cst_11 = arith.constant 0.000000e+00 : f32
    %13 = vector.broadcast %cst_11 : f32 to vector<32x128xf32>
    %14 = arith.maximumf %12, %13 : vector<32x128xf32>
    %c1 = arith.constant 1 : index
    %c0_12 = arith.constant 0 : index
    %c0_13 = arith.constant 0 : index
    %15 = vector.load %arg2[%c1, %c0_12, %c0_13] : memref<2x128x128xbf16, #tpu.memory_space<vmem>>, vector<1x128x128xbf16>
    %16 = vector.shape_cast %15 : vector<1x128x128xbf16> to vector<128x128xbf16>
    %c1_14 = arith.constant 1 : index
    %c0_15 = arith.constant 0 : index
    %c0_16 = arith.constant 0 : index
    %17 = vector.load %arg3[%c1_14, %c0_15, %c0_16] : memref<2x1x128xf32, #tpu.memory_space<vmem>>, vector<1x1x128xf32>
    %18 = vector.shape_cast %17 : vector<1x1x128xf32> to vector<1x128xf32>
    %19 = arith.truncf %14 : vector<32x128xf32> to vector<32x128xbf16>
    %cst_17 = arith.constant dense<0.000000e+00> : vector<32x128xf32>
    %20 = tpu.matmul %19, %16, %cst_17 {dimension_numbers = #tpu.dot_dimension_numbers<[1], [0], [0], [1], [0, 0, 1, 1], [], []>} : vector<32x128xbf16>, vector<128x128xbf16>, vector<32x128xf32> -> vector<32x128xf32>
    %c0_18 = arith.constant 0 : index
    %c0_19 = arith.constant 0 : index
    %21 = vector.load %arg0[%c0_18, %c0_19] : memref<32x32xbf16, #tpu.memory_space<vmem>>, vector<32x32xbf16>
    %22 = arith.truncf %20 : vector<32x128xf32> to vector<32x128xbf16>
    %cst_20 = arith.constant dense<0.000000e+00> : vector<32x128xf32>
    %23 = tpu.matmul %21, %22, %cst_20 {dimension_numbers = #tpu.dot_dimension_numbers<[1], [0], [0], [1], [0, 0, 1, 1], [], []>} : vector<32x32xbf16>, vector<32x128xbf16>, vector<32x128xf32> -> vector<32x128xf32>
    %24 = vector.broadcast %18 : vector<1x128xf32> to vector<32x128xf32>
    %25 = arith.addf %23, %24 : vector<32x128xf32>
    %cst_21 = arith.constant 0.000000e+00 : f32
    %26 = vector.broadcast %cst_21 : f32 to vector<32x128xf32>
    %27 = arith.maximumf %25, %26 : vector<32x128xf32>
    %28 = vector.shape_cast %27 : vector<32x128xf32> to vector<4x8x128xf32>
    %29 = vector.extract_strided_slice %28 {offsets = [0, 0, 0], sizes = [2, 8, 128], strides = [1, 1, 1]} : vector<4x8x128xf32> to vector<2x8x128xf32>
    %30 = vector.extract_strided_slice %28 {offsets = [2, 0, 0], sizes = [2, 8, 128], strides = [1, 1, 1]} : vector<4x8x128xf32> to vector<2x8x128xf32>
    %31 = arith.mulf %29, %29 : vector<2x8x128xf32>
    %cst_22 = arith.constant dense<0.000000e+00> : vector<2x8xf32>
    %32 = vector.multi_reduction <add>, %31, %cst_22 [2] : vector<2x8x128xf32> to vector<2x8xf32>
    %33 = vector.shape_cast %32 : vector<2x8xf32> to vector<2x8x1xf32>
    %34 = math.sqrt %33 : vector<2x8x1xf32>
    %cst_23 = arith.constant 9.99999993E-9 : f32
    %35 = vector.broadcast %cst_23 : f32 to vector<2x8x1xf32>
    %36 = arith.maximumf %34, %35 : vector<2x8x1xf32>
    %37 = arith.mulf %30, %30 : vector<2x8x128xf32>
    %cst_24 = arith.constant dense<0.000000e+00> : vector<2x8xf32>
    %38 = vector.multi_reduction <add>, %37, %cst_24 [2] : vector<2x8x128xf32> to vector<2x8xf32>
    %39 = vector.shape_cast %38 : vector<2x8xf32> to vector<2x8x1xf32>
    %40 = math.sqrt %39 : vector<2x8x1xf32>
    %cst_25 = arith.constant 9.99999993E-9 : f32
    %41 = vector.broadcast %cst_25 : f32 to vector<2x8x1xf32>
    %42 = arith.maximumf %40, %41 : vector<2x8x1xf32>
    %43 = vector.broadcast %36 : vector<2x8x1xf32> to vector<2x8x128xf32>
    %44 = arith.divf %29, %43 : vector<2x8x128xf32>
    %45 = arith.truncf %44 : vector<2x8x128xf32> to vector<2x8x128xbf16>
    %46 = vector.broadcast %42 : vector<2x8x1xf32> to vector<2x8x128xf32>
    %47 = arith.divf %30, %46 : vector<2x8x128xf32>
    %48 = arith.truncf %47 : vector<2x8x128xf32> to vector<2x8x128xbf16>
    "tpu.trace_start"() <{level = 10 : i32, message = "bid,bjd->bij"}> : () -> ()
    %cst_26 = arith.constant dense<0.000000e+00> : vector<2x8x8xf32>
    %49 = tpu.matmul %45, %48, %cst_26 {dimension_numbers = #tpu.dot_dimension_numbers<[2], [2], [1], [1], [0, 0, 0, 1, 1, 1], [0], [0]>} : vector<2x8x128xbf16>, vector<2x8x128xbf16>, vector<2x8x8xf32> -> vector<2x8x8xf32>
    "tpu.trace_stop"() : () -> ()
    %50 = arith.truncf %49 : vector<2x8x8xf32> to vector<2x8x8xbf16>
    %51 = tpu.transpose %49, [0, 2, 1] : vector<2x8x8xf32> -> vector<2x8x8xf32>
    %52 = arith.truncf %51 : vector<2x8x8xf32> to vector<2x8x8xbf16>
    %53 = arith.truncf %29 : vector<2x8x128xf32> to vector<2x8x128xbf16>
    %54 = arith.truncf %30 : vector<2x8x128xf32> to vector<2x8x128xbf16>
    "tpu.trace_start"() <{level = 10 : i32, message = "bij,bjh->bih"}> : () -> ()
    %cst_27 = arith.constant dense<0.000000e+00> : vector<2x8x128xf32>
    %55 = tpu.matmul %50, %54, %cst_27 {dimension_numbers = #tpu.dot_dimension_numbers<[2], [1], [1], [2], [0, 0, 0, 1, 1, 2], [0], [0]>} : vector<2x8x8xbf16>, vector<2x8x128xbf16>, vector<2x8x128xf32> -> vector<2x8x128xf32>
    "tpu.trace_stop"() : () -> ()
    "tpu.trace_start"() <{level = 10 : i32, message = "bji,bih->bjh"}> : () -> ()
    %cst_28 = arith.constant dense<0.000000e+00> : vector<2x8x128xf32>
    %56 = tpu.matmul %52, %53, %cst_28 {dimension_numbers = #tpu.dot_dimension_numbers<[2], [1], [1], [2], [0, 0, 0, 1, 1, 2], [0], [0]>} : vector<2x8x8xbf16>, vector<2x8x128xbf16>, vector<2x8x128xf32> -> vector<2x8x128xf32>
    "tpu.trace_stop"() : () -> ()
    %57 = arith.mulf %29, %55 : vector<2x8x128xf32>
    %58 = vector.shape_cast %57 : vector<2x8x128xf32> to vector<16x128xf32>
    %59 = arith.mulf %29, %29 : vector<2x8x128xf32>
    %60 = vector.shape_cast %59 : vector<2x8x128xf32> to vector<16x128xf32>
    %61 = arith.mulf %55, %55 : vector<2x8x128xf32>
    %62 = vector.shape_cast %61 : vector<2x8x128xf32> to vector<16x128xf32>
    %63 = arith.mulf %30, %56 : vector<2x8x128xf32>
    %64 = vector.shape_cast %63 : vector<2x8x128xf32> to vector<16x128xf32>
    %65 = arith.mulf %30, %30 : vector<2x8x128xf32>
    %66 = vector.shape_cast %65 : vector<2x8x128xf32> to vector<16x128xf32>
    %67 = arith.mulf %56, %56 : vector<2x8x128xf32>
    %68 = vector.shape_cast %67 : vector<2x8x128xf32> to vector<16x128xf32>
    %69 = tpu.concatenate %58, %60, %62, %64, %66, %68 in 0 : vector<16x128xf32>, vector<16x128xf32>, vector<16x128xf32>, vector<16x128xf32>, vector<16x128xf32>, vector<16x128xf32> -> vector<96x128xf32>
    %70 = arith.truncf %69 : vector<96x128xf32> to vector<96x128xbf16>
    %c0_29 = arith.constant 0 : index
    %c0_30 = arith.constant 0 : index
    %71 = vector.load %arg4[%c0_29, %c0_30] : memref<128x128xbf16, #tpu.memory_space<vmem>>, vector<128x128xbf16>
    %cst_31 = arith.constant dense<0.000000e+00> : vector<96x128xf32>
    %72 = tpu.matmul %70, %71, %cst_31 {dimension_numbers = #tpu.dot_dimension_numbers<[1], [0], [0], [1], [0, 0, 1, 1], [], []>} : vector<96x128xbf16>, vector<128x128xbf16>, vector<96x128xf32> -> vector<96x128xf32>
    %73 = vector.extract_strided_slice %72 {offsets = [0, 0], sizes = [16, 128], strides = [1, 1]} : vector<96x128xf32> to vector<16x128xf32>
    %74 = vector.extract_strided_slice %72 {offsets = [16, 0], sizes = [16, 128], strides = [1, 1]} : vector<96x128xf32> to vector<16x128xf32>
    %75 = vector.extract_strided_slice %72 {offsets = [32, 0], sizes = [16, 128], strides = [1, 1]} : vector<96x128xf32> to vector<16x128xf32>
    %76 = vector.extract_strided_slice %72 {offsets = [48, 0], sizes = [16, 128], strides = [1, 1]} : vector<96x128xf32> to vector<16x128xf32>
    %77 = vector.extract_strided_slice %72 {offsets = [64, 0], sizes = [16, 128], strides = [1, 1]} : vector<96x128xf32> to vector<16x128xf32>
    %78 = vector.extract_strided_slice %72 {offsets = [80, 0], sizes = [16, 128], strides = [1, 1]} : vector<96x128xf32> to vector<16x128xf32>
    %79 = math.sqrt %74 : vector<16x128xf32>
    %cst_32 = arith.constant 9.99999993E-9 : f32
    %80 = vector.broadcast %cst_32 : f32 to vector<16x128xf32>
    %81 = arith.maximumf %79, %80 : vector<16x128xf32>
    %82 = math.sqrt %75 : vector<16x128xf32>
    %cst_33 = arith.constant 9.99999993E-9 : f32
    %83 = vector.broadcast %cst_33 : f32 to vector<16x128xf32>
    %84 = arith.maximumf %82, %83 : vector<16x128xf32>
    %85 = arith.mulf %81, %84 : vector<16x128xf32>
    %86 = arith.divf %73, %85 : vector<16x128xf32>
    %87 = math.sqrt %77 : vector<16x128xf32>
    %cst_34 = arith.constant 9.99999993E-9 : f32
    %88 = vector.broadcast %cst_34 : f32 to vector<16x128xf32>
    %89 = arith.maximumf %87, %88 : vector<16x128xf32>
    %90 = math.sqrt %78 : vector<16x128xf32>
    %cst_35 = arith.constant 9.99999993E-9 : f32
    %91 = vector.broadcast %cst_35 : f32 to vector<16x128xf32>
    %92 = arith.maximumf %90, %91 : vector<16x128xf32>
    %93 = arith.mulf %89, %92 : vector<16x128xf32>
    %94 = arith.divf %76, %93 : vector<16x128xf32>
    %95 = tpu.concatenate %86, %94 in 0 : vector<16x128xf32>, vector<16x128xf32> -> vector<32x128xf32>
    %96 = arith.truncf %95 : vector<32x128xf32> to vector<32x128xbf16>
    %c0_36 = arith.constant 0 : index
    %c0_37 = arith.constant 0 : index
    %97 = vector.load %arg5[%c0_36, %c0_37] : memref<128x1024xbf16, #tpu.memory_space<vmem>>, vector<128x1024xbf16>
    %cst_38 = arith.constant dense<0.000000e+00> : vector<32x1024xf32>
    %98 = tpu.matmul %96, %97, %cst_38 {dimension_numbers = #tpu.dot_dimension_numbers<[1], [0], [0], [1], [0, 0, 1, 1], [], []>} : vector<32x128xbf16>, vector<128x1024xbf16>, vector<32x1024xf32> -> vector<32x1024xf32>
    %99 = vector.shape_cast %98 : vector<32x1024xf32> to vector<4x8x1024xf32>
    %c0_39 = arith.constant 0 : index
    %c0_40 = arith.constant 0 : index
    %100 = vector.load %arg6[%c0_39, %c0_40] : memref<256x1024xbf16, #tpu.memory_space<vmem>>, vector<256x1024xbf16>
    %c0_41 = arith.constant 0 : index
    %c0_42 = arith.constant 0 : index
    %101 = vector.load %arg7[%c0_41, %c0_42] : memref<1x1024xf32, #tpu.memory_space<vmem>>, vector<1x1024xf32>
    %cst_43 = arith.constant 0.000000e+00 : f32
    %102 = vector.broadcast %cst_43 : f32 to vector<4x256xf32>
    %cst_44 = arith.constant 0.000000e+00 : f32
    %103 = vector.broadcast %cst_44 : f32 to vector<4x128xf32>
    %cst_45 = arith.constant 0.000000e+00 : f32
    %104 = vector.broadcast %cst_45 : f32 to vector<4x128xf32>
    %105 = arith.truncf %102 : vector<4x256xf32> to vector<4x256xbf16>
    %cst_46 = arith.constant dense<0.000000e+00> : vector<4x1024xf32>
    %106 = tpu.matmul %105, %100, %cst_46 {dimension_numbers = #tpu.dot_dimension_numbers<[1], [0], [0], [1], [0, 0, 1, 1], [], []>} : vector<4x256xbf16>, vector<256x1024xbf16>, vector<4x1024xf32> -> vector<4x1024xf32>
    %107 = vector.broadcast %101 : vector<1x1024xf32> to vector<4x1024xf32>
    %108 = arith.addf %106, %107 : vector<4x1024xf32>
    %109 = vector.extract_strided_slice %108 {offsets = [0, 0], sizes = [4, 512], strides = [1, 1]} : vector<4x1024xf32> to vector<4x512xf32>
    %110 = vector.extract_strided_slice %99 {offsets = [0, 0, 0], sizes = [4, 1, 512], strides = [1, 1, 1]} : vector<4x8x1024xf32> to vector<4x1x512xf32>
    %111 = vector.shape_cast %110 : vector<4x1x512xf32> to vector<4x512xf32>
    %112 = arith.addf %109, %111 : vector<4x512xf32>
    %113 = vector.extract_strided_slice %108 {offsets = [0, 512], sizes = [4, 512], strides = [1, 1]} : vector<4x1024xf32> to vector<4x512xf32>
    %114 = vector.extract_strided_slice %99 {offsets = [0, 7, 512], sizes = [4, 1, 512], strides = [1, 1, 1]} : vector<4x8x1024xf32> to vector<4x1x512xf32>
    %115 = vector.shape_cast %114 : vector<4x1x512xf32> to vector<4x512xf32>
    %116 = arith.addf %113, %115 : vector<4x512xf32>
    %117 = vector.extract_strided_slice %112 {offsets = [0, 0], sizes = [4, 128], strides = [1, 1]} : vector<4x512xf32> to vector<4x128xf32>
    %118 = arith.negf %117 : vector<4x128xf32>
    %119 = math.exp %118 : vector<4x128xf32>
    %cst_47 = arith.constant 1.000000e+00 : f32
    %120 = vector.broadcast %cst_47 : f32 to vector<4x128xf32>
    %121 = arith.addf %120, %119 : vector<4x128xf32>
    %122 = arith.divf %120, %121 : vector<4x128xf32>
    %123 = vector.extract_strided_slice %112 {offsets = [0, 128], sizes = [4, 128], strides = [1, 1]} : vector<4x512xf32> to vector<4x128xf32>
    %124 = arith.negf %123 : vector<4x128xf32>
    %125 = math.exp %124 : vector<4x128xf32>
    %cst_48 = arith.constant 1.000000e+00 : f32
    %126 = vector.broadcast %cst_48 : f32 to vector<4x128xf32>
    %127 = arith.addf %126, %125 : vector<4x128xf32>
    %128 = arith.divf %126, %127 : vector<4x128xf32>
    %129 = vector.extract_strided_slice %112 {offsets = [0, 256], sizes = [4, 128], strides = [1, 1]} : vector<4x512xf32> to vector<4x128xf32>
    %130 = math.tanh %129 : vector<4x128xf32>
    %131 = vector.extract_strided_slice %112 {offsets = [0, 384], sizes = [4, 128], strides = [1, 1]} : vector<4x512xf32> to vector<4x128xf32>
    %132 = arith.negf %131 : vector<4x128xf32>
    %133 = math.exp %132 : vector<4x128xf32>
    %cst_49 = arith.constant 1.000000e+00 : f32
    %134 = vector.broadcast %cst_49 : f32 to vector<4x128xf32>
    %135 = arith.addf %134, %133 : vector<4x128xf32>
    %136 = arith.divf %134, %135 : vector<4x128xf32>
    %137 = arith.mulf %128, %103 : vector<4x128xf32>
    %138 = arith.mulf %122, %130 : vector<4x128xf32>
    %139 = arith.addf %137, %138 : vector<4x128xf32>
    %140 = math.tanh %139 : vector<4x128xf32>
    %141 = arith.mulf %136, %140 : vector<4x128xf32>
    %142 = vector.extract_strided_slice %116 {offsets = [0, 0], sizes = [4, 128], strides = [1, 1]} : vector<4x512xf32> to vector<4x128xf32>
    %143 = arith.negf %142 : vector<4x128xf32>
    %144 = math.exp %143 : vector<4x128xf32>
    %cst_50 = arith.constant 1.000000e+00 : f32
    %145 = vector.broadcast %cst_50 : f32 to vector<4x128xf32>
    %146 = arith.addf %145, %144 : vector<4x128xf32>
    %147 = arith.divf %145, %146 : vector<4x128xf32>
    %148 = vector.extract_strided_slice %116 {offsets = [0, 128], sizes = [4, 128], strides = [1, 1]} : vector<4x512xf32> to vector<4x128xf32>
    %149 = arith.negf %148 : vector<4x128xf32>
    %150 = math.exp %149 : vector<4x128xf32>
    %cst_51 = arith.constant 1.000000e+00 : f32
    %151 = vector.broadcast %cst_51 : f32 to vector<4x128xf32>
    %152 = arith.addf %151, %150 : vector<4x128xf32>
    %153 = arith.divf %151, %152 : vector<4x128xf32>
    %154 = vector.extract_strided_slice %116 {offsets = [0, 256], sizes = [4, 128], strides = [1, 1]} : vector<4x512xf32> to vector<4x128xf32>
    %155 = math.tanh %154 : vector<4x128xf32>
    %156 = vector.extract_strided_slice %116 {offsets = [0, 384], sizes = [4, 128], strides = [1, 1]} : vector<4x512xf32> to vector<4x128xf32>
    %157 = arith.negf %156 : vector<4x128xf32>
    %158 = math.exp %157 : vector<4x128xf32>
    %cst_52 = arith.constant 1.000000e+00 : f32
    %159 = vector.broadcast %cst_52 : f32 to vector<4x128xf32>
    %160 = arith.addf %159, %158 : vector<4x128xf32>
    %161 = arith.divf %159, %160 : vector<4x128xf32>
    %162 = arith.mulf %153, %104 : vector<4x128xf32>
    %163 = arith.mulf %147, %155 : vector<4x128xf32>
    %164 = arith.addf %162, %163 : vector<4x128xf32>
    %165 = math.tanh %164 : vector<4x128xf32>
    %166 = arith.mulf %161, %165 : vector<4x128xf32>
    %167 = tpu.concatenate %141, %166 in 1 : vector<4x128xf32>, vector<4x128xf32> -> vector<4x256xf32>
    %168 = arith.truncf %167 : vector<4x256xf32> to vector<4x256xbf16>
    %cst_53 = arith.constant dense<0.000000e+00> : vector<4x1024xf32>
    %169 = tpu.matmul %168, %100, %cst_53 {dimension_numbers = #tpu.dot_dimension_numbers<[1], [0], [0], [1], [0, 0, 1, 1], [], []>} : vector<4x256xbf16>, vector<256x1024xbf16>, vector<4x1024xf32> -> vector<4x1024xf32>
    %170 = vector.broadcast %101 : vector<1x1024xf32> to vector<4x1024xf32>
    %171 = arith.addf %169, %170 : vector<4x1024xf32>
    %172 = vector.extract_strided_slice %171 {offsets = [0, 0], sizes = [4, 512], strides = [1, 1]} : vector<4x1024xf32> to vector<4x512xf32>
    %173 = vector.extract_strided_slice %99 {offsets = [0, 1, 0], sizes = [4, 1, 512], strides = [1, 1, 1]} : vector<4x8x1024xf32> to vector<4x1x512xf32>
    %174 = vector.shape_cast %173 : vector<4x1x512xf32> to vector<4x512xf32>
    %175 = arith.addf %172, %174 : vector<4x512xf32>
    %176 = vector.extract_strided_slice %171 {offsets = [0, 512], sizes = [4, 512], strides = [1, 1]} : vector<4x1024xf32> to vector<4x512xf32>
    %177 = vector.extract_strided_slice %99 {offsets = [0, 6, 512], sizes = [4, 1, 512], strides = [1, 1, 1]} : vector<4x8x1024xf32> to vector<4x1x512xf32>
    %178 = vector.shape_cast %177 : vector<4x1x512xf32> to vector<4x512xf32>
    %179 = arith.addf %176, %178 : vector<4x512xf32>
    %180 = vector.extract_strided_slice %175 {offsets = [0, 0], sizes = [4, 128], strides = [1, 1]} : vector<4x512xf32> to vector<4x128xf32>
    %181 = arith.negf %180 : vector<4x128xf32>
    %182 = math.exp %181 : vector<4x128xf32>
    %cst_54 = arith.constant 1.000000e+00 : f32
    %183 = vector.broadcast %cst_54 : f32 to vector<4x128xf32>
    %184 = arith.addf %183, %182 : vector<4x128xf32>
    %185 = arith.divf %183, %184 : vector<4x128xf32>
    %186 = vector.extract_strided_slice %175 {offsets = [0, 128], sizes = [4, 128], strides = [1, 1]} : vector<4x512xf32> to vector<4x128xf32>
    %187 = arith.negf %186 : vector<4x128xf32>
    %188 = math.exp %187 : vector<4x128xf32>
    %cst_55 = arith.constant 1.000000e+00 : f32
    %189 = vector.broadcast %cst_55 : f32 to vector<4x128xf32>
    %190 = arith.addf %189, %188 : vector<4x128xf32>
    %191 = arith.divf %189, %190 : vector<4x128xf32>
    %192 = vector.extract_strided_slice %175 {offsets = [0, 256], sizes = [4, 128], strides = [1, 1]} : vector<4x512xf32> to vector<4x128xf32>
    %193 = math.tanh %192 : vector<4x128xf32>
    %194 = vector.extract_strided_slice %175 {offsets = [0, 384], sizes = [4, 128], strides = [1, 1]} : vector<4x512xf32> to vector<4x128xf32>
    %195 = arith.negf %194 : vector<4x128xf32>
    %196 = math.exp %195 : vector<4x128xf32>
    %cst_56 = arith.constant 1.000000e+00 : f32
    %197 = vector.broadcast %cst_56 : f32 to vector<4x128xf32>
    %198 = arith.addf %197, %196 : vector<4x128xf32>
    %199 = arith.divf %197, %198 : vector<4x128xf32>
    %200 = arith.mulf %191, %139 : vector<4x128xf32>
    %201 = arith.mulf %185, %193 : vector<4x128xf32>
    %202 = arith.addf %200, %201 : vector<4x128xf32>
    %203 = math.tanh %202 : vector<4x128xf32>
    %204 = arith.mulf %199, %203 : vector<4x128xf32>
    %205 = vector.extract_strided_slice %179 {offsets = [0, 0], sizes = [4, 128], strides = [1, 1]} : vector<4x512xf32> to vector<4x128xf32>
    %206 = arith.negf %205 : vector<4x128xf32>
    %207 = math.exp %206 : vector<4x128xf32>
    %cst_57 = arith.constant 1.000000e+00 : f32
    %208 = vector.broadcast %cst_57 : f32 to vector<4x128xf32>
    %209 = arith.addf %208, %207 : vector<4x128xf32>
    %210 = arith.divf %208, %209 : vector<4x128xf32>
    %211 = vector.extract_strided_slice %179 {offsets = [0, 128], sizes = [4, 128], strides = [1, 1]} : vector<4x512xf32> to vector<4x128xf32>
    %212 = arith.negf %211 : vector<4x128xf32>
    %213 = math.exp %212 : vector<4x128xf32>
    %cst_58 = arith.constant 1.000000e+00 : f32
    %214 = vector.broadcast %cst_58 : f32 to vector<4x128xf32>
    %215 = arith.addf %214, %213 : vector<4x128xf32>
    %216 = arith.divf %214, %215 : vector<4x128xf32>
    %217 = vector.extract_strided_slice %179 {offsets = [0, 256], sizes = [4, 128], strides = [1, 1]} : vector<4x512xf32> to vector<4x128xf32>
    %218 = math.tanh %217 : vector<4x128xf32>
    %219 = vector.extract_strided_slice %179 {offsets = [0, 384], sizes = [4, 128], strides = [1, 1]} : vector<4x512xf32> to vector<4x128xf32>
    %220 = arith.negf %219 : vector<4x128xf32>
    %221 = math.exp %220 : vector<4x128xf32>
    %cst_59 = arith.constant 1.000000e+00 : f32
    %222 = vector.broadcast %cst_59 : f32 to vector<4x128xf32>
    %223 = arith.addf %222, %221 : vector<4x128xf32>
    %224 = arith.divf %222, %223 : vector<4x128xf32>
    %225 = arith.mulf %216, %164 : vector<4x128xf32>
    %226 = arith.mulf %210, %218 : vector<4x128xf32>
    %227 = arith.addf %225, %226 : vector<4x128xf32>
    %228 = math.tanh %227 : vector<4x128xf32>
    %229 = arith.mulf %224, %228 : vector<4x128xf32>
    %230 = tpu.concatenate %204, %229 in 1 : vector<4x128xf32>, vector<4x128xf32> -> vector<4x256xf32>
    %231 = arith.truncf %230 : vector<4x256xf32> to vector<4x256xbf16>
    %cst_60 = arith.constant dense<0.000000e+00> : vector<4x1024xf32>
    %232 = tpu.matmul %231, %100, %cst_60 {dimension_numbers = #tpu.dot_dimension_numbers<[1], [0], [0], [1], [0, 0, 1, 1], [], []>} : vector<4x256xbf16>, vector<256x1024xbf16>, vector<4x1024xf32> -> vector<4x1024xf32>
    %233 = vector.broadcast %101 : vector<1x1024xf32> to vector<4x1024xf32>
    %234 = arith.addf %232, %233 : vector<4x1024xf32>
    %235 = vector.extract_strided_slice %234 {offsets = [0, 0], sizes = [4, 512], strides = [1, 1]} : vector<4x1024xf32> to vector<4x512xf32>
    %236 = vector.extract_strided_slice %99 {offsets = [0, 2, 0], sizes = [4, 1, 512], strides = [1, 1, 1]} : vector<4x8x1024xf32> to vector<4x1x512xf32>
    %237 = vector.shape_cast %236 : vector<4x1x512xf32> to vector<4x512xf32>
    %238 = arith.addf %235, %237 : vector<4x512xf32>
    %239 = vector.extract_strided_slice %234 {offsets = [0, 512], sizes = [4, 512], strides = [1, 1]} : vector<4x1024xf32> to vector<4x512xf32>
    %240 = vector.extract_strided_slice %99 {offsets = [0, 5, 512], sizes = [4, 1, 512], strides = [1, 1, 1]} : vector<4x8x1024xf32> to vector<4x1x512xf32>
    %241 = vector.shape_cast %240 : vector<4x1x512xf32> to vector<4x512xf32>
    %242 = arith.addf %239, %241 : vector<4x512xf32>
    %243 = vector.extract_strided_slice %238 {offsets = [0, 0], sizes = [4, 128], strides = [1, 1]} : vector<4x512xf32> to vector<4x128xf32>
    %244 = arith.negf %243 : vector<4x128xf32>
    %245 = math.exp %244 : vector<4x128xf32>
    %cst_61 = arith.constant 1.000000e+00 : f32
    %246 = vector.broadcast %cst_61 : f32 to vector<4x128xf32>
    %247 = arith.addf %246, %245 : vector<4x128xf32>
    %248 = arith.divf %246, %247 : vector<4x128xf32>
    %249 = vector.extract_strided_slice %238 {offsets = [0, 128], sizes = [4, 128], strides = [1, 1]} : vector<4x512xf32> to vector<4x128xf32>
    %250 = arith.negf %249 : vector<4x128xf32>
    %251 = math.exp %250 : vector<4x128xf32>
    %cst_62 = arith.constant 1.000000e+00 : f32
    %252 = vector.broadcast %cst_62 : f32 to vector<4x128xf32>
    %253 = arith.addf %252, %251 : vector<4x128xf32>
    %254 = arith.divf %252, %253 : vector<4x128xf32>
    %255 = vector.extract_strided_slice %238 {offsets = [0, 256], sizes = [4, 128], strides = [1, 1]} : vector<4x512xf32> to vector<4x128xf32>
    %256 = math.tanh %255 : vector<4x128xf32>
    %257 = vector.extract_strided_slice %238 {offsets = [0, 384], sizes = [4, 128], strides = [1, 1]} : vector<4x512xf32> to vector<4x128xf32>
    %258 = arith.negf %257 : vector<4x128xf32>
    %259 = math.exp %258 : vector<4x128xf32>
    %cst_63 = arith.constant 1.000000e+00 : f32
    %260 = vector.broadcast %cst_63 : f32 to vector<4x128xf32>
    %261 = arith.addf %260, %259 : vector<4x128xf32>
    %262 = arith.divf %260, %261 : vector<4x128xf32>
    %263 = arith.mulf %254, %202 : vector<4x128xf32>
    %264 = arith.mulf %248, %256 : vector<4x128xf32>
    %265 = arith.addf %263, %264 : vector<4x128xf32>
    %266 = math.tanh %265 : vector<4x128xf32>
    %267 = arith.mulf %262, %266 : vector<4x128xf32>
    %268 = vector.extract_strided_slice %242 {offsets = [0, 0], sizes = [4, 128], strides = [1, 1]} : vector<4x512xf32> to vector<4x128xf32>
    %269 = arith.negf %268 : vector<4x128xf32>
    %270 = math.exp %269 : vector<4x128xf32>
    %cst_64 = arith.constant 1.000000e+00 : f32
    %271 = vector.broadcast %cst_64 : f32 to vector<4x128xf32>
    %272 = arith.addf %271, %270 : vector<4x128xf32>
    %273 = arith.divf %271, %272 : vector<4x128xf32>
    %274 = vector.extract_strided_slice %242 {offsets = [0, 128], sizes = [4, 128], strides = [1, 1]} : vector<4x512xf32> to vector<4x128xf32>
    %275 = arith.negf %274 : vector<4x128xf32>
    %276 = math.exp %275 : vector<4x128xf32>
    %cst_65 = arith.constant 1.000000e+00 : f32
    %277 = vector.broadcast %cst_65 : f32 to vector<4x128xf32>
    %278 = arith.addf %277, %276 : vector<4x128xf32>
    %279 = arith.divf %277, %278 : vector<4x128xf32>
    %280 = vector.extract_strided_slice %242 {offsets = [0, 256], sizes = [4, 128], strides = [1, 1]} : vector<4x512xf32> to vector<4x128xf32>
    %281 = math.tanh %280 : vector<4x128xf32>
    %282 = vector.extract_strided_slice %242 {offsets = [0, 384], sizes = [4, 128], strides = [1, 1]} : vector<4x512xf32> to vector<4x128xf32>
    %283 = arith.negf %282 : vector<4x128xf32>
    %284 = math.exp %283 : vector<4x128xf32>
    %cst_66 = arith.constant 1.000000e+00 : f32
    %285 = vector.broadcast %cst_66 : f32 to vector<4x128xf32>
    %286 = arith.addf %285, %284 : vector<4x128xf32>
    %287 = arith.divf %285, %286 : vector<4x128xf32>
    %288 = arith.mulf %279, %227 : vector<4x128xf32>
    %289 = arith.mulf %273, %281 : vector<4x128xf32>
    %290 = arith.addf %288, %289 : vector<4x128xf32>
    %291 = math.tanh %290 : vector<4x128xf32>
    %292 = arith.mulf %287, %291 : vector<4x128xf32>
    %293 = tpu.concatenate %267, %292 in 1 : vector<4x128xf32>, vector<4x128xf32> -> vector<4x256xf32>
    %294 = arith.truncf %293 : vector<4x256xf32> to vector<4x256xbf16>
    %cst_67 = arith.constant dense<0.000000e+00> : vector<4x1024xf32>
    %295 = tpu.matmul %294, %100, %cst_67 {dimension_numbers = #tpu.dot_dimension_numbers<[1], [0], [0], [1], [0, 0, 1, 1], [], []>} : vector<4x256xbf16>, vector<256x1024xbf16>, vector<4x1024xf32> -> vector<4x1024xf32>
    %296 = vector.broadcast %101 : vector<1x1024xf32> to vector<4x1024xf32>
    %297 = arith.addf %295, %296 : vector<4x1024xf32>
    %298 = vector.extract_strided_slice %297 {offsets = [0, 0], sizes = [4, 512], strides = [1, 1]} : vector<4x1024xf32> to vector<4x512xf32>
    %299 = vector.extract_strided_slice %99 {offsets = [0, 3, 0], sizes = [4, 1, 512], strides = [1, 1, 1]} : vector<4x8x1024xf32> to vector<4x1x512xf32>
    %300 = vector.shape_cast %299 : vector<4x1x512xf32> to vector<4x512xf32>
    %301 = arith.addf %298, %300 : vector<4x512xf32>
    %302 = vector.extract_strided_slice %297 {offsets = [0, 512], sizes = [4, 512], strides = [1, 1]} : vector<4x1024xf32> to vector<4x512xf32>
    %303 = vector.extract_strided_slice %99 {offsets = [0, 4, 512], sizes = [4, 1, 512], strides = [1, 1, 1]} : vector<4x8x1024xf32> to vector<4x1x512xf32>
    %304 = vector.shape_cast %303 : vector<4x1x512xf32> to vector<4x512xf32>
    %305 = arith.addf %302, %304 : vector<4x512xf32>
    %306 = vector.extract_strided_slice %301 {offsets = [0, 0], sizes = [4, 128], strides = [1, 1]} : vector<4x512xf32> to vector<4x128xf32>
    %307 = arith.negf %306 : vector<4x128xf32>
    %308 = math.exp %307 : vector<4x128xf32>
    %cst_68 = arith.constant 1.000000e+00 : f32
    %309 = vector.broadcast %cst_68 : f32 to vector<4x128xf32>
    %310 = arith.addf %309, %308 : vector<4x128xf32>
    %311 = arith.divf %309, %310 : vector<4x128xf32>
    %312 = vector.extract_strided_slice %301 {offsets = [0, 128], sizes = [4, 128], strides = [1, 1]} : vector<4x512xf32> to vector<4x128xf32>
    %313 = arith.negf %312 : vector<4x128xf32>
    %314 = math.exp %313 : vector<4x128xf32>
    %cst_69 = arith.constant 1.000000e+00 : f32
    %315 = vector.broadcast %cst_69 : f32 to vector<4x128xf32>
    %316 = arith.addf %315, %314 : vector<4x128xf32>
    %317 = arith.divf %315, %316 : vector<4x128xf32>
    %318 = vector.extract_strided_slice %301 {offsets = [0, 256], sizes = [4, 128], strides = [1, 1]} : vector<4x512xf32> to vector<4x128xf32>
    %319 = math.tanh %318 : vector<4x128xf32>
    %320 = vector.extract_strided_slice %301 {offsets = [0, 384], sizes = [4, 128], strides = [1, 1]} : vector<4x512xf32> to vector<4x128xf32>
    %321 = arith.negf %320 : vector<4x128xf32>
    %322 = math.exp %321 : vector<4x128xf32>
    %cst_70 = arith.constant 1.000000e+00 : f32
    %323 = vector.broadcast %cst_70 : f32 to vector<4x128xf32>
    %324 = arith.addf %323, %322 : vector<4x128xf32>
    %325 = arith.divf %323, %324 : vector<4x128xf32>
    %326 = arith.mulf %317, %265 : vector<4x128xf32>
    %327 = arith.mulf %311, %319 : vector<4x128xf32>
    %328 = arith.addf %326, %327 : vector<4x128xf32>
    %329 = math.tanh %328 : vector<4x128xf32>
    %330 = arith.mulf %325, %329 : vector<4x128xf32>
    %331 = vector.extract_strided_slice %305 {offsets = [0, 0], sizes = [4, 128], strides = [1, 1]} : vector<4x512xf32> to vector<4x128xf32>
    %332 = arith.negf %331 : vector<4x128xf32>
    %333 = math.exp %332 : vector<4x128xf32>
    %cst_71 = arith.constant 1.000000e+00 : f32
    %334 = vector.broadcast %cst_71 : f32 to vector<4x128xf32>
    %335 = arith.addf %334, %333 : vector<4x128xf32>
    %336 = arith.divf %334, %335 : vector<4x128xf32>
    %337 = vector.extract_strided_slice %305 {offsets = [0, 128], sizes = [4, 128], strides = [1, 1]} : vector<4x512xf32> to vector<4x128xf32>
    %338 = arith.negf %337 : vector<4x128xf32>
    %339 = math.exp %338 : vector<4x128xf32>
    %cst_72 = arith.constant 1.000000e+00 : f32
    %340 = vector.broadcast %cst_72 : f32 to vector<4x128xf32>
    %341 = arith.addf %340, %339 : vector<4x128xf32>
    %342 = arith.divf %340, %341 : vector<4x128xf32>
    %343 = vector.extract_strided_slice %305 {offsets = [0, 256], sizes = [4, 128], strides = [1, 1]} : vector<4x512xf32> to vector<4x128xf32>
    %344 = math.tanh %343 : vector<4x128xf32>
    %345 = vector.extract_strided_slice %305 {offsets = [0, 384], sizes = [4, 128], strides = [1, 1]} : vector<4x512xf32> to vector<4x128xf32>
    %346 = arith.negf %345 : vector<4x128xf32>
    %347 = math.exp %346 : vector<4x128xf32>
    %cst_73 = arith.constant 1.000000e+00 : f32
    %348 = vector.broadcast %cst_73 : f32 to vector<4x128xf32>
    %349 = arith.addf %348, %347 : vector<4x128xf32>
    %350 = arith.divf %348, %349 : vector<4x128xf32>
    %351 = arith.mulf %342, %290 : vector<4x128xf32>
    %352 = arith.mulf %336, %344 : vector<4x128xf32>
    %353 = arith.addf %351, %352 : vector<4x128xf32>
    %354 = math.tanh %353 : vector<4x128xf32>
    %355 = arith.mulf %350, %354 : vector<4x128xf32>
    %356 = tpu.concatenate %330, %355 in 1 : vector<4x128xf32>, vector<4x128xf32> -> vector<4x256xf32>
    %357 = arith.truncf %356 : vector<4x256xf32> to vector<4x256xbf16>
    %cst_74 = arith.constant dense<0.000000e+00> : vector<4x1024xf32>
    %358 = tpu.matmul %357, %100, %cst_74 {dimension_numbers = #tpu.dot_dimension_numbers<[1], [0], [0], [1], [0, 0, 1, 1], [], []>} : vector<4x256xbf16>, vector<256x1024xbf16>, vector<4x1024xf32> -> vector<4x1024xf32>
    %359 = vector.broadcast %101 : vector<1x1024xf32> to vector<4x1024xf32>
    %360 = arith.addf %358, %359 : vector<4x1024xf32>
    %361 = vector.extract_strided_slice %360 {offsets = [0, 0], sizes = [4, 512], strides = [1, 1]} : vector<4x1024xf32> to vector<4x512xf32>
    %362 = vector.extract_strided_slice %99 {offsets = [0, 4, 0], sizes = [4, 1, 512], strides = [1, 1, 1]} : vector<4x8x1024xf32> to vector<4x1x512xf32>
    %363 = vector.shape_cast %362 : vector<4x1x512xf32> to vector<4x512xf32>
    %364 = arith.addf %361, %363 : vector<4x512xf32>
    %365 = vector.extract_strided_slice %360 {offsets = [0, 512], sizes = [4, 512], strides = [1, 1]} : vector<4x1024xf32> to vector<4x512xf32>
    %366 = vector.extract_strided_slice %99 {offsets = [0, 3, 512], sizes = [4, 1, 512], strides = [1, 1, 1]} : vector<4x8x1024xf32> to vector<4x1x512xf32>
    %367 = vector.shape_cast %366 : vector<4x1x512xf32> to vector<4x512xf32>
    %368 = arith.addf %365, %367 : vector<4x512xf32>
    %369 = vector.extract_strided_slice %364 {offsets = [0, 0], sizes = [4, 128], strides = [1, 1]} : vector<4x512xf32> to vector<4x128xf32>
    %370 = arith.negf %369 : vector<4x128xf32>
    %371 = math.exp %370 : vector<4x128xf32>
    %cst_75 = arith.constant 1.000000e+00 : f32
    %372 = vector.broadcast %cst_75 : f32 to vector<4x128xf32>
    %373 = arith.addf %372, %371 : vector<4x128xf32>
    %374 = arith.divf %372, %373 : vector<4x128xf32>
    %375 = vector.extract_strided_slice %364 {offsets = [0, 128], sizes = [4, 128], strides = [1, 1]} : vector<4x512xf32> to vector<4x128xf32>
    %376 = arith.negf %375 : vector<4x128xf32>
    %377 = math.exp %376 : vector<4x128xf32>
    %cst_76 = arith.constant 1.000000e+00 : f32
    %378 = vector.broadcast %cst_76 : f32 to vector<4x128xf32>
    %379 = arith.addf %378, %377 : vector<4x128xf32>
    %380 = arith.divf %378, %379 : vector<4x128xf32>
    %381 = vector.extract_strided_slice %364 {offsets = [0, 256], sizes = [4, 128], strides = [1, 1]} : vector<4x512xf32> to vector<4x128xf32>
    %382 = math.tanh %381 : vector<4x128xf32>
    %383 = vector.extract_strided_slice %364 {offsets = [0, 384], sizes = [4, 128], strides = [1, 1]} : vector<4x512xf32> to vector<4x128xf32>
    %384 = arith.negf %383 : vector<4x128xf32>
    %385 = math.exp %384 : vector<4x128xf32>
    %cst_77 = arith.constant 1.000000e+00 : f32
    %386 = vector.broadcast %cst_77 : f32 to vector<4x128xf32>
    %387 = arith.addf %386, %385 : vector<4x128xf32>
    %388 = arith.divf %386, %387 : vector<4x128xf32>
    %389 = arith.mulf %380, %328 : vector<4x128xf32>
    %390 = arith.mulf %374, %382 : vector<4x128xf32>
    %391 = arith.addf %389, %390 : vector<4x128xf32>
    %392 = math.tanh %391 : vector<4x128xf32>
    %393 = arith.mulf %388, %392 : vector<4x128xf32>
    %394 = vector.extract_strided_slice %368 {offsets = [0, 0], sizes = [4, 128], strides = [1, 1]} : vector<4x512xf32> to vector<4x128xf32>
    %395 = arith.negf %394 : vector<4x128xf32>
    %396 = math.exp %395 : vector<4x128xf32>
    %cst_78 = arith.constant 1.000000e+00 : f32
    %397 = vector.broadcast %cst_78 : f32 to vector<4x128xf32>
    %398 = arith.addf %397, %396 : vector<4x128xf32>
    %399 = arith.divf %397, %398 : vector<4x128xf32>
    %400 = vector.extract_strided_slice %368 {offsets = [0, 128], sizes = [4, 128], strides = [1, 1]} : vector<4x512xf32> to vector<4x128xf32>
    %401 = arith.negf %400 : vector<4x128xf32>
    %402 = math.exp %401 : vector<4x128xf32>
    %cst_79 = arith.constant 1.000000e+00 : f32
    %403 = vector.broadcast %cst_79 : f32 to vector<4x128xf32>
    %404 = arith.addf %403, %402 : vector<4x128xf32>
    %405 = arith.divf %403, %404 : vector<4x128xf32>
    %406 = vector.extract_strided_slice %368 {offsets = [0, 256], sizes = [4, 128], strides = [1, 1]} : vector<4x512xf32> to vector<4x128xf32>
    %407 = math.tanh %406 : vector<4x128xf32>
    %408 = vector.extract_strided_slice %368 {offsets = [0, 384], sizes = [4, 128], strides = [1, 1]} : vector<4x512xf32> to vector<4x128xf32>
    %409 = arith.negf %408 : vector<4x128xf32>
    %410 = math.exp %409 : vector<4x128xf32>
    %cst_80 = arith.constant 1.000000e+00 : f32
    %411 = vector.broadcast %cst_80 : f32 to vector<4x128xf32>
    %412 = arith.addf %411, %410 : vector<4x128xf32>
    %413 = arith.divf %411, %412 : vector<4x128xf32>
    %414 = arith.mulf %405, %353 : vector<4x128xf32>
    %415 = arith.mulf %399, %407 : vector<4x128xf32>
    %416 = arith.addf %414, %415 : vector<4x128xf32>
    %417 = math.tanh %416 : vector<4x128xf32>
    %418 = arith.mulf %413, %417 : vector<4x128xf32>
    %419 = tpu.concatenate %393, %418 in 1 : vector<4x128xf32>, vector<4x128xf32> -> vector<4x256xf32>
    %420 = arith.truncf %419 : vector<4x256xf32> to vector<4x256xbf16>
    %cst_81 = arith.constant dense<0.000000e+00> : vector<4x1024xf32>
    %421 = tpu.matmul %420, %100, %cst_81 {dimension_numbers = #tpu.dot_dimension_numbers<[1], [0], [0], [1], [0, 0, 1, 1], [], []>} : vector<4x256xbf16>, vector<256x1024xbf16>, vector<4x1024xf32> -> vector<4x1024xf32>
    %422 = vector.broadcast %101 : vector<1x1024xf32> to vector<4x1024xf32>
    %423 = arith.addf %421, %422 : vector<4x1024xf32>
    %424 = vector.extract_strided_slice %423 {offsets = [0, 0], sizes = [4, 512], strides = [1, 1]} : vector<4x1024xf32> to vector<4x512xf32>
    %425 = vector.extract_strided_slice %99 {offsets = [0, 5, 0], sizes = [4, 1, 512], strides = [1, 1, 1]} : vector<4x8x1024xf32> to vector<4x1x512xf32>
    %426 = vector.shape_cast %425 : vector<4x1x512xf32> to vector<4x512xf32>
    %427 = arith.addf %424, %426 : vector<4x512xf32>
    %428 = vector.extract_strided_slice %423 {offsets = [0, 512], sizes = [4, 512], strides = [1, 1]} : vector<4x1024xf32> to vector<4x512xf32>
    %429 = vector.extract_strided_slice %99 {offsets = [0, 2, 512], sizes = [4, 1, 512], strides = [1, 1, 1]} : vector<4x8x1024xf32> to vector<4x1x512xf32>
    %430 = vector.shape_cast %429 : vector<4x1x512xf32> to vector<4x512xf32>
    %431 = arith.addf %428, %430 : vector<4x512xf32>
    %432 = vector.extract_strided_slice %427 {offsets = [0, 0], sizes = [4, 128], strides = [1, 1]} : vector<4x512xf32> to vector<4x128xf32>
    %433 = arith.negf %432 : vector<4x128xf32>
    %434 = math.exp %433 : vector<4x128xf32>
    %cst_82 = arith.constant 1.000000e+00 : f32
    %435 = vector.broadcast %cst_82 : f32 to vector<4x128xf32>
    %436 = arith.addf %435, %434 : vector<4x128xf32>
    %437 = arith.divf %435, %436 : vector<4x128xf32>
    %438 = vector.extract_strided_slice %427 {offsets = [0, 128], sizes = [4, 128], strides = [1, 1]} : vector<4x512xf32> to vector<4x128xf32>
    %439 = arith.negf %438 : vector<4x128xf32>
    %440 = math.exp %439 : vector<4x128xf32>
    %cst_83 = arith.constant 1.000000e+00 : f32
    %441 = vector.broadcast %cst_83 : f32 to vector<4x128xf32>
    %442 = arith.addf %441, %440 : vector<4x128xf32>
    %443 = arith.divf %441, %442 : vector<4x128xf32>
    %444 = vector.extract_strided_slice %427 {offsets = [0, 256], sizes = [4, 128], strides = [1, 1]} : vector<4x512xf32> to vector<4x128xf32>
    %445 = math.tanh %444 : vector<4x128xf32>
    %446 = vector.extract_strided_slice %427 {offsets = [0, 384], sizes = [4, 128], strides = [1, 1]} : vector<4x512xf32> to vector<4x128xf32>
    %447 = arith.negf %446 : vector<4x128xf32>
    %448 = math.exp %447 : vector<4x128xf32>
    %cst_84 = arith.constant 1.000000e+00 : f32
    %449 = vector.broadcast %cst_84 : f32 to vector<4x128xf32>
    %450 = arith.addf %449, %448 : vector<4x128xf32>
    %451 = arith.divf %449, %450 : vector<4x128xf32>
    %452 = arith.mulf %443, %391 : vector<4x128xf32>
    %453 = arith.mulf %437, %445 : vector<4x128xf32>
    %454 = arith.addf %452, %453 : vector<4x128xf32>
    %455 = math.tanh %454 : vector<4x128xf32>
    %456 = arith.mulf %451, %455 : vector<4x128xf32>
    %457 = vector.extract_strided_slice %431 {offsets = [0, 0], sizes = [4, 128], strides = [1, 1]} : vector<4x512xf32> to vector<4x128xf32>
    %458 = arith.negf %457 : vector<4x128xf32>
    %459 = math.exp %458 : vector<4x128xf32>
    %cst_85 = arith.constant 1.000000e+00 : f32
    %460 = vector.broadcast %cst_85 : f32 to vector<4x128xf32>
    %461 = arith.addf %460, %459 : vector<4x128xf32>
    %462 = arith.divf %460, %461 : vector<4x128xf32>
    %463 = vector.extract_strided_slice %431 {offsets = [0, 128], sizes = [4, 128], strides = [1, 1]} : vector<4x512xf32> to vector<4x128xf32>
    %464 = arith.negf %463 : vector<4x128xf32>
    %465 = math.exp %464 : vector<4x128xf32>
    %cst_86 = arith.constant 1.000000e+00 : f32
    %466 = vector.broadcast %cst_86 : f32 to vector<4x128xf32>
    %467 = arith.addf %466, %465 : vector<4x128xf32>
    %468 = arith.divf %466, %467 : vector<4x128xf32>
    %469 = vector.extract_strided_slice %431 {offsets = [0, 256], sizes = [4, 128], strides = [1, 1]} : vector<4x512xf32> to vector<4x128xf32>
    %470 = math.tanh %469 : vector<4x128xf32>
    %471 = vector.extract_strided_slice %431 {offsets = [0, 384], sizes = [4, 128], strides = [1, 1]} : vector<4x512xf32> to vector<4x128xf32>
    %472 = arith.negf %471 : vector<4x128xf32>
    %473 = math.exp %472 : vector<4x128xf32>
    %cst_87 = arith.constant 1.000000e+00 : f32
    %474 = vector.broadcast %cst_87 : f32 to vector<4x128xf32>
    %475 = arith.addf %474, %473 : vector<4x128xf32>
    %476 = arith.divf %474, %475 : vector<4x128xf32>
    %477 = arith.mulf %468, %416 : vector<4x128xf32>
    %478 = arith.mulf %462, %470 : vector<4x128xf32>
    %479 = arith.addf %477, %478 : vector<4x128xf32>
    %480 = math.tanh %479 : vector<4x128xf32>
    %481 = arith.mulf %476, %480 : vector<4x128xf32>
    %482 = tpu.concatenate %456, %481 in 1 : vector<4x128xf32>, vector<4x128xf32> -> vector<4x256xf32>
    %483 = arith.truncf %482 : vector<4x256xf32> to vector<4x256xbf16>
    %cst_88 = arith.constant dense<0.000000e+00> : vector<4x1024xf32>
    %484 = tpu.matmul %483, %100, %cst_88 {dimension_numbers = #tpu.dot_dimension_numbers<[1], [0], [0], [1], [0, 0, 1, 1], [], []>} : vector<4x256xbf16>, vector<256x1024xbf16>, vector<4x1024xf32> -> vector<4x1024xf32>
    %485 = vector.broadcast %101 : vector<1x1024xf32> to vector<4x1024xf32>
    %486 = arith.addf %484, %485 : vector<4x1024xf32>
    %487 = vector.extract_strided_slice %486 {offsets = [0, 0], sizes = [4, 512], strides = [1, 1]} : vector<4x1024xf32> to vector<4x512xf32>
    %488 = vector.extract_strided_slice %99 {offsets = [0, 6, 0], sizes = [4, 1, 512], strides = [1, 1, 1]} : vector<4x8x1024xf32> to vector<4x1x512xf32>
    %489 = vector.shape_cast %488 : vector<4x1x512xf32> to vector<4x512xf32>
    %490 = arith.addf %487, %489 : vector<4x512xf32>
    %491 = vector.extract_strided_slice %486 {offsets = [0, 512], sizes = [4, 512], strides = [1, 1]} : vector<4x1024xf32> to vector<4x512xf32>
    %492 = vector.extract_strided_slice %99 {offsets = [0, 1, 512], sizes = [4, 1, 512], strides = [1, 1, 1]} : vector<4x8x1024xf32> to vector<4x1x512xf32>
    %493 = vector.shape_cast %492 : vector<4x1x512xf32> to vector<4x512xf32>
    %494 = arith.addf %491, %493 : vector<4x512xf32>
    %495 = vector.extract_strided_slice %490 {offsets = [0, 0], sizes = [4, 128], strides = [1, 1]} : vector<4x512xf32> to vector<4x128xf32>
    %496 = arith.negf %495 : vector<4x128xf32>
    %497 = math.exp %496 : vector<4x128xf32>
    %cst_89 = arith.constant 1.000000e+00 : f32
    %498 = vector.broadcast %cst_89 : f32 to vector<4x128xf32>
    %499 = arith.addf %498, %497 : vector<4x128xf32>
    %500 = arith.divf %498, %499 : vector<4x128xf32>
    %501 = vector.extract_strided_slice %490 {offsets = [0, 128], sizes = [4, 128], strides = [1, 1]} : vector<4x512xf32> to vector<4x128xf32>
    %502 = arith.negf %501 : vector<4x128xf32>
    %503 = math.exp %502 : vector<4x128xf32>
    %cst_90 = arith.constant 1.000000e+00 : f32
    %504 = vector.broadcast %cst_90 : f32 to vector<4x128xf32>
    %505 = arith.addf %504, %503 : vector<4x128xf32>
    %506 = arith.divf %504, %505 : vector<4x128xf32>
    %507 = vector.extract_strided_slice %490 {offsets = [0, 256], sizes = [4, 128], strides = [1, 1]} : vector<4x512xf32> to vector<4x128xf32>
    %508 = math.tanh %507 : vector<4x128xf32>
    %509 = vector.extract_strided_slice %490 {offsets = [0, 384], sizes = [4, 128], strides = [1, 1]} : vector<4x512xf32> to vector<4x128xf32>
    %510 = arith.negf %509 : vector<4x128xf32>
    %511 = math.exp %510 : vector<4x128xf32>
    %cst_91 = arith.constant 1.000000e+00 : f32
    %512 = vector.broadcast %cst_91 : f32 to vector<4x128xf32>
    %513 = arith.addf %512, %511 : vector<4x128xf32>
    %514 = arith.divf %512, %513 : vector<4x128xf32>
    %515 = arith.mulf %506, %454 : vector<4x128xf32>
    %516 = arith.mulf %500, %508 : vector<4x128xf32>
    %517 = arith.addf %515, %516 : vector<4x128xf32>
    %518 = math.tanh %517 : vector<4x128xf32>
    %519 = arith.mulf %514, %518 : vector<4x128xf32>
    %520 = vector.extract_strided_slice %494 {offsets = [0, 0], sizes = [4, 128], strides = [1, 1]} : vector<4x512xf32> to vector<4x128xf32>
    %521 = arith.negf %520 : vector<4x128xf32>
    %522 = math.exp %521 : vector<4x128xf32>
    %cst_92 = arith.constant 1.000000e+00 : f32
    %523 = vector.broadcast %cst_92 : f32 to vector<4x128xf32>
    %524 = arith.addf %523, %522 : vector<4x128xf32>
    %525 = arith.divf %523, %524 : vector<4x128xf32>
    %526 = vector.extract_strided_slice %494 {offsets = [0, 128], sizes = [4, 128], strides = [1, 1]} : vector<4x512xf32> to vector<4x128xf32>
    %527 = arith.negf %526 : vector<4x128xf32>
    %528 = math.exp %527 : vector<4x128xf32>
    %cst_93 = arith.constant 1.000000e+00 : f32
    %529 = vector.broadcast %cst_93 : f32 to vector<4x128xf32>
    %530 = arith.addf %529, %528 : vector<4x128xf32>
    %531 = arith.divf %529, %530 : vector<4x128xf32>
    %532 = vector.extract_strided_slice %494 {offsets = [0, 256], sizes = [4, 128], strides = [1, 1]} : vector<4x512xf32> to vector<4x128xf32>
    %533 = math.tanh %532 : vector<4x128xf32>
    %534 = vector.extract_strided_slice %494 {offsets = [0, 384], sizes = [4, 128], strides = [1, 1]} : vector<4x512xf32> to vector<4x128xf32>
    %535 = arith.negf %534 : vector<4x128xf32>
    %536 = math.exp %535 : vector<4x128xf32>
    %cst_94 = arith.constant 1.000000e+00 : f32
    %537 = vector.broadcast %cst_94 : f32 to vector<4x128xf32>
    %538 = arith.addf %537, %536 : vector<4x128xf32>
    %539 = arith.divf %537, %538 : vector<4x128xf32>
    %540 = arith.mulf %531, %479 : vector<4x128xf32>
    %541 = arith.mulf %525, %533 : vector<4x128xf32>
    %542 = arith.addf %540, %541 : vector<4x128xf32>
    %543 = math.tanh %542 : vector<4x128xf32>
    %544 = arith.mulf %539, %543 : vector<4x128xf32>
    %545 = tpu.concatenate %519, %544 in 1 : vector<4x128xf32>, vector<4x128xf32> -> vector<4x256xf32>
    %546 = arith.truncf %545 : vector<4x256xf32> to vector<4x256xbf16>
    %cst_95 = arith.constant dense<0.000000e+00> : vector<4x1024xf32>
    %547 = tpu.matmul %546, %100, %cst_95 {dimension_numbers = #tpu.dot_dimension_numbers<[1], [0], [0], [1], [0, 0, 1, 1], [], []>} : vector<4x256xbf16>, vector<256x1024xbf16>, vector<4x1024xf32> -> vector<4x1024xf32>
    %548 = vector.broadcast %101 : vector<1x1024xf32> to vector<4x1024xf32>
    %549 = arith.addf %547, %548 : vector<4x1024xf32>
    %550 = vector.extract_strided_slice %549 {offsets = [0, 0], sizes = [4, 512], strides = [1, 1]} : vector<4x1024xf32> to vector<4x512xf32>
    %551 = vector.extract_strided_slice %99 {offsets = [0, 7, 0], sizes = [4, 1, 512], strides = [1, 1, 1]} : vector<4x8x1024xf32> to vector<4x1x512xf32>
    %552 = vector.shape_cast %551 : vector<4x1x512xf32> to vector<4x512xf32>
    %553 = arith.addf %550, %552 : vector<4x512xf32>
    %554 = vector.extract_strided_slice %549 {offsets = [0, 512], sizes = [4, 512], strides = [1, 1]} : vector<4x1024xf32> to vector<4x512xf32>
    %555 = vector.extract_strided_slice %99 {offsets = [0, 0, 512], sizes = [4, 1, 512], strides = [1, 1, 1]} : vector<4x8x1024xf32> to vector<4x1x512xf32>
    %556 = vector.shape_cast %555 : vector<4x1x512xf32> to vector<4x512xf32>
    %557 = arith.addf %554, %556 : vector<4x512xf32>
    %558 = vector.extract_strided_slice %553 {offsets = [0, 0], sizes = [4, 128], strides = [1, 1]} : vector<4x512xf32> to vector<4x128xf32>
    %559 = arith.negf %558 : vector<4x128xf32>
    %560 = math.exp %559 : vector<4x128xf32>
    %cst_96 = arith.constant 1.000000e+00 : f32
    %561 = vector.broadcast %cst_96 : f32 to vector<4x128xf32>
    %562 = arith.addf %561, %560 : vector<4x128xf32>
    %563 = arith.divf %561, %562 : vector<4x128xf32>
    %564 = vector.extract_strided_slice %553 {offsets = [0, 128], sizes = [4, 128], strides = [1, 1]} : vector<4x512xf32> to vector<4x128xf32>
    %565 = arith.negf %564 : vector<4x128xf32>
    %566 = math.exp %565 : vector<4x128xf32>
    %cst_97 = arith.constant 1.000000e+00 : f32
    %567 = vector.broadcast %cst_97 : f32 to vector<4x128xf32>
    %568 = arith.addf %567, %566 : vector<4x128xf32>
    %569 = arith.divf %567, %568 : vector<4x128xf32>
    %570 = vector.extract_strided_slice %553 {offsets = [0, 256], sizes = [4, 128], strides = [1, 1]} : vector<4x512xf32> to vector<4x128xf32>
    %571 = math.tanh %570 : vector<4x128xf32>
    %572 = vector.extract_strided_slice %553 {offsets = [0, 384], sizes = [4, 128], strides = [1, 1]} : vector<4x512xf32> to vector<4x128xf32>
    %573 = arith.negf %572 : vector<4x128xf32>
    %574 = math.exp %573 : vector<4x128xf32>
    %cst_98 = arith.constant 1.000000e+00 : f32
    %575 = vector.broadcast %cst_98 : f32 to vector<4x128xf32>
    %576 = arith.addf %575, %574 : vector<4x128xf32>
    %577 = arith.divf %575, %576 : vector<4x128xf32>
    %578 = arith.mulf %569, %517 : vector<4x128xf32>
    %579 = arith.mulf %563, %571 : vector<4x128xf32>
    %580 = arith.addf %578, %579 : vector<4x128xf32>
    %581 = math.tanh %580 : vector<4x128xf32>
    %582 = arith.mulf %577, %581 : vector<4x128xf32>
    %583 = vector.extract_strided_slice %557 {offsets = [0, 0], sizes = [4, 128], strides = [1, 1]} : vector<4x512xf32> to vector<4x128xf32>
    %584 = arith.negf %583 : vector<4x128xf32>
    %585 = math.exp %584 : vector<4x128xf32>
    %cst_99 = arith.constant 1.000000e+00 : f32
    %586 = vector.broadcast %cst_99 : f32 to vector<4x128xf32>
    %587 = arith.addf %586, %585 : vector<4x128xf32>
    %588 = arith.divf %586, %587 : vector<4x128xf32>
    %589 = vector.extract_strided_slice %557 {offsets = [0, 128], sizes = [4, 128], strides = [1, 1]} : vector<4x512xf32> to vector<4x128xf32>
    %590 = arith.negf %589 : vector<4x128xf32>
    %591 = math.exp %590 : vector<4x128xf32>
    %cst_100 = arith.constant 1.000000e+00 : f32
    %592 = vector.broadcast %cst_100 : f32 to vector<4x128xf32>
    %593 = arith.addf %592, %591 : vector<4x128xf32>
    %594 = arith.divf %592, %593 : vector<4x128xf32>
    %595 = vector.extract_strided_slice %557 {offsets = [0, 256], sizes = [4, 128], strides = [1, 1]} : vector<4x512xf32> to vector<4x128xf32>
    %596 = math.tanh %595 : vector<4x128xf32>
    %597 = vector.extract_strided_slice %557 {offsets = [0, 384], sizes = [4, 128], strides = [1, 1]} : vector<4x512xf32> to vector<4x128xf32>
    %598 = arith.negf %597 : vector<4x128xf32>
    %599 = math.exp %598 : vector<4x128xf32>
    %cst_101 = arith.constant 1.000000e+00 : f32
    %600 = vector.broadcast %cst_101 : f32 to vector<4x128xf32>
    %601 = arith.addf %600, %599 : vector<4x128xf32>
    %602 = arith.divf %600, %601 : vector<4x128xf32>
    %603 = arith.mulf %594, %542 : vector<4x128xf32>
    %604 = arith.mulf %588, %596 : vector<4x128xf32>
    %605 = arith.addf %603, %604 : vector<4x128xf32>
    %606 = math.tanh %605 : vector<4x128xf32>
    %607 = arith.mulf %602, %606 : vector<4x128xf32>
    %608 = tpu.concatenate %582, %607 in 1 : vector<4x128xf32>, vector<4x128xf32> -> vector<4x256xf32>
    %609 = vector.extract_strided_slice %608 {offsets = [0, 0], sizes = [2, 256], strides = [1, 1]} : vector<4x256xf32> to vector<2x256xf32>
    %610 = vector.extract_strided_slice %608 {offsets = [2, 0], sizes = [2, 256], strides = [1, 1]} : vector<4x256xf32> to vector<2x256xf32>
    %611 = arith.mulf %609, %610 : vector<2x256xf32>
    %cst_102 = arith.constant dense<0.000000e+00> : vector<2xf32>
    %612 = vector.multi_reduction <add>, %611, %cst_102 [1] : vector<2x256xf32> to vector<2xf32>
    %613 = vector.shape_cast %612 : vector<2xf32> to vector<2x1xf32>
    %614 = arith.mulf %609, %609 : vector<2x256xf32>
    %cst_103 = arith.constant dense<0.000000e+00> : vector<2xf32>
    %615 = vector.multi_reduction <add>, %614, %cst_103 [1] : vector<2x256xf32> to vector<2xf32>
    %616 = vector.shape_cast %615 : vector<2xf32> to vector<2x1xf32>
    %617 = math.sqrt %616 : vector<2x1xf32>
    %cst_104 = arith.constant 9.99999993E-9 : f32
    %618 = vector.broadcast %cst_104 : f32 to vector<2x1xf32>
    %619 = arith.maximumf %617, %618 : vector<2x1xf32>
    %620 = arith.mulf %610, %610 : vector<2x256xf32>
    %cst_105 = arith.constant dense<0.000000e+00> : vector<2xf32>
    %621 = vector.multi_reduction <add>, %620, %cst_105 [1] : vector<2x256xf32> to vector<2xf32>
    %622 = vector.shape_cast %621 : vector<2xf32> to vector<2x1xf32>
    %623 = math.sqrt %622 : vector<2x1xf32>
    %cst_106 = arith.constant 9.99999993E-9 : f32
    %624 = vector.broadcast %cst_106 : f32 to vector<2x1xf32>
    %625 = arith.maximumf %623, %624 : vector<2x1xf32>
    %626 = arith.mulf %619, %625 : vector<2x1xf32>
    %627 = arith.divf %613, %626 : vector<2x1xf32>
    %cst_107 = arith.constant 0.000000e+00 : f32
    %628 = vector.broadcast %cst_107 : f32 to vector<6x1xf32>
    %629 = tpu.concatenate %627, %628 in 0 : vector<2x1xf32>, vector<6x1xf32> -> vector<8x1xf32>
    %630 = vector.shape_cast %629 : vector<8x1xf32> to vector<8x1xf32>
    %631 = vector.broadcast %630 : vector<8x1xf32> to vector<8x128xf32>
    %c0_108 = arith.constant 0 : index
    %c0_109 = arith.constant 0 : index
    %632 = vector.load %arg8[%c0_108, %c0_109] : memref<8x128xf32, #tpu.memory_space<vmem>>, vector<8x128xf32>
    tpu.vector_store %arg8[%c0_108, %c0_109], %631 {strides = array<i32>} : memref<8x128xf32, #tpu.memory_space<vmem>>, vector<8x128xf32>,
    return
  }
}

</mosaic_0001>

<bundles_post_ra>
// kernel: ngmn_forward.1
= control target key start
LH: loop header
LB: loop body
LE: loop exit
PB: predicated region body
PF: predicated region fallthrough
CT: control target
= control target key end

     0   :  { %vm172_vm0 = vcmask 261120   ;;  %v5604_v51 = vmov 0.0   ;;  %vm623_vm1 = vcmask 1043456   ;;  %vm5605_vm2 = vmmov 0   ;;  %s8556_s2 = inlined_call_operand.vmem [shape: bf16[2,128,128], index: 2, kind: input, shape index: {}]   ;;  %s8557_s1 = inlined_call_operand.vmem [shape: f32[4,8,128], index: 1, kind: input, shape index: {}]   ;;  %s8558_s0 = inlined_call_operand.vmem [shape: bf16[32,32], index: 0, kind: input, shape index: {}]   ;;  %s8559_s3 = inlined_call_operand.vmem [shape: f32[2,1,128], index: 3, kind: input, shape index: {}]   ;;  %s8560_s4 = inlined_call_operand.vmem [shape: bf16[128,128], index: 4, kind: input, shape index: {}]   ;;  %s8561_s5 = inlined_call_operand.vmem [shape: bf16[128,1024], index: 5, kind: input, shape index: {}]   ;;  %s8562_s6 = inlined_call_operand.vmem [shape: bf16[256,1024], index: 6, kind: input, shape index: {}]   ;;  %s8563_s7 = inlined_call_operand.vmem [shape: f32[1,1024], index: 7, kind: input, shape index: {}]   ;;  %s8564_s8 = inlined_call_operand.vmem [shape: f32[8,128], index: 8, kind: output, shape index: {}]  }
   0x1   :  { %v5276_v0 = vld [vmem:[%s8556_s2 + $0x38] sm:$0xff]   ;;  %v5277_v1 = vld [vmem:[%s8556_s2 + $0x30] sm:$0xff]   ;;  %v5278_v2 = vld [vmem:[%s8556_s2 + $0x28] sm:$0xff]   ;;  %vm619_vm11 = vcmask 64512  }
   0x2   :  { %5144 = vmatprep.subr.bf16.mxu0 %v5276_v0  ;;  %v5279_v3 = vld [vmem:[%s8556_s2 + $0x20] sm:$0xff]   ;;  %v31_v5 = vld [vmem:[%s8557_s1 + $0x8] sm:$0xff]  ;;  %v5280_v7 = vld [vmem:[%s8556_s2 + $0x18] sm:$0xff]  }
   0x3   :  { %5145 = vmatpush3.bf16.msra.mxu0 %v5276_v0  ;;  %v30_v4 = vld [vmem:[%s8557_s1] sm:$0xff]  ;;  %v5281_v8 = vld [vmem:[%s8556_s2 + $0x10] sm:$0xff]   ;;  %v5282_v9 = vld [vmem:[%s8556_s2 + $0x8] sm:$0xff]  }
   0x4   :  { %5146 = vmatprep.subr.bf16.mxu0 %v5277_v1  ;;  %v51_v6 = vpack.c.bf16 %v31_v5, %v30_v4  ;;  %v5283_v10 = vld [vmem:[%s8556_s2] sm:$0xff]   ;;  %v32_v11 = vld [vmem:[%s8557_s1 + $0x10] sm:$0xff]  ;;  %v33_v12 = vld [vmem:[%s8557_s1 + $0x18] sm:$0xff] }
   0x5   :  { %v52_v13 = vpack.c.bf16 %v33_v12, %v32_v11  ;;  %v5284_v14 = vld [vmem:[%s8558_s0] sm:$0xff]   ;;  %v5286_v21 = vld [vmem:[%s8556_s2 + $0x78] sm:$0xff]   ;;  %v5285_v22 = vld [vmem:[%s8558_s0 + $0x8] sm:$0xff]  }
   0x6   :  { %5160 = vmatprep.mubr.bf16.mxu0 %v51_v6  ;;  %5168 = vmatprep.mubr.msk.bf16.mxu1 %vm172_vm0, %v5284_v14  ;;  %v5287_v23 = vld [vmem:[%s8556_s2 + $0x70] sm:$0xff]   ;;  %v5288_v24 = vld [vmem:[%s8556_s2 + $0x68] sm:$0xff]   ;;  %v5289_v25 = vld [vmem:[%s8556_s2 + $0x60] sm:$0xff]  }
   0x7   :  { %5147 = vmatpush3.bf16.msra.mxu0 %v5277_v1  ;;  %v5290_v26 = vld [vmem:[%s8556_s2 + $0x58] sm:$0xff]   ;;  %v5291_v27 = vld [vmem:[%s8556_s2 + $0x50] sm:$0xff]   ;;  %v5292_v28 = vld [vmem:[%s8556_s2 + $0x48] sm:$0xff]  }
   0x8   :  { %5148 = vmatprep.subr.bf16.mxu0 %v5278_v2  ;;  %v5293_v29 = vld [vmem:[%s8556_s2 + $0x40] sm:$0xff]  }
   0x9   :  { %v4805_v32 = vld [vmem:[%s8559_s3] ss:$0 sm:$0xff]  ;;  %v4835_v52 = vld [vmem:[%s8559_s3 + $0x1] ss:$0 sm:$0xff] }
   0xb   :  { %5149 = vmatpush3.bf16.msra.mxu0 %v5278_v2 }
   0xc   :  { %5150 = vmatprep.subr.bf16.mxu0 %v5279_v3 }
   0xf   :  { %5151 = vmatpush3.bf16.msra.mxu0 %v5279_v3 }
  0x10   :  { %5152 = vmatprep.subr.bf16.mxu0 %v5280_v7 }
  0x13   :  { %5153 = vmatpush3.bf16.msra.mxu0 %v5280_v7 }
  0x14   :  { %5154 = vmatprep.subr.bf16.mxu0 %v5281_v8 }
  0x17   :  { %5155 = vmatpush3.bf16.msra.mxu0 %v5281_v8 }
  0x18   :  { %5156 = vmatprep.subr.bf16.mxu0 %v5282_v9 }
  0x1b   :  { %5157 = vmatpush3.bf16.msra.mxu0 %v5282_v9 }
  0x1c   :  { %5158 = vmatprep.subr.bf16.mxu0 %v5283_v10 }
  0x1f   :  { %5159 = vmatpush3.bf16.msra.mxu0 %v5283_v10 }
  0x20   :  { %5212 = vmatprep.subr.bf16.mxu0 %v5604_v51 }
  0x22   :  { %5161 = vmatmul.mubr.bf16.vlgmr.msra.gmra.mxu0 %v52_v13 }
  0x23   :  { %5214 = vmatprep.mubr.msk.bf16.mxu0 %vm5605_vm2, %v5604_v51 }
  0xe2   :  { %v5162_v15 = vpop.f32.mrf.mxu0 }
  0xe4   :  { %v135_v16 = vpop.f32.mrf.mxu0 }
  0xe6   :  { %v5163_v17 = vpop.f32.mrf.mxu0 }
  0xe7   :  { %v155_v18 = vpack.c.bf16 %v5163_v17, %v5162_v15 }
  0xe8   :  { %v138_v19 = vpop.f32.mrf.mxu0 }
  0xe9   :  { %v154_v20 = vpack.c.bf16 %v138_v19, %v135_v16  ;;  %5164 = vmatprep.subr.bf16.mxu1 %v155_v18 }
  0xea   :  { %5165 = vmatpush3.bf16.msra.mxu1 %v155_v18 }
  0xeb   :  { %5166 = vmatprep.subr.bf16.mxu1 %v154_v20 }
  0xee   :  { %5167 = vmatpush3.bf16.msra.mxu1 %v154_v20 }
  0xef   :  { %5172 = vmatprep.subr.bf16.mxu1 %v5286_v21 }
  0xf1   :  { %5169 = vmatmul.mubr.msk.bf16.vlgmr.msra.gmra.mxu1 %vm172_vm0, %v5285_v22 }
  0xf2   :  { %5173 = vmatpush3.bf16.msra.mxu1 %v5286_v21 }
  0xf3   :  { %5174 = vmatprep.subr.bf16.mxu1 %v5287_v23 }
  0xf6   :  { %5175 = vmatpush3.bf16.msra.mxu1 %v5287_v23 }
  0xf7   :  { %5176 = vmatprep.subr.bf16.mxu1 %v5288_v24 }
  0xfa   :  { %5177 = vmatpush3.bf16.msra.mxu1 %v5288_v24 }
  0xfb   :  { %5178 = vmatprep.subr.bf16.mxu1 %v5289_v25 }
  0xfe   :  { %5179 = vmatpush3.bf16.msra.mxu1 %v5289_v25 }
  0xff   :  { %5180 = vmatprep.subr.bf16.mxu1 %v5290_v26 }
 0x102   :  { %5181 = vmatpush3.bf16.msra.mxu1 %v5290_v26 }
 0x103   :  { %5182 = vmatprep.subr.bf16.mxu1 %v5291_v27 }
 0x106   :  { %5183 = vmatpush3.bf16.msra.mxu1 %v5291_v27 }
 0x107   :  { %5184 = vmatprep.subr.bf16.mxu1 %v5292_v28 }
 0x10a   :  { %5185 = vmatpush3.bf16.msra.mxu1 %v5292_v28 }
 0x10b   :  { %5186 = vmatprep.subr.bf16.mxu1 %v5293_v29 }
 0x10e   :  { %5187 = vmatpush3.bf16.msra.mxu1 %v5293_v29 }
 0x1b1   :  { %v5170_v30 = vpop.f32.mrf.mxu1 }
 0x1b2   :  { %v222_v36 = vadd.f32 %v5170_v30, %v4805_v32 }
 0x1b3   :  { %v213_v31 = vpop.f32.mrf.mxu1 }
 0x1b4   :  { %v214_v34 = vadd.f32 %v4805_v32, %v213_v31  ;;  %v230_v42 = vmax.f32 %v222_v36, 0.0 }
 0x1b5   :  { %v5171_v33 = vpop.f32.mrf.mxu1 }
 0x1b6   :  { %v225_v35 = vadd.f32 %v5171_v33, %v4805_v32  ;;  %v228_v40 = vmax.f32 %v214_v34, 0.0 }
 0x1b7   :  { %v216_v37 = vpop.f32.mrf.mxu1 }
 0x1b8   :  { %v217_v38 = vadd.f32 %v4805_v32, %v216_v37  ;;  %v231_v39 = vmax.f32 %v225_v35, 0.0 }
 0x1ba   :  { %v229_v41 = vmax.f32 %v217_v38, 0.0  ;;  %v252_v44 = vpack.c.bf16 %v231_v39, %v230_v42 }
 0x1bc   :  { %v251_v43 = vpack.c.bf16 %v229_v41, %v228_v40 }
 0x1be   :  { %5188 = vmatprep.mubr.bf16.mxu1 %v251_v43 }
 0x1bf   :  { %5189 = vmatmul.mubr.bf16.vlgmr.msra.gmra.mxu1 %v252_v44 }
 0x1c0   :  { %5196 = vmatprep.mubr.msk.bf16.mxu1 %vm172_vm0, %v5284_v14 }
 0x27f   :  { %v5190_v45 = vpop.f32.mrf.mxu1 }
 0x281   :  { %v335_v46 = vpop.f32.mrf.mxu1 }
 0x283   :  { %v5191_v47 = vpop.f32.mrf.mxu1 }
 0x284   :  { %v351_v48 = vpack.c.bf16 %v5191_v47, %v5190_v45 }
 0x285   :  { %v338_v49 = vpop.f32.mrf.mxu1 }
 0x286   :  { %v350_v50 = vpack.c.bf16 %v338_v49, %v335_v46  ;;  %5192 = vmatprep.subr.bf16.mxu1 %v351_v48 }
 0x287   :  { %5193 = vmatpush3.bf16.msra.mxu1 %v351_v48 }
 0x288   :  { %5194 = vmatprep.subr.bf16.mxu1 %v350_v50 }
 0x28b   :  { %5195 = vmatpush3.bf16.msra.mxu1 %v350_v50 }
 0x28c   :  { %5200 = vmatprep.subr.bf16.mxu1 %v5604_v51 }
 0x28e   :  { %5197 = vmatmul.mubr.msk.bf16.vlgmr.msra.gmra.mxu1 %vm172_vm0, %v5285_v22 }
 0x28f   :  { %5202 = vmatprep.mubr.msk.bf16.mxu1 %vm5605_vm2, %v5604_v51 }
 0x34e   :  { %v5198_v53 = vpop.f32.mrf.mxu1 }
 0x34f   :  { %v401_v54 = vadd.f32 %v5198_v53, %v4835_v52 }
 0x350   :  { %v392_v55 = vpop.f32.mrf.mxu1 }
 0x351   :  { %v5730_v56 = vmax.f32 %v401_v54, 0.0  ;;  %v393_v57 = vadd.f32 %v4835_v52, %v392_v55 }
 0x352   :  { %v5199_v58 = vpop.f32.mrf.mxu1 }
 0x353   :  { %v5732_v59 = vmax.f32 %v393_v57, 0.0  ;;  %v404_v60 = vadd.f32 %v5199_v58, %v4835_v52  ;;  %v5736_v61 = vmul.f32 %v5730_v56, %v5730_v56  ;;  %v617_v62 = vpack.c.bf16 %v5730_v56, %v5730_v56 }
 0x354   :  { %v395_v63 = vpop.f32.mrf.mxu1 }
 0x355   :  { %v5740_v0 = vmax.f32 %v404_v60, 0.0  ;;  %v396_v1 = vadd.f32 %v4835_v52, %v395_v63  ;;  %435 = vadd.xlane.f32.xlu0 %v5736_v61  ;;  %v625_v2 = vsel %vm623_vm1, %v617_v62, 0  ;;  %v5752_v5 = vmul.f32 %v5732_v59, %v5732_v59 }
 0x356   :  { %5213 = vmatpush3.bf16.msra.mxu0 %v625_v2  ;;  %v615_v52 = vpack.c.bf16 %v5732_v59, %v5732_v59 }
 0x357   :  { %v5744_v3 = vmax.f32 %v396_v1, 0.0  ;;  %v5748_v4 = vmul.f32 %v5740_v0, %v5740_v0  ;;  %5224 = vmatprep.subr.bf16.mxu0 %v5604_v51  ;;  %v618_v48 = vpack.c.bf16 %v5740_v0, %v5740_v0 }
 0x358   :  { %v717_v57 = vsel %vm623_vm1, %v615_v52, 0  ;;  %v1090_v52 = vld [vmem:[%s8561_s5 + $0x180] sm:$0xff] }
 0x359   :  { %437 = vadd.xlane.f32.xlu1 %v5748_v4  ;;  %v817_v6 = vpack.c.bf16 %v5748_v4, %v5736_v61  ;;  %413 = vadd.xlane.f32.xlu0 %v5752_v5  ;;  %v5761_v7 = vmul.f32 %v5744_v3, %v5744_v3  ;;  %v671_v50 = vsel %vm623_vm1, %v618_v48, 0  ;;  %v616_v62 = vpack.c.bf16 %v5744_v3, %v5744_v3  ;;  %v1099_v48 = vld [vmem:[%s8561_s5 + $0x1c8] sm:$0xff] }
 0x35a   :  { %v1103_v61 = vld [vmem:[%s8561_s5 + $0x1e8] sm:$0xff] }
 0x35b   :  { %v814_v8 = vpack.c.bf16 %v5761_v7, %v5752_v5 }
 0x35d   :  { %415 = vadd.xlane.f32.xlu1 %v5761_v7 }
 0x3de   :  { %v436_v9 = vpop.xlane.xlu0 %435 }
 0x3df   :  { %5302 = vrsqrt.f32 %v436_v9  ;;  %vm441_vm3 = vcmp.eq.f32.partialorder %v436_v9, inf  ;;  %v444_v15 = vand.u32 2147483648, %v436_v9  ;;  %vm443_vm4 = vcmp.eq.f32.partialorder %v436_v9, 0.0 }
 0x3e2   :  { %v438_v10 = vpop.xlane.xlu1 %437  ;;  %v414_v11 = vpop.xlane.xlu0 %413 }
 0x3e3   :  { %5304 = vrsqrt.f32 %v438_v10  ;;  %vm448_vm5 = vcmp.eq.f32.partialorder %v438_v10, inf  ;;  %vm450_vm6 = vcmp.eq.f32.partialorder %v438_v10, 0.0  ;;  %v451_v22 = vand.u32 2147483648, %v438_v10 }
 0x3e4   :  { %5306 = vrsqrt.f32 %v414_v11  ;;  %vm419_vm7 = vcmp.eq.f32.partialorder %v414_v11, inf  ;;  %v422_v25 = vand.u32 2147483648, %v414_v11  ;;  %vm421_vm8 = vcmp.eq.f32.partialorder %v414_v11, 0.0 }
 0x3e6   :  { %v416_v12 = vpop.xlane.xlu1 %415 }
 0x3e7   :  { %5308 = vrsqrt.f32 %v416_v12  ;;  %vm426_vm9 = vcmp.eq.f32.partialorder %v416_v12, inf  ;;  %v429_v33 = vand.u32 2147483648, %v416_v12  ;;  %vm428_vm10 = vcmp.eq.f32.partialorder %v416_v12, 0.0 }
 0x3ec   :  { %v5303_v13 = vpop.eup %5302 }
 0x3ed   :  { %v440_v14 = vmul.f32 %v5303_v13, %v436_v9 }
 0x3ef   :  { %v442_v16 = vsel %vm441_vm3, %v436_v9, %v440_v14 }
 0x3f0   :  { %v5305_v17 = vpop.eup %5304  ;;  %v445_v18 = vsel %vm443_vm4, %v444_v15, %v442_v16 }
 0x3f1   :  { %v5307_v19 = vpop.eup %5306  ;;  %v453_v20 = vmax.f32 %v445_v18, 1e-08  ;;  %v447_v21 = vmul.f32 %v5305_v17, %v438_v10 }
 0x3f2   :  { %v418_v23 = vmul.f32 %v5307_v19, %v414_v11  ;;  %v5295_v19 = vld [vmem:[%s8560_s4 + $0x30] sm:$0xff]  }
 0x3f3   :  { %5310 = vrcp.f32 %v453_v20  ;;  %v449_v24 = vsel %vm448_vm5, %v438_v10, %v447_v21  ;;  %v763_v10 = vsel %vm623_vm1, %v616_v62, 0  ;;  %v5297_v20 = vld [vmem:[%s8560_s4 + $0x20] sm:$0xff]   ;;  %v5298_v21 = vld [vmem:[%s8560_s4 + $0x18] sm:$0xff]  }
 0x3f4   :  { %v5309_v26 = vpop.eup %5308  ;;  %v452_v27 = vsel %vm450_vm6, %v451_v22, %v449_v24  ;;  %v420_v28 = vsel %vm419_vm7, %v414_v11, %v418_v23  ;;  %v5299_v22 = vld [vmem:[%s8560_s4 + $0x10] sm:$0xff]   ;;  %v5300_v23 = vld [vmem:[%s8560_s4 + $0x8] sm:$0xff]   ;;  %v5301_v24 = vld [vmem:[%s8560_s4] sm:$0xff]  }
 0x3f5   :  { %v454_v29 = vmax.f32 %v452_v27, 1e-08  ;;  %v423_v30 = vsel %vm421_vm8, %v422_v25, %v420_v28  ;;  %v425_v31 = vmul.f32 %v5309_v26, %v416_v12 }
 0x3f6   :  { %v431_v32 = vmax.f32 %v423_v30, 1e-08 }
 0x3f7   :  { %5312 = vrcp.f32 %v454_v29  ;;  %v427_v34 = vsel %vm426_vm9, %v416_v12, %v425_v31  ;;  %v5294_v12 = vld [vmem:[%s8560_s4 + $0x38] sm:$0xff]  }
 0x3f8   :  { %5314 = vrcp.f32 %v431_v32  ;;  %v430_v35 = vsel %vm428_vm10, %v429_v33, %v427_v34 }
 0x3f9   :  { %v432_v36 = vmax.f32 %v430_v35, 1e-08 }
 0x3fb   :  { %5316 = vrcp.f32 %v432_v36 }
 0x400   :  { %v5311_v37 = vpop.eup %5310 }
 0x401   :  { %v462_v38 = vmul.f32 %v5311_v37, %v5730_v56 }
 0x403   :  { %v465_v39 = vpack.c.bf16 %v462_v38, %v462_v38 }
 0x404   :  { %v5313_v40 = vpop.eup %5312 }
 0x405   :  { %v5315_v41 = vpop.eup %5314  ;;  %5201 = vmatpush3.bf16.xpose.msra.mxu1 %v465_v39  ;;  %v464_v43 = vmul.f32 %v5313_v40, %v5740_v0 }
 0x406   :  { %v456_v42 = vmul.f32 %v5315_v41, %v5732_v59  ;;  %5206 = vmatprep.subr.bf16.mxu1 %v5604_v51 }
 0x407   :  { %v466_v46 = vpack.c.bf16 %v464_v43, %v464_v43 }
 0x408   :  { %v459_v44 = vpack.c.bf16 %v456_v42, %v456_v42  ;;  %v5317_v45 = vpop.eup %5316 }
 0x409   :  { %v458_v47 = vmul.f32 %v5317_v45, %v5744_v3 }
 0x40b   :  { %v460_v49 = vpack.c.bf16 %v458_v47, %v458_v47 }
 0x40c   :  { %5203 = vmatmul.mubr.bf16.vlgmr.msra.gmra.mxu1 %v459_v44 }
 0x40d   :  { %5207 = vmatpush3.bf16.xpose.msra.mxu1 %v466_v46  ;;  %5208 = vmatprep.mubr.msk.bf16.mxu1 %vm5605_vm2, %v5604_v51 }
 0x40e   :  { %5218 = vmatprep.subr.bf16.mxu1 %v5604_v51 }
 0x414   :  { %5209 = vmatmul.mubr.bf16.vlgmr.msra.gmra.mxu1 %v460_v49 }
 0x415   :  { %5219 = vmatpush3.bf16.msra.mxu1 %v671_v50  ;;  %5220 = vmatprep.mubr.msk.bf16.mxu1 %vm5605_vm2, %v5604_v51  ;;  %v4909_v50 = vcombine.high %v1099_v48, %v1103_v61 }
 0x416   :  { %5230 = vmatprep.subr.bf16.mxu1 %v5604_v51 }
 0x4cc   :  { %v501_v53 = vpop.f32.mrf.mxu1 }
 0x4cd   :  { %v547_v54 = vpack.c.bf16 %v501_v53, %v501_v53 }
 0x4ce   :  { %v5204_v55 = vpop.f32.mrf.mxu1 }
 0x4cf   :  { %5215 = vmatmul.mubr.msk.bf16.vlgmr.msra.gmra.mxu0 %vm619_vm11, %v547_v54  ;;  %v1091_v54 = vld [vmem:[%s8561_s5 + $0x188] sm:$0xff] }
 0x4d0   :  { %5225 = vmatpush3.bf16.msra.mxu0 %v717_v57  ;;  %v504_v58 = vpop.f32.mrf.mxu1  ;;  %5226 = vmatprep.mubr.msk.bf16.mxu0 %vm5605_vm2, %v5604_v51  ;;  %v1095_v57 = vld [vmem:[%s8561_s5 + $0x1a8] sm:$0xff] }
 0x4d1   :  { %5236 = vmatprep.subr.bf16.mxu0 %v5294_v12  ;;  %v4901_v62 = vcombine.high %v1091_v54, %v1095_v57 }
 0x4d2   :  { %v5205_v60 = vpop.f32.mrf.mxu1 }
 0x4d3   :  { %v4900_v60 = vcombine.low %v1091_v54, %v1095_v57 }
 0x4d4   :  { %v541_v63 = vpop.f32.mrf.mxu1 }
 0x4d5   :  { %v548_v1 = vpack.c.bf16 %v541_v63, %v541_v63  ;;  %v5267_v2 = vpack.i.bf16 %v541_v63, %v501_v53  ;;  %v1094_v53 = vld [vmem:[%s8561_s5 + $0x1a0] sm:$0xff] }
 0x4d6   :  { %v5210_v9 = vpop.f32.mrf.mxu1  ;;  %v4899_v55 = vcombine.high %v1090_v52, %v1094_v53  ;;  %v4898_v58 = vcombine.low %v1090_v52, %v1094_v53  ;;  %v1082_v63 = vld [vmem:[%s8561_s5 + $0x140] sm:$0xff] }
 0x4d7   :  { %5268 = vxpose.xlu0.b32.start.end [1/1] (short) (narrow) %v5267_v2, 8  ;;  %5221 = vmatmul.mubr.msk.bf16.vlgmr.msra.gmra.mxu1 %vm619_vm11, %v548_v1  ;;  %v1086_v1 = vld [vmem:[%s8561_s5 + $0x160] sm:$0xff]  ;;  %v1083_v2 = vld [vmem:[%s8561_s5 + $0x148] sm:$0xff] }
 0x4d8   :  { %5231 = vmatpush3.bf16.msra.mxu1 %v763_v10  ;;  %v544_v11 = vpop.f32.mrf.mxu1  ;;  %5232 = vmatprep.mubr.msk.bf16.mxu1 %vm5605_vm2, %v5604_v51  ;;  %v5296_v51 = vld [vmem:[%s8560_s4 + $0x28] sm:$0xff]   ;;  %v4891_v9 = vcombine.high %v1082_v63, %v1086_v1 }
 0x4d9   :  { %v1087_v10 = vld [vmem:[%s8561_s5 + $0x168] sm:$0xff]  ;;  %v4890_v11 = vcombine.low %v1082_v63, %v1086_v1 }
 0x4da   :  { %v5211_v13 = vpop.f32.mrf.mxu1 }
 0x4db   :  { %v4893_v13 = vcombine.high %v1083_v2, %v1087_v10 }
 0x553   :  { %v5269_v14 = vpop.trf.xlu0 }
 0x554   :  { %v5273_v15 = vunpack.i.h.bf16 %v5269_v14  ;;  %v5270_v16 = vunpack.i.l.bf16 %v5269_v14  ;;  %v1074_v14 = vld [vmem:[%s8561_s5 + $0x100] sm:$0xff] }
 0x556   :  { %v614_v17 = vpack.c.bf16 %v5273_v15, %v5273_v15  ;;  %v613_v18 = vpack.c.bf16 %v5270_v16, %v5270_v16  ;;  %v1078_v15 = vld [vmem:[%s8561_s5 + $0x120] sm:$0xff]  ;;  %v1075_v16 = vld [vmem:[%s8561_s5 + $0x108] sm:$0xff] }
 0x558   :  { %5227 = vmatmul.mubr.msk.bf16.vlgmr.msra.gmra.mxu0 %vm619_vm11, %v613_v18  ;;  %5233 = vmatmul.mubr.msk.bf16.vlgmr.msra.gmra.mxu1 %vm619_vm11, %v614_v17  ;;  %v4883_v17 = vcombine.high %v1074_v14, %v1078_v15  ;;  %v1079_v18 = vld [vmem:[%s8561_s5 + $0x128] sm:$0xff] }
 0x559   :  { %5237 = vmatpush3.bf16.msra.mxu0 %v5294_v12  ;;  %v4892_v12 = vcombine.low %v1083_v2, %v1087_v10 }
 0x55a   :  { %5238 = vmatprep.subr.bf16.mxu0 %v5295_v19 }
 0x55d   :  { %5239 = vmatpush3.bf16.msra.mxu0 %v5295_v19  ;;  %v4882_v19 = vcombine.low %v1074_v14, %v1078_v15 }
 0x55e   :  { %5240 = vmatprep.subr.bf16.mxu0 %v5296_v51 }
 0x561   :  { %5241 = vmatpush3.bf16.msra.mxu0 %v5296_v51  ;;  %v4884_v51 = vcombine.low %v1075_v16, %v1079_v18 }
 0x562   :  { %5242 = vmatprep.subr.bf16.mxu0 %v5297_v20 }
 0x565   :  { %5243 = vmatpush3.bf16.msra.mxu0 %v5297_v20  ;;  %v4885_v20 = vcombine.high %v1075_v16, %v1079_v18 }
 0x566   :  { %5244 = vmatprep.subr.bf16.mxu0 %v5298_v21 }
 0x569   :  { %5245 = vmatpush3.bf16.msra.mxu0 %v5298_v21  ;;  %v1066_v21 = vld [vmem:[%s8561_s5 + $0xc0] sm:$0xff] }
 0x56a   :  { %5246 = vmatprep.subr.bf16.mxu0 %v5299_v22 }
 0x56d   :  { %5247 = vmatpush3.bf16.msra.mxu0 %v5299_v22  ;;  %v1070_v22 = vld [vmem:[%s8561_s5 + $0xe0] sm:$0xff] }
 0x56e   :  { %5248 = vmatprep.subr.bf16.mxu0 %v5300_v23 }
 0x571   :  { %5249 = vmatpush3.bf16.msra.mxu0 %v5300_v23  ;;  %v1067_v23 = vld [vmem:[%s8561_s5 + $0xc8] sm:$0xff] }
 0x572   :  { %5250 = vmatprep.subr.bf16.mxu0 %v5301_v24 }
 0x575   :  { %5251 = vmatpush3.bf16.msra.mxu0 %v5301_v24  ;;  %v4875_v24 = vcombine.high %v1066_v21, %v1070_v22 }
 0x576   :  { %1479 = vmatprep.subr.bf16.mxu0 %v4909_v50 }
 0x58f   :  { %v661_v25 = vpop.f32.mrf.mxu0 }
 0x590   :  { %v805_v30 = vmul.f32 %v661_v25, %v5732_v59  ;;  %v807_v34 = vmul.f32 %v661_v25, %v661_v25  ;;  %v1071_v25 = vld [vmem:[%s8561_s5 + $0xe8] sm:$0xff] }
 0x591   :  { %v5216_v26 = vpop.f32.mrf.mxu0 }
 0x592   :  { %v4874_v26 = vcombine.low %v1066_v21, %v1070_v22 }
 0x593   :  { %v664_v27 = vpop.f32.mrf.mxu0 }
 0x594   :  { %v4876_v27 = vcombine.low %v1067_v23, %v1071_v25 }
 0x595   :  { %v5217_v28 = vpop.f32.mrf.mxu0 }
 0x596   :  { %v4877_v28 = vcombine.high %v1067_v23, %v1071_v25 }
 0x597   :  { %v707_v29 = vpop.f32.mrf.mxu1 }
 0x598   :  { %v806_v31 = vmul.f32 %v707_v29, %v5744_v3  ;;  %v808_v32 = vmul.f32 %v707_v29, %v707_v29  ;;  %v1058_v29 = vld [vmem:[%s8561_s5 + $0x80] sm:$0xff] }
 0x599   :  { %v5222_v33 = vpop.f32.mrf.mxu1 }
 0x59a   :  { %v813_v35 = vpack.c.bf16 %v806_v31, %v805_v30  ;;  %v815_v37 = vpack.c.bf16 %v808_v32, %v807_v34  ;;  %v1062_v30 = vld [vmem:[%s8561_s5 + $0xa0] sm:$0xff]  ;;  %v1059_v31 = vld [vmem:[%s8561_s5 + $0x88] sm:$0xff] }
 0x59b   :  { %v710_v36 = vpop.f32.mrf.mxu1  ;;  %v4867_v32 = vcombine.high %v1058_v29, %v1062_v30  ;;  %v1063_v33 = vld [vmem:[%s8561_s5 + $0xa8] sm:$0xff]  ;;  %v4866_v34 = vcombine.low %v1058_v29, %v1062_v30 }
 0x59c   :  { %5252 = vmatprep.mubr.bf16.mxu0 %v813_v35  ;;  %v4868_v35 = vcombine.low %v1059_v31, %v1063_v33  ;;  %v4869_v36 = vcombine.high %v1059_v31, %v1063_v33 }
 0x59d   :  { %v5223_v38 = vpop.f32.mrf.mxu1  ;;  %5253 = vmatmul.mubr.bf16.vlgmr.msra.gmra.mxu0 %v814_v8 }
 0x59e   :  { %5256 = vmatprep.mubr.bf16.mxu0 %v815_v37  ;;  %v1050_v37 = vld [vmem:[%s8561_s5 + $0x40] sm:$0xff] }
 0x59f   :  { %v1054_v38 = vld [vmem:[%s8561_s5 + $0x60] sm:$0xff] }
 0x618   :  { %v753_v39 = vpop.f32.mrf.mxu0  ;;  %v799_v40 = vpop.f32.mrf.mxu1 }
 0x619   :  { %v809_v41 = vmul.f32 %v753_v39, %v5730_v56  ;;  %v810_v59 = vmul.f32 %v799_v40, %v5740_v0  ;;  %v811_v5 = vmul.f32 %v753_v39, %v753_v39  ;;  %v812_v7 = vmul.f32 %v799_v40, %v799_v40  ;;  %v1098_v56 = vld [vmem:[%s8561_s5 + $0x1c0] sm:$0xff]  ;;  %v1051_v39 = vld [vmem:[%s8561_s5 + $0x48] sm:$0xff] }
 0x61a   :  { %v5228_v3 = vpop.f32.mrf.mxu0  ;;  %v5234_v42 = vpop.f32.mrf.mxu1  ;;  %v1102_v0 = vld [vmem:[%s8561_s5 + $0x1e0] sm:$0xff]  ;;  %v4858_v40 = vcombine.low %v1050_v37, %v1054_v38 }
 0x61b   :  { %v816_v43 = vpack.c.bf16 %v810_v59, %v809_v41  ;;  %v818_v8 = vpack.c.bf16 %v812_v7, %v811_v5  ;;  %v4907_v49 = vcombine.high %v1098_v56, %v1102_v0  ;;  %v4906_v4 = vcombine.low %v1098_v56, %v1102_v0  ;;  %v1055_v59 = vld [vmem:[%s8561_s5 + $0x68] sm:$0xff]  ;;  %v1042_v3 = vld [vmem:[%s8561_s5] sm:$0xff]  ;;  %v5932_v7 = vld [vmem:[%s8561_s5 + $0x1d0] sm:$0xff] }
 0x61c   :  { %v756_v44 = vpop.f32.mrf.mxu0  ;;  %v802_v45 = vpop.f32.mrf.mxu1  ;;  %v4859_v41 = vcombine.high %v1050_v37, %v1054_v38  ;;  %v1046_v42 = vld [vmem:[%s8561_s5 + $0x20] sm:$0xff]  ;;  %v8565_v5 = vmov 0   ;;  %v5938_v56 = vld [vmem:[%s8561_s5 + $0x1f0] sm:$0xff]  ;;  %v5943_v0 = vld [vmem:[%s8561_s5 + $0x1d8] sm:$0xff] }
 0x61d   :  { %5257 = vmatmul.mubr.bf16.gmra.mxu0 %v816_v43  ;;  %1426 = vmatprep.subr.bf16.mxu1 %v4907_v49  ;;  %v4860_v43 = vcombine.low %v1051_v39, %v1055_v59  ;;  %v4861_v44 = vcombine.high %v1051_v39, %v1055_v59  ;;  %v4851_v45 = vcombine.high %v1042_v3, %v1046_v42 }
 0x61e   :  { %v5229_v46 = vpop.f32.mrf.mxu0  ;;  %v5235_v47 = vpop.f32.mrf.mxu1  ;;  %5260 = vmatprep.mubr.bf16.mxu0 %v817_v6  ;;  %v4908_v6 = vcombine.low %v1099_v48, %v1103_v61  ;;  %1427 = vmatpush1.bf16.msra.mxu1 %v4906_v4  ;;  %v5948_v48 = vld [vmem:[%s8561_s5 + $0x1f8] sm:$0xff]  ;;  %v4850_v49 = vcombine.low %v1042_v3, %v1046_v42  ;;  %v4910_v61 = vcombine.low %v5932_v7, %v5938_v56 }
 0x61f   :  { %1428 = vmatprep.subr.bf16.mxu1 %v4899_v55  ;;  %v1043_v46 = vld [vmem:[%s8561_s5 + $0x8] sm:$0xff]  ;;  %1458 = vmatprep.mubr.bf16.mxu1 %v8565_v5  ;;  %v4912_v4 = vcombine.low %v5943_v0, %v5948_v48  ;;  %v4911_v50 = vcombine.high %v5932_v7, %v5938_v56  ;;  %v4913_v52 = vcombine.high %v5943_v0, %v5948_v48  ;;  %v1080_v7 = vld [vmem:[%s8561_s5 + $0x130] sm:$0xff]  ;;  %v1077_v56 = vld [vmem:[%s8561_s5 + $0x118] sm:$0xff] }
 0x620   :  { %1480 = vmatpush1.bf16.msra.mxu0 %v4908_v6  ;;  %v1047_v47 = vld [vmem:[%s8561_s5 + $0x28] sm:$0xff]  ;;  %5274 = vset.pattern.permute.xlu1 %v8565_v5  ;;  %v1081_v0 = vld [vmem:[%s8561_s5 + $0x138] sm:$0xff] }
 0x621   :  { %1481 = vmatprep.subr.bf16.mxu0 %v4901_v62  ;;  %v4852_v6 = vcombine.low %v1043_v46, %v1047_v47  ;;  %5275 = vset.pattern.permute.xlu0 %v8565_v5 }
 0x622   :  { %1429 = vmatpush1.bf16.msra.mxu1 %v4898_v58 }
 0x623   :  { %1430 = vmatprep.subr.bf16.mxu1 %v4891_v9 }
 0x624   :  { %1482 = vmatpush1.bf16.msra.mxu0 %v4900_v60 }
 0x625   :  { %5261 = vmatmul.mubr.bf16.gmra.mxu0 %v818_v8  ;;  %1483 = vmatprep.subr.bf16.mxu0 %v4893_v13  ;;  %v4853_v8 = vcombine.high %v1043_v46, %v1047_v47 }
 0x626   :  { %1431 = vmatpush1.bf16.msra.mxu1 %v4890_v11  ;;  %1511 = vmatprep.mubr.bf16.mxu0 %v8565_v5 }
 0x627   :  { %1432 = vmatprep.subr.bf16.mxu1 %v4883_v17 }
 0x628   :  { %1484 = vmatpush1.bf16.msra.mxu0 %v4892_v12 }
 0x629   :  { %1485 = vmatprep.subr.bf16.mxu0 %v4885_v20 }
 0x62a   :  { %1433 = vmatpush1.bf16.msra.mxu1 %v4882_v19 }
 0x62b   :  { %1434 = vmatprep.subr.bf16.mxu1 %v4875_v24 }
 0x62c   :  { %1486 = vmatpush1.bf16.msra.mxu0 %v4884_v51 }
 0x62d   :  { %1487 = vmatprep.subr.bf16.mxu0 %v4877_v28 }
 0x62e   :  { %1435 = vmatpush1.bf16.msra.mxu1 %v4874_v26 }
 0x62f   :  { %1436 = vmatprep.subr.bf16.mxu1 %v4867_v32 }
 0x630   :  { %1488 = vmatpush1.bf16.msra.mxu0 %v4876_v27 }
 0x631   :  { %1489 = vmatprep.subr.bf16.mxu0 %v4869_v36 }
 0x632   :  { %1437 = vmatpush1.bf16.msra.mxu1 %v4866_v34 }
 0x633   :  { %1438 = vmatprep.subr.bf16.mxu1 %v4859_v41 }
 0x634   :  { %1490 = vmatpush1.bf16.msra.mxu0 %v4868_v35 }
 0x635   :  { %1491 = vmatprep.subr.bf16.mxu0 %v4861_v44 }
 0x636   :  { %1439 = vmatpush1.bf16.msra.mxu1 %v4858_v40 }
 0x637   :  { %1440 = vmatprep.subr.bf16.mxu1 %v4851_v45 }
 0x638   :  { %1492 = vmatpush1.bf16.msra.mxu0 %v4860_v43 }
 0x639   :  { %1493 = vmatprep.subr.bf16.mxu0 %v4853_v8 }
 0x63a   :  { %1441 = vmatpush1.bf16.msra.mxu1 %v4850_v49 }
 0x63b   :  { %1532 = vmatprep.subr.bf16.mxu1 %v4911_v50 }
 0x63c   :  { %1494 = vmatpush1.bf16.msra.mxu0 %v4852_v6 }
 0x63d   :  { %1585 = vmatprep.subr.bf16.mxu0 %v4913_v52 }
 0x65d   :  { %v5254_v53 = vpop.f32.mrf.mxu0 }
 0x65e   :  { %5318 = vrsqrt.f32 %v5254_v53  ;;  %vm966_vm12 = vcmp.eq.f32.partialorder %v5254_v53, inf  ;;  %v969_v17 = vand.u32 2147483648, %v5254_v53  ;;  %vm968_vm14 = vcmp.eq.f32.partialorder %v5254_v53, 0.0 }
 0x65f   :  { %v5960_v54 = vpop.f32.mrf.mxu0 }
 0x661   :  { %v5255_v55 = vpop.f32.mrf.mxu0 }
 0x662   :  { %5320 = vrsqrt.f32 %v5255_v55  ;;  %vm973_vm13 = vcmp.eq.f32.partialorder %v5255_v55, inf  ;;  %v976_v19 = vand.u32 2147483648, %v5255_v55  ;;  %vm975_vm15 = vcmp.eq.f32.partialorder %v5255_v55, 0.0 }
 0x663   :  { %v5962_v57 = vpop.f32.mrf.mxu0 }
 0x66b   :  { %v5319_v1 = vpop.eup %5318 }
 0x66c   :  { %v965_v11 = vmul.f32 %v5319_v1, %v5254_v53 }
 0x66e   :  { %v967_v15 = vsel %vm966_vm12, %v5254_v53, %v965_v11  ;;  %v1092_v11 = vld [vmem:[%s8561_s5 + $0x190] sm:$0xff]  ;;  %vm2629_vm12 = vcmask 1041409  }
 0x66f   :  { %v5321_v9 = vpop.eup %5320  ;;  %v970_v20 = vsel %vm968_vm14, %v969_v17, %v967_v15  ;;  %v1097_v15 = vld [vmem:[%s8561_s5 + $0x1b8] sm:$0xff]  ;;  %vm2635_vm14 = vcmask 1043459  }
 0x670   :  { %v972_v12 = vmul.f32 %v5321_v9, %v5255_v55  ;;  %v978_v26 = vmax.f32 %v970_v20, 1e-08  ;;  %v1084_v20 = vld [vmem:[%s8561_s5 + $0x150] sm:$0xff] }
 0x672   :  { %v974_v18 = vsel %vm973_vm13, %v5255_v55, %v972_v12  ;;  %vm2632_vm13 = vcmask 1042434  }
 0x673   :  { %v977_v22 = vsel %vm975_vm15, %v976_v19, %v974_v18  ;;  %vm4766_vm15 = vcmask 1043458  }
 0x674   :  { %v979_v30 = vmax.f32 %v977_v22, 1e-08  ;;  %v1085_v22 = vld [vmem:[%s8561_s5 + $0x158] sm:$0xff] }
 0x6dd   :  { %v5964_v58 = vpop.f32.mrf.mxu0 }
 0x6df   :  { %v933_v60 = vpop.f32.mrf.mxu0 }
 0x6e0   :  { %5322 = vrsqrt.f32 %v933_v60  ;;  %vm982_vm0 = vcmp.eq.f32.partialorder %v933_v60, inf  ;;  %v985_v21 = vand.u32 2147483648, %v933_v60  ;;  %vm984_vm1 = vcmp.eq.f32.partialorder %v933_v60, 0.0 }
 0x6e1   :  { %v5966_v62 = vpop.f32.mrf.mxu0 }
 0x6e3   :  { %v936_v63 = vpop.f32.mrf.mxu0 }
 0x6e4   :  { %5324 = vrsqrt.f32 %v936_v63  ;;  %vm989_vm2 = vcmp.eq.f32.partialorder %v936_v63, inf  ;;  %v992_v31 = vand.u32 2147483648, %v936_v63  ;;  %vm991_vm3 = vcmp.eq.f32.partialorder %v936_v63, 0.0 }
 0x6e5   :  { %v5262_v2 = vpop.f32.mrf.mxu0 }
 0x6e6   :  { %5326 = vrsqrt.f32 %v5262_v2  ;;  %vm1020_vm4 = vcmp.eq.f32.partialorder %v5262_v2, inf  ;;  %vm1022_vm5 = vcmp.eq.f32.partialorder %v5262_v2, 0.0  ;;  %v1023_v37 = vand.u32 2147483648, %v5262_v2 }
 0x6e7   :  { %v949_v10 = vpop.f32.mrf.mxu0 }
 0x6e8   :  { %5328 = vrsqrt.f32 %v949_v10  ;;  %vm1004_vm6 = vcmp.eq.f32.partialorder %v949_v10, inf  ;;  %vm1006_vm7 = vcmp.eq.f32.partialorder %v949_v10, 0.0  ;;  %v1007_v3 = vand.u32 2147483648, %v949_v10 }
 0x6e9   :  { %v5263_v13 = vpop.f32.mrf.mxu0 }
 0x6ea   :  { %5330 = vrsqrt.f32 %v5263_v13  ;;  %vm1027_vm8 = vcmp.eq.f32.partialorder %v5263_v13, inf  ;;  %vm1029_vm9 = vcmp.eq.f32.partialorder %v5263_v13, 0.0  ;;  %v1030_v8 = vand.u32 2147483648, %v5263_v13 }
 0x6eb   :  { %v5968_v14 = vpop.f32.mrf.mxu0 }
 0x6ec   :  { %5332 = vrsqrt.f32 %v5968_v14  ;;  %vm1011_vm10 = vcmp.eq.f32.partialorder %v5968_v14, inf  ;;  %v1014_v53 = vand.u32 2147483648, %v5968_v14  ;;  %vm1013_vm11 = vcmp.eq.f32.partialorder %v5968_v14, 0.0 }
 0x6ed   :  { %v5323_v16 = vpop.eup %5322 }
 0x6ee   :  { %v981_v51 = vmul.f32 %v5323_v16, %v933_v60 }
 0x6f0   :  { %v983_v23 = vsel %vm982_vm0, %v933_v60, %v981_v51  ;;  %vm4745_vm0 = vcmask 1041408  }
 0x6f1   :  { %v5325_v24 = vpop.eup %5324  ;;  %v986_v25 = vsel %vm984_vm1, %v985_v21, %v983_v23  ;;  %v1088_v21 = vld [vmem:[%s8561_s5 + $0x170] sm:$0xff] }
 0x6f2   :  { %v994_v27 = vmax.f32 %v986_v25, 1e-08  ;;  %v988_v28 = vmul.f32 %v5325_v24, %v936_v63  ;;  %v4895_v25 = vcombine.high %v1084_v20, %v1088_v21 }
 0x6f3   :  { %v5327_v29 = vpop.eup %5326 }
 0x6f4   :  { %v996_v32 = vmul.f32 %v994_v27, %v978_v26  ;;  %v990_v33 = vsel %vm989_vm2, %v936_v63, %v988_v28  ;;  %v1019_v34 = vmul.f32 %v5327_v29, %v5262_v2  ;;  %v1076_v27 = vld [vmem:[%s8561_s5 + $0x110] sm:$0xff] }
 0x6f5   :  { %v5329_v35 = vpop.eup %5328  ;;  %v993_v36 = vsel %vm991_vm3, %v992_v31, %v990_v33  ;;  %v4887_v31 = vcombine.high %v1076_v27, %v1080_v7  ;;  %v1068_v33 = vld [vmem:[%s8561_s5 + $0xd0] sm:$0xff] }
 0x6f6   :  { %v995_v38 = vmax.f32 %v993_v36, 1e-08  ;;  %v1021_v39 = vsel %vm1020_vm4, %v5262_v2, %v1019_v34  ;;  %v1003_v40 = vmul.f32 %v5329_v35, %v949_v10  ;;  %5334 = vrcp.f32 %v996_v32  ;;  %v1073_v34 = vld [vmem:[%s8561_s5 + $0xf8] sm:$0xff] }
 0x6f7   :  { %v5331_v41 = vpop.eup %5330  ;;  %v1024_v59 = vsel %vm1022_vm5, %v1023_v37, %v1021_v39  ;;  %v4889_v32 = vcombine.high %v1077_v56, %v1081_v0  ;;  %v4886_v35 = vcombine.low %v1076_v27, %v1080_v7  ;;  %v4888_v36 = vcombine.low %v1077_v56, %v1081_v0  ;;  %v1060_v39 = vld [vmem:[%s8561_s5 + $0x90] sm:$0xff]  ;;  %v1679_v27 = vld [vmem:[%s8562_s6 + $0x148] sm:$0xff] }
 0x6f8   :  { %v997_v42 = vmul.f32 %v995_v38, %v979_v30  ;;  %v1005_v43 = vsel %vm1004_vm6, %v949_v10, %v1003_v40  ;;  %v1026_v44 = vmul.f32 %v5331_v41, %v5263_v13  ;;  %v1032_v46 = vmax.f32 %v1024_v59, 1e-08  ;;  %v1064_v40 = vld [vmem:[%s8561_s5 + $0xb0] sm:$0xff]  ;;  %v1061_v41 = vld [vmem:[%s8561_s5 + $0x98] sm:$0xff] }
 0x6f9   :  { %v5333_v45 = vpop.eup %5332  ;;  %v1008_v47 = vsel %vm1006_vm7, %v1007_v3, %v1005_v43  ;;  %v1065_v59 = vld [vmem:[%s8561_s5 + $0xb8] sm:$0xff]  ;;  %v4871_v43 = vcombine.high %v1060_v39, %v1064_v40 }
 0x6fa   :  { %5336 = vrcp.f32 %v997_v42  ;;  %v1016_v49 = vmax.f32 %v1008_v47, 1e-08  ;;  %v1028_v6 = vsel %vm1027_vm8, %v5263_v13, %v1026_v44  ;;  %v1010_v50 = vmul.f32 %v5333_v45, %v5968_v14  ;;  %v1096_v13 = vld [vmem:[%s8561_s5 + $0x1b0] sm:$0xff]  ;;  %v1053_v47 = vld [vmem:[%s8561_s5 + $0x58] sm:$0xff] }
 0x6fb   :  { %v1031_v52 = vsel %vm1029_vm9, %v1030_v8, %v1028_v6  ;;  %v4903_v19 = vcombine.high %v1092_v11, %v1096_v13  ;;  %v4902_v23 = vcombine.low %v1092_v11, %v1096_v13  ;;  %v4873_v44 = vcombine.high %v1061_v41, %v1065_v59  ;;  %v1052_v45 = vld [vmem:[%s8561_s5 + $0x50] sm:$0xff]  ;;  %v1057_v8 = vld [vmem:[%s8561_s5 + $0x78] sm:$0xff]  ;;  %v1694_v11 = vld [vmem:[%s8562_s6 + $0x1c0] sm:$0xff] }
 0x6fc   :  { %v1034_v55 = vmul.f32 %v1032_v46, %v1016_v49  ;;  %v1012_v60 = vsel %vm1011_vm10, %v5968_v14, %v1010_v50  ;;  %v1033_v1 = vmax.f32 %v1031_v52, 1e-08  ;;  %v1093_v14 = vld [vmem:[%s8561_s5 + $0x198] sm:$0xff]  ;;  %v1056_v46 = vld [vmem:[%s8561_s5 + $0x70] sm:$0xff]  ;;  %v4870_v49 = vcombine.low %v1060_v39, %v1064_v40  ;;  %v1695_v13 = vld [vmem:[%s8562_s6 + $0x1c8] sm:$0xff] }
 0x6fd   :  { %v1015_v63 = vsel %vm1013_vm11, %v1014_v53, %v1012_v60  ;;  %v4905_v51 = vcombine.high %v1093_v14, %v1097_v15  ;;  %v4904_v24 = vcombine.low %v1093_v14, %v1097_v15  ;;  %v4872_v6 = vcombine.low %v1061_v41, %v1065_v59  ;;  %v1044_v53 = vld [vmem:[%s8561_s5 + $0x10] sm:$0xff]  ;;  %v1045_v60 = vld [vmem:[%s8561_s5 + $0x18] sm:$0xff]  ;;  %v1699_v14 = vld [vmem:[%s8562_s6 + $0x1e8] sm:$0xff] }
 0x6fe   :  { %v1017_v2 = vmax.f32 %v1015_v63, 1e-08  ;;  %5338 = vrcp.f32 %v1034_v55  ;;  %v4863_v50 = vcombine.high %v1052_v45, %v1056_v46  ;;  %v4865_v52 = vcombine.high %v1053_v47, %v1057_v8  ;;  %v1048_v55 = vld [vmem:[%s8561_s5 + $0x30] sm:$0xff]  ;;  %v1049_v63 = vld [vmem:[%s8561_s5 + $0x38] sm:$0xff]  ;;  %v1658_v41 = vld [vmem:[%s8562_s6 + $0xa0] sm:$0xff] }
 0x6ff   :  { %v4854_v15 = vcombine.low %v1044_v53, %v1048_v55  ;;  %v1655_v59 = vld [vmem:[%s8562_s6 + $0x88] sm:$0xff] }
 0x700   :  { %v1035_v9 = vmul.f32 %v1033_v1, %v1017_v2  ;;  %v4862_v1 = vcombine.low %v1052_v45, %v1056_v46  ;;  %v4864_v2 = vcombine.low %v1053_v47, %v1057_v8  ;;  %v1646_v46 = vld [vmem:[%s8562_s6 + $0x40] sm:$0xff]  ;;  %v1647_v8 = vld [vmem:[%s8562_s6 + $0x48] sm:$0xff] }
 0x701   :  { %v1650_v47 = vld [vmem:[%s8562_s6 + $0x60] sm:$0xff] }
 0x702   :  { %5340 = vrcp.f32 %v1035_v9  ;;  %v4855_v9 = vcombine.high %v1044_v53, %v1048_v55  ;;  %v1638_v55 = vld [vmem:[%s8562_s6] sm:$0xff] }
 0x703   :  { %v5335_v10 = vpop.eup %5334 }
 0x704   :  { %v999_v16 = vmul.f32 %v5335_v10, %v5960_v54  ;;  %v1089_v54 = vld [vmem:[%s8561_s5 + $0x178] sm:$0xff]  ;;  %v4857_v10 = vcombine.high %v1045_v60, %v1049_v63 }
 0x705   :  { %v4897_v26 = vcombine.high %v1085_v22, %v1089_v54  ;;  %v4896_v29 = vcombine.low %v1085_v22, %v1089_v54  ;;  %v1691_v22 = vld [vmem:[%s8562_s6 + $0x1a8] sm:$0xff] }
 0x707   :  { %v5337_v12 = vpop.eup %5336 }
 0x708   :  { %v1001_v17 = vmul.f32 %v5337_v12, %v5962_v57  ;;  %v1698_v12 = vld [vmem:[%s8562_s6 + $0x1e0] sm:$0xff] }
 0x709   :  { %v6110_v54 = vcombine.low %v1694_v11, %v1698_v12 }
 0x70a   :  { %v5990_v18 = vpack.c.bf16 %v1001_v17, %v999_v16  ;;  %v4856_v16 = vcombine.low %v1045_v60, %v1049_v63  ;;  %v6094_v17 = vcombine.high %v1694_v11, %v1698_v12  ;;  %v1642_v60 = vld [vmem:[%s8562_s6 + $0x20] sm:$0xff]  ;;  %v1639_v63 = vld [vmem:[%s8562_s6 + $0x8] sm:$0xff] }
 0x70b   :  { %v5339_v57 = vpop.eup %5338  ;;  %8884 = vst [vmem:[#allocation4_spill] sm:$0xff] %v6110_v54  ;;  %v1758_v12 = vld [vmem:[%s8562_s6 + $0x3c0] sm:$0xff] }
 0x70c   :  { %1459 = vmatmul.mubr.bf16.vlgmr.msra.gmra.mxu1 %v5990_v18  ;;  %1512 = vmatmul.mubr.bf16.vlgmr.msra.gmra.mxu0 %v5990_v18  ;;  %v1037_v48 = vmul.f32 %v5339_v57, %v5964_v58  ;;  %v1072_v58 = vld [vmem:[%s8561_s5 + $0xf0] sm:$0xff]  ;;  %8882 = vst [vmem:[#allocation2_spill] sm:$0xff] %v6094_v17  ;;  %v6112_v57 = vcombine.low %v1695_v13, %v1699_v14 }
 0x70d   :  { %1533 = vmatpush1.bf16.msra.mxu1 %v4910_v61  ;;  %1586 = vmatpush1.bf16.msra.mxu0 %v4912_v4  ;;  %v4894_v4 = vcombine.low %v1084_v20, %v1088_v21  ;;  %v4879_v37 = vcombine.high %v1068_v33, %v1072_v58  ;;  %v4878_v3 = vcombine.low %v1068_v33, %v1072_v58  ;;  %v1690_v20 = vld [vmem:[%s8562_s6 + $0x1a0] sm:$0xff]  ;;  %v1687_v21 = vld [vmem:[%s8562_s6 + $0x188] sm:$0xff] }
 0x70e   :  { %1534 = vmatprep.subr.bf16.mxu1 %v4903_v19  ;;  %1587 = vmatprep.subr.bf16.mxu0 %v4905_v51  ;;  %v6096_v19 = vcombine.high %v1695_v13, %v1699_v14  ;;  %v1686_v51 = vld [vmem:[%s8562_s6 + $0x180] sm:$0xff]  ;;  %8885 = vst [vmem:[#allocation5_spill] sm:$0xff] %v6112_v57  ;;  %v6138_v56 = vcombine.low %v1687_v21, %v1691_v22  ;;  %v1759_v14 = vld [vmem:[%s8562_s6 + $0x3c8] sm:$0xff] }
 0x70f   :  { %v5341_v28 = vpop.eup %5340  ;;  %1468 = vmatprep.mubr.bf16.mxu1 %v8565_v5  ;;  %1521 = vmatprep.mubr.bf16.mxu0 %v8565_v5  ;;  %v6136_v7 = vcombine.low %v1686_v51, %v1690_v20  ;;  %v1762_v13 = vld [vmem:[%s8562_s6 + $0x3e0] sm:$0xff] }
 0x710   :  { %v1039_v61 = vmul.f32 %v5341_v28, %v5966_v62  ;;  %v1069_v62 = vld [vmem:[%s8561_s5 + $0xd8] sm:$0xff]  ;;  %8883 = vst [vmem:[#allocation3_spill] sm:$0xff] %v6096_v19  ;;  %v1683_v28 = vld [vmem:[%s8562_s6 + $0x168] sm:$0xff]  ;;  %8889 = vst [vmem:[#allocation9_spill] sm:$0xff] %v6138_v56 }
 0x711   :  { %1535 = vmatpush1.bf16.msra.mxu1 %v4902_v23  ;;  %1588 = vmatpush1.bf16.msra.mxu0 %v4904_v24  ;;  %v4881_v38 = vcombine.high %v1069_v62, %v1073_v34  ;;  %v4880_v42 = vcombine.low %v1069_v62, %v1073_v34  ;;  %v6116_v23 = vcombine.high %v1686_v51, %v1690_v20  ;;  %v1662_v62 = vld [vmem:[%s8562_s6 + $0xc0] sm:$0xff] }
 0x712   :  { %1536 = vmatprep.subr.bf16.mxu1 %v4895_v25  ;;  %1589 = vmatprep.subr.bf16.mxu0 %v4897_v26  ;;  %v6028_v30 = vpack.c.bf16 %v1039_v61, %v1037_v48  ;;  %v6118_v24 = vcombine.high %v1687_v21, %v1691_v22  ;;  %v1678_v25 = vld [vmem:[%s8562_s6 + $0x140] sm:$0xff]  ;;  %8888 = vst [vmem:[#allocation8_spill] sm:$0xff] %v6136_v7 }
 0x713   :  { %8886 = vst [vmem:[#allocation6_spill] sm:$0xff] %v6116_v23  ;;  %v1682_v26 = vld [vmem:[%s8562_s6 + $0x160] sm:$0xff]  ;;  %v6144_v48 = vcombine.high %v1679_v27, %v1683_v28  ;;  %v6292_v20 = vcombine.high %v1758_v12, %v1762_v13 }
 0x714   :  { %1469 = vmatmul.mubr.bf16.gmra.mxu1 %v6028_v30  ;;  %1522 = vmatmul.mubr.bf16.gmra.mxu0 %v6028_v30  ;;  %8887 = vst [vmem:[#allocation7_spill] sm:$0xff] %v6118_v24  ;;  %v6142_v0 = vcombine.high %v1678_v25, %v1682_v26  ;;  %v1674_v61 = vld [vmem:[%s8562_s6 + $0x120] sm:$0xff] }
 0x715   :  { %1537 = vmatpush1.bf16.msra.mxu1 %v4894_v4  ;;  %1590 = vmatpush1.bf16.msra.mxu0 %v4896_v29  ;;  %8891 = vst [vmem:[#allocation11_spill] sm:$0xff] %v6144_v48  ;;  %v1671_v4 = vld [vmem:[%s8562_s6 + $0x108] sm:$0xff]  ;;  %v1666_v34 = vld [vmem:[%s8562_s6 + $0xe0] sm:$0xff]  ;;  %8914 = vst [vmem:[#allocation34_spill] sm:$0xff] %v6292_v20 }
 0x716   :  { %1538 = vmatprep.subr.bf16.mxu1 %v4887_v31  ;;  %1591 = vmatprep.subr.bf16.mxu0 %v4889_v32  ;;  %8890 = vst [vmem:[#allocation10_spill] sm:$0xff] %v6142_v0  ;;  %v1675_v29 = vld [vmem:[%s8562_s6 + $0x128] sm:$0xff]  ;;  %v6162_v31 = vcombine.low %v1678_v25, %v1682_v26  ;;  %v6164_v32 = vcombine.low %v1679_v27, %v1683_v28  ;;  %v1750_v22 = vld [vmem:[%s8562_s6 + $0x380] sm:$0xff] }
 0x717   :  { %1564 = vmatprep.mubr.bf16.mxu1 %v8565_v5  ;;  %1617 = vmatprep.mubr.bf16.mxu0 %v8565_v5  ;;  %v6170_v58 = vcombine.high %v1671_v4, %v1675_v29  ;;  %v6194_v39 = vcombine.high %v1662_v62, %v1666_v34  ;;  %v1754_v25 = vld [vmem:[%s8562_s6 + $0x3a0] sm:$0xff]  ;;  %v1751_v26 = vld [vmem:[%s8562_s6 + $0x388] sm:$0xff]  ;;  %v6310_v28 = vcombine.low %v1758_v12, %v1762_v13 }
 0x718   :  { %8892 = vst [vmem:[#allocation12_spill] sm:$0xff] %v6162_v31  ;;  %8893 = vst [vmem:[#allocation13_spill] sm:$0xff] %v6164_v32  ;;  %v1755_v27 = vld [vmem:[%s8562_s6 + $0x3a8] sm:$0xff]  ;;  %v1730_v12 = vld [vmem:[%s8562_s6 + $0x2e0] sm:$0xff] }
 0x719   :  { %1539 = vmatpush1.bf16.msra.mxu1 %v4886_v35  ;;  %1592 = vmatpush1.bf16.msra.mxu0 %v4888_v36  ;;  %8895 = vst [vmem:[#allocation15_spill] sm:$0xff] %v6170_v58  ;;  %v1663_v35 = vld [vmem:[%s8562_s6 + $0xc8] sm:$0xff]  ;;  %8898 = vst [vmem:[#allocation18_spill] sm:$0xff] %v6194_v39 }
 0x71a   :  { %1540 = vmatprep.subr.bf16.mxu1 %v4879_v37  ;;  %1593 = vmatprep.subr.bf16.mxu0 %v4881_v38  ;;  %v1667_v36 = vld [vmem:[%s8562_s6 + $0xe8] sm:$0xff]  ;;  %v6190_v38 = vcombine.low %v1671_v4, %v1675_v29  ;;  %8916 = vst [vmem:[#allocation36_spill] sm:$0xff] %v6310_v28  ;;  %v6318_v4 = vcombine.high %v1751_v26, %v1755_v27  ;;  %v1742_v29 = vld [vmem:[%s8562_s6 + $0x340] sm:$0xff] }
 0x71b   :  { %v6196_v40 = vcombine.high %v1663_v35, %v1667_v36  ;;  %v1727_v13 = vld [vmem:[%s8562_s6 + $0x2c8] sm:$0xff] }
 0x71c   :  { %8897 = vst [vmem:[#allocation17_spill] sm:$0xff] %v6190_v38  ;;  %8919 = vst [vmem:[#allocation39_spill] sm:$0xff] %v6318_v4 }
 0x71d   :  { %1541 = vmatpush1.bf16.msra.mxu1 %v4878_v3  ;;  %1594 = vmatpush1.bf16.msra.mxu0 %v4880_v42  ;;  %8899 = vst [vmem:[#allocation19_spill] sm:$0xff] %v6196_v40  ;;  %v1659_v3 = vld [vmem:[%s8562_s6 + $0xa8] sm:$0xff]  ;;  %v6214_v42 = vcombine.low %v1662_v62, %v1666_v34  ;;  %v1746_v62 = vld [vmem:[%s8562_s6 + $0x360] sm:$0xff] }
 0x71e   :  { %1542 = vmatprep.subr.bf16.mxu1 %v4871_v43  ;;  %1595 = vmatprep.subr.bf16.mxu0 %v4873_v44  ;;  %v6216_v43 = vcombine.low %v1663_v35, %v1667_v36  ;;  %v6222_v45 = vcombine.high %v1655_v59, %v1659_v3  ;;  %v1743_v34 = vld [vmem:[%s8562_s6 + $0x348] sm:$0xff]  ;;  %v6334_v36 = vcombine.low %v1750_v22, %v1754_v25 }
 0x71f   :  { %8900 = vst [vmem:[#allocation20_spill] sm:$0xff] %v6214_v42  ;;  %v1747_v35 = vld [vmem:[%s8562_s6 + $0x368] sm:$0xff] }
 0x720   :  { %8901 = vst [vmem:[#allocation21_spill] sm:$0xff] %v6216_v43  ;;  %8903 = vst [vmem:[#allocation23_spill] sm:$0xff] %v6222_v45 }
 0x721   :  { %1543 = vmatpush1.bf16.msra.mxu1 %v4870_v49  ;;  %1596 = vmatpush1.bf16.msra.mxu0 %v4872_v6  ;;  %v1651_v49 = vld [vmem:[%s8562_s6 + $0x68] sm:$0xff]  ;;  %8920 = vst [vmem:[#allocation40_spill] sm:$0xff] %v6334_v36 }
 0x722   :  { %1544 = vmatprep.subr.bf16.mxu1 %v4863_v50  ;;  %1597 = vmatprep.subr.bf16.mxu0 %v4865_v52  ;;  %v6240_v50 = vcombine.low %v1655_v59, %v1659_v3  ;;  %v6244_v52 = vcombine.high %v1646_v46, %v1650_v47  ;;  %v6246_v53 = vcombine.high %v1647_v8, %v1651_v49  ;;  %v1734_v3 = vld [vmem:[%s8562_s6 + $0x300] sm:$0xff] }
 0x723   :  { %v6342_v59 = vcombine.high %v1743_v34, %v1747_v35 }
 0x724   :  { %8905 = vst [vmem:[#allocation25_spill] sm:$0xff] %v6240_v50  ;;  %8906 = vst [vmem:[#allocation26_spill] sm:$0xff] %v6244_v52 }
 0x725   :  { %1545 = vmatpush1.bf16.msra.mxu1 %v4862_v1  ;;  %1598 = vmatpush1.bf16.msra.mxu0 %v4864_v2  ;;  %8907 = vst [vmem:[#allocation27_spill] sm:$0xff] %v6246_v53  ;;  %v1643_v1 = vld [vmem:[%s8562_s6 + $0x28] sm:$0xff]  ;;  %v6262_v2 = vcombine.low %v1646_v46, %v1650_v47  ;;  %8923 = vst [vmem:[#allocation43_spill] sm:$0xff] %v6342_v59  ;;  %v1738_v46 = vld [vmem:[%s8562_s6 + $0x320] sm:$0xff] }
 0x726   :  { %1546 = vmatprep.subr.bf16.mxu1 %v4855_v9  ;;  %1599 = vmatprep.subr.bf16.mxu0 %v4857_v10  ;;  %v6264_v9 = vcombine.low %v1647_v8, %v1651_v49  ;;  %v6268_v10 = vcombine.high %v1638_v55, %v1642_v60  ;;  %v6270_v11 = vcombine.high %v1639_v63, %v1643_v1  ;;  %v1735_v47 = vld [vmem:[%s8562_s6 + $0x308] sm:$0xff] }
 0x727   :  { %8908 = vst [vmem:[#allocation28_spill] sm:$0xff] %v6262_v2  ;;  %v6288_v51 = vcombine.low %v1639_v63, %v1643_v1  ;;  %v1739_v8 = vld [vmem:[%s8562_s6 + $0x328] sm:$0xff]  ;;  %v6358_v49 = vcombine.low %v1742_v29, %v1746_v62  ;;  %v1726_v1 = vld [vmem:[%s8562_s6 + $0x2c0] sm:$0xff] }
 0x728   :  { %8909 = vst [vmem:[#allocation29_spill] sm:$0xff] %v6264_v9  ;;  %8910 = vst [vmem:[#allocation30_spill] sm:$0xff] %v6268_v10  ;;  %v6366_v63 = vcombine.high %v1735_v47, %v1739_v8 }
 0x729   :  { %1547 = vmatpush1.bf16.msra.mxu1 %v4854_v15  ;;  %1600 = vmatpush1.bf16.msra.mxu0 %v4856_v16  ;;  %8911 = vst [vmem:[#allocation31_spill] sm:$0xff] %v6270_v11  ;;  %v1763_v15 = vld [vmem:[%s8562_s6 + $0x3e8] sm:$0xff]  ;;  %v6286_v16 = vcombine.low %v1638_v55, %v1642_v60  ;;  %8913 = vst [vmem:[#allocation33_spill] sm:$0xff] %v6288_v51  ;;  %v6360_v55 = vcombine.low %v1743_v34, %v1747_v35 }
 0x72a   :  { %2448 = vmatprep.subr.bf16.mxu1 %v6094_v17  ;;  %2489 = vmatprep.subr.bf16.mxu0 %v6096_v19  ;;  %v6294_v21 = vcombine.high %v1759_v14, %v1763_v15  ;;  %8924 = vst [vmem:[#allocation44_spill] sm:$0xff] %v6358_v49  ;;  %v6364_v60 = vcombine.high %v1734_v3, %v1738_v46  ;;  %8927 = vst [vmem:[#allocation47_spill] sm:$0xff] %v6366_v63  ;;  %v1723_v34 = vld [vmem:[%s8562_s6 + $0x2a8] sm:$0xff] }
 0x72b   :  { %8912 = vst [vmem:[#allocation32_spill] sm:$0xff] %v6286_v16  ;;  %8925 = vst [vmem:[#allocation45_spill] sm:$0xff] %v6360_v55  ;;  %v6406_v35 = vcombine.low %v1726_v1, %v1730_v12 }
 0x72c   :  { %1565 = vmatmul.mubr.bf16.vlgmr.msra.gmra.mxu1 %v5990_v18  ;;  %1618 = vmatmul.mubr.bf16.vlgmr.msra.gmra.mxu0 %v5990_v18  ;;  %v1670_v18 = vld [vmem:[%s8562_s6 + $0x100] sm:$0xff]  ;;  %8915 = vst [vmem:[#allocation35_spill] sm:$0xff] %v6294_v21  ;;  %8926 = vst [vmem:[#allocation46_spill] sm:$0xff] %v6364_v60 }
 0x72d   :  { %2449 = vmatpush1.bf16.msra.mxu1 %v6110_v54  ;;  %2490 = vmatpush1.bf16.msra.mxu0 %v6112_v57  ;;  %v6168_v33 = vcombine.high %v1670_v18, %v1674_v61  ;;  %v6188_v37 = vcombine.low %v1670_v18, %v1674_v61  ;;  %v6312_v18 = vcombine.low %v1759_v14, %v1763_v15  ;;  %v1731_v14 = vld [vmem:[%s8562_s6 + $0x2e8] sm:$0xff] }
 0x72e   :  { %2450 = vmatprep.subr.bf16.mxu1 %v6116_v23  ;;  %2491 = vmatprep.subr.bf16.mxu0 %v6118_v24  ;;  %v6316_v61 = vcombine.high %v1750_v22, %v1754_v25  ;;  %v6382_v15 = vcombine.low %v1734_v3, %v1738_v46  ;;  %v6384_v22 = vcombine.low %v1735_v47, %v1739_v8  ;;  %v1710_v8 = vld [vmem:[%s8562_s6 + $0x240] sm:$0xff] }
 0x72f   :  { %1574 = vmatprep.mubr.bf16.mxu1 %v8565_v5  ;;  %1627 = vmatprep.mubr.bf16.mxu0 %v8565_v5  ;;  %8894 = vst [vmem:[#allocation14_spill] sm:$0xff] %v6168_v33  ;;  %8896 = vst [vmem:[#allocation16_spill] sm:$0xff] %v6188_v37  ;;  %v6388_v25 = vcombine.high %v1726_v1, %v1730_v12  ;;  %v6408_v3 = vcombine.low %v1727_v13, %v1731_v14  ;;  %v1711_v1 = vld [vmem:[%s8562_s6 + $0x248] sm:$0xff] }
 0x730   :  { %8917 = vst [vmem:[#allocation37_spill] sm:$0xff] %v6312_v18  ;;  %8918 = vst [vmem:[#allocation38_spill] sm:$0xff] %v6316_v61  ;;  %v1715_v12 = vld [vmem:[%s8562_s6 + $0x268] sm:$0xff] }
 0x731   :  { %2451 = vmatpush1.bf16.msra.mxu1 %v6136_v7  ;;  %2492 = vmatpush1.bf16.msra.mxu0 %v6138_v56  ;;  %8928 = vst [vmem:[#allocation48_spill] sm:$0xff] %v6382_v15  ;;  %8929 = vst [vmem:[#allocation49_spill] sm:$0xff] %v6384_v22 }
 0x732   :  { %2452 = vmatprep.subr.bf16.mxu1 %v6142_v0  ;;  %2493 = vmatprep.subr.bf16.mxu0 %v6144_v48  ;;  %8930 = vst [vmem:[#allocation50_spill] sm:$0xff] %v6388_v25  ;;  %8932 = vst [vmem:[#allocation52_spill] sm:$0xff] %v6406_v35 }
 0x733   :  { %8933 = vst [vmem:[#allocation53_spill] sm:$0xff] %v6408_v3 }
 0x734   :  { %1575 = vmatmul.mubr.bf16.gmra.mxu1 %v6028_v30  ;;  %1628 = vmatmul.mubr.bf16.gmra.mxu0 %v6028_v30  ;;  %v1654_v30 = vld [vmem:[%s8562_s6 + $0x80] sm:$0xff] }
 0x735   :  { %2453 = vmatpush1.bf16.msra.mxu1 %v6162_v31  ;;  %2494 = vmatpush1.bf16.msra.mxu0 %v6164_v32  ;;  %v6220_v44 = vcombine.high %v1654_v30, %v1658_v41  ;;  %v6238_v6 = vcombine.low %v1654_v30, %v1658_v41  ;;  %v6336_v30 = vcombine.low %v1751_v26, %v1755_v27  ;;  %v1718_v27 = vld [vmem:[%s8562_s6 + $0x280] sm:$0xff] }
 0x736   :  { %2454 = vmatprep.subr.bf16.mxu1 %v6168_v33  ;;  %2495 = vmatprep.subr.bf16.mxu0 %v6170_v58  ;;  %v6340_v41 = vcombine.high %v1742_v29, %v1746_v62  ;;  %v6390_v26 = vcombine.high %v1727_v13, %v1731_v14  ;;  %v1722_v29 = vld [vmem:[%s8562_s6 + $0x2a0] sm:$0xff]  ;;  %v1719_v62 = vld [vmem:[%s8562_s6 + $0x288] sm:$0xff] }
 0x737   :  { %2480 = vmatprep.mubr.bf16.mxu1 %v8565_v5  ;;  %2521 = vmatprep.mubr.bf16.mxu0 %v8565_v5  ;;  %8902 = vst [vmem:[#allocation22_spill] sm:$0xff] %v6220_v44  ;;  %8904 = vst [vmem:[#allocation24_spill] sm:$0xff] %v6238_v6  ;;  %v6412_v46 = vcombine.high %v1718_v27, %v1722_v29  ;;  %v6414_v47 = vcombine.high %v1719_v62, %v1723_v34  ;;  %v1714_v5 = vld [vmem:[%s8562_s6 + $0x260] sm:$0xff] }
 0x738   :  { %8921 = vst [vmem:[#allocation41_spill] sm:$0xff] %v6336_v30  ;;  %8922 = vst [vmem:[#allocation42_spill] sm:$0xff] %v6340_v41  ;;  %v6430_v13 = vcombine.low %v1718_v27, %v1722_v29  ;;  %v6432_v14 = vcombine.low %v1719_v62, %v1723_v34  ;;  %v1703_v27 = vld [vmem:[%s8562_s6 + $0x208] sm:$0xff]  ;;  %v6454_v62 = vcombine.low %v1710_v8, %v1714_v5 }
 0x739   :  { %2455 = vmatpush1.bf16.msra.mxu1 %v6188_v37  ;;  %2496 = vmatpush1.bf16.msra.mxu0 %v6190_v38  ;;  %8931 = vst [vmem:[#allocation51_spill] sm:$0xff] %v6390_v26  ;;  %8934 = vst [vmem:[#allocation54_spill] sm:$0xff] %v6412_v46  ;;  %v1707_v29 = vld [vmem:[%s8562_s6 + $0x228] sm:$0xff]  ;;  %v6456_v34 = vcombine.low %v1711_v1, %v1715_v12 }
 0x73a   :  { %2456 = vmatprep.subr.bf16.mxu1 %v6194_v39  ;;  %2497 = vmatprep.subr.bf16.mxu0 %v6196_v40  ;;  %8935 = vst [vmem:[#allocation55_spill] sm:$0xff] %v6414_v47  ;;  %8936 = vst [vmem:[#allocation56_spill] sm:$0xff] %v6430_v13 }
 0x73b   :  { %8937 = vst [vmem:[#allocation57_spill] sm:$0xff] %v6432_v14  ;;  %8940 = vst [vmem:[#allocation60_spill] sm:$0xff] %v6454_v62 }
 0x73c   :  { %8941 = vst [vmem:[#allocation61_spill] sm:$0xff] %v6456_v34 }
 0x73d   :  { %2457 = vmatpush1.bf16.msra.mxu1 %v6214_v42  ;;  %2498 = vmatpush1.bf16.msra.mxu0 %v6216_v43 }
 0x73e   :  { %2458 = vmatprep.subr.bf16.mxu1 %v6220_v44  ;;  %2499 = vmatprep.subr.bf16.mxu0 %v6222_v45 }
 0x741   :  { %2459 = vmatpush1.bf16.msra.mxu1 %v6238_v6  ;;  %2500 = vmatpush1.bf16.msra.mxu0 %v6240_v50 }
 0x742   :  { %2460 = vmatprep.subr.bf16.mxu1 %v6244_v52  ;;  %2501 = vmatprep.subr.bf16.mxu0 %v6246_v53 }
 0x745   :  { %2461 = vmatpush1.bf16.msra.mxu1 %v6262_v2  ;;  %2502 = vmatpush1.bf16.msra.mxu0 %v6264_v9 }
 0x746   :  { %2462 = vmatprep.subr.bf16.mxu1 %v6268_v10  ;;  %2503 = vmatprep.subr.bf16.mxu0 %v6270_v11 }
 0x749   :  { %2463 = vmatpush1.bf16.msra.mxu1 %v6286_v16  ;;  %2504 = vmatpush1.bf16.msra.mxu0 %v6288_v51 }
 0x74a   :  { %2464 = vmatprep.subr.bf16.mxu1 %v6292_v20  ;;  %2505 = vmatprep.subr.bf16.mxu0 %v6294_v21 }
 0x74d   :  { %2465 = vmatpush2.bf16.msra.mxu1 %v6310_v28  ;;  %2506 = vmatpush2.bf16.msra.mxu0 %v6312_v18 }
 0x74e   :  { %2466 = vmatprep.subr.bf16.mxu1 %v6316_v61  ;;  %2507 = vmatprep.subr.bf16.mxu0 %v6318_v4 }
 0x751   :  { %2467 = vmatpush2.bf16.msra.mxu1 %v6334_v36  ;;  %2508 = vmatpush2.bf16.msra.mxu0 %v6336_v30 }
 0x752   :  { %2468 = vmatprep.subr.bf16.mxu1 %v6340_v41  ;;  %2509 = vmatprep.subr.bf16.mxu0 %v6342_v59 }
 0x755   :  { %2469 = vmatpush2.bf16.msra.mxu1 %v6358_v49  ;;  %2510 = vmatpush2.bf16.msra.mxu0 %v6360_v55 }
 0x756   :  { %2470 = vmatprep.subr.bf16.mxu1 %v6364_v60  ;;  %2511 = vmatprep.subr.bf16.mxu0 %v6366_v63 }
 0x759   :  { %2471 = vmatpush2.bf16.msra.mxu1 %v6382_v15  ;;  %2512 = vmatpush2.bf16.msra.mxu0 %v6384_v22  ;;  %v1702_v22 = vld [vmem:[%s8562_s6 + $0x200] sm:$0xff]  ;;  %v1672_v15 = vld [vmem:[%s8562_s6 + $0x110] sm:$0xff] }
 0x75a   :  { %2472 = vmatprep.subr.bf16.mxu1 %v6388_v25  ;;  %2513 = vmatprep.subr.bf16.mxu0 %v6390_v26  ;;  %v6436_v26 = vcombine.high %v1710_v8, %v1714_v5  ;;  %v6438_v25 = vcombine.high %v1711_v1, %v1715_v12  ;;  %v1697_v5 = vld [vmem:[%s8562_s6 + $0x1d8] sm:$0xff]  ;;  %v6480_v12 = vcombine.low %v1703_v27, %v1707_v29 }
 0x75b   :  { %v1701_v8 = vld [vmem:[%s8562_s6 + $0x1f8] sm:$0xff] }
 0x75c   :  { %8938 = vst [vmem:[#allocation58_spill] sm:$0xff] %v6436_v26  ;;  %8939 = vst [vmem:[#allocation59_spill] sm:$0xff] %v6438_v25 }
 0x75d   :  { %2473 = vmatpush2.bf16.msra.mxu1 %v6406_v35  ;;  %2514 = vmatpush2.bf16.msra.mxu0 %v6408_v3  ;;  %v1706_v3 = vld [vmem:[%s8562_s6 + $0x220] sm:$0xff]  ;;  %v1696_v35 = vld [vmem:[%s8562_s6 + $0x1d0] sm:$0xff]  ;;  %8945 = vst [vmem:[#allocation65_spill] sm:$0xff] %v6480_v12 }
 0x75e   :  { %2474 = vmatprep.subr.bf16.mxu1 %v6412_v46  ;;  %2515 = vmatprep.subr.bf16.mxu0 %v6414_v47  ;;  %v6460_v47 = vcombine.high %v1702_v22, %v1706_v3  ;;  %v6462_v46 = vcombine.high %v1703_v27, %v1707_v29  ;;  %v6478_v1 = vcombine.low %v1702_v22, %v1706_v3  ;;  %v1689_v22 = vld [vmem:[%s8562_s6 + $0x198] sm:$0xff] }
 0x75f   :  { %v1693_v3 = vld [vmem:[%s8562_s6 + $0x1b8] sm:$0xff]  ;;  %v6504_v29 = vcombine.low %v1697_v5, %v1701_v8 }
 0x760   :  { %8942 = vst [vmem:[#allocation62_spill] sm:$0xff] %v6460_v47  ;;  %8943 = vst [vmem:[#allocation63_spill] sm:$0xff] %v6462_v46 }
 0x761   :  { %2475 = vmatpush2.bf16.msra.mxu1 %v6430_v13  ;;  %2516 = vmatpush2.bf16.msra.mxu0 %v6432_v14  ;;  %v1700_v14 = vld [vmem:[%s8562_s6 + $0x1f0] sm:$0xff]  ;;  %8944 = vst [vmem:[#allocation64_spill] sm:$0xff] %v6478_v1  ;;  %8949 = vst [vmem:[#allocation69_spill] sm:$0xff] %v6504_v29 }
 0x762   :  { %2476 = vmatprep.subr.bf16.mxu1 %v6436_v26  ;;  %2517 = vmatprep.subr.bf16.mxu0 %v6438_v25  ;;  %v6484_v25 = vcombine.high %v1696_v35, %v1700_v14  ;;  %v6486_v26 = vcombine.high %v1697_v5, %v1701_v8  ;;  %v1688_v13 = vld [vmem:[%s8562_s6 + $0x190] sm:$0xff]  ;;  %v6502_v27 = vcombine.low %v1696_v35, %v1700_v14  ;;  %v1681_v35 = vld [vmem:[%s8562_s6 + $0x158] sm:$0xff]  ;;  %v8952_v5 = vmov 0  }
 0x763   :  { %v1685_v14 = vld [vmem:[%s8562_s6 + $0x178] sm:$0xff] }
 0x764   :  { %8946 = vst [vmem:[#allocation66_spill] sm:$0xff] %v6484_v25  ;;  %8947 = vst [vmem:[#allocation67_spill] sm:$0xff] %v6486_v26 }
 0x765   :  { %2477 = vmatpush2.bf16.msra.mxu1 %v6454_v62  ;;  %2518 = vmatpush2.bf16.msra.mxu0 %v6456_v34  ;;  %v1692_v34 = vld [vmem:[%s8562_s6 + $0x1b0] sm:$0xff]  ;;  %8948 = vst [vmem:[#allocation68_spill] sm:$0xff] %v6502_v27 }
 0x766   :  { %2478 = vmatprep.subr.bf16.mxu1 %v6460_v47  ;;  %2519 = vmatprep.subr.bf16.mxu0 %v6462_v46  ;;  %v6508_v46 = vcombine.high %v1688_v13, %v1692_v34  ;;  %v6510_v47 = vcombine.high %v1689_v22, %v1693_v3  ;;  %v1680_v62 = vld [vmem:[%s8562_s6 + $0x150] sm:$0xff]  ;;  %v6528_v8 = vcombine.low %v1688_v13, %v1692_v34  ;;  %v1673_v13 = vld [vmem:[%s8562_s6 + $0x118] sm:$0xff] }
 0x767   :  { %v1677_v34 = vld [vmem:[%s8562_s6 + $0x138] sm:$0xff] }
 0x768   :  { %8950 = vst [vmem:[#allocation70_spill] sm:$0xff] %v6508_v46  ;;  %8951 = vst [vmem:[#allocation71_spill] sm:$0xff] %v6510_v47 }
 0x769   :  { %2479 = vmatpush2.bf16.msra.mxu1 %v6478_v1  ;;  %2520 = vmatpush2.bf16.msra.mxu0 %v6480_v12  ;;  %v1684_v12 = vld [vmem:[%s8562_s6 + $0x170] sm:$0xff]  ;;  %8953 = vst [vmem:[#allocation72_spill] sm:$0xff] %v6528_v8  ;;  %v6536_v1 = vcombine.high %v1681_v35, %v1685_v14 }
 0x76a   :  { %2530 = vmatprep.subr.bf16.mxu1 %v6484_v25  ;;  %2571 = vmatprep.subr.bf16.mxu0 %v6486_v26  ;;  %v6530_v26 = vcombine.low %v1689_v22, %v1693_v3  ;;  %v6534_v25 = vcombine.high %v1680_v62, %v1684_v12  ;;  %v6554_v22 = vcombine.low %v1680_v62, %v1684_v12  ;;  %v1665_v62 = vld [vmem:[%s8562_s6 + $0xd8] sm:$0xff] }
 0x76b   :  { %8956 = vst [vmem:[#allocation75_spill] sm:$0xff] %v6536_v1  ;;  %v6556_v3 = vcombine.low %v1681_v35, %v1685_v14  ;;  %v1669_v12 = vld [vmem:[%s8562_s6 + $0xf8] sm:$0xff]  ;;  %v6580_v14 = vcombine.low %v1673_v13, %v1677_v34 }
 0x76c   :  { %2481 = vmatmul.mubr.bf16.vlgmr.msra.gmra.mxu1 %v8952_v5  ;;  %2522 = vmatmul.mubr.bf16.vlgmr.msra.gmra.mxu0 %v8952_v5  ;;  %8954 = vst [vmem:[#allocation73_spill] sm:$0xff] %v6530_v26  ;;  %8955 = vst [vmem:[#allocation74_spill] sm:$0xff] %v6534_v25 }
 0x76d   :  { %2531 = vmatpush1.bf16.msra.mxu1 %v6502_v27  ;;  %2572 = vmatpush1.bf16.msra.mxu0 %v6504_v29  ;;  %v1676_v29 = vld [vmem:[%s8562_s6 + $0x130] sm:$0xff]  ;;  %8957 = vst [vmem:[#allocation76_spill] sm:$0xff] %v6554_v22  ;;  %8958 = vst [vmem:[#allocation77_spill] sm:$0xff] %v6556_v3 }
 0x76e   :  { %2532 = vmatprep.subr.bf16.mxu1 %v6508_v46  ;;  %2573 = vmatprep.subr.bf16.mxu0 %v6510_v47  ;;  %v6560_v47 = vcombine.high %v1672_v15, %v1676_v29  ;;  %v6562_v46 = vcombine.high %v1673_v13, %v1677_v34  ;;  %v1664_v27 = vld [vmem:[%s8562_s6 + $0xd0] sm:$0xff]  ;;  %v6578_v35 = vcombine.low %v1672_v15, %v1676_v29  ;;  %v1657_v15 = vld [vmem:[%s8562_s6 + $0x98] sm:$0xff] }
 0x76f   :  { %2562 = vmatprep.mubr.bf16.mxu1 %v8952_v5  ;;  %2603 = vmatprep.mubr.bf16.mxu0 %v8952_v5  ;;  %8962 = vst [vmem:[#allocation81_spill] sm:$0xff] %v6580_v14  ;;  %v1661_v29 = vld [vmem:[%s8562_s6 + $0xb8] sm:$0xff]  ;;  %v6604_v34 = vcombine.low %v1665_v62, %v1669_v12 }
 0x770   :  { %8959 = vst [vmem:[#allocation78_spill] sm:$0xff] %v6560_v47  ;;  %8960 = vst [vmem:[#allocation79_spill] sm:$0xff] %v6562_v46 }
 0x771   :  { %2533 = vmatpush1.bf16.msra.mxu1 %v6528_v8  ;;  %2574 = vmatpush1.bf16.msra.mxu0 %v6530_v26  ;;  %v1668_v26 = vld [vmem:[%s8562_s6 + $0xf0] sm:$0xff]  ;;  %8961 = vst [vmem:[#allocation80_spill] sm:$0xff] %v6578_v35  ;;  %8966 = vst [vmem:[#allocation85_spill] sm:$0xff] %v6604_v34 }
 0x772   :  { %2534 = vmatprep.subr.bf16.mxu1 %v6534_v25  ;;  %2575 = vmatprep.subr.bf16.mxu0 %v6536_v1  ;;  %v6584_v1 = vcombine.high %v1664_v27, %v1668_v26  ;;  %v6586_v25 = vcombine.high %v1665_v62, %v1669_v12  ;;  %v1656_v8 = vld [vmem:[%s8562_s6 + $0x90] sm:$0xff]  ;;  %v6602_v13 = vcombine.low %v1664_v27, %v1668_v26  ;;  %v1649_v26 = vld [vmem:[%s8562_s6 + $0x58] sm:$0xff] }
 0x773   :  { %v1653_v27 = vld [vmem:[%s8562_s6 + $0x78] sm:$0xff]  ;;  %v6628_v12 = vcombine.low %v1657_v15, %v1661_v29 }
 0x774   :  { %8963 = vst [vmem:[#allocation82_spill] sm:$0xff] %v6584_v1  ;;  %8964 = vst [vmem:[#allocation83_spill] sm:$0xff] %v6586_v25 }
 0x775   :  { %2535 = vmatpush1.bf16.msra.mxu1 %v6554_v22  ;;  %2576 = vmatpush1.bf16.msra.mxu0 %v6556_v3  ;;  %v1660_v3 = vld [vmem:[%s8562_s6 + $0xb0] sm:$0xff]  ;;  %8965 = vst [vmem:[#allocation84_spill] sm:$0xff] %v6602_v13  ;;  %8970 = vst [vmem:[#allocation89_spill] sm:$0xff] %v6628_v12 }
 0x776   :  { %2536 = vmatprep.subr.bf16.mxu1 %v6560_v47  ;;  %2577 = vmatprep.subr.bf16.mxu0 %v6562_v46  ;;  %v6608_v46 = vcombine.high %v1656_v8, %v1660_v3  ;;  %v6610_v47 = vcombine.high %v1657_v15, %v1661_v29  ;;  %v1648_v22 = vld [vmem:[%s8562_s6 + $0x50] sm:$0xff]  ;;  %v6626_v62 = vcombine.low %v1656_v8, %v1660_v3  ;;  %v1641_v8 = vld [vmem:[%s8562_s6 + $0x18] sm:$0xff] }
 0x777   :  { %v1645_v3 = vld [vmem:[%s8562_s6 + $0x38] sm:$0xff]  ;;  %v6652_v29 = vcombine.low %v1649_v26, %v1653_v27 }
 0x778   :  { %8967 = vst [vmem:[#allocation86_spill] sm:$0xff] %v6608_v46  ;;  %8968 = vst [vmem:[#allocation87_spill] sm:$0xff] %v6610_v47 }
 0x779   :  { %2537 = vmatpush1.bf16.msra.mxu1 %v6578_v35  ;;  %2578 = vmatpush1.bf16.msra.mxu0 %v6580_v14  ;;  %v1652_v14 = vld [vmem:[%s8562_s6 + $0x70] sm:$0xff]  ;;  %8969 = vst [vmem:[#allocation88_spill] sm:$0xff] %v6626_v62  ;;  %8974 = vst [vmem:[#allocation93_spill] sm:$0xff] %v6652_v29 }
 0x77a   :  { %2538 = vmatprep.subr.bf16.mxu1 %v6584_v1  ;;  %2579 = vmatprep.subr.bf16.mxu0 %v6586_v25  ;;  %v6632_v25 = vcombine.high %v1648_v22, %v1652_v14  ;;  %v6634_v1 = vcombine.high %v1649_v26, %v1653_v27  ;;  %v1640_v35 = vld [vmem:[%s8562_s6 + $0x10] sm:$0xff]  ;;  %v6650_v15 = vcombine.low %v1648_v22, %v1652_v14  ;;  %v1761_v22 = vld [vmem:[%s8562_s6 + $0x3d8] sm:$0xff] }
 0x77b   :  { %v1765_v14 = vld [vmem:[%s8562_s6 + $0x3f8] sm:$0xff]  ;;  %v6676_v27 = vcombine.low %v1641_v8, %v1645_v3 }
 0x77c   :  { %8971 = vst [vmem:[#allocation90_spill] sm:$0xff] %v6632_v25  ;;  %8972 = vst [vmem:[#allocation91_spill] sm:$0xff] %v6634_v1 }
 0x77d   :  { %2539 = vmatpush1.bf16.msra.mxu1 %v6602_v13  ;;  %2580 = vmatpush1.bf16.msra.mxu0 %v6604_v34  ;;  %v1644_v34 = vld [vmem:[%s8562_s6 + $0x30] sm:$0xff]  ;;  %8973 = vst [vmem:[#allocation92_spill] sm:$0xff] %v6650_v15  ;;  %8978 = vst [vmem:[#allocation97_spill] sm:$0xff] %v6676_v27 }
 0x77e   :  { %2540 = vmatprep.subr.bf16.mxu1 %v6608_v46  ;;  %2581 = vmatprep.subr.bf16.mxu0 %v6610_v47  ;;  %v6656_v47 = vcombine.high %v1640_v35, %v1644_v34  ;;  %v6658_v46 = vcombine.high %v1641_v8, %v1645_v3  ;;  %v1760_v13 = vld [vmem:[%s8562_s6 + $0x3d0] sm:$0xff]  ;;  %v6674_v26 = vcombine.low %v1640_v35, %v1644_v34  ;;  %v1753_v35 = vld [vmem:[%s8562_s6 + $0x398] sm:$0xff] }
 0x77f   :  { %v1757_v34 = vld [vmem:[%s8562_s6 + $0x3b8] sm:$0xff]  ;;  %v6700_v3 = vcombine.low %v1761_v22, %v1765_v14 }
 0x780   :  { %8975 = vst [vmem:[#allocation94_spill] sm:$0xff] %v6656_v47  ;;  %8976 = vst [vmem:[#allocation95_spill] sm:$0xff] %v6658_v46 }
 0x781   :  { %2541 = vmatpush1.bf16.msra.mxu1 %v6626_v62  ;;  %2582 = vmatpush1.bf16.msra.mxu0 %v6628_v12  ;;  %v1764_v12 = vld [vmem:[%s8562_s6 + $0x3f0] sm:$0xff]  ;;  %8977 = vst [vmem:[#allocation96_spill] sm:$0xff] %v6674_v26  ;;  %8982 = vst [vmem:[#allocation101_spill] sm:$0xff] %v6700_v3 }
 0x782   :  { %2542 = vmatprep.subr.bf16.mxu1 %v6632_v25  ;;  %2583 = vmatprep.subr.bf16.mxu0 %v6634_v1  ;;  %v6680_v1 = vcombine.high %v1760_v13, %v1764_v12  ;;  %v6682_v25 = vcombine.high %v1761_v22, %v1765_v14  ;;  %v1752_v62 = vld [vmem:[%s8562_s6 + $0x390] sm:$0xff]  ;;  %v6698_v8 = vcombine.low %v1760_v13, %v1764_v12  ;;  %v1745_v13 = vld [vmem:[%s8562_s6 + $0x358] sm:$0xff] }
 0x783   :  { %v1749_v12 = vld [vmem:[%s8562_s6 + $0x378] sm:$0xff]  ;;  %v6724_v14 = vcombine.low %v1753_v35, %v1757_v34 }
 0x784   :  { %8979 = vst [vmem:[#allocation98_spill] sm:$0xff] %v6680_v1  ;;  %8980 = vst [vmem:[#allocation99_spill] sm:$0xff] %v6682_v25 }
 0x785   :  { %2543 = vmatpush1.bf16.msra.mxu1 %v6650_v15  ;;  %2584 = vmatpush1.bf16.msra.mxu0 %v6652_v29  ;;  %v1756_v29 = vld [vmem:[%s8562_s6 + $0x3b0] sm:$0xff]  ;;  %8981 = vst [vmem:[#allocation100_spill] sm:$0xff] %v6698_v8  ;;  %8986 = vst [vmem:[#allocation105_spill] sm:$0xff] %v6724_v14 }
 0x786   :  { %2544 = vmatprep.subr.bf16.mxu1 %v6656_v47  ;;  %2585 = vmatprep.subr.bf16.mxu0 %v6658_v46  ;;  %v6704_v46 = vcombine.high %v1752_v62, %v1756_v29  ;;  %v6706_v47 = vcombine.high %v1753_v35, %v1757_v34  ;;  %v1744_v15 = vld [vmem:[%s8562_s6 + $0x350] sm:$0xff]  ;;  %v6722_v22 = vcombine.low %v1752_v62, %v1756_v29  ;;  %v1737_v62 = vld [vmem:[%s8562_s6 + $0x318] sm:$0xff] }
 0x787   :  { %v1741_v29 = vld [vmem:[%s8562_s6 + $0x338] sm:$0xff]  ;;  %v6748_v34 = vcombine.low %v1745_v13, %v1749_v12 }
 0x788   :  { %8983 = vst [vmem:[#allocation102_spill] sm:$0xff] %v6704_v46  ;;  %8984 = vst [vmem:[#allocation103_spill] sm:$0xff] %v6706_v47 }
 0x789   :  { %2545 = vmatpush1.bf16.msra.mxu1 %v6674_v26  ;;  %2586 = vmatpush1.bf16.msra.mxu0 %v6676_v27  ;;  %v1748_v27 = vld [vmem:[%s8562_s6 + $0x370] sm:$0xff]  ;;  %8985 = vst [vmem:[#allocation104_spill] sm:$0xff] %v6722_v22  ;;  %8990 = vst [vmem:[#allocation109_spill] sm:$0xff] %v6748_v34 }
 0x78a   :  { %2546 = vmatprep.subr.bf16.mxu1 %v6680_v1  ;;  %2587 = vmatprep.subr.bf16.mxu0 %v6682_v25  ;;  %v6728_v25 = vcombine.high %v1744_v15, %v1748_v27  ;;  %v6730_v1 = vcombine.high %v1745_v13, %v1749_v12  ;;  %v1736_v26 = vld [vmem:[%s8562_s6 + $0x310] sm:$0xff]  ;;  %v6746_v35 = vcombine.low %v1744_v15, %v1748_v27  ;;  %v1729_v15 = vld [vmem:[%s8562_s6 + $0x2d8] sm:$0xff] }
 0x78b   :  { %v1733_v27 = vld [vmem:[%s8562_s6 + $0x2f8] sm:$0xff]  ;;  %v6772_v12 = vcombine.low %v1737_v62, %v1741_v29 }
 0x78c   :  { %8987 = vst [vmem:[#allocation106_spill] sm:$0xff] %v6728_v25  ;;  %8988 = vst [vmem:[#allocation107_spill] sm:$0xff] %v6730_v1 }
 0x78d   :  { %2547 = vmatpush2.bf16.msra.mxu1 %v6698_v8  ;;  %2588 = vmatpush2.bf16.msra.mxu0 %v6700_v3  ;;  %v1740_v3 = vld [vmem:[%s8562_s6 + $0x330] sm:$0xff]  ;;  %8989 = vst [vmem:[#allocation108_spill] sm:$0xff] %v6746_v35  ;;  %8994 = vst [vmem:[#allocation113_spill] sm:$0xff] %v6772_v12 }
 0x78e   :  { %2548 = vmatprep.subr.bf16.mxu1 %v6704_v46  ;;  %2589 = vmatprep.subr.bf16.mxu0 %v6706_v47  ;;  %v6752_v47 = vcombine.high %v1736_v26, %v1740_v3  ;;  %v6754_v46 = vcombine.high %v1737_v62, %v1741_v29  ;;  %v1728_v8 = vld [vmem:[%s8562_s6 + $0x2d0] sm:$0xff]  ;;  %v6770_v13 = vcombine.low %v1736_v26, %v1740_v3  ;;  %v1721_v26 = vld [vmem:[%s8562_s6 + $0x298] sm:$0xff] }
 0x78f   :  { %v1725_v3 = vld [vmem:[%s8562_s6 + $0x2b8] sm:$0xff]  ;;  %v6796_v29 = vcombine.low %v1729_v15, %v1733_v27 }
 0x790   :  { %8991 = vst [vmem:[#allocation110_spill] sm:$0xff] %v6752_v47  ;;  %8992 = vst [vmem:[#allocation111_spill] sm:$0xff] %v6754_v46 }
 0x791   :  { %2549 = vmatpush2.bf16.msra.mxu1 %v6722_v22  ;;  %2590 = vmatpush2.bf16.msra.mxu0 %v6724_v14  ;;  %v1732_v14 = vld [vmem:[%s8562_s6 + $0x2f0] sm:$0xff]  ;;  %8993 = vst [vmem:[#allocation112_spill] sm:$0xff] %v6770_v13  ;;  %8998 = vst [vmem:[#allocation117_spill] sm:$0xff] %v6796_v29 }
 0x792   :  { %2550 = vmatprep.subr.bf16.mxu1 %v6728_v25  ;;  %2591 = vmatprep.subr.bf16.mxu0 %v6730_v1  ;;  %v6776_v1 = vcombine.high %v1728_v8, %v1732_v14  ;;  %v6778_v25 = vcombine.high %v1729_v15, %v1733_v27  ;;  %v1720_v22 = vld [vmem:[%s8562_s6 + $0x290] sm:$0xff]  ;;  %v6794_v62 = vcombine.low %v1728_v8, %v1732_v14  ;;  %v1713_v8 = vld [vmem:[%s8562_s6 + $0x258] sm:$0xff] }
 0x793   :  { %v1717_v14 = vld [vmem:[%s8562_s6 + $0x278] sm:$0xff]  ;;  %v6820_v27 = vcombine.low %v1721_v26, %v1725_v3 }
 0x794   :  { %8995 = vst [vmem:[#allocation114_spill] sm:$0xff] %v6776_v1  ;;  %8996 = vst [vmem:[#allocation115_spill] sm:$0xff] %v6778_v25 }
 0x795   :  { %2551 = vmatpush2.bf16.msra.mxu1 %v6746_v35  ;;  %2592 = vmatpush2.bf16.msra.mxu0 %v6748_v34  ;;  %v1724_v34 = vld [vmem:[%s8562_s6 + $0x2b0] sm:$0xff]  ;;  %8997 = vst [vmem:[#allocation116_spill] sm:$0xff] %v6794_v62  ;;  %9002 = vst [vmem:[#allocation121_spill] sm:$0xff] %v6820_v27 }
 0x796   :  { %2552 = vmatprep.subr.bf16.mxu1 %v6752_v47  ;;  %2593 = vmatprep.subr.bf16.mxu0 %v6754_v46  ;;  %v6800_v46 = vcombine.high %v1720_v22, %v1724_v34  ;;  %v6802_v47 = vcombine.high %v1721_v26, %v1725_v3  ;;  %v1712_v35 = vld [vmem:[%s8562_s6 + $0x250] sm:$0xff]  ;;  %v6818_v15 = vcombine.low %v1720_v22, %v1724_v34  ;;  %v1705_v22 = vld [vmem:[%s8562_s6 + $0x218] sm:$0xff] }
 0x797   :  { %v1709_v34 = vld [vmem:[%s8562_s6 + $0x238] sm:$0xff]  ;;  %v6844_v3 = vcombine.low %v1713_v8, %v1717_v14 }
 0x798   :  { %8999 = vst [vmem:[#allocation118_spill] sm:$0xff] %v6800_v46  ;;  %9000 = vst [vmem:[#allocation119_spill] sm:$0xff] %v6802_v47 }
 0x799   :  { %2553 = vmatpush2.bf16.msra.mxu1 %v6770_v13  ;;  %2594 = vmatpush2.bf16.msra.mxu0 %v6772_v12  ;;  %v1716_v12 = vld [vmem:[%s8562_s6 + $0x270] sm:$0xff]  ;;  %9001 = vst [vmem:[#allocation120_spill] sm:$0xff] %v6818_v15  ;;  %9006 = vst [vmem:[#allocation125_spill] sm:$0xff] %v6844_v3 }
 0x79a   :  { %2554 = vmatprep.subr.bf16.mxu1 %v6776_v1  ;;  %2595 = vmatprep.subr.bf16.mxu0 %v6778_v25  ;;  %v6824_v25 = vcombine.high %v1712_v35, %v1716_v12  ;;  %v6826_v1 = vcombine.high %v1713_v8, %v1717_v14  ;;  %v1704_v13 = vld [vmem:[%s8562_s6 + $0x210] sm:$0xff]  ;;  %v6842_v26 = vcombine.low %v1712_v35, %v1716_v12 }
 0x79b   :  { %v9015_v14 = vld [vmem:[#allocation48_spill] sm:$0xff] }
 0x79c   :  { %9003 = vst [vmem:[#allocation122_spill] sm:$0xff] %v6824_v25  ;;  %9004 = vst [vmem:[#allocation123_spill] sm:$0xff] %v6826_v1 }
 0x79d   :  { %2555 = vmatpush2.bf16.msra.mxu1 %v6794_v62  ;;  %2596 = vmatpush2.bf16.msra.mxu0 %v6796_v29  ;;  %v1708_v29 = vld [vmem:[%s8562_s6 + $0x230] sm:$0xff]  ;;  %9005 = vst [vmem:[#allocation124_spill] sm:$0xff] %v6842_v26 }
 0x79e   :  { %2556 = vmatprep.subr.bf16.mxu1 %v6800_v46  ;;  %2597 = vmatprep.subr.bf16.mxu0 %v6802_v47  ;;  %v6848_v47 = vcombine.high %v1704_v13, %v1708_v29  ;;  %v6850_v46 = vcombine.high %v1705_v22, %v1709_v34  ;;  %v6854_v62 = vcombine.low %v1704_v13, %v1708_v29 }
 0x7a0   :  { %9007 = vst [vmem:[#allocation126_spill] sm:$0xff] %v6848_v47  ;;  %9008 = vst [vmem:[#allocation127_spill] sm:$0xff] %v6850_v46 }
 0x7a1   :  { %2557 = vmatpush2.bf16.msra.mxu1 %v6818_v15  ;;  %2598 = vmatpush2.bf16.msra.mxu0 %v6820_v27  ;;  %9009 = vst [vmem:[#allocation128_spill] sm:$0xff] %v6854_v62  ;;  %v6856_v15 = vcombine.low %v1705_v22, %v1709_v34  ;;  %v9016_v22 = vld [vmem:[#allocation49_spill] sm:$0xff] }
 0x7a2   :  { %2558 = vmatprep.subr.bf16.mxu1 %v6824_v25  ;;  %2599 = vmatprep.subr.bf16.mxu0 %v6826_v1 }
 0x7a3   :  { %9010 = vst [vmem:[#allocation129_spill] sm:$0xff] %v6856_v15 }
 0x7a5   :  { %2559 = vmatpush2.bf16.msra.mxu1 %v6842_v26  ;;  %2600 = vmatpush2.bf16.msra.mxu0 %v6844_v3 }
 0x7a6   :  { %2560 = vmatprep.subr.bf16.mxu1 %v6848_v47  ;;  %2601 = vmatprep.subr.bf16.mxu0 %v6850_v46 }
 0x7a9   :  { %2561 = vmatpush2.bf16.msra.mxu1 %v6854_v62  ;;  %2602 = vmatpush2.bf16.msra.mxu0 %v6856_v15 }
 0x7aa   :  { %2765 = vmatprep.subr.bf16.mxu1 %v6094_v17  ;;  %2806 = vmatprep.subr.bf16.mxu0 %v6096_v19 }
 0x7ac   :  { %2563 = vmatmul.mubr.bf16.vlgmr.msra.gmra.mxu1 %v8952_v5  ;;  %2604 = vmatmul.mubr.bf16.vlgmr.msra.gmra.mxu0 %v8952_v5 }
 0x7ad   :  { %2766 = vmatpush1.bf16.msra.mxu1 %v6110_v54  ;;  %2807 = vmatpush1.bf16.msra.mxu0 %v6112_v57 }
 0x7ae   :  { %2767 = vmatprep.subr.bf16.mxu1 %v6116_v23  ;;  %2808 = vmatprep.subr.bf16.mxu0 %v6118_v24 }
 0x7b1   :  { %2768 = vmatpush1.bf16.msra.mxu1 %v6136_v7  ;;  %2809 = vmatpush1.bf16.msra.mxu0 %v6138_v56 }
 0x7b2   :  { %2769 = vmatprep.subr.bf16.mxu1 %v6142_v0  ;;  %2810 = vmatprep.subr.bf16.mxu0 %v6144_v48 }
 0x7b5   :  { %2770 = vmatpush1.bf16.msra.mxu1 %v6162_v31  ;;  %2811 = vmatpush1.bf16.msra.mxu0 %v6164_v32 }
 0x7b6   :  { %2771 = vmatprep.subr.bf16.mxu1 %v6168_v33  ;;  %2812 = vmatprep.subr.bf16.mxu0 %v6170_v58 }
 0x7b9   :  { %2772 = vmatpush1.bf16.msra.mxu1 %v6188_v37  ;;  %2813 = vmatpush1.bf16.msra.mxu0 %v6190_v38 }
 0x7ba   :  { %2773 = vmatprep.subr.bf16.mxu1 %v6194_v39  ;;  %2814 = vmatprep.subr.bf16.mxu0 %v6196_v40 }
 0x7bd   :  { %2774 = vmatpush1.bf16.msra.mxu1 %v6214_v42  ;;  %2815 = vmatpush1.bf16.msra.mxu0 %v6216_v43 }
 0x7be   :  { %2775 = vmatprep.subr.bf16.mxu1 %v6220_v44  ;;  %2816 = vmatprep.subr.bf16.mxu0 %v6222_v45 }
 0x7c1   :  { %2776 = vmatpush1.bf16.msra.mxu1 %v6238_v6  ;;  %2817 = vmatpush1.bf16.msra.mxu0 %v6240_v50 }
 0x7c2   :  { %2777 = vmatprep.subr.bf16.mxu1 %v6244_v52  ;;  %2818 = vmatprep.subr.bf16.mxu0 %v6246_v53 }
 0x7c5   :  { %2778 = vmatpush1.bf16.msra.mxu1 %v6262_v2  ;;  %2819 = vmatpush1.bf16.msra.mxu0 %v6264_v9 }
 0x7c6   :  { %2779 = vmatprep.subr.bf16.mxu1 %v6268_v10  ;;  %2820 = vmatprep.subr.bf16.mxu0 %v6270_v11 }
 0x7c9   :  { %2780 = vmatpush1.bf16.msra.mxu1 %v6286_v16  ;;  %2821 = vmatpush1.bf16.msra.mxu0 %v6288_v51 }
 0x7ca   :  { %2781 = vmatprep.subr.bf16.mxu1 %v6292_v20  ;;  %2822 = vmatprep.subr.bf16.mxu0 %v6294_v21  ;;  %v9038_v21 = vld [vmem:[#allocation65_spill] sm:$0xff] }
 0x7cc   :  { %v6900_v5 = vpop.f32.mrf.mxu1  ;;  %v6902_v35 = vpop.f32.mrf.mxu0 }
 0x7cd   :  { %2782 = vmatpush2.bf16.msra.mxu1 %v6310_v28  ;;  %2823 = vmatpush2.bf16.msra.mxu0 %v6312_v18  ;;  %9011 = vst [vmem:[#allocation130_spill] sm:$0xff] %v6900_v5  ;;  %v9033_v18 = vld [vmem:[#allocation61_spill] sm:$0xff] }
 0x7ce   :  { %2783 = vmatprep.subr.bf16.mxu1 %v6316_v61  ;;  %2824 = vmatprep.subr.bf16.mxu0 %v6318_v4  ;;  %v6908_v13 = vpop.f32.mrf.mxu1  ;;  %v6910_v12 = vpop.f32.mrf.mxu0  ;;  %v9027_v4 = vld [vmem:[#allocation57_spill] sm:$0xff] }
 0x7cf   :  { %9012 = vst [vmem:[#allocation131_spill] sm:$0xff] %v6908_v13  ;;  %9013 = vst [vmem:[#allocation132_spill] sm:$0xff] %v6910_v12 }
 0x7d0   :  { %v6916_v29 = vpop.f32.mrf.mxu1  ;;  %v6918_v8 = vpop.f32.mrf.mxu0 }
 0x7d1   :  { %2784 = vmatpush2.bf16.msra.mxu1 %v6334_v36  ;;  %2825 = vmatpush2.bf16.msra.mxu0 %v6336_v30  ;;  %9014 = vst [vmem:[#allocation133_spill] sm:$0xff] %v6916_v29  ;;  %v9022_v30 = vld [vmem:[#allocation53_spill] sm:$0xff] }
 0x7d2   :  { %2785 = vmatprep.subr.bf16.mxu1 %v6340_v41  ;;  %2826 = vmatprep.subr.bf16.mxu0 %v6342_v59  ;;  %v6924_v34 = vpop.f32.mrf.mxu1  ;;  %v6926_v41 = vpop.f32.mrf.mxu0  ;;  %v9019_v59 = vld [vmem:[#allocation50_spill] sm:$0xff] }
 0x7d3   :  { %9017 = vst [vmem:[#allocation134_spill] sm:$0xff] %v6924_v34  ;;  %9018 = vst [vmem:[#allocation135_spill] sm:$0xff] %v6926_v41 }
 0x7d4   :  { %v6932_v36 = vpop.f32.mrf.mxu1 }
 0x7d5   :  { %2786 = vmatpush2.bf16.msra.mxu1 %v6358_v49  ;;  %2827 = vmatpush2.bf16.msra.mxu0 %v6360_v55  ;;  %v9020_v49 = vld [vmem:[#allocation51_spill] sm:$0xff]  ;;  %v9021_v55 = vld [vmem:[#allocation52_spill] sm:$0xff]  ;;  %9023 = vst [vmem:[#allocation136_spill] sm:$0xff] %v6932_v36 }
 0x7d6   :  { %2787 = vmatprep.subr.bf16.mxu1 %v6364_v60  ;;  %2828 = vmatprep.subr.bf16.mxu0 %v6366_v63  ;;  %v6934_v60 = vpop.f32.mrf.mxu0  ;;  %v9024_v63 = vld [vmem:[#allocation54_spill] sm:$0xff]  ;;  %v6940_v61 = vpop.f32.mrf.mxu1 }
 0x7d7   :  { %9028 = vst [vmem:[#allocation137_spill] sm:$0xff] %v6940_v61 }
 0x7d8   :  { %v6948_v28 = vpop.f32.mrf.mxu1 }
 0x7d9   :  { %2788 = vmatpush2.bf16.msra.mxu1 %v9015_v14  ;;  %2829 = vmatpush2.bf16.msra.mxu0 %v9016_v22  ;;  %v9025_v14 = vld [vmem:[#allocation55_spill] sm:$0xff]  ;;  %v9026_v22 = vld [vmem:[#allocation56_spill] sm:$0xff]  ;;  %9034 = vst [vmem:[#allocation139_spill] sm:$0xff] %v6948_v28 }
 0x7da   :  { %2789 = vmatprep.subr.bf16.mxu1 %v9019_v59  ;;  %2830 = vmatprep.subr.bf16.mxu0 %v9020_v49  ;;  %v6942_v59 = vpop.f32.mrf.mxu0  ;;  %v9030_v49 = vld [vmem:[#allocation58_spill] sm:$0xff]  ;;  %v6956_v20 = vpop.f32.mrf.mxu1 }
 0x7db   :  { %9029 = vst [vmem:[#allocation138_spill] sm:$0xff] %v6942_v59  ;;  %9039 = vst [vmem:[#allocation140_spill] sm:$0xff] %v6956_v20 }
 0x7dd   :  { %2790 = vmatpush2.bf16.msra.mxu1 %v9021_v55  ;;  %2831 = vmatpush2.bf16.msra.mxu0 %v9022_v30  ;;  %v9031_v55 = vld [vmem:[#allocation59_spill] sm:$0xff]  ;;  %v9032_v30 = vld [vmem:[#allocation60_spill] sm:$0xff] }
 0x7de   :  { %2791 = vmatprep.subr.bf16.mxu1 %v9024_v63  ;;  %2832 = vmatprep.subr.bf16.mxu0 %v9025_v14  ;;  %v6950_v63 = vpop.f32.mrf.mxu0  ;;  %v9035_v14 = vld [vmem:[#allocation62_spill] sm:$0xff] }
 0x7e1   :  { %2792 = vmatpush2.bf16.msra.mxu1 %v9026_v22  ;;  %2833 = vmatpush2.bf16.msra.mxu0 %v9027_v4  ;;  %v9036_v22 = vld [vmem:[#allocation63_spill] sm:$0xff]  ;;  %v9037_v4 = vld [vmem:[#allocation64_spill] sm:$0xff] }
 0x7e2   :  { %2793 = vmatprep.subr.bf16.mxu1 %v9030_v49  ;;  %2834 = vmatprep.subr.bf16.mxu0 %v9031_v55  ;;  %v6958_v49 = vpop.f32.mrf.mxu0  ;;  %v9041_v55 = vld [vmem:[#allocation66_spill] sm:$0xff] }
 0x7e3   :  { %9040 = vst [vmem:[#allocation141_spill] sm:$0xff] %v6958_v49 }
 0x7e5   :  { %2794 = vmatpush2.bf16.msra.mxu1 %v9032_v30  ;;  %2835 = vmatpush2.bf16.msra.mxu0 %v9033_v18  ;;  %v9042_v30 = vld [vmem:[#allocation67_spill] sm:$0xff] }
 0x7e6   :  { %2795 = vmatprep.subr.bf16.mxu1 %v9035_v14  ;;  %2836 = vmatprep.subr.bf16.mxu0 %v9036_v22 }
 0x7e9   :  { %2796 = vmatpush2.bf16.msra.mxu1 %v9037_v4  ;;  %2837 = vmatpush2.bf16.msra.mxu0 %v9038_v21 }
 0x7ea   :  { %2847 = vmatprep.subr.bf16.mxu1 %v9041_v55  ;;  %2888 = vmatprep.subr.bf16.mxu0 %v9042_v30 }
 0x7ec   :  { %v6962_v18 = vpop.f32.mrf.mxu1  ;;  %v6964_v51 = vpop.f32.mrf.mxu0 }
 0x7ed   :  { %v2679_v30 = vrot.slane %v6962_v18, 7  ;;  %v2693_v55 = vrot.slane %v6964_v51, 7  ;;  %v2961_v10 = vrot.slane %v6962_v18, 6  ;;  %v2975_v9 = vrot.slane %v6964_v51, 6 }
 0x7ee   :  { %v6966_v16 = vpop.f32.mrf.mxu1  ;;  %v6968_v14 = vpop.f32.mrf.mxu0  ;;  %v3243_v50 = vrot.slane %v6962_v18, 5  ;;  %v3257_v40 = vrot.slane %v6964_v51, 5 }
 0x7ef   :  { %9043 = vst [vmem:[#allocation142_spill] sm:$0xff] %v6968_v14  ;;  %v2686_v38 = vrot.slane %v6966_v16, 7  ;;  %v2968_v37 = vrot.slane %v6966_v16, 6  ;;  %v3250_v58 = vrot.slane %v6966_v16, 5 }
 0x7f0   :  { %v6970_v22 = vpop.f32.mrf.mxu1  ;;  %v6972_v4 = vpop.f32.mrf.mxu0 }
 0x7f1   :  { %v2680_v2 = vrot.slane %v6970_v22, 6  ;;  %v2694_v53 = vrot.slane %v6972_v4, 6  ;;  %v2962_v52 = vrot.slane %v6970_v22, 5  ;;  %v2976_v43 = vrot.slane %v6972_v4, 5 }
 0x7f2   :  { %v6974_v21 = vpop.f32.mrf.mxu1  ;;  %v6976_v11 = vpop.f32.mrf.mxu0  ;;  %v3244_v0 = vrot.slane %v6970_v22, 4  ;;  %v3258_v56 = vrot.slane %v6972_v4, 4 }
 0x7f3   :  { %9044 = vst [vmem:[#allocation143_spill] sm:$0xff] %v6976_v11  ;;  %v2687_v44 = vrot.slane %v6974_v21, 6  ;;  %v2969_v42 = vrot.slane %v6974_v21, 5  ;;  %v2681_v7 = vsel %vm2629_vm12, %v2680_v2, %v2679_v30  ;;  %v2695_v24 = vsel %vm2629_vm12, %v2694_v53, %v2693_v55 }
 0x7f4   :  { %v6986_v6 = vpop.f32.mrf.mxu1  ;;  %v6988_v45 = vpop.f32.mrf.mxu0  ;;  %v2963_v23 = vsel %vm2629_vm12, %v2962_v52, %v2961_v10  ;;  %v2977_v62 = vsel %vm2629_vm12, %v2976_v43, %v2975_v9 }
 0x7f5   :  { %v2682_v39 = vrot.slane %v6986_v6, 5  ;;  %v2696_v31 = vrot.slane %v6988_v45, 5  ;;  %v2964_v48 = vrot.slane %v6986_v6, 4  ;;  %v2978_v57 = vrot.slane %v6988_v45, 4 }
 0x7f6   :  { %v6998_v33 = vpop.f32.mrf.mxu1  ;;  %v7000_v32 = vpop.f32.mrf.mxu0  ;;  %v2688_v17 = vsel %vm2629_vm12, %v2687_v44, %v2686_v38  ;;  %v2970_v46 = vsel %vm2629_vm12, %v2969_v42, %v2968_v37 }
 0x7f7   :  { %9045 = vst [vmem:[#allocation144_spill] sm:$0xff] %v7000_v32  ;;  %v2689_v15 = vrot.slane %v6998_v33, 5  ;;  %v2683_v2 = vsel %vm2632_vm13, %v2682_v39, %v2681_v7  ;;  %v2971_v10 = vrot.slane %v6998_v33, 4  ;;  %v2697_v55 = vsel %vm2632_vm13, %v2696_v31, %v2695_v24 }
 0x7f8   :  { %v7010_v54 = vpop.f32.mrf.mxu1  ;;  %v7012_v19 = vpop.f32.mrf.mxu0  ;;  %v2965_v38 = vsel %vm2632_vm13, %v2964_v48, %v2963_v23  ;;  %v2979_v42 = vsel %vm2632_vm13, %v2978_v57, %v2977_v62 }
 0x7f9   :  { %v2684_v53 = vrot.slane %v7010_v54, 4  ;;  %v2698_v52 = vrot.slane %v7012_v19, 4  ;;  %v2966_v44 = vrot.slane %v7010_v54, 3  ;;  %v2980_v43 = vrot.slane %v7012_v19, 3 }
 0x7fa   :  { %v7022_v30 = vpop.f32.mrf.mxu1  ;;  %v2690_v9 = vsel %vm2632_vm13, %v2689_v15, %v2688_v17  ;;  %v3245_v17 = vsel %vm2629_vm12, %v3244_v0, %v3243_v50  ;;  %v3248_v62 = vrot.slane %v7010_v54, 2  ;;  %v3540_v15 = vrot.slane %v6972_v4, 3 }
 0x7fb   :  { %v7029_v37 = vsel %vm2635_vm14, %v2684_v53, %v2683_v2  ;;  %v7032_v7 = vsel %vm2635_vm14, %v2698_v52, %v2697_v55  ;;  %v2691_v39 = vrot.slane %v7022_v30, 4  ;;  %v7038_v24 = vsel %vm2635_vm14, %v2966_v44, %v2965_v38 }
 0x7fc   :  { %9046 = vst [vmem:[#allocation145_spill] sm:$0xff] %v7038_v24  ;;  %v7041_v23 = vsel %vm2635_vm14, %v2980_v43, %v2979_v42  ;;  %v2973_v48 = vrot.slane %v7022_v30, 3  ;;  %v2972_v2 = vsel %vm2632_vm13, %v2971_v10, %v2970_v46  ;;  %v3246_v53 = vrot.slane %v6986_v6, 3 }
 0x7fd   :  { %9047 = vst [vmem:[#allocation146_spill] sm:$0xff] %v7041_v23  ;;  %v7045_v31 = vsel %vm2635_vm14, %v2691_v39, %v2690_v9  ;;  %v3526_v52 = vrot.slane %v6970_v22, 3  ;;  %v3260_v38 = vrot.slane %v6988_v45, 3  ;;  %v3262_v44 = vrot.slane %v7012_v19, 2 }
 0x7fe   :  { %v7051_v57 = vsel %vm2635_vm14, %v2973_v48, %v2972_v2  ;;  %v3247_v55 = vsel %vm2632_vm13, %v3246_v53, %v3245_v17  ;;  %v3251_v46 = vrot.slane %v6974_v21, 4  ;;  %v3259_v43 = vsel %vm2629_vm12, %v3258_v56, %v3257_v40 }
 0x7ff   :  { %9048 = vst [vmem:[#allocation147_spill] sm:$0xff] %v7051_v57  ;;  %v7061_v10 = vsel %vm2635_vm14, %v3248_v62, %v3247_v55  ;;  %v3253_v39 = vrot.slane %v6998_v33, 3  ;;  %v3255_v0 = vrot.slane %v7022_v30, 2  ;;  %v3261_v50 = vsel %vm2632_vm13, %v3260_v38, %v3259_v43 }
 0x800   :  { %9049 = vst [vmem:[#allocation148_spill] sm:$0xff] %v7061_v10  ;;  %v3252_v42 = vsel %vm2629_vm12, %v3251_v46, %v3250_v58  ;;  %v7069_v9 = vsel %vm2635_vm14, %v3262_v44, %v3261_v50  ;;  %v3525_v2 = vrot.slane %v6962_v18, 4  ;;  %v3539_v53 = vrot.slane %v6964_v51, 4 }
 0x801   :  { %9050 = vst [vmem:[#allocation149_spill] sm:$0xff] %v7069_v9  ;;  %v3254_v48 = vsel %vm2632_vm13, %v3253_v39, %v3252_v42  ;;  %v3528_v56 = vrot.slane %v6986_v6, 2  ;;  %v3530_v40 = vrot.slane %v7010_v54, 1  ;;  %v3542_v55 = vrot.slane %v6988_v45, 2 }
 0x802   :  { %v7075_v17 = vsel %vm2635_vm14, %v3255_v0, %v3254_v48  ;;  %v3527_v62 = vsel %vm2629_vm12, %v3526_v52, %v3525_v2  ;;  %v3541_v58 = vsel %vm2629_vm12, %v3540_v15, %v3539_v53  ;;  %v3544_v38 = vrot.slane %v7012_v19, 1 }
 0x803   :  { %9051 = vst [vmem:[#allocation150_spill] sm:$0xff] %v7075_v17  ;;  %v3529_v44 = vsel %vm2632_vm13, %v3528_v56, %v3527_v62  ;;  %v3532_v46 = vrot.slane %v6966_v16, 4  ;;  %v3533_v43 = vrot.slane %v6974_v21, 3  ;;  %v3535_v39 = vrot.slane %v6998_v33, 2 }
 0x804   :  { %v7088_v0 = vsel %vm2635_vm14, %v3530_v40, %v3529_v44  ;;  %v3543_v50 = vsel %vm2632_vm13, %v3542_v55, %v3541_v58  ;;  %v3537_v52 = vrot.slane %v7022_v30, 1  ;;  %v3811_v53 = vrot.slane %v6962_v18, 3 }
 0x805   :  { %9052 = vst [vmem:[#allocation151_spill] sm:$0xff] %v7088_v0  ;;  %v7093_v15 = vsel %vm2635_vm14, %v3544_v38, %v3543_v50  ;;  %v3534_v42 = vsel %vm2629_vm12, %v3533_v43, %v3532_v46  ;;  %v3812_v56 = vrot.slane %v6970_v22, 2  ;;  %v3814_v40 = vrot.slane %v6986_v6, 1 }
 0x806   :  { %9053 = vst [vmem:[#allocation152_spill] sm:$0xff] %v7093_v15  ;;  %v3536_v48 = vsel %vm2632_vm13, %v3535_v39, %v3534_v42  ;;  %v3823_v62 = vrot.slane %v6964_v51, 3  ;;  %v3824_v58 = vrot.slane %v6972_v4, 2  ;;  %v3826_v38 = vrot.slane %v6988_v45, 1 }
 0x807   :  { %v7098_v2 = vsel %vm2635_vm14, %v3537_v52, %v3536_v48  ;;  %v3813_v55 = vsel %vm2629_vm12, %v3812_v56, %v3811_v53  ;;  %v3817_v44 = vrot.slane %v6966_v16, 3  ;;  %v3818_v39 = vrot.slane %v6974_v21, 2 }
 0x808   :  { %9054 = vst [vmem:[#allocation153_spill] sm:$0xff] %v7098_v2  ;;  %v3815_v46 = vsel %vm2632_vm13, %v3814_v40, %v3813_v55  ;;  %v3825_v43 = vsel %vm2629_vm12, %v3824_v58, %v3823_v62  ;;  %v3820_v50 = vrot.slane %v6998_v33, 1  ;;  %v4093_v62 = vrot.slane %v6962_v18, 2 }
 0x809   :  { %v7114_v52 = vsel %vm2635_vm14, %v7010_v54, %v3815_v46  ;;  %v3827_v42 = vsel %vm2632_vm13, %v3826_v38, %v3825_v43  ;;  %v3819_v53 = vsel %vm2629_vm12, %v3818_v39, %v3817_v44  ;;  %v4094_v58 = vrot.slane %v6970_v22, 1 }
 0x80a   :  { %9055 = vst [vmem:[#allocation154_spill] sm:$0xff] %v7114_v52  ;;  %v7119_v48 = vsel %vm2635_vm14, %v7012_v19, %v3827_v42  ;;  %v3821_v56 = vsel %vm2632_vm13, %v3820_v50, %v3819_v53  ;;  %v4097_v55 = vrot.slane %v7010_v54, 7  ;;  %v4105_v38 = vrot.slane %v6964_v51, 2 }
 0x80b   :  { %9056 = vst [vmem:[#allocation155_spill] sm:$0xff] %v7119_v48  ;;  %v7125_v40 = vsel %vm2635_vm14, %v7022_v30, %v3821_v56  ;;  %v4106_v46 = vrot.slane %v6972_v4, 1  ;;  %v4095_v43 = vsel %vm2629_vm12, %v4094_v58, %v4093_v62  ;;  %v4109_v44 = vrot.slane %v7012_v19, 7 }
 0x80c   :  { %9057 = vst [vmem:[#allocation156_spill] sm:$0xff] %v7125_v40  ;;  %v4099_v39 = vrot.slane %v6966_v16, 2  ;;  %v4096_v50 = vsel %vm2632_vm13, %v6986_v6, %v4095_v43  ;;  %v4100_v53 = vrot.slane %v6974_v21, 1  ;;  %v4103_v56 = vrot.slane %v7022_v30, 7 }
 0x80d   :  { %v4107_v42 = vsel %vm2629_vm12, %v4106_v46, %v4105_v38  ;;  %v7141_v48 = vsel %vm2635_vm14, %v4097_v55, %v4096_v50  ;;  %v1768_v52 = vlaneseq  ;;  %v4375_v55 = vrot.slane %v6962_v18, 1 }
 0x80e   :  { %9058 = vst [vmem:[#allocation157_spill] sm:$0xff] %v7141_v48  ;;  %v4108_v40 = vsel %vm2632_vm13, %v6988_v45, %v4107_v42  ;;  %v4101_v58 = vsel %vm2629_vm12, %v4100_v53, %v4099_v39  ;;  %v4377_v50 = vrot.slane %v6986_v6, 7  ;;  %v4379_v42 = vrot.slane %v7010_v54, 6 }
 0x80f   :  { %v7146_v62 = vsel %vm2635_vm14, %v4109_v44, %v4108_v40  ;;  %v4102_v43 = vsel %vm2632_vm13, %v6998_v33, %v4101_v58  ;;  %v7154_v46 = vshrl.u32 %v1768_v52, 7  ;;  %v4387_v40 = vrot.slane %v6964_v51, 1  ;;  %v7169_v58 = vld [vmem:[%s8563_s7] sm:$0xff] }
 0x810   :  { %9059 = vst [vmem:[#allocation158_spill] sm:$0xff] %v7146_v62  ;;  %v7152_v38 = vsel %vm2635_vm14, %v4103_v56, %v4102_v43  ;;  %v4389_v44 = vrot.slane %v6988_v45, 7  ;;  %v4376_v53 = vsel %vm2629_vm12, %v6970_v22, %v4375_v55  ;;  %v4391_v56 = vrot.slane %v7012_v19, 6 }
 0x811   :  { %9060 = vst [vmem:[#allocation159_spill] sm:$0xff] %v7152_v38  ;;  %v1770_v39 = vsub.s32 0, %v7154_v46  ;;  %v4381_v52 = vrot.slane %v6966_v16, 1  ;;  %v4378_v43 = vsel %vm2632_vm13, %v4377_v50, %v4376_v53  ;;  %v4388_v62 = vsel %vm2629_vm12, %v6972_v4, %v4387_v40 }
 0x812   :  { %v4383_v38 = vrot.slane %v6998_v33, 7  ;;  %v4385_v48 = vrot.slane %v7022_v30, 6  ;;  %v1774_v55 = vsub.s32 1, %v7154_v46  ;;  %v7178_v15 = vsel %vm2635_vm14, %v4379_v42, %v4378_v43  ;;  %v7195_v43 = vpop.f32.mrf.mxu0 }
 0x813   :  { %9061 = vst [vmem:[#allocation160_spill] sm:$0xff] %v7178_v15  ;;  %v4390_v2 = vsel %vm2632_vm13, %v4389_v44, %v4388_v62  ;;  %v4382_v0 = vsel %vm2629_vm12, %v6974_v21, %v4381_v52  ;;  %v2628_v9 = vrot.slane %v6916_v29, 7  ;;  %v7189_v53 = vrot.slane %v7169_v58, %v1770_v39  ;;  %9065 = vst [vmem:[#allocation164_spill] sm:$0xff] %v7195_v43 }
 0x814   :  { %v7185_v50 = vsel %vm2635_vm14, %v4391_v56, %v4390_v2  ;;  %v4384_v40 = vsel %vm2632_vm13, %v4383_v38, %v4382_v0  ;;  %v2631_v17 = vrot.slane %v6932_v36, 6  ;;  %v2634_v62 = vrot.slane %v6948_v28, 5 }
 0x815   :  { %9062 = vst [vmem:[#allocation161_spill] sm:$0xff] %v7185_v50  ;;  %9063 = vst [vmem:[#allocation162_spill] sm:$0xff] %v7189_v53  ;;  %v7193_v42 = vsel %vm2635_vm14, %v4385_v48, %v4384_v40  ;;  %v2637_v44 = vrot.slane %v6924_v34, 7  ;;  %v7200_v52 = vrot.slane %v7169_v58, %v1774_v55  ;;  %v2639_v2 = vrot.slane %v6940_v61, 6 }
 0x816   :  { %9064 = vst [vmem:[#allocation163_spill] sm:$0xff] %v7193_v42  ;;  %v2630_v38 = vsel %vm2629_vm12, %v2628_v9, %v6900_v5  ;;  %v2641_v56 = vrot.slane %v6956_v20, 5 }
 0x817   :  { %v2633_v40 = vsel %vm2632_vm13, %v2631_v17, %v2630_v38  ;;  %v2638_v55 = vsel %vm2629_vm12, %v2637_v44, %v6908_v13  ;;  %v1778_v17 = vsub.s32 2, %v7154_v46  ;;  %v4657_v44 = vrot.slane %v6970_v22, 7 }
 0x818   :  { %v2636_v50 = vsel %vm2635_vm14, %v2634_v62, %v2633_v40  ;;  %v2640_v9 = vsel %vm2632_vm13, %v2639_v2, %v2638_v55  ;;  %v4669_v2 = vrot.slane %v6972_v4, 7 }
 0x819   :  { %v2642_v57 = vsel %vm2635_vm14, %v2641_v56, %v2640_v9  ;;  %v7222_v56 = vrot.slane %v7169_v58, %v1778_v17 }
 0x81b   :  { %9066 = vst [vmem:[#allocation165_spill] sm:$0xff] %v7222_v56 }
 0x82c   :  { %v2482_v0 = vpop.f32.mrf.mxu1  ;;  %v2523_v39 = vpop.f32.mrf.mxu0 }
 0x82d   :  { %v2483_v48 = vadd.f32 %v2482_v0, %v7189_v53  ;;  %v2524_v55 = vadd.f32 %v2523_v39, %v7222_v56 }
 0x82e   :  { %v2484_v42 = vpop.f32.mrf.mxu1  ;;  %v7211_v15 = vpop.f32.mrf.mxu0 }
 0x82f   :  { %v2659_v10 = vadd.f32 %v2636_v50, %v2483_v48  ;;  %v2485_v23 = vadd.f32 %v2484_v42, %v7200_v52  ;;  %v4659_v50 = vrot.slane %v6986_v6, 6  ;;  %v4661_v42 = vrot.slane %v7010_v54, 5 }
 0x830   :  { %v2486_v24 = vpop.f32.mrf.mxu1  ;;  %v2527_v34 = vpop.f32.mrf.mxu0  ;;  %v4670_v6 = vsel %vm2629_vm12, %v4669_v2, %v6964_v51  ;;  %v4673_v54 = vrot.slane %v7012_v19, 5  ;;  %v4667_v48 = vrot.slane %v7022_v30, 5  ;;  %v2647_v51 = vrot.slane %v6950_v63, 5 }
 0x831   :  { %v5042_v0 = vmul.f32 -1.442695, %v2659_v10  ;;  %v2660_v38 = vadd.f32 %v2642_v57, %v2485_v23  ;;  %v4658_v34 = vsel %vm2629_vm12, %v4657_v44, %v6962_v18  ;;  %v4671_v24 = vrot.slane %v6988_v45, 6 }
 0x832   :  { %v2487_v62 = vpop.f32.mrf.mxu1  ;;  %v2528_v40 = vpop.f32.mrf.mxu0  ;;  %v2643_v23 = vrot.slane %v6918_v8, 7  ;;  %v4660_v57 = vsel %vm2632_vm13, %v4659_v50, %v4658_v34  ;;  %v4663_v10 = vrot.slane %v6974_v21, 7  ;;  %v4665_v18 = vrot.slane %v6998_v33, 6 }
 0x833   :  { %5342 = vpow2.f32 %v5042_v0  ;;  %v5043_v53 = vmul.f32 -1.442695, %v2660_v38  ;;  %v7233_v4 = vsel %vm2635_vm14, %v4661_v42, %v4660_v57  ;;  %v4672_v22 = vsel %vm2632_vm13, %v4671_v24, %v4670_v6 }
 0x834   :  { %9067 = vst [vmem:[#allocation166_spill] sm:$0xff] %v7233_v4  ;;  %v2645_v45 = vrot.slane %v6934_v60, 6  ;;  %v4664_v19 = vsel %vm2629_vm12, %v4663_v10, %v6966_v16  ;;  %v2644_v21 = vsel %vm2629_vm12, %v2643_v23, %v6902_v35  ;;  %v1786_v24 = vsub.s32 4, %v7154_v46  ;;  %v9101_v4 = vld [vmem:[#allocation96_spill] sm:$0xff] }
 0x835   :  { %5344 = vpow2.f32 %v5043_v53  ;;  %v7240_v53 = vsel %vm2635_vm14, %v4673_v54, %v4672_v22  ;;  %v4666_v9 = vsel %vm2632_vm13, %v4665_v18, %v4664_v19  ;;  %v1790_v23 = vsub.s32 5, %v7154_v46 }
 0x836   :  { %9068 = vst [vmem:[#allocation167_spill] sm:$0xff] %v7240_v53  ;;  %v7251_v33 = vsel %vm2635_vm14, %v4667_v48, %v4666_v9  ;;  %v2646_v0 = vsel %vm2632_vm13, %v2645_v45, %v2644_v21  ;;  %v7260_v57 = vrot.slane %v7169_v58, %v1786_v24  ;;  %v1782_v54 = vsub.s32 3, %v7154_v46  ;;  %v9099_v53 = vld [vmem:[#allocation94_spill] sm:$0xff] }
 0x837   :  { %9069 = vst [vmem:[#allocation168_spill] sm:$0xff] %v7251_v33  ;;  %v2648_v17 = vsel %vm2635_vm14, %v2647_v51, %v2646_v0  ;;  %v7263_v6 = vrot.slane %v7169_v58, %v1790_v23  ;;  %v1798_v48 = vsub.s32 7, %v7154_v46  ;;  %v2649_v21 = vrot.slane %v6926_v41, 7  ;;  %v9100_v33 = vld [vmem:[#allocation95_spill] sm:$0xff] }
 0x838   :  { %v2661_v30 = vadd.f32 %v2648_v17, %v2524_v55  ;;  %9070 = vst [vmem:[#allocation169_spill] sm:$0xff] %v7260_v57  ;;  %v7271_v9 = vrot.slane %v7169_v58, %v1782_v54  ;;  %v2700_v23 = vrot.slane %v6968_v14, 7  ;;  %v2705_v54 = vrot.slane %v7195_v43, 4 }
 0x83a   :  { %5346 = vtanh.f32 %v2661_v30  ;;  %9071 = vst [vmem:[#allocation170_spill] sm:$0xff] %v7271_v9 }
 0x840   :  { %v5343_v38 = vpop.eup %5342 }
 0x841   :  { %v2718_v62 = vadd.f32 1.0, %v5343_v38  ;;  %v1794_v38 = vsub.s32 6, %v7154_v46  ;;  %v2650_v46 = vsel %vm2629_vm12, %v2649_v21, %v6910_v12 }
 0x842   :  { %v5345_v40 = vpop.eup %5344 }
 0x843   :  { %5348 = vrcp.f32 %v2718_v62  ;;  %v2724_v16 = vadd.f32 1.0, %v5345_v40  ;;  %v2651_v40 = vrot.slane %v6942_v59, 6  ;;  %v7288_v24 = vrot.slane %v7169_v58, %v1794_v38 }
 0x845   :  { %5350 = vrcp.f32 %v2724_v16  ;;  %v7278_v16 = vrot.slane %v7169_v58, %v1798_v48 }
 0x847   :  { %v5347_v39 = vpop.eup %5346  ;;  %9072 = vst [vmem:[#allocation171_spill] sm:$0xff] %v7278_v16 }
 0x850   :  { %v5349_v44 = vpop.eup %5348 }
 0x851   :  { %v2735_v50 = vmul.f32 %v5349_v44, %v5347_v39  ;;  %v2653_v44 = vrot.slane %v6958_v49, 5 }
 0x852   :  { %v5351_v42 = vpop.eup %5350 }
 0x853   :  { %v2734_v2 = vmul.f32 0.0, %v5351_v42  ;;  %v2701_v42 = vrot.slane %v6976_v11, 6 }
 0x855   :  { %v7255_v34 = vadd.f32 %v2735_v50, %v2734_v2  ;;  %v2526_v2 = vadd.f32 %v7211_v15, %v7271_v9  ;;  %v2702_v15 = vsel %vm2629_vm12, %v2701_v42, %v2700_v23 }
 0x86c   :  { %v2564_v22 = vpop.f32.mrf.mxu1  ;;  %v2605_v10 = vpop.f32.mrf.mxu0 }
 0x86d   :  { %v2565_v18 = vadd.f32 %v2564_v22, %v7260_v57  ;;  %v2652_v22 = vsel %vm2632_vm13, %v2651_v40, %v2650_v46 }
 0x86e   :  { %v2566_v45 = vpop.f32.mrf.mxu1  ;;  %v2607_v51 = vpop.f32.mrf.mxu0 }
 0x86f   :  { %v2711_v19 = vadd.f32 %v7029_v37, %v2565_v18  ;;  %v2567_v55 = vadd.f32 %v2566_v45, %v7263_v6  ;;  %v2608_v18 = vadd.f32 %v2607_v51, %v7278_v16  ;;  %v2654_v45 = vsel %vm2635_vm14, %v2653_v44, %v2652_v22 }
 0x870   :  { %v2568_v0 = vpop.f32.mrf.mxu1  ;;  %v2609_v17 = vpop.f32.mrf.mxu0  ;;  %v2662_v48 = vadd.f32 %v2654_v45, %v2526_v2 }
 0x871   :  { %v5045_v30 = vmul.f32 -1.442695, %v2711_v19  ;;  %v2712_v62 = vadd.f32 %v7045_v31, %v2567_v55  ;;  %v2703_v31 = vrot.slane %v7000_v32, 5  ;;  %v2606_v55 = vadd.f32 %v2605_v10, %v7288_v24 }
 0x872   :  { %v2569_v37 = vpop.f32.mrf.mxu1  ;;  %v2610_v39 = vpop.f32.mrf.mxu0  ;;  %v5044_v0 = vmul.f32 -1.442695, %v2662_v48 }
 0x873   :  { %5352 = vpow2.f32 %v5045_v30  ;;  %v5046_v50 = vmul.f32 -1.442695, %v2712_v62  ;;  %v2704_v19 = vsel %vm2632_vm13, %v2703_v31, %v2702_v15  ;;  %v2713_v17 = vadd.f32 %v7032_v7, %v2606_v55  ;;  %v9073_v55 = vld [vmem:[#allocation68_spill] sm:$0xff] }
 0x874   :  { %v2706_v58 = vsel %vm2635_vm14, %v2705_v54, %v2704_v19 }
 0x875   :  { %5354 = vpow2.f32 %v5046_v50  ;;  %v2714_v21 = vadd.f32 %v2706_v58, %v2608_v18  ;;  %v9074_v58 = vld [vmem:[#allocation69_spill] sm:$0xff] }
 0x876   :  { %5356 = vpow2.f32 %v5044_v0  ;;  %v9076_v0 = vld [vmem:[#allocation71_spill] sm:$0xff] }
 0x877   :  { %v5047_v30 = vmul.f32 -1.442695, %v2714_v21  ;;  %5358 = vtanh.f32 %v2713_v17  ;;  %v9075_v21 = vld [vmem:[#allocation70_spill] sm:$0xff]  ;;  %v9077_v17 = vld [vmem:[#allocation72_spill] sm:$0xff] }
 0x879   :  { %5360 = vpow2.f32 %v5047_v30  ;;  %v9078_v30 = vld [vmem:[#allocation73_spill] sm:$0xff] }
 0x880   :  { %v5353_v38 = vpop.eup %5352 }
 0x881   :  { %v2742_v62 = vadd.f32 1.0, %v5353_v38  ;;  %v9079_v38 = vld [vmem:[#allocation74_spill] sm:$0xff] }
 0x882   :  { %v5355_v51 = vpop.eup %5354 }
 0x883   :  { %5362 = vrcp.f32 %v2742_v62  ;;  %v2748_v40 = vadd.f32 1.0, %v5355_v51  ;;  %v5357_v37 = vpop.eup %5356  ;;  %v9080_v62 = vld [vmem:[#allocation75_spill] sm:$0xff]  ;;  %v9081_v51 = vld [vmem:[#allocation76_spill] sm:$0xff] }
 0x884   :  { %v5359_v39 = vpop.eup %5358  ;;  %v2731_v50 = vadd.f32 1.0, %v5357_v37  ;;  %v9083_v37 = vld [vmem:[#allocation78_spill] sm:$0xff] }
 0x885   :  { %5364 = vrcp.f32 %v2748_v40  ;;  %v9082_v40 = vld [vmem:[#allocation77_spill] sm:$0xff] }
 0x886   :  { %v5361_v44 = vpop.eup %5360  ;;  %5366 = vtanh.f32 %v7255_v34 }
 0x887   :  { %v2755_v46 = vadd.f32 1.0, %v5361_v44  ;;  %5368 = vrcp.f32 %v2731_v50  ;;  %v9085_v44 = vld [vmem:[#allocation80_spill] sm:$0xff]  ;;  %v9087_v50 = vld [vmem:[#allocation82_spill] sm:$0xff] }
 0x889   :  { %5370 = vrcp.f32 %v2755_v46  ;;  %v9090_v46 = vld [vmem:[#allocation85_spill] sm:$0xff] }
 0x890   :  { %v5363_v10 = vpop.eup %5362 }
 0x891   :  { %v2759_v42 = vmul.f32 %v5363_v10, %v5359_v39  ;;  %v9084_v39 = vld [vmem:[#allocation79_spill] sm:$0xff]  ;;  %v9086_v10 = vld [vmem:[#allocation81_spill] sm:$0xff] }
 0x892   :  { %v5365_v2 = vpop.eup %5364 }
 0x893   :  { %v2758_v31 = vmul.f32 0.0, %v5365_v2  ;;  %v5367_v23 = vpop.eup %5366  ;;  %v9089_v2 = vld [vmem:[#allocation84_spill] sm:$0xff] }
 0x894   :  { %v5369_v54 = vpop.eup %5368 }
 0x895   :  { %v7301_v7 = vadd.f32 %v2759_v42, %v2758_v31  ;;  %v2738_v45 = vmul.f32 %v5369_v54, %v5367_v23  ;;  %v9088_v42 = vld [vmem:[#allocation83_spill] sm:$0xff]  ;;  %v9091_v31 = vld [vmem:[#allocation86_spill] sm:$0xff]  ;;  %v9093_v54 = vld [vmem:[#allocation88_spill] sm:$0xff] }
 0x896   :  { %v5371_v22 = vpop.eup %5370  ;;  %v9092_v23 = vld [vmem:[#allocation87_spill] sm:$0xff] }
 0x897   :  { %5372 = vtanh.f32 %v7301_v7  ;;  %v7304_v19 = vpack.c.bf16 %v2738_v45, %v2738_v45  ;;  %v9096_v45 = vld [vmem:[#allocation91_spill] sm:$0xff] }
 0x8a4   :  { %v5373_v18 = vpop.eup %5372 }
 0x8a5   :  { %v2762_v15 = vmul.f32 %v5373_v18, %v5371_v22  ;;  %v9094_v22 = vld [vmem:[#allocation89_spill] sm:$0xff]  ;;  %v9095_v18 = vld [vmem:[#allocation90_spill] sm:$0xff] }
 0x8a7   :  { %v2764_v48 = vpack.c.bf16 %v2762_v15, %v2762_v15  ;;  %v9097_v15 = vld [vmem:[#allocation92_spill] sm:$0xff] }
 0x8a9   :  { %2797 = vmatprep.mubr.bf16.mxu1 %v2764_v48  ;;  %2838 = vmatprep.mubr.bf16.mxu0 %v2764_v48 }
 0x8aa   :  { %2798 = vmatmul.mubr.bf16.vlgmr.msra.gmra.mxu1 %v7304_v19  ;;  %2839 = vmatmul.mubr.bf16.vlgmr.msra.gmra.mxu0 %v7304_v19 }
 0x8ab   :  { %2848 = vmatpush1.bf16.msra.mxu1 %v9073_v55  ;;  %2889 = vmatpush1.bf16.msra.mxu0 %v9074_v58 }
 0x8ac   :  { %2879 = vmatprep.mubr.bf16.mxu1 %v2764_v48  ;;  %2920 = vmatprep.mubr.bf16.mxu0 %v2764_v48  ;;  %v9098_v48 = vld [vmem:[#allocation93_spill] sm:$0xff] }
 0x8ad   :  { %2849 = vmatprep.subr.bf16.mxu1 %v9075_v21  ;;  %2890 = vmatprep.subr.bf16.mxu0 %v9076_v0 }
 0x8af   :  { %2850 = vmatpush1.bf16.msra.mxu1 %v9077_v17  ;;  %2891 = vmatpush1.bf16.msra.mxu0 %v9078_v30 }
 0x8b0   :  { %2851 = vmatprep.subr.bf16.mxu1 %v9079_v38  ;;  %2892 = vmatprep.subr.bf16.mxu0 %v9080_v62 }
 0x8b3   :  { %2852 = vmatpush1.bf16.msra.mxu1 %v9081_v51  ;;  %2893 = vmatpush1.bf16.msra.mxu0 %v9082_v40 }
 0x8b4   :  { %2853 = vmatprep.subr.bf16.mxu1 %v9083_v37  ;;  %2894 = vmatprep.subr.bf16.mxu0 %v9084_v39 }
 0x8b7   :  { %2854 = vmatpush1.bf16.msra.mxu1 %v9085_v44  ;;  %2895 = vmatpush1.bf16.msra.mxu0 %v9086_v10 }
 0x8b8   :  { %2855 = vmatprep.subr.bf16.mxu1 %v9087_v50  ;;  %2896 = vmatprep.subr.bf16.mxu0 %v9088_v42 }
 0x8bb   :  { %2856 = vmatpush1.bf16.msra.mxu1 %v9089_v2  ;;  %2897 = vmatpush1.bf16.msra.mxu0 %v9090_v46 }
 0x8bc   :  { %2857 = vmatprep.subr.bf16.mxu1 %v9091_v31  ;;  %2898 = vmatprep.subr.bf16.mxu0 %v9092_v23  ;;  %v9102_v31 = vld [vmem:[#allocation97_spill] sm:$0xff]  ;;  %v9103_v23 = vld [vmem:[#allocation98_spill] sm:$0xff] }
 0x8bf   :  { %2858 = vmatpush1.bf16.msra.mxu1 %v9093_v54  ;;  %2899 = vmatpush1.bf16.msra.mxu0 %v9094_v22  ;;  %v9104_v54 = vld [vmem:[#allocation99_spill] sm:$0xff]  ;;  %v9105_v22 = vld [vmem:[#allocation100_spill] sm:$0xff] }
 0x8c0   :  { %2859 = vmatprep.subr.bf16.mxu1 %v9095_v18  ;;  %2900 = vmatprep.subr.bf16.mxu0 %v9096_v45  ;;  %v9106_v18 = vld [vmem:[#allocation101_spill] sm:$0xff]  ;;  %v9107_v45 = vld [vmem:[#allocation102_spill] sm:$0xff] }
 0x8c3   :  { %2860 = vmatpush1.bf16.msra.mxu1 %v9097_v15  ;;  %2901 = vmatpush1.bf16.msra.mxu0 %v9098_v48  ;;  %v9108_v15 = vld [vmem:[#allocation103_spill] sm:$0xff]  ;;  %v9109_v48 = vld [vmem:[#allocation104_spill] sm:$0xff] }
 0x8c4   :  { %2861 = vmatprep.subr.bf16.mxu1 %v9099_v53  ;;  %2902 = vmatprep.subr.bf16.mxu0 %v9100_v33  ;;  %v9110_v53 = vld [vmem:[#allocation105_spill] sm:$0xff]  ;;  %v9111_v33 = vld [vmem:[#allocation106_spill] sm:$0xff] }
 0x8c7   :  { %2862 = vmatpush1.bf16.msra.mxu1 %v9101_v4  ;;  %2903 = vmatpush1.bf16.msra.mxu0 %v9102_v31  ;;  %v9112_v4 = vld [vmem:[#allocation107_spill] sm:$0xff]  ;;  %v9113_v31 = vld [vmem:[#allocation108_spill] sm:$0xff] }
 0x8c8   :  { %2863 = vmatprep.subr.bf16.mxu1 %v9103_v23  ;;  %2904 = vmatprep.subr.bf16.mxu0 %v9104_v54  ;;  %v9114_v23 = vld [vmem:[#allocation109_spill] sm:$0xff]  ;;  %v9115_v54 = vld [vmem:[#allocation110_spill] sm:$0xff] }
 0x8cb   :  { %2864 = vmatpush2.bf16.msra.mxu1 %v9105_v22  ;;  %2905 = vmatpush2.bf16.msra.mxu0 %v9106_v18  ;;  %v9116_v22 = vld [vmem:[#allocation111_spill] sm:$0xff]  ;;  %v9117_v18 = vld [vmem:[#allocation112_spill] sm:$0xff] }
 0x8cc   :  { %2865 = vmatprep.subr.bf16.mxu1 %v9107_v45  ;;  %2906 = vmatprep.subr.bf16.mxu0 %v9108_v15  ;;  %v9118_v45 = vld [vmem:[#allocation113_spill] sm:$0xff]  ;;  %v9119_v15 = vld [vmem:[#allocation114_spill] sm:$0xff] }
 0x8cf   :  { %2866 = vmatpush2.bf16.msra.mxu1 %v9109_v48  ;;  %2907 = vmatpush2.bf16.msra.mxu0 %v9110_v53  ;;  %v9120_v48 = vld [vmem:[#allocation115_spill] sm:$0xff]  ;;  %v9121_v53 = vld [vmem:[#allocation116_spill] sm:$0xff] }
 0x8d0   :  { %2867 = vmatprep.subr.bf16.mxu1 %v9111_v33  ;;  %2908 = vmatprep.subr.bf16.mxu0 %v9112_v4  ;;  %v9122_v33 = vld [vmem:[#allocation117_spill] sm:$0xff]  ;;  %v9123_v4 = vld [vmem:[#allocation118_spill] sm:$0xff] }
 0x8d3   :  { %2868 = vmatpush2.bf16.msra.mxu1 %v9113_v31  ;;  %2909 = vmatpush2.bf16.msra.mxu0 %v9114_v23  ;;  %v9124_v31 = vld [vmem:[#allocation119_spill] sm:$0xff]  ;;  %v9125_v23 = vld [vmem:[#allocation120_spill] sm:$0xff] }
 0x8d4   :  { %2869 = vmatprep.subr.bf16.mxu1 %v9115_v54  ;;  %2910 = vmatprep.subr.bf16.mxu0 %v9116_v22 }
 0x8d7   :  { %2870 = vmatpush2.bf16.msra.mxu1 %v9117_v18  ;;  %2911 = vmatpush2.bf16.msra.mxu0 %v9118_v45 }
 0x8d8   :  { %2871 = vmatprep.subr.bf16.mxu1 %v9119_v15  ;;  %2912 = vmatprep.subr.bf16.mxu0 %v9120_v48  ;;  %v9196_v48 = vld [vmem:[#allocation134_spill] sm:$0xff] }
 0x8db   :  { %2872 = vmatpush2.bf16.msra.mxu1 %v9121_v53  ;;  %2913 = vmatpush2.bf16.msra.mxu0 %v9122_v33  ;;  %v9126_v53 = vld [vmem:[#allocation127_spill] sm:$0xff]  ;;  %v9127_v33 = vld [vmem:[#allocation128_spill] sm:$0xff] }
 0x8dc   :  { %2873 = vmatprep.subr.bf16.mxu1 %v9123_v4  ;;  %2914 = vmatprep.subr.bf16.mxu0 %v9124_v31  ;;  %v9128_v4 = vld [vmem:[#allocation129_spill] sm:$0xff]  ;;  %v9129_v31 = vld [vmem:[#allocation2_spill] sm:$0xff] }
 0x8df   :  { %2874 = vmatpush2.bf16.msra.mxu1 %v9125_v23  ;;  %2915 = vmatpush2.bf16.msra.mxu0 %v6820_v27  ;;  %v9130_v23 = vld [vmem:[#allocation3_spill] sm:$0xff] }
 0x8e0   :  { %2875 = vmatprep.subr.bf16.mxu1 %v6824_v25  ;;  %2916 = vmatprep.subr.bf16.mxu0 %v6826_v1  ;;  %v9131_v1 = vld [vmem:[#allocation4_spill] sm:$0xff]  ;;  %v9140_v25 = vld [vmem:[#allocation13_spill] sm:$0xff] }
 0x8e3   :  { %2876 = vmatpush2.bf16.msra.mxu1 %v6842_v26  ;;  %2917 = vmatpush2.bf16.msra.mxu0 %v6844_v3  ;;  %v9132_v26 = vld [vmem:[#allocation5_spill] sm:$0xff]  ;;  %v9133_v3 = vld [vmem:[#allocation6_spill] sm:$0xff] }
 0x8e4   :  { %2877 = vmatprep.subr.bf16.mxu1 %v6848_v47  ;;  %2918 = vmatprep.subr.bf16.mxu0 %v9126_v53  ;;  %v9134_v47 = vld [vmem:[#allocation7_spill] sm:$0xff]  ;;  %v9135_v53 = vld [vmem:[#allocation8_spill] sm:$0xff] }
 0x8e7   :  { %2878 = vmatpush2.bf16.msra.mxu1 %v9127_v33  ;;  %2919 = vmatpush2.bf16.msra.mxu0 %v9128_v4  ;;  %v9136_v33 = vld [vmem:[#allocation9_spill] sm:$0xff]  ;;  %v9137_v4 = vld [vmem:[#allocation10_spill] sm:$0xff] }
 0x8e8   :  { %3047 = vmatprep.subr.bf16.mxu1 %v9129_v31  ;;  %3088 = vmatprep.subr.bf16.mxu0 %v9130_v23  ;;  %v9138_v31 = vld [vmem:[#allocation11_spill] sm:$0xff]  ;;  %v9139_v23 = vld [vmem:[#allocation12_spill] sm:$0xff] }
 0x8ea   :  { %2880 = vmatmul.mubr.bf16.vlgmr.msra.gmra.mxu1 %v7304_v19  ;;  %2921 = vmatmul.mubr.bf16.vlgmr.msra.gmra.mxu0 %v7304_v19  ;;  %v9141_v19 = vld [vmem:[#allocation14_spill] sm:$0xff] }
 0x8eb   :  { %3048 = vmatpush1.bf16.msra.mxu1 %v9131_v1  ;;  %3089 = vmatpush1.bf16.msra.mxu0 %v9132_v26  ;;  %v9142_v1 = vld [vmem:[#allocation15_spill] sm:$0xff]  ;;  %v9143_v26 = vld [vmem:[#allocation16_spill] sm:$0xff] }
 0x8ec   :  { %3049 = vmatprep.subr.bf16.mxu1 %v9133_v3  ;;  %3090 = vmatprep.subr.bf16.mxu0 %v9134_v47  ;;  %v9144_v3 = vld [vmem:[#allocation17_spill] sm:$0xff]  ;;  %v9145_v47 = vld [vmem:[#allocation18_spill] sm:$0xff] }
 0x8ef   :  { %3050 = vmatpush1.bf16.msra.mxu1 %v9135_v53  ;;  %3091 = vmatpush1.bf16.msra.mxu0 %v9136_v33  ;;  %v9146_v53 = vld [vmem:[#allocation19_spill] sm:$0xff]  ;;  %v9147_v33 = vld [vmem:[#allocation20_spill] sm:$0xff] }
 0x8f0   :  { %3051 = vmatprep.subr.bf16.mxu1 %v9137_v4  ;;  %3092 = vmatprep.subr.bf16.mxu0 %v9138_v31  ;;  %v9148_v4 = vld [vmem:[#allocation21_spill] sm:$0xff]  ;;  %v9149_v31 = vld [vmem:[#allocation22_spill] sm:$0xff] }
 0x8f3   :  { %3052 = vmatpush1.bf16.msra.mxu1 %v9139_v23  ;;  %3093 = vmatpush1.bf16.msra.mxu0 %v9140_v25  ;;  %v9150_v23 = vld [vmem:[#allocation23_spill] sm:$0xff]  ;;  %v9151_v25 = vld [vmem:[#allocation24_spill] sm:$0xff] }
 0x8f4   :  { %3053 = vmatprep.subr.bf16.mxu1 %v9141_v19  ;;  %3094 = vmatprep.subr.bf16.mxu0 %v9142_v1  ;;  %v9152_v19 = vld [vmem:[#allocation25_spill] sm:$0xff]  ;;  %v9153_v1 = vld [vmem:[#allocation26_spill] sm:$0xff] }
 0x8f7   :  { %3054 = vmatpush1.bf16.msra.mxu1 %v9143_v26  ;;  %3095 = vmatpush1.bf16.msra.mxu0 %v9144_v3  ;;  %v9154_v26 = vld [vmem:[#allocation27_spill] sm:$0xff]  ;;  %v9155_v3 = vld [vmem:[#allocation28_spill] sm:$0xff] }
 0x8f8   :  { %3055 = vmatprep.subr.bf16.mxu1 %v9145_v47  ;;  %3096 = vmatprep.subr.bf16.mxu0 %v9146_v53  ;;  %v9156_v47 = vld [vmem:[#allocation29_spill] sm:$0xff]  ;;  %v9157_v53 = vld [vmem:[#allocation30_spill] sm:$0xff] }
 0x8fb   :  { %3056 = vmatpush1.bf16.msra.mxu1 %v9147_v33  ;;  %3097 = vmatpush1.bf16.msra.mxu0 %v9148_v4  ;;  %v9158_v33 = vld [vmem:[#allocation31_spill] sm:$0xff]  ;;  %v9159_v4 = vld [vmem:[#allocation32_spill] sm:$0xff] }
 0x8fc   :  { %3057 = vmatprep.subr.bf16.mxu1 %v9149_v31  ;;  %3098 = vmatprep.subr.bf16.mxu0 %v9150_v23  ;;  %v9160_v31 = vld [vmem:[#allocation33_spill] sm:$0xff]  ;;  %v9161_v23 = vld [vmem:[#allocation34_spill] sm:$0xff] }
 0x8ff   :  { %3058 = vmatpush1.bf16.msra.mxu1 %v9151_v25  ;;  %3099 = vmatpush1.bf16.msra.mxu0 %v9152_v19  ;;  %v9162_v25 = vld [vmem:[#allocation35_spill] sm:$0xff]  ;;  %v9163_v19 = vld [vmem:[#allocation36_spill] sm:$0xff] }
 0x900   :  { %3059 = vmatprep.subr.bf16.mxu1 %v9153_v1  ;;  %3100 = vmatprep.subr.bf16.mxu0 %v9154_v26  ;;  %v9164_v1 = vld [vmem:[#allocation37_spill] sm:$0xff]  ;;  %v9165_v26 = vld [vmem:[#allocation38_spill] sm:$0xff] }
 0x903   :  { %3060 = vmatpush1.bf16.msra.mxu1 %v9155_v3  ;;  %3101 = vmatpush1.bf16.msra.mxu0 %v9156_v47  ;;  %v9166_v3 = vld [vmem:[#allocation39_spill] sm:$0xff]  ;;  %v9167_v47 = vld [vmem:[#allocation40_spill] sm:$0xff] }
 0x904   :  { %3061 = vmatprep.subr.bf16.mxu1 %v9157_v53  ;;  %3102 = vmatprep.subr.bf16.mxu0 %v9158_v33  ;;  %v9168_v53 = vld [vmem:[#allocation41_spill] sm:$0xff]  ;;  %v9169_v33 = vld [vmem:[#allocation42_spill] sm:$0xff] }
 0x907   :  { %3062 = vmatpush1.bf16.msra.mxu1 %v9159_v4  ;;  %3103 = vmatpush1.bf16.msra.mxu0 %v9160_v31  ;;  %v9170_v4 = vld [vmem:[#allocation43_spill] sm:$0xff]  ;;  %v9171_v31 = vld [vmem:[#allocation44_spill] sm:$0xff] }
 0x908   :  { %3063 = vmatprep.subr.bf16.mxu1 %v9161_v23  ;;  %3104 = vmatprep.subr.bf16.mxu0 %v9162_v25  ;;  %v9172_v23 = vld [vmem:[#allocation45_spill] sm:$0xff]  ;;  %v9173_v25 = vld [vmem:[#allocation46_spill] sm:$0xff] }
 0x90b   :  { %3064 = vmatpush2.bf16.msra.mxu1 %v9163_v19  ;;  %3105 = vmatpush2.bf16.msra.mxu0 %v9164_v1  ;;  %v9174_v19 = vld [vmem:[#allocation47_spill] sm:$0xff]  ;;  %v9175_v1 = vld [vmem:[#allocation48_spill] sm:$0xff] }
 0x90c   :  { %3065 = vmatprep.subr.bf16.mxu1 %v9165_v26  ;;  %3106 = vmatprep.subr.bf16.mxu0 %v9166_v3  ;;  %v9176_v26 = vld [vmem:[#allocation49_spill] sm:$0xff]  ;;  %v9177_v3 = vld [vmem:[#allocation50_spill] sm:$0xff] }
 0x90f   :  { %3066 = vmatpush2.bf16.msra.mxu1 %v9167_v47  ;;  %3107 = vmatpush2.bf16.msra.mxu0 %v9168_v53  ;;  %v9178_v47 = vld [vmem:[#allocation51_spill] sm:$0xff]  ;;  %v9179_v53 = vld [vmem:[#allocation52_spill] sm:$0xff] }
 0x910   :  { %3067 = vmatprep.subr.bf16.mxu1 %v9169_v33  ;;  %3108 = vmatprep.subr.bf16.mxu0 %v9170_v4  ;;  %v9180_v33 = vld [vmem:[#allocation53_spill] sm:$0xff]  ;;  %v9181_v4 = vld [vmem:[#allocation54_spill] sm:$0xff] }
 0x913   :  { %3068 = vmatpush2.bf16.msra.mxu1 %v9171_v31  ;;  %3109 = vmatpush2.bf16.msra.mxu0 %v9172_v23  ;;  %v9182_v31 = vld [vmem:[#allocation55_spill] sm:$0xff]  ;;  %v9183_v23 = vld [vmem:[#allocation56_spill] sm:$0xff] }
 0x914   :  { %3069 = vmatprep.subr.bf16.mxu1 %v9173_v25  ;;  %3110 = vmatprep.subr.bf16.mxu0 %v9174_v19  ;;  %v9184_v25 = vld [vmem:[#allocation57_spill] sm:$0xff]  ;;  %v9185_v19 = vld [vmem:[#allocation58_spill] sm:$0xff] }
 0x917   :  { %3070 = vmatpush2.bf16.msra.mxu1 %v9175_v1  ;;  %3111 = vmatpush2.bf16.msra.mxu0 %v9176_v26  ;;  %v9186_v1 = vld [vmem:[#allocation59_spill] sm:$0xff]  ;;  %v9187_v26 = vld [vmem:[#allocation60_spill] sm:$0xff] }
 0x918   :  { %3071 = vmatprep.subr.bf16.mxu1 %v9177_v3  ;;  %3112 = vmatprep.subr.bf16.mxu0 %v9178_v47  ;;  %v9188_v3 = vld [vmem:[#allocation61_spill] sm:$0xff]  ;;  %v9189_v47 = vld [vmem:[#allocation62_spill] sm:$0xff] }
 0x91b   :  { %3072 = vmatpush2.bf16.msra.mxu1 %v9179_v53  ;;  %3113 = vmatpush2.bf16.msra.mxu0 %v9180_v33  ;;  %v9190_v53 = vld [vmem:[#allocation63_spill] sm:$0xff]  ;;  %v9191_v33 = vld [vmem:[#allocation64_spill] sm:$0xff] }
 0x91c   :  { %3073 = vmatprep.subr.bf16.mxu1 %v9181_v4  ;;  %3114 = vmatprep.subr.bf16.mxu0 %v9182_v31  ;;  %v9192_v4 = vld [vmem:[#allocation65_spill] sm:$0xff]  ;;  %v9193_v31 = vld [vmem:[#allocation66_spill] sm:$0xff] }
 0x91f   :  { %3074 = vmatpush2.bf16.msra.mxu1 %v9183_v23  ;;  %3115 = vmatpush2.bf16.msra.mxu0 %v9184_v25  ;;  %v9194_v23 = vld [vmem:[#allocation67_spill] sm:$0xff] }
 0x920   :  { %3075 = vmatprep.subr.bf16.mxu1 %v9185_v19  ;;  %3116 = vmatprep.subr.bf16.mxu0 %v9186_v1  ;;  %v2931_v19 = vrot.slane %v6932_v36, 7  ;;  %v2929_v1 = vrot.slane %v6900_v5, 1 }
 0x923   :  { %3076 = vmatpush2.bf16.msra.mxu1 %v9187_v26  ;;  %3117 = vmatpush2.bf16.msra.mxu0 %v9188_v3  ;;  %v2933_v26 = vrot.slane %v6948_v28, 6  ;;  %v2937_v3 = vrot.slane %v6940_v61, 7 }
 0x924   :  { %3077 = vmatprep.subr.bf16.mxu1 %v9189_v47  ;;  %3118 = vmatprep.subr.bf16.mxu0 %v9190_v53  ;;  %v2930_v53 = vsel %vm2629_vm12, %v6916_v29, %v2929_v1 }
 0x927   :  { %3078 = vmatpush2.bf16.msra.mxu1 %v9191_v33  ;;  %3119 = vmatpush2.bf16.msra.mxu0 %v9192_v4  ;;  %v2935_v33 = vrot.slane %v6908_v13, 1  ;;  %v2939_v4 = vrot.slane %v6956_v20, 6 }
 0x928   :  { %3129 = vmatprep.subr.bf16.mxu1 %v9193_v31  ;;  %3170 = vmatprep.subr.bf16.mxu0 %v9194_v23  ;;  %v9195_v31 = vld [vmem:[#allocation162_spill] sm:$0xff]  ;;  %v2932_v23 = vsel %vm2632_vm13, %v2931_v19, %v2930_v53 }
 0x929   :  { %v2934_v36 = vsel %vm2635_vm14, %v2933_v26, %v2932_v23  ;;  %v2936_v28 = vsel %vm2629_vm12, %v9196_v48, %v2935_v33  ;;  %v2943_v23 = vrot.slane %v6934_v60, 7  ;;  %v2941_v33 = vrot.slane %v6902_v35, 1 }
 0x92a   :  { %v2938_v1 = vsel %vm2632_vm13, %v2937_v3, %v2936_v28 }
 0x92b   :  { %v2940_v13 = vsel %vm2635_vm14, %v2939_v4, %v2938_v1  ;;  %v2942_v28 = vsel %vm2629_vm12, %v6918_v8, %v2941_v33 }
 0x96a   :  { %v2799_v25 = vpop.f32.mrf.mxu1  ;;  %v2840_v47 = vpop.f32.mrf.mxu0 }
 0x96b   :  { %v2800_v27 = vadd.f32 %v2799_v25, %v9195_v31 }
 0x96c   :  { %v2801_v5 = vpop.f32.mrf.mxu1  ;;  %v2842_v61 = vpop.f32.mrf.mxu0 }
 0x96d   :  { %v2957_v15 = vadd.f32 %v2934_v36, %v2800_v27  ;;  %v2802_v45 = vadd.f32 %v2801_v5, %v7200_v52  ;;  %v2945_v36 = vrot.slane %v6950_v63, 6  ;;  %v2841_v27 = vadd.f32 %v2840_v47, %v7222_v56 }
 0x96e   :  { %v2803_v29 = vpop.f32.mrf.mxu1  ;;  %v2844_v20 = vpop.f32.mrf.mxu0 }
 0x96f   :  { %v5048_v18 = vmul.f32 -1.442695, %v2957_v15  ;;  %v2958_v25 = vadd.f32 %v2940_v13, %v2802_v45  ;;  %v2944_v20 = vsel %vm2632_vm13, %v2943_v23, %v2942_v28 }
 0x970   :  { %v2804_v31 = vpop.f32.mrf.mxu1  ;;  %v2845_v53 = vpop.f32.mrf.mxu0  ;;  %v2946_v3 = vsel %vm2635_vm14, %v2945_v36, %v2944_v20  ;;  %v9197_v36 = vld [vmem:[#allocation145_spill] sm:$0xff] }
 0x971   :  { %5374 = vpow2.f32 %v5048_v18  ;;  %v5049_v26 = vmul.f32 -1.442695, %v2958_v25  ;;  %v2959_v5 = vadd.f32 %v2946_v3, %v2841_v27 }
 0x973   :  { %5376 = vpow2.f32 %v5049_v26 }
 0x974   :  { %5378 = vtanh.f32 %v2959_v5 }
 0x97e   :  { %v5375_v13 = vpop.eup %5374 }
 0x97f   :  { %v3000_v29 = vadd.f32 1.0, %v5375_v13  ;;  %v9198_v13 = vld [vmem:[#allocation147_spill] sm:$0xff] }
 0x980   :  { %v5377_v4 = vpop.eup %5376 }
 0x981   :  { %5380 = vrcp.f32 %v3000_v29  ;;  %v3006_v31 = vadd.f32 1.0, %v5377_v4  ;;  %v5379_v18 = vpop.eup %5378  ;;  %v2947_v4 = vrot.slane %v6910_v12, 1 }
 0x983   :  { %5382 = vrcp.f32 %v3006_v31 }
 0x98e   :  { %v5381_v45 = vpop.eup %5380 }
 0x98f   :  { %v3017_v15 = vmul.f32 %v5381_v45, %v5379_v18  ;;  %v2951_v45 = vrot.slane %v6958_v49, 6 }
 0x990   :  { %v5383_v19 = vpop.eup %5382 }
 0x991   :  { %v3016_v47 = vmul.f32 %v5383_v19, %v7255_v34  ;;  %v2949_v34 = vrot.slane %v6942_v59, 7  ;;  %v2983_v19 = vrot.slane %v6976_v11, 5 }
 0x993   :  { %v7463_v1 = vadd.f32 %v3017_v15, %v3016_v47  ;;  %v2843_v47 = vadd.f32 %v2842_v61, %v7271_v9 }
 0x9aa   :  { %v2881_v25 = vpop.f32.mrf.mxu1  ;;  %v2922_v53 = vpop.f32.mrf.mxu0 }
 0x9ab   :  { %v2882_v26 = vadd.f32 %v2881_v25, %v7260_v57  ;;  %v2985_v25 = vrot.slane %v7000_v32, 4 }
 0x9ac   :  { %v2883_v23 = vpop.f32.mrf.mxu1  ;;  %v2924_v33 = vpop.f32.mrf.mxu0 }
 0x9ad   :  { %v2993_v27 = vadd.f32 %v9197_v36, %v2882_v26  ;;  %v2884_v28 = vadd.f32 %v2883_v23, %v7263_v6  ;;  %v2948_v26 = vsel %vm2629_vm12, %v6926_v41, %v2947_v4  ;;  %v2982_v23 = vrot.slane %v6968_v14, 6 }
 0x9ae   :  { %v2885_v20 = vpop.f32.mrf.mxu1  ;;  %v2926_v3 = vpop.f32.mrf.mxu0  ;;  %v2987_v36 = vrot.slane %v7195_v43, 3 }
 0x9af   :  { %v5051_v5 = vmul.f32 -1.442695, %v2993_v27  ;;  %v2994_v29 = vadd.f32 %v9198_v13, %v2884_v28  ;;  %v2950_v27 = vsel %vm2632_vm13, %v2949_v34, %v2948_v26  ;;  %v2925_v28 = vadd.f32 %v2924_v33, %v7278_v16 }
 0x9b0   :  { %v2886_v31 = vpop.f32.mrf.mxu1  ;;  %v2927_v18 = vpop.f32.mrf.mxu0  ;;  %v2952_v20 = vsel %vm2635_vm14, %v2951_v45, %v2950_v27  ;;  %v2984_v3 = vsel %vm2629_vm12, %v2983_v19, %v2982_v23  ;;  %v2923_v13 = vadd.f32 %v2922_v53, %v7288_v24 }
 0x9b1   :  { %5384 = vpow2.f32 %v5051_v5  ;;  %v5052_v15 = vmul.f32 -1.442695, %v2994_v29  ;;  %v2960_v5 = vadd.f32 %v2952_v20, %v2843_v47  ;;  %v2986_v61 = vsel %vm2632_vm13, %v2985_v25, %v2984_v3  ;;  %v9199_v18 = vld [vmem:[#allocation146_spill] sm:$0xff] }
 0x9b2   :  { %v2988_v29 = vsel %vm2635_vm14, %v2987_v36, %v2986_v61 }
 0x9b3   :  { %5386 = vpow2.f32 %v5052_v15  ;;  %v2996_v4 = vadd.f32 %v2988_v29, %v2925_v28  ;;  %v5050_v31 = vmul.f32 -1.442695, %v2960_v5  ;;  %v2995_v15 = vadd.f32 %v9199_v18, %v2923_v13  ;;  %v9202_v18 = vld [vmem:[#allocation88_spill] sm:$0xff] }
 0x9b5   :  { %v5053_v59 = vmul.f32 -1.442695, %v2996_v4  ;;  %5388 = vpow2.f32 %v5050_v31  ;;  %v9201_v31 = vld [vmem:[#allocation87_spill] sm:$0xff] }
 0x9b6   :  { %5390 = vtanh.f32 %v2995_v15  ;;  %v9203_v15 = vld [vmem:[#allocation89_spill] sm:$0xff] }
 0x9b7   :  { %5392 = vpow2.f32 %v5053_v59 }
 0x9be   :  { %v5385_v43 = vpop.eup %5384 }
 0x9bf   :  { %v3024_v34 = vadd.f32 1.0, %v5385_v43 }
 0x9c0   :  { %v5387_v33 = vpop.eup %5386 }
 0x9c1   :  { %5394 = vrcp.f32 %v3024_v34  ;;  %v3030_v45 = vadd.f32 1.0, %v5387_v33  ;;  %v9204_v34 = vld [vmem:[#allocation90_spill] sm:$0xff]  ;;  %v9205_v33 = vld [vmem:[#allocation91_spill] sm:$0xff] }
 0x9c2   :  { %v5389_v19 = vpop.eup %5388 }
 0x9c3   :  { %5396 = vrcp.f32 %v3030_v45  ;;  %v5391_v47 = vpop.eup %5390  ;;  %v3013_v26 = vadd.f32 1.0, %v5389_v19  ;;  %v9206_v45 = vld [vmem:[#allocation92_spill] sm:$0xff]  ;;  %v9207_v19 = vld [vmem:[#allocation93_spill] sm:$0xff] }
 0x9c4   :  { %v5393_v25 = vpop.eup %5392  ;;  %5398 = vtanh.f32 %v7463_v1 }
 0x9c5   :  { %v3037_v27 = vadd.f32 1.0, %v5393_v25  ;;  %5400 = vrcp.f32 %v3013_v26  ;;  %v9209_v25 = vld [vmem:[#allocation95_spill] sm:$0xff]  ;;  %v9211_v26 = vld [vmem:[#allocation97_spill] sm:$0xff] }
 0x9c7   :  { %5402 = vrcp.f32 %v3037_v27  ;;  %v9214_v27 = vld [vmem:[#allocation100_spill] sm:$0xff] }
 0x9ce   :  { %v5395_v53 = vpop.eup %5394 }
 0x9cf   :  { %v3041_v23 = vmul.f32 %v5395_v53, %v5391_v47  ;;  %v9208_v47 = vld [vmem:[#allocation94_spill] sm:$0xff]  ;;  %v9210_v53 = vld [vmem:[#allocation96_spill] sm:$0xff] }
 0x9d0   :  { %v5397_v36 = vpop.eup %5396 }
 0x9d1   :  { %v3040_v28 = vmul.f32 %v5397_v36, %v7301_v7  ;;  %v5399_v59 = vpop.eup %5398  ;;  %v9200_v7 = vld [vmem:[#allocation86_spill] sm:$0xff]  ;;  %v9213_v36 = vld [vmem:[#allocation99_spill] sm:$0xff] }
 0x9d2   :  { %v5401_v20 = vpop.eup %5400 }
 0x9d3   :  { %v7489_v43 = vadd.f32 %v3041_v23, %v3040_v28  ;;  %v3020_v61 = vmul.f32 %v5401_v20, %v5399_v59  ;;  %v9212_v23 = vld [vmem:[#allocation98_spill] sm:$0xff]  ;;  %v9215_v28 = vld [vmem:[#allocation101_spill] sm:$0xff]  ;;  %v9217_v20 = vld [vmem:[#allocation103_spill] sm:$0xff] }
 0x9d4   :  { %v5403_v3 = vpop.eup %5402  ;;  %v9216_v59 = vld [vmem:[#allocation102_spill] sm:$0xff] }
 0x9d5   :  { %5404 = vtanh.f32 %v7489_v43  ;;  %v7492_v4 = vpack.c.bf16 %v3020_v61, %v3020_v61  ;;  %v9220_v61 = vld [vmem:[#allocation106_spill] sm:$0xff] }
 0x9e2   :  { %v5405_v5 = vpop.eup %5404 }
 0x9e3   :  { %v3044_v13 = vmul.f32 %v5405_v5, %v5403_v3  ;;  %v9218_v3 = vld [vmem:[#allocation104_spill] sm:$0xff]  ;;  %v9219_v5 = vld [vmem:[#allocation105_spill] sm:$0xff] }
 0x9e5   :  { %v3046_v29 = vpack.c.bf16 %v3044_v13, %v3044_v13  ;;  %v9221_v13 = vld [vmem:[#allocation107_spill] sm:$0xff] }
 0x9e7   :  { %3079 = vmatprep.mubr.bf16.mxu1 %v3046_v29  ;;  %3120 = vmatprep.mubr.bf16.mxu0 %v3046_v29 }
 0x9e8   :  { %3080 = vmatmul.mubr.bf16.vlgmr.msra.gmra.mxu1 %v7492_v4  ;;  %3121 = vmatmul.mubr.bf16.vlgmr.msra.gmra.mxu0 %v7492_v4 }
 0x9e9   :  { %3130 = vmatpush1.bf16.msra.mxu1 %v9073_v55  ;;  %3171 = vmatpush1.bf16.msra.mxu0 %v9074_v58 }
 0x9ea   :  { %3161 = vmatprep.mubr.bf16.mxu1 %v3046_v29  ;;  %3202 = vmatprep.mubr.bf16.mxu0 %v3046_v29  ;;  %v9222_v29 = vld [vmem:[#allocation108_spill] sm:$0xff] }
 0x9eb   :  { %3131 = vmatprep.subr.bf16.mxu1 %v9075_v21  ;;  %3172 = vmatprep.subr.bf16.mxu0 %v9076_v0 }
 0x9ed   :  { %3132 = vmatpush1.bf16.msra.mxu1 %v9077_v17  ;;  %3173 = vmatpush1.bf16.msra.mxu0 %v9078_v30 }
 0x9ee   :  { %3133 = vmatprep.subr.bf16.mxu1 %v9079_v38  ;;  %3174 = vmatprep.subr.bf16.mxu0 %v9080_v62 }
 0x9f1   :  { %3134 = vmatpush1.bf16.msra.mxu1 %v9081_v51  ;;  %3175 = vmatpush1.bf16.msra.mxu0 %v9082_v40 }
 0x9f2   :  { %3135 = vmatprep.subr.bf16.mxu1 %v9083_v37  ;;  %3176 = vmatprep.subr.bf16.mxu0 %v9084_v39 }
 0x9f5   :  { %3136 = vmatpush1.bf16.msra.mxu1 %v9085_v44  ;;  %3177 = vmatpush1.bf16.msra.mxu0 %v9086_v10 }
 0x9f6   :  { %3137 = vmatprep.subr.bf16.mxu1 %v9087_v50  ;;  %3178 = vmatprep.subr.bf16.mxu0 %v9088_v42 }
 0x9f9   :  { %3138 = vmatpush1.bf16.msra.mxu1 %v9089_v2  ;;  %3179 = vmatpush1.bf16.msra.mxu0 %v9090_v46 }
 0x9fa   :  { %3139 = vmatprep.subr.bf16.mxu1 %v9200_v7  ;;  %3180 = vmatprep.subr.bf16.mxu0 %v9201_v31 }
 0x9fd   :  { %3140 = vmatpush1.bf16.msra.mxu1 %v9202_v18  ;;  %3181 = vmatpush1.bf16.msra.mxu0 %v9203_v15 }
 0x9fe   :  { %3141 = vmatprep.subr.bf16.mxu1 %v9204_v34  ;;  %3182 = vmatprep.subr.bf16.mxu0 %v9205_v33 }
 0xa01   :  { %3142 = vmatpush1.bf16.msra.mxu1 %v9206_v45  ;;  %3183 = vmatpush1.bf16.msra.mxu0 %v9207_v19 }
 0xa02   :  { %3143 = vmatprep.subr.bf16.mxu1 %v9208_v47  ;;  %3184 = vmatprep.subr.bf16.mxu0 %v9209_v25  ;;  %v9313_v25 = vld [vmem:[#allocation162_spill] sm:$0xff]  ;;  %v9314_v47 = vld [vmem:[#allocation136_spill] sm:$0xff] }
 0xa05   :  { %3144 = vmatpush1.bf16.msra.mxu1 %v9210_v53  ;;  %3185 = vmatpush1.bf16.msra.mxu0 %v9211_v26  ;;  %v9312_v53 = vld [vmem:[#allocation140_spill] sm:$0xff] }
 0xa06   :  { %3145 = vmatprep.subr.bf16.mxu1 %v9212_v23  ;;  %3186 = vmatprep.subr.bf16.mxu0 %v9213_v36  ;;  %v9223_v23 = vld [vmem:[#allocation109_spill] sm:$0xff]  ;;  %v9311_v36 = vld [vmem:[#allocation131_spill] sm:$0xff] }
 0xa09   :  { %3146 = vmatpush2.bf16.msra.mxu1 %v9214_v27  ;;  %3187 = vmatpush2.bf16.msra.mxu0 %v9215_v28  ;;  %v9224_v28 = vld [vmem:[#allocation112_spill] sm:$0xff]  ;;  %v9310_v27 = vld [vmem:[#allocation139_spill] sm:$0xff] }
 0xa0a   :  { %3147 = vmatprep.subr.bf16.mxu1 %v9216_v59  ;;  %3188 = vmatprep.subr.bf16.mxu0 %v9217_v20  ;;  %v9225_v59 = vld [vmem:[#allocation113_spill] sm:$0xff]  ;;  %v9226_v20 = vld [vmem:[#allocation114_spill] sm:$0xff] }
 0xa0d   :  { %3148 = vmatpush2.bf16.msra.mxu1 %v9218_v3  ;;  %3189 = vmatpush2.bf16.msra.mxu0 %v9219_v5  ;;  %v9227_v3 = vld [vmem:[#allocation115_spill] sm:$0xff]  ;;  %v9228_v5 = vld [vmem:[#allocation116_spill] sm:$0xff] }
 0xa0e   :  { %3149 = vmatprep.subr.bf16.mxu1 %v9220_v61  ;;  %3190 = vmatprep.subr.bf16.mxu0 %v9221_v13  ;;  %v9229_v61 = vld [vmem:[#allocation117_spill] sm:$0xff]  ;;  %v9230_v13 = vld [vmem:[#allocation118_spill] sm:$0xff] }
 0xa11   :  { %3150 = vmatpush2.bf16.msra.mxu1 %v9222_v29  ;;  %3191 = vmatpush2.bf16.msra.mxu0 %v9223_v23  ;;  %v9231_v29 = vld [vmem:[#allocation119_spill] sm:$0xff]  ;;  %v9232_v23 = vld [vmem:[#allocation120_spill] sm:$0xff] }
 0xa12   :  { %3151 = vmatprep.subr.bf16.mxu1 %v9115_v54  ;;  %3192 = vmatprep.subr.bf16.mxu0 %v9116_v22  ;;  %v9233_v54 = vld [vmem:[#allocation121_spill] sm:$0xff]  ;;  %v9234_v22 = vld [vmem:[#allocation122_spill] sm:$0xff] }
 0xa15   :  { %3152 = vmatpush2.bf16.msra.mxu1 %v9224_v28  ;;  %3193 = vmatpush2.bf16.msra.mxu0 %v9225_v59  ;;  %v9235_v28 = vld [vmem:[#allocation123_spill] sm:$0xff]  ;;  %v9236_v59 = vld [vmem:[#allocation124_spill] sm:$0xff] }
 0xa16   :  { %3153 = vmatprep.subr.bf16.mxu1 %v9226_v20  ;;  %3194 = vmatprep.subr.bf16.mxu0 %v9227_v3  ;;  %v9237_v20 = vld [vmem:[#allocation125_spill] sm:$0xff]  ;;  %v9238_v3 = vld [vmem:[#allocation126_spill] sm:$0xff] }
 0xa19   :  { %3154 = vmatpush2.bf16.msra.mxu1 %v9228_v5  ;;  %3195 = vmatpush2.bf16.msra.mxu0 %v9229_v61  ;;  %v9239_v5 = vld [vmem:[#allocation127_spill] sm:$0xff]  ;;  %v9240_v61 = vld [vmem:[#allocation128_spill] sm:$0xff] }
 0xa1a   :  { %3155 = vmatprep.subr.bf16.mxu1 %v9230_v13  ;;  %3196 = vmatprep.subr.bf16.mxu0 %v9231_v29  ;;  %v9241_v13 = vld [vmem:[#allocation129_spill] sm:$0xff]  ;;  %v9242_v29 = vld [vmem:[#allocation2_spill] sm:$0xff] }
 0xa1d   :  { %3156 = vmatpush2.bf16.msra.mxu1 %v9232_v23  ;;  %3197 = vmatpush2.bf16.msra.mxu0 %v9233_v54  ;;  %v9243_v23 = vld [vmem:[#allocation3_spill] sm:$0xff]  ;;  %v9309_v54 = vld [vmem:[#allocation130_spill] sm:$0xff] }
 0xa1e   :  { %3157 = vmatprep.subr.bf16.mxu1 %v9234_v22  ;;  %3198 = vmatprep.subr.bf16.mxu0 %v9235_v28  ;;  %v9244_v28 = vld [vmem:[#allocation4_spill] sm:$0xff]  ;;  %v9253_v22 = vld [vmem:[#allocation13_spill] sm:$0xff] }
 0xa21   :  { %3158 = vmatpush2.bf16.msra.mxu1 %v9236_v59  ;;  %3199 = vmatpush2.bf16.msra.mxu0 %v9237_v20  ;;  %v9245_v59 = vld [vmem:[#allocation5_spill] sm:$0xff]  ;;  %v9246_v20 = vld [vmem:[#allocation6_spill] sm:$0xff] }
 0xa22   :  { %3159 = vmatprep.subr.bf16.mxu1 %v9238_v3  ;;  %3200 = vmatprep.subr.bf16.mxu0 %v9239_v5  ;;  %v9247_v3 = vld [vmem:[#allocation7_spill] sm:$0xff]  ;;  %v9248_v5 = vld [vmem:[#allocation8_spill] sm:$0xff] }
 0xa25   :  { %3160 = vmatpush2.bf16.msra.mxu1 %v9240_v61  ;;  %3201 = vmatpush2.bf16.msra.mxu0 %v9241_v13  ;;  %v9249_v61 = vld [vmem:[#allocation9_spill] sm:$0xff]  ;;  %v9250_v13 = vld [vmem:[#allocation10_spill] sm:$0xff] }
 0xa26   :  { %3329 = vmatprep.subr.bf16.mxu1 %v9242_v29  ;;  %3370 = vmatprep.subr.bf16.mxu0 %v9243_v23  ;;  %v9251_v29 = vld [vmem:[#allocation11_spill] sm:$0xff]  ;;  %v9252_v23 = vld [vmem:[#allocation12_spill] sm:$0xff] }
 0xa28   :  { %3162 = vmatmul.mubr.bf16.vlgmr.msra.gmra.mxu1 %v7492_v4  ;;  %3203 = vmatmul.mubr.bf16.vlgmr.msra.gmra.mxu0 %v7492_v4  ;;  %v9254_v4 = vld [vmem:[#allocation14_spill] sm:$0xff] }
 0xa29   :  { %3330 = vmatpush1.bf16.msra.mxu1 %v9244_v28  ;;  %3371 = vmatpush1.bf16.msra.mxu0 %v9245_v59  ;;  %v9255_v28 = vld [vmem:[#allocation15_spill] sm:$0xff]  ;;  %v9256_v59 = vld [vmem:[#allocation16_spill] sm:$0xff] }
 0xa2a   :  { %3331 = vmatprep.subr.bf16.mxu1 %v9246_v20  ;;  %3372 = vmatprep.subr.bf16.mxu0 %v9247_v3  ;;  %v9257_v20 = vld [vmem:[#allocation17_spill] sm:$0xff]  ;;  %v9258_v3 = vld [vmem:[#allocation18_spill] sm:$0xff] }
 0xa2d   :  { %3332 = vmatpush1.bf16.msra.mxu1 %v9248_v5  ;;  %3373 = vmatpush1.bf16.msra.mxu0 %v9249_v61  ;;  %v9259_v5 = vld [vmem:[#allocation19_spill] sm:$0xff]  ;;  %v9260_v61 = vld [vmem:[#allocation20_spill] sm:$0xff] }
 0xa2e   :  { %3333 = vmatprep.subr.bf16.mxu1 %v9250_v13  ;;  %3374 = vmatprep.subr.bf16.mxu0 %v9251_v29  ;;  %v9261_v13 = vld [vmem:[#allocation21_spill] sm:$0xff]  ;;  %v9262_v29 = vld [vmem:[#allocation22_spill] sm:$0xff] }
 0xa31   :  { %3334 = vmatpush1.bf16.msra.mxu1 %v9252_v23  ;;  %3375 = vmatpush1.bf16.msra.mxu0 %v9253_v22  ;;  %v9263_v23 = vld [vmem:[#allocation23_spill] sm:$0xff]  ;;  %v9264_v22 = vld [vmem:[#allocation24_spill] sm:$0xff] }
 0xa32   :  { %3335 = vmatprep.subr.bf16.mxu1 %v9254_v4  ;;  %3376 = vmatprep.subr.bf16.mxu0 %v9255_v28  ;;  %v9265_v4 = vld [vmem:[#allocation25_spill] sm:$0xff]  ;;  %v9266_v28 = vld [vmem:[#allocation26_spill] sm:$0xff] }
 0xa35   :  { %3336 = vmatpush1.bf16.msra.mxu1 %v9256_v59  ;;  %3377 = vmatpush1.bf16.msra.mxu0 %v9257_v20  ;;  %v9267_v59 = vld [vmem:[#allocation27_spill] sm:$0xff]  ;;  %v9268_v20 = vld [vmem:[#allocation28_spill] sm:$0xff] }
 0xa36   :  { %3337 = vmatprep.subr.bf16.mxu1 %v9258_v3  ;;  %3378 = vmatprep.subr.bf16.mxu0 %v9259_v5  ;;  %v9269_v3 = vld [vmem:[#allocation29_spill] sm:$0xff]  ;;  %v9270_v5 = vld [vmem:[#allocation30_spill] sm:$0xff] }
 0xa39   :  { %3338 = vmatpush1.bf16.msra.mxu1 %v9260_v61  ;;  %3379 = vmatpush1.bf16.msra.mxu0 %v9261_v13  ;;  %v9271_v61 = vld [vmem:[#allocation31_spill] sm:$0xff]  ;;  %v9272_v13 = vld [vmem:[#allocation32_spill] sm:$0xff] }
 0xa3a   :  { %3339 = vmatprep.subr.bf16.mxu1 %v9262_v29  ;;  %3380 = vmatprep.subr.bf16.mxu0 %v9263_v23  ;;  %v9273_v29 = vld [vmem:[#allocation33_spill] sm:$0xff]  ;;  %v9274_v23 = vld [vmem:[#allocation34_spill] sm:$0xff] }
 0xa3d   :  { %3340 = vmatpush1.bf16.msra.mxu1 %v9264_v22  ;;  %3381 = vmatpush1.bf16.msra.mxu0 %v9265_v4  ;;  %v9275_v22 = vld [vmem:[#allocation35_spill] sm:$0xff]  ;;  %v9276_v4 = vld [vmem:[#allocation36_spill] sm:$0xff] }
 0xa3e   :  { %3341 = vmatprep.subr.bf16.mxu1 %v9266_v28  ;;  %3382 = vmatprep.subr.bf16.mxu0 %v9267_v59  ;;  %v9277_v28 = vld [vmem:[#allocation37_spill] sm:$0xff]  ;;  %v9278_v59 = vld [vmem:[#allocation38_spill] sm:$0xff] }
 0xa41   :  { %3342 = vmatpush1.bf16.msra.mxu1 %v9268_v20  ;;  %3383 = vmatpush1.bf16.msra.mxu0 %v9269_v3  ;;  %v9279_v20 = vld [vmem:[#allocation39_spill] sm:$0xff]  ;;  %v9280_v3 = vld [vmem:[#allocation40_spill] sm:$0xff] }
 0xa42   :  { %3343 = vmatprep.subr.bf16.mxu1 %v9270_v5  ;;  %3384 = vmatprep.subr.bf16.mxu0 %v9271_v61  ;;  %v9281_v5 = vld [vmem:[#allocation41_spill] sm:$0xff]  ;;  %v9282_v61 = vld [vmem:[#allocation42_spill] sm:$0xff] }
 0xa45   :  { %3344 = vmatpush1.bf16.msra.mxu1 %v9272_v13  ;;  %3385 = vmatpush1.bf16.msra.mxu0 %v9273_v29  ;;  %v9283_v13 = vld [vmem:[#allocation43_spill] sm:$0xff]  ;;  %v9284_v29 = vld [vmem:[#allocation44_spill] sm:$0xff] }
 0xa46   :  { %3345 = vmatprep.subr.bf16.mxu1 %v9274_v23  ;;  %3386 = vmatprep.subr.bf16.mxu0 %v9275_v22  ;;  %v9285_v23 = vld [vmem:[#allocation45_spill] sm:$0xff]  ;;  %v9286_v22 = vld [vmem:[#allocation46_spill] sm:$0xff] }
 0xa49   :  { %3346 = vmatpush2.bf16.msra.mxu1 %v9276_v4  ;;  %3387 = vmatpush2.bf16.msra.mxu0 %v9277_v28  ;;  %v9287_v4 = vld [vmem:[#allocation47_spill] sm:$0xff]  ;;  %v9288_v28 = vld [vmem:[#allocation48_spill] sm:$0xff] }
 0xa4a   :  { %3347 = vmatprep.subr.bf16.mxu1 %v9278_v59  ;;  %3388 = vmatprep.subr.bf16.mxu0 %v9279_v20  ;;  %v9289_v59 = vld [vmem:[#allocation49_spill] sm:$0xff]  ;;  %v9290_v20 = vld [vmem:[#allocation50_spill] sm:$0xff] }
 0xa4d   :  { %3348 = vmatpush2.bf16.msra.mxu1 %v9280_v3  ;;  %3389 = vmatpush2.bf16.msra.mxu0 %v9281_v5  ;;  %v9291_v3 = vld [vmem:[#allocation51_spill] sm:$0xff]  ;;  %v9292_v5 = vld [vmem:[#allocation52_spill] sm:$0xff] }
 0xa4e   :  { %3349 = vmatprep.subr.bf16.mxu1 %v9282_v61  ;;  %3390 = vmatprep.subr.bf16.mxu0 %v9283_v13  ;;  %v9293_v61 = vld [vmem:[#allocation53_spill] sm:$0xff]  ;;  %v9294_v13 = vld [vmem:[#allocation54_spill] sm:$0xff] }
 0xa51   :  { %3350 = vmatpush2.bf16.msra.mxu1 %v9284_v29  ;;  %3391 = vmatpush2.bf16.msra.mxu0 %v9285_v23  ;;  %v9295_v29 = vld [vmem:[#allocation55_spill] sm:$0xff]  ;;  %v9296_v23 = vld [vmem:[#allocation56_spill] sm:$0xff] }
 0xa52   :  { %3351 = vmatprep.subr.bf16.mxu1 %v9286_v22  ;;  %3392 = vmatprep.subr.bf16.mxu0 %v9287_v4  ;;  %v9297_v22 = vld [vmem:[#allocation57_spill] sm:$0xff]  ;;  %v9298_v4 = vld [vmem:[#allocation58_spill] sm:$0xff] }
 0xa55   :  { %3352 = vmatpush2.bf16.msra.mxu1 %v9288_v28  ;;  %3393 = vmatpush2.bf16.msra.mxu0 %v9289_v59  ;;  %v9299_v28 = vld [vmem:[#allocation59_spill] sm:$0xff]  ;;  %v9300_v59 = vld [vmem:[#allocation60_spill] sm:$0xff] }
 0xa56   :  { %3353 = vmatprep.subr.bf16.mxu1 %v9290_v20  ;;  %3394 = vmatprep.subr.bf16.mxu0 %v9291_v3  ;;  %v9301_v20 = vld [vmem:[#allocation61_spill] sm:$0xff]  ;;  %v9302_v3 = vld [vmem:[#allocation62_spill] sm:$0xff] }
 0xa59   :  { %3354 = vmatpush2.bf16.msra.mxu1 %v9292_v5  ;;  %3395 = vmatpush2.bf16.msra.mxu0 %v9293_v61  ;;  %v9303_v5 = vld [vmem:[#allocation63_spill] sm:$0xff]  ;;  %v9304_v61 = vld [vmem:[#allocation64_spill] sm:$0xff] }
 0xa5a   :  { %3355 = vmatprep.subr.bf16.mxu1 %v9294_v13  ;;  %3396 = vmatprep.subr.bf16.mxu0 %v9295_v29  ;;  %v9305_v13 = vld [vmem:[#allocation65_spill] sm:$0xff]  ;;  %v9306_v29 = vld [vmem:[#allocation66_spill] sm:$0xff] }
 0xa5d   :  { %3356 = vmatpush2.bf16.msra.mxu1 %v9296_v23  ;;  %3397 = vmatpush2.bf16.msra.mxu0 %v9297_v22  ;;  %v9307_v23 = vld [vmem:[#allocation67_spill] sm:$0xff]  ;;  %v9308_v22 = vld [vmem:[#allocation133_spill] sm:$0xff] }
 0xa5e   :  { %3357 = vmatprep.subr.bf16.mxu1 %v9298_v4  ;;  %3398 = vmatprep.subr.bf16.mxu0 %v9299_v28  ;;  %v3212_v4 = vrot.slane %v9308_v22, 1  ;;  %v3211_v28 = vrot.slane %v9309_v54, 2 }
 0xa61   :  { %3358 = vmatpush2.bf16.msra.mxu1 %v9300_v59  ;;  %3399 = vmatpush2.bf16.msra.mxu0 %v9301_v20  ;;  %v3218_v59 = vrot.slane %v9196_v48, 1  ;;  %v3213_v20 = vsel %vm2629_vm12, %v3212_v4, %v3211_v28 }
 0xa62   :  { %3359 = vmatprep.subr.bf16.mxu1 %v9302_v3  ;;  %3400 = vmatprep.subr.bf16.mxu0 %v9303_v5  ;;  %v3215_v3 = vrot.slane %v9310_v27, 7  ;;  %v3217_v5 = vrot.slane %v9311_v36, 2  ;;  %v3214_v22 = vsel %vm2632_vm13, %v9314_v47, %v3213_v20  ;;  %v9315_v27 = vld [vmem:[#allocation137_spill] sm:$0xff] }
 0xa64   :  { %v3216_v54 = vsel %vm2635_vm14, %v3215_v3, %v3214_v22  ;;  %v3224_v22 = vrot.slane %v6918_v8, 1 }
 0xa65   :  { %3360 = vmatpush2.bf16.msra.mxu1 %v9304_v61  ;;  %3401 = vmatpush2.bf16.msra.mxu0 %v9305_v13  ;;  %v3219_v13 = vsel %vm2629_vm12, %v3218_v59, %v3217_v5 }
 0xa66   :  { %3411 = vmatprep.subr.bf16.mxu1 %v9306_v29  ;;  %3452 = vmatprep.subr.bf16.mxu0 %v9307_v23  ;;  %v3221_v29 = vrot.slane %v9312_v53, 7  ;;  %v3220_v36 = vsel %vm2632_vm13, %v9315_v27, %v3219_v13 }
 0xa68   :  { %v3222_v45 = vsel %vm2635_vm14, %v3221_v29, %v3220_v36 }
 0xaa8   :  { %v3081_v26 = vpop.f32.mrf.mxu1  ;;  %v3122_v61 = vpop.f32.mrf.mxu0 }
 0xaa9   :  { %v3082_v23 = vadd.f32 %v3081_v26, %v9313_v25  ;;  %v3123_v3 = vadd.f32 %v3122_v61, %v7222_v56 }
 0xaaa   :  { %v3083_v48 = vpop.f32.mrf.mxu1  ;;  %v3124_v19 = vpop.f32.mrf.mxu0 }
 0xaab   :  { %v3239_v28 = vadd.f32 %v3216_v54, %v3082_v23  ;;  %v3084_v4 = vadd.f32 %v3083_v48, %v7200_v52  ;;  %v3223_v54 = vrot.slane %v6902_v35, 2  ;;  %v3227_v23 = vrot.slane %v6950_v63, 7 }
 0xaac   :  { %v3085_v59 = vpop.f32.mrf.mxu1  ;;  %v3126_v5 = vpop.f32.mrf.mxu0 }
 0xaad   :  { %v5054_v53 = vmul.f32 -1.442695, %v3239_v28  ;;  %v3240_v33 = vadd.f32 %v3222_v45, %v3084_v4  ;;  %v3225_v48 = vsel %vm2629_vm12, %v3224_v22, %v3223_v54 }
 0xaae   :  { %v3086_v26 = vpop.f32.mrf.mxu1  ;;  %v3127_v25 = vpop.f32.mrf.mxu0  ;;  %v3226_v36 = vsel %vm2632_vm13, %v6934_v60, %v3225_v48 }
 0xaaf   :  { %5406 = vpow2.f32 %v5054_v53  ;;  %v5055_v20 = vmul.f32 -1.442695, %v3240_v33  ;;  %v3228_v45 = vsel %vm2635_vm14, %v3227_v23, %v3226_v36  ;;  %v9316_v36 = vld [vmem:[#allocation148_spill] sm:$0xff] }
 0xab0   :  { %v3241_v13 = vadd.f32 %v3228_v45, %v3123_v3  ;;  %v3230_v3 = vrot.slane %v6926_v41, 1  ;;  %v3265_v41 = vrot.slane %v6976_v11, 4 }
 0xab1   :  { %5408 = vpow2.f32 %v5055_v20 }
 0xab2   :  { %5410 = vtanh.f32 %v3241_v13 }
 0xabc   :  { %v5407_v25 = vpop.eup %5406 }
 0xabd   :  { %v3282_v53 = vadd.f32 1.0, %v5407_v25 }
 0xabe   :  { %v5409_v33 = vpop.eup %5408 }
 0xabf   :  { %5412 = vrcp.f32 %v3282_v53  ;;  %v3288_v29 = vadd.f32 1.0, %v5409_v33  ;;  %v5411_v28 = vpop.eup %5410  ;;  %v3229_v33 = vrot.slane %v6910_v12, 2 }
 0xac1   :  { %5414 = vrcp.f32 %v3288_v29 }
 0xacc   :  { %v5413_v4 = vpop.eup %5412 }
 0xacd   :  { %v3299_v59 = vmul.f32 %v5413_v4, %v5411_v28  ;;  %v3233_v4 = vrot.slane %v6958_v49, 7  ;;  %v9320_v49 = vld [vmem:[#allocation149_spill] sm:$0xff] }
 0xace   :  { %v5415_v5 = vpop.eup %5414 }
 0xacf   :  { %v3298_v26 = vmul.f32 %v5415_v5, %v7463_v1  ;;  %v9317_v1 = vld [vmem:[#allocation150_spill] sm:$0xff] }
 0xad1   :  { %v7651_v61 = vadd.f32 %v3299_v59, %v3298_v26  ;;  %v3231_v26 = vsel %vm2629_vm12, %v3230_v3, %v3229_v33 }
 0xae8   :  { %v3163_v20 = vpop.f32.mrf.mxu1  ;;  %v3204_v22 = vpop.f32.mrf.mxu0 }
 0xae9   :  { %v3164_v54 = vadd.f32 %v3163_v20, %v7260_v57 }
 0xaea   :  { %v3165_v48 = vpop.f32.mrf.mxu1  ;;  %v3206_v23 = vpop.f32.mrf.mxu0 }
 0xaeb   :  { %v3275_v45 = vadd.f32 %v9316_v36, %v3164_v54  ;;  %v3166_v13 = vadd.f32 %v3165_v48, %v7263_v6  ;;  %v3125_v54 = vadd.f32 %v3124_v19, %v7271_v9  ;;  %v3267_v48 = vrot.slane %v7000_v32, 3 }
 0xaec   :  { %v3167_v25 = vpop.f32.mrf.mxu1  ;;  %v3208_v53 = vpop.f32.mrf.mxu0  ;;  %v3264_v36 = vrot.slane %v6968_v14, 5  ;;  %v3205_v19 = vadd.f32 %v3204_v22, %v7288_v24 }
 0xaed   :  { %v5057_v29 = vmul.f32 -1.442695, %v3275_v45  ;;  %v3276_v28 = vadd.f32 %v9317_v1, %v3166_v13  ;;  %v9318_v45 = vld [vmem:[#allocation164_spill] sm:$0xff]  ;;  %v9319_v13 = vld [vmem:[#allocation138_spill] sm:$0xff]  ;;  %v3207_v1 = vadd.f32 %v3206_v23, %v7278_v16 }
 0xaee   :  { %v3168_v59 = vpop.f32.mrf.mxu1  ;;  %v3209_v5 = vpop.f32.mrf.mxu0  ;;  %v3269_v25 = vrot.slane %v9318_v45, 2  ;;  %v3232_v53 = vsel %vm2632_vm13, %v9319_v13, %v3231_v26  ;;  %v3266_v33 = vsel %vm2629_vm12, %v3265_v41, %v3264_v36  ;;  %v3277_v45 = vadd.f32 %v9320_v49, %v3205_v19 }
 0xaef   :  { %5416 = vpow2.f32 %v5057_v29  ;;  %v5058_v20 = vmul.f32 -1.442695, %v3276_v28  ;;  %v3234_v3 = vsel %vm2635_vm14, %v3233_v4, %v3232_v53  ;;  %v3268_v28 = vsel %vm2632_vm13, %v3267_v48, %v3266_v33 }
 0xaf0   :  { %v3242_v29 = vadd.f32 %v3234_v3, %v3125_v54  ;;  %v3270_v59 = vsel %vm2635_vm14, %v3269_v25, %v3268_v28 }
 0xaf1   :  { %5418 = vpow2.f32 %v5058_v20  ;;  %v3278_v5 = vadd.f32 %v3270_v59, %v3207_v1 }
 0xaf2   :  { %v5056_v20 = vmul.f32 -1.442695, %v3242_v29 }
 0xaf3   :  { %v5059_v14 = vmul.f32 -1.442695, %v3278_v5  ;;  %v9322_v5 = vld [vmem:[#allocation92_spill] sm:$0xff] }
 0xaf4   :  { %5420 = vpow2.f32 %v5056_v20  ;;  %v9323_v20 = vld [vmem:[#allocation93_spill] sm:$0xff] }
 0xaf5   :  { %5422 = vtanh.f32 %v3277_v45 }
 0xaf6   :  { %5424 = vpow2.f32 %v5059_v14 }
 0xafc   :  { %v5417_v32 = vpop.eup %5416 }
 0xafd   :  { %v3306_v26 = vadd.f32 1.0, %v5417_v32 }
 0xafe   :  { %v5419_v23 = vpop.eup %5418 }
 0xaff   :  { %5426 = vrcp.f32 %v3306_v26  ;;  %v3312_v41 = vadd.f32 1.0, %v5419_v23  ;;  %v9324_v26 = vld [vmem:[#allocation94_spill] sm:$0xff]  ;;  %v9325_v23 = vld [vmem:[#allocation95_spill] sm:$0xff] }
 0xb01   :  { %5428 = vrcp.f32 %v3312_v41  ;;  %v5421_v4 = vpop.eup %5420  ;;  %v9326_v41 = vld [vmem:[#allocation96_spill] sm:$0xff] }
 0xb02   :  { %v5423_v54 = vpop.eup %5422  ;;  %v3295_v36 = vadd.f32 1.0, %v5421_v4  ;;  %5430 = vtanh.f32 %v7651_v61  ;;  %v9327_v4 = vld [vmem:[#allocation97_spill] sm:$0xff] }
 0xb03   :  { %v5425_v48 = vpop.eup %5424 }
 0xb04   :  { %v3319_v1 = vadd.f32 1.0, %v5425_v48  ;;  %5432 = vrcp.f32 %v3295_v36  ;;  %v9329_v48 = vld [vmem:[#allocation99_spill] sm:$0xff]  ;;  %v9331_v36 = vld [vmem:[#allocation101_spill] sm:$0xff] }
 0xb06   :  { %5434 = vrcp.f32 %v3319_v1  ;;  %v9334_v1 = vld [vmem:[#allocation104_spill] sm:$0xff] }
 0xb0c   :  { %v5427_v22 = vpop.eup %5426 }
 0xb0d   :  { %v3323_v25 = vmul.f32 %v5427_v22, %v5423_v54  ;;  %v9328_v54 = vld [vmem:[#allocation98_spill] sm:$0xff]  ;;  %v9330_v22 = vld [vmem:[#allocation100_spill] sm:$0xff] }
 0xb0e   :  { %v5429_v53 = vpop.eup %5428 }
 0xb0f   :  { %v3322_v49 = vmul.f32 %v5429_v53, %v7489_v43  ;;  %v5431_v14 = vpop.eup %5430  ;;  %v9321_v43 = vld [vmem:[#allocation91_spill] sm:$0xff] }
 0xb10   :  { %v9333_v53 = vld [vmem:[#allocation103_spill] sm:$0xff] }
 0xb11   :  { %v7677_v32 = vadd.f32 %v3323_v25, %v3322_v49  ;;  %v5433_v45 = vpop.eup %5432  ;;  %v9332_v25 = vld [vmem:[#allocation102_spill] sm:$0xff]  ;;  %v9335_v49 = vld [vmem:[#allocation105_spill] sm:$0xff] }
 0xb12   :  { %v3302_v29 = vmul.f32 %v5433_v45, %v5431_v14  ;;  %v9336_v14 = vld [vmem:[#allocation106_spill] sm:$0xff]  ;;  %v9337_v45 = vld [vmem:[#allocation107_spill] sm:$0xff] }
 0xb13   :  { %5436 = vtanh.f32 %v7677_v32  ;;  %v5435_v3 = vpop.eup %5434 }
 0xb14   :  { %v7680_v59 = vpack.c.bf16 %v3302_v29, %v3302_v29  ;;  %v9340_v29 = vld [vmem:[#allocation110_spill] sm:$0xff] }
 0xb20   :  { %v5437_v33 = vpop.eup %5436 }
 0xb21   :  { %v3326_v28 = vmul.f32 %v5437_v33, %v5435_v3  ;;  %v9338_v3 = vld [vmem:[#allocation108_spill] sm:$0xff]  ;;  %v9339_v33 = vld [vmem:[#allocation109_spill] sm:$0xff] }
 0xb23   :  { %v3328_v19 = vpack.c.bf16 %v3326_v28, %v3326_v28  ;;  %v9341_v28 = vld [vmem:[#allocation111_spill] sm:$0xff] }
 0xb25   :  { %3361 = vmatprep.mubr.bf16.mxu1 %v3328_v19  ;;  %3402 = vmatprep.mubr.bf16.mxu0 %v3328_v19 }
 0xb26   :  { %3362 = vmatmul.mubr.bf16.vlgmr.msra.gmra.mxu1 %v7680_v59  ;;  %3403 = vmatmul.mubr.bf16.vlgmr.msra.gmra.mxu0 %v7680_v59 }
 0xb27   :  { %3412 = vmatpush1.bf16.msra.mxu1 %v9073_v55  ;;  %3453 = vmatpush1.bf16.msra.mxu0 %v9074_v58 }
 0xb28   :  { %3443 = vmatprep.mubr.bf16.mxu1 %v3328_v19  ;;  %3484 = vmatprep.mubr.bf16.mxu0 %v3328_v19  ;;  %v9342_v19 = vld [vmem:[#allocation112_spill] sm:$0xff] }
 0xb29   :  { %3413 = vmatprep.subr.bf16.mxu1 %v9075_v21  ;;  %3454 = vmatprep.subr.bf16.mxu0 %v9076_v0 }
 0xb2b   :  { %3414 = vmatpush1.bf16.msra.mxu1 %v9077_v17  ;;  %3455 = vmatpush1.bf16.msra.mxu0 %v9078_v30 }
 0xb2c   :  { %3415 = vmatprep.subr.bf16.mxu1 %v9079_v38  ;;  %3456 = vmatprep.subr.bf16.mxu0 %v9080_v62 }
 0xb2f   :  { %3416 = vmatpush1.bf16.msra.mxu1 %v9081_v51  ;;  %3457 = vmatpush1.bf16.msra.mxu0 %v9082_v40 }
 0xb30   :  { %3417 = vmatprep.subr.bf16.mxu1 %v9083_v37  ;;  %3458 = vmatprep.subr.bf16.mxu0 %v9084_v39 }
 0xb33   :  { %3418 = vmatpush1.bf16.msra.mxu1 %v9085_v44  ;;  %3459 = vmatpush1.bf16.msra.mxu0 %v9086_v10 }
 0xb34   :  { %3419 = vmatprep.subr.bf16.mxu1 %v9087_v50  ;;  %3460 = vmatprep.subr.bf16.mxu0 %v9088_v42 }
 0xb37   :  { %3420 = vmatpush1.bf16.msra.mxu1 %v9089_v2  ;;  %3461 = vmatpush1.bf16.msra.mxu0 %v9090_v46 }
 0xb38   :  { %3421 = vmatprep.subr.bf16.mxu1 %v9200_v7  ;;  %3462 = vmatprep.subr.bf16.mxu0 %v9201_v31 }
 0xb3b   :  { %3422 = vmatpush1.bf16.msra.mxu1 %v9202_v18  ;;  %3463 = vmatpush1.bf16.msra.mxu0 %v9203_v15 }
 0xb3c   :  { %3423 = vmatprep.subr.bf16.mxu1 %v9204_v34  ;;  %3464 = vmatprep.subr.bf16.mxu0 %v9321_v43 }
 0xb3f   :  { %3424 = vmatpush1.bf16.msra.mxu1 %v9322_v5  ;;  %3465 = vmatpush1.bf16.msra.mxu0 %v9323_v20 }
 0xb40   :  { %3425 = vmatprep.subr.bf16.mxu1 %v9324_v26  ;;  %3466 = vmatprep.subr.bf16.mxu0 %v9325_v23 }
 0xb43   :  { %3426 = vmatpush1.bf16.msra.mxu1 %v9326_v41  ;;  %3467 = vmatpush1.bf16.msra.mxu0 %v9327_v4  ;;  %v9431_v4 = vld [vmem:[#allocation139_spill] sm:$0xff] }
 0xb44   :  { %3427 = vmatprep.subr.bf16.mxu1 %v9328_v54  ;;  %3468 = vmatprep.subr.bf16.mxu0 %v9329_v48  ;;  %v9430_v54 = vld [vmem:[#allocation162_spill] sm:$0xff] }
 0xb47   :  { %3428 = vmatpush2.bf16.msra.mxu1 %v9330_v22  ;;  %3469 = vmatpush2.bf16.msra.mxu0 %v9331_v36  ;;  %v9428_v36 = vld [vmem:[#allocation134_spill] sm:$0xff]  ;;  %v9429_v22 = vld [vmem:[#allocation131_spill] sm:$0xff] }
 0xb48   :  { %3429 = vmatprep.subr.bf16.mxu1 %v9332_v25  ;;  %3470 = vmatprep.subr.bf16.mxu0 %v9333_v53  ;;  %v9343_v25 = vld [vmem:[#allocation113_spill] sm:$0xff]  ;;  %v9344_v53 = vld [vmem:[#allocation114_spill] sm:$0xff] }
 0xb4b   :  { %3430 = vmatpush2.bf16.msra.mxu1 %v9334_v1  ;;  %3471 = vmatpush2.bf16.msra.mxu0 %v9335_v49  ;;  %v9345_v1 = vld [vmem:[#allocation115_spill] sm:$0xff]  ;;  %v9346_v49 = vld [vmem:[#allocation116_spill] sm:$0xff] }
 0xb4c   :  { %3431 = vmatprep.subr.bf16.mxu1 %v9336_v14  ;;  %3472 = vmatprep.subr.bf16.mxu0 %v9337_v45  ;;  %v9347_v14 = vld [vmem:[#allocation117_spill] sm:$0xff]  ;;  %v9348_v45 = vld [vmem:[#allocation118_spill] sm:$0xff] }
 0xb4f   :  { %3432 = vmatpush2.bf16.msra.mxu1 %v9338_v3  ;;  %3473 = vmatpush2.bf16.msra.mxu0 %v9339_v33  ;;  %v9349_v3 = vld [vmem:[#allocation119_spill] sm:$0xff]  ;;  %v9350_v33 = vld [vmem:[#allocation120_spill] sm:$0xff] }
 0xb50   :  { %3433 = vmatprep.subr.bf16.mxu1 %v9340_v29  ;;  %3474 = vmatprep.subr.bf16.mxu0 %v9341_v28  ;;  %v9351_v29 = vld [vmem:[#allocation121_spill] sm:$0xff]  ;;  %v9352_v28 = vld [vmem:[#allocation122_spill] sm:$0xff] }
 0xb53   :  { %3434 = vmatpush2.bf16.msra.mxu1 %v9342_v19  ;;  %3475 = vmatpush2.bf16.msra.mxu0 %v9343_v25  ;;  %v9353_v19 = vld [vmem:[#allocation123_spill] sm:$0xff]  ;;  %v9354_v25 = vld [vmem:[#allocation124_spill] sm:$0xff] }
 0xb54   :  { %3435 = vmatprep.subr.bf16.mxu1 %v9344_v53  ;;  %3476 = vmatprep.subr.bf16.mxu0 %v9345_v1  ;;  %v9355_v53 = vld [vmem:[#allocation125_spill] sm:$0xff]  ;;  %v9356_v1 = vld [vmem:[#allocation126_spill] sm:$0xff] }
 0xb57   :  { %3436 = vmatpush2.bf16.msra.mxu1 %v9346_v49  ;;  %3477 = vmatpush2.bf16.msra.mxu0 %v9347_v14  ;;  %v9357_v49 = vld [vmem:[#allocation127_spill] sm:$0xff]  ;;  %v9358_v14 = vld [vmem:[#allocation128_spill] sm:$0xff] }
 0xb58   :  { %3437 = vmatprep.subr.bf16.mxu1 %v9348_v45  ;;  %3478 = vmatprep.subr.bf16.mxu0 %v9349_v3  ;;  %v9359_v45 = vld [vmem:[#allocation129_spill] sm:$0xff]  ;;  %v9360_v3 = vld [vmem:[#allocation2_spill] sm:$0xff] }
 0xb5b   :  { %3438 = vmatpush2.bf16.msra.mxu1 %v9350_v33  ;;  %3479 = vmatpush2.bf16.msra.mxu0 %v9351_v29  ;;  %v9361_v33 = vld [vmem:[#allocation3_spill] sm:$0xff]  ;;  %v9427_v29 = vld [vmem:[#allocation130_spill] sm:$0xff] }
 0xb5c   :  { %3439 = vmatprep.subr.bf16.mxu1 %v9352_v28  ;;  %3480 = vmatprep.subr.bf16.mxu0 %v9353_v19  ;;  %v9362_v19 = vld [vmem:[#allocation4_spill] sm:$0xff]  ;;  %v9371_v28 = vld [vmem:[#allocation13_spill] sm:$0xff] }
 0xb5f   :  { %3440 = vmatpush2.bf16.msra.mxu1 %v9354_v25  ;;  %3481 = vmatpush2.bf16.msra.mxu0 %v9355_v53  ;;  %v9363_v25 = vld [vmem:[#allocation5_spill] sm:$0xff]  ;;  %v9364_v53 = vld [vmem:[#allocation6_spill] sm:$0xff] }
 0xb60   :  { %3441 = vmatprep.subr.bf16.mxu1 %v9356_v1  ;;  %3482 = vmatprep.subr.bf16.mxu0 %v9357_v49  ;;  %v9365_v1 = vld [vmem:[#allocation7_spill] sm:$0xff]  ;;  %v9366_v49 = vld [vmem:[#allocation8_spill] sm:$0xff] }
 0xb63   :  { %3442 = vmatpush2.bf16.msra.mxu1 %v9358_v14  ;;  %3483 = vmatpush2.bf16.msra.mxu0 %v9359_v45  ;;  %v9367_v14 = vld [vmem:[#allocation9_spill] sm:$0xff]  ;;  %v9368_v45 = vld [vmem:[#allocation10_spill] sm:$0xff] }
 0xb64   :  { %3611 = vmatprep.subr.bf16.mxu1 %v9360_v3  ;;  %3652 = vmatprep.subr.bf16.mxu0 %v9361_v33  ;;  %v9369_v3 = vld [vmem:[#allocation11_spill] sm:$0xff]  ;;  %v9370_v33 = vld [vmem:[#allocation12_spill] sm:$0xff] }
 0xb66   :  { %3444 = vmatmul.mubr.bf16.vlgmr.msra.gmra.mxu1 %v7680_v59  ;;  %3485 = vmatmul.mubr.bf16.vlgmr.msra.gmra.mxu0 %v7680_v59  ;;  %v9372_v59 = vld [vmem:[#allocation14_spill] sm:$0xff] }
 0xb67   :  { %3612 = vmatpush1.bf16.msra.mxu1 %v9362_v19  ;;  %3653 = vmatpush1.bf16.msra.mxu0 %v9363_v25  ;;  %v9373_v19 = vld [vmem:[#allocation15_spill] sm:$0xff]  ;;  %v9374_v25 = vld [vmem:[#allocation16_spill] sm:$0xff] }
 0xb68   :  { %3613 = vmatprep.subr.bf16.mxu1 %v9364_v53  ;;  %3654 = vmatprep.subr.bf16.mxu0 %v9365_v1  ;;  %v9375_v53 = vld [vmem:[#allocation17_spill] sm:$0xff]  ;;  %v9376_v1 = vld [vmem:[#allocation18_spill] sm:$0xff] }
 0xb6b   :  { %3614 = vmatpush1.bf16.msra.mxu1 %v9366_v49  ;;  %3655 = vmatpush1.bf16.msra.mxu0 %v9367_v14  ;;  %v9377_v49 = vld [vmem:[#allocation19_spill] sm:$0xff]  ;;  %v9378_v14 = vld [vmem:[#allocation20_spill] sm:$0xff] }
 0xb6c   :  { %3615 = vmatprep.subr.bf16.mxu1 %v9368_v45  ;;  %3656 = vmatprep.subr.bf16.mxu0 %v9369_v3  ;;  %v9379_v45 = vld [vmem:[#allocation21_spill] sm:$0xff]  ;;  %v9380_v3 = vld [vmem:[#allocation22_spill] sm:$0xff] }
 0xb6f   :  { %3616 = vmatpush1.bf16.msra.mxu1 %v9370_v33  ;;  %3657 = vmatpush1.bf16.msra.mxu0 %v9371_v28  ;;  %v9381_v33 = vld [vmem:[#allocation23_spill] sm:$0xff]  ;;  %v9382_v28 = vld [vmem:[#allocation24_spill] sm:$0xff] }
 0xb70   :  { %3617 = vmatprep.subr.bf16.mxu1 %v9372_v59  ;;  %3658 = vmatprep.subr.bf16.mxu0 %v9373_v19  ;;  %v9383_v59 = vld [vmem:[#allocation25_spill] sm:$0xff]  ;;  %v9384_v19 = vld [vmem:[#allocation26_spill] sm:$0xff] }
 0xb73   :  { %3618 = vmatpush1.bf16.msra.mxu1 %v9374_v25  ;;  %3659 = vmatpush1.bf16.msra.mxu0 %v9375_v53  ;;  %v9385_v25 = vld [vmem:[#allocation27_spill] sm:$0xff]  ;;  %v9386_v53 = vld [vmem:[#allocation28_spill] sm:$0xff] }
 0xb74   :  { %3619 = vmatprep.subr.bf16.mxu1 %v9376_v1  ;;  %3660 = vmatprep.subr.bf16.mxu0 %v9377_v49  ;;  %v9387_v1 = vld [vmem:[#allocation29_spill] sm:$0xff]  ;;  %v9388_v49 = vld [vmem:[#allocation30_spill] sm:$0xff] }
 0xb77   :  { %3620 = vmatpush1.bf16.msra.mxu1 %v9378_v14  ;;  %3661 = vmatpush1.bf16.msra.mxu0 %v9379_v45  ;;  %v9389_v14 = vld [vmem:[#allocation31_spill] sm:$0xff]  ;;  %v9390_v45 = vld [vmem:[#allocation32_spill] sm:$0xff] }
 0xb78   :  { %3621 = vmatprep.subr.bf16.mxu1 %v9380_v3  ;;  %3662 = vmatprep.subr.bf16.mxu0 %v9381_v33  ;;  %v9391_v3 = vld [vmem:[#allocation33_spill] sm:$0xff]  ;;  %v9392_v33 = vld [vmem:[#allocation34_spill] sm:$0xff] }
 0xb7b   :  { %3622 = vmatpush1.bf16.msra.mxu1 %v9382_v28  ;;  %3663 = vmatpush1.bf16.msra.mxu0 %v9383_v59  ;;  %v9393_v28 = vld [vmem:[#allocation35_spill] sm:$0xff]  ;;  %v9394_v59 = vld [vmem:[#allocation36_spill] sm:$0xff] }
 0xb7c   :  { %3623 = vmatprep.subr.bf16.mxu1 %v9384_v19  ;;  %3664 = vmatprep.subr.bf16.mxu0 %v9385_v25  ;;  %v9395_v19 = vld [vmem:[#allocation37_spill] sm:$0xff]  ;;  %v9396_v25 = vld [vmem:[#allocation38_spill] sm:$0xff] }
 0xb7f   :  { %3624 = vmatpush1.bf16.msra.mxu1 %v9386_v53  ;;  %3665 = vmatpush1.bf16.msra.mxu0 %v9387_v1  ;;  %v9397_v53 = vld [vmem:[#allocation39_spill] sm:$0xff]  ;;  %v9398_v1 = vld [vmem:[#allocation40_spill] sm:$0xff] }
 0xb80   :  { %3625 = vmatprep.subr.bf16.mxu1 %v9388_v49  ;;  %3666 = vmatprep.subr.bf16.mxu0 %v9389_v14  ;;  %v9399_v49 = vld [vmem:[#allocation41_spill] sm:$0xff]  ;;  %v9400_v14 = vld [vmem:[#allocation42_spill] sm:$0xff] }
 0xb83   :  { %3626 = vmatpush1.bf16.msra.mxu1 %v9390_v45  ;;  %3667 = vmatpush1.bf16.msra.mxu0 %v9391_v3  ;;  %v9401_v45 = vld [vmem:[#allocation43_spill] sm:$0xff]  ;;  %v9402_v3 = vld [vmem:[#allocation44_spill] sm:$0xff] }
 0xb84   :  { %3627 = vmatprep.subr.bf16.mxu1 %v9392_v33  ;;  %3668 = vmatprep.subr.bf16.mxu0 %v9393_v28  ;;  %v9403_v33 = vld [vmem:[#allocation45_spill] sm:$0xff]  ;;  %v9404_v28 = vld [vmem:[#allocation46_spill] sm:$0xff] }
 0xb87   :  { %3628 = vmatpush2.bf16.msra.mxu1 %v9394_v59  ;;  %3669 = vmatpush2.bf16.msra.mxu0 %v9395_v19  ;;  %v9405_v59 = vld [vmem:[#allocation47_spill] sm:$0xff]  ;;  %v9406_v19 = vld [vmem:[#allocation48_spill] sm:$0xff] }
 0xb88   :  { %3629 = vmatprep.subr.bf16.mxu1 %v9396_v25  ;;  %3670 = vmatprep.subr.bf16.mxu0 %v9397_v53  ;;  %v9407_v25 = vld [vmem:[#allocation49_spill] sm:$0xff]  ;;  %v9408_v53 = vld [vmem:[#allocation50_spill] sm:$0xff] }
 0xb8b   :  { %3630 = vmatpush2.bf16.msra.mxu1 %v9398_v1  ;;  %3671 = vmatpush2.bf16.msra.mxu0 %v9399_v49  ;;  %v9409_v1 = vld [vmem:[#allocation51_spill] sm:$0xff]  ;;  %v9410_v49 = vld [vmem:[#allocation52_spill] sm:$0xff] }
 0xb8c   :  { %3631 = vmatprep.subr.bf16.mxu1 %v9400_v14  ;;  %3672 = vmatprep.subr.bf16.mxu0 %v9401_v45  ;;  %v9411_v14 = vld [vmem:[#allocation53_spill] sm:$0xff]  ;;  %v9412_v45 = vld [vmem:[#allocation54_spill] sm:$0xff] }
 0xb8f   :  { %3632 = vmatpush2.bf16.msra.mxu1 %v9402_v3  ;;  %3673 = vmatpush2.bf16.msra.mxu0 %v9403_v33  ;;  %v9413_v3 = vld [vmem:[#allocation55_spill] sm:$0xff]  ;;  %v9414_v33 = vld [vmem:[#allocation56_spill] sm:$0xff] }
 0xb90   :  { %3633 = vmatprep.subr.bf16.mxu1 %v9404_v28  ;;  %3674 = vmatprep.subr.bf16.mxu0 %v9405_v59  ;;  %v9415_v28 = vld [vmem:[#allocation57_spill] sm:$0xff]  ;;  %v9416_v59 = vld [vmem:[#allocation58_spill] sm:$0xff] }
 0xb93   :  { %3634 = vmatpush2.bf16.msra.mxu1 %v9406_v19  ;;  %3675 = vmatpush2.bf16.msra.mxu0 %v9407_v25  ;;  %v9417_v19 = vld [vmem:[#allocation59_spill] sm:$0xff]  ;;  %v9418_v25 = vld [vmem:[#allocation60_spill] sm:$0xff] }
 0xb94   :  { %3635 = vmatprep.subr.bf16.mxu1 %v9408_v53  ;;  %3676 = vmatprep.subr.bf16.mxu0 %v9409_v1  ;;  %v9419_v53 = vld [vmem:[#allocation61_spill] sm:$0xff]  ;;  %v9420_v1 = vld [vmem:[#allocation62_spill] sm:$0xff] }
 0xb97   :  { %3636 = vmatpush2.bf16.msra.mxu1 %v9410_v49  ;;  %3677 = vmatpush2.bf16.msra.mxu0 %v9411_v14  ;;  %v9421_v49 = vld [vmem:[#allocation63_spill] sm:$0xff]  ;;  %v9422_v14 = vld [vmem:[#allocation64_spill] sm:$0xff] }
 0xb98   :  { %3637 = vmatprep.subr.bf16.mxu1 %v9412_v45  ;;  %3678 = vmatprep.subr.bf16.mxu0 %v9413_v3  ;;  %v9423_v45 = vld [vmem:[#allocation65_spill] sm:$0xff]  ;;  %v9424_v3 = vld [vmem:[#allocation66_spill] sm:$0xff] }
 0xb9b   :  { %3638 = vmatpush2.bf16.msra.mxu1 %v9414_v33  ;;  %3679 = vmatpush2.bf16.msra.mxu0 %v9415_v28  ;;  %v9425_v33 = vld [vmem:[#allocation67_spill] sm:$0xff]  ;;  %v9426_v28 = vld [vmem:[#allocation133_spill] sm:$0xff] }
 0xb9c   :  { %3639 = vmatprep.subr.bf16.mxu1 %v9416_v59  ;;  %3680 = vmatprep.subr.bf16.mxu0 %v9417_v19  ;;  %v3494_v59 = vrot.slane %v9426_v28, 2  ;;  %v3496_v19 = vrot.slane %v9314_v47, 1 }
 0xb9f   :  { %3640 = vmatpush2.bf16.msra.mxu1 %v9418_v25  ;;  %3681 = vmatpush2.bf16.msra.mxu0 %v9419_v53  ;;  %v3493_v25 = vrot.slane %v9427_v29, 3  ;;  %v3500_v53 = vrot.slane %v9428_v36, 2 }
 0xba0   :  { %3641 = vmatprep.subr.bf16.mxu1 %v9420_v1  ;;  %3682 = vmatprep.subr.bf16.mxu0 %v9421_v49  ;;  %v3502_v1 = vrot.slane %v9315_v27, 1 }
 0xba1   :  { %v3495_v49 = vsel %vm2629_vm12, %v3494_v59, %v3493_v25  ;;  %v9432_v59 = vld [vmem:[#allocation140_spill] sm:$0xff] }
 0xba3   :  { %3642 = vmatpush2.bf16.msra.mxu1 %v9422_v14  ;;  %3683 = vmatpush2.bf16.msra.mxu0 %v9423_v45  ;;  %v3499_v14 = vrot.slane %v9429_v22, 3  ;;  %v3497_v45 = vsel %vm2632_vm13, %v3496_v19, %v3495_v49 }
 0xba4   :  { %3693 = vmatprep.subr.bf16.mxu1 %v9424_v3  ;;  %3734 = vmatprep.subr.bf16.mxu0 %v9425_v33  ;;  %v3498_v29 = vsel %vm2635_vm14, %v9431_v4, %v3497_v45  ;;  %v3508_v45 = vrot.slane %v6934_v60, 1 }
 0xba5   :  { %v3501_v33 = vsel %vm2629_vm12, %v3500_v53, %v3499_v14 }
 0xba6   :  { %v3503_v47 = vsel %vm2632_vm13, %v3502_v1, %v3501_v33  ;;  %v3506_v1 = vrot.slane %v6918_v8, 2  ;;  %v3505_v33 = vrot.slane %v6902_v35, 3 }
 0xba7   :  { %v3504_v22 = vsel %vm2635_vm14, %v9432_v59, %v3503_v47 }
 0xbe6   :  { %v3363_v48 = vpop.f32.mrf.mxu1  ;;  %v3404_v3 = vpop.f32.mrf.mxu0 }
 0xbe7   :  { %v3364_v28 = vadd.f32 %v3363_v48, %v9430_v54 }
 0xbe8   :  { %v3365_v36 = vpop.f32.mrf.mxu1  ;;  %v3406_v41 = vpop.f32.mrf.mxu0 }
 0xbe9   :  { %v3521_v27 = vadd.f32 %v3498_v29, %v3364_v28  ;;  %v3366_v25 = vadd.f32 %v3365_v36, %v7200_v52  ;;  %v3507_v36 = vsel %vm2629_vm12, %v3506_v1, %v3505_v33  ;;  %v3405_v29 = vadd.f32 %v3404_v3, %v7222_v56 }
 0xbea   :  { %v3367_v49 = vpop.f32.mrf.mxu1  ;;  %v3408_v19 = vpop.f32.mrf.mxu0  ;;  %v3509_v47 = vsel %vm2632_vm13, %v3508_v45, %v3507_v36 }
 0xbeb   :  { %v5060_v23 = vmul.f32 -1.442695, %v3521_v27  ;;  %v3522_v26 = vadd.f32 %v3504_v22, %v3366_v25  ;;  %v3510_v27 = vsel %vm2635_vm14, %v6950_v63, %v3509_v47  ;;  %v9433_v47 = vld [vmem:[#allocation135_spill] sm:$0xff] }
 0xbec   :  { %v3368_v53 = vpop.f32.mrf.mxu1  ;;  %v3409_v14 = vpop.f32.mrf.mxu0  ;;  %v3523_v22 = vadd.f32 %v3510_v27, %v3405_v29  ;;  %v3512_v27 = vrot.slane %v9433_v47, 2  ;;  %v3547_v47 = vrot.slane %v6976_v11, 3 }
 0xbed   :  { %5438 = vpow2.f32 %v5060_v23  ;;  %v5061_v48 = vmul.f32 -1.442695, %v3522_v26 }
 0xbef   :  { %5440 = vpow2.f32 %v5061_v48 }
 0xbf0   :  { %5442 = vtanh.f32 %v3523_v22  ;;  %v9434_v22 = vld [vmem:[#allocation151_spill] sm:$0xff] }
 0xbfa   :  { %v5439_v28 = vpop.eup %5438 }
 0xbfb   :  { %v3564_v23 = vadd.f32 1.0, %v5439_v28 }
 0xbfc   :  { %v5441_v26 = vpop.eup %5440 }
 0xbfd   :  { %5444 = vrcp.f32 %v3564_v23  ;;  %v3570_v25 = vadd.f32 1.0, %v5441_v26  ;;  %v5443_v49 = vpop.eup %5442  ;;  %v3514_v26 = vrot.slane %v9319_v13, 1 }
 0xbff   :  { %5446 = vrcp.f32 %v3570_v25 }
 0xc0a   :  { %v5445_v19 = vpop.eup %5444 }
 0xc0b   :  { %v3581_v53 = vmul.f32 %v5445_v19, %v5443_v49 }
 0xc0c   :  { %v5447_v14 = vpop.eup %5446 }
 0xc0d   :  { %v3580_v48 = vmul.f32 %v5447_v14, %v7651_v61  ;;  %v3511_v61 = vrot.slane %v6910_v12, 3 }
 0xc0f   :  { %v7839_v3 = vadd.f32 %v3581_v53, %v3580_v48  ;;  %v9435_v53 = vld [vmem:[#allocation153_spill] sm:$0xff] }
 0xc26   :  { %v3445_v1 = vpop.f32.mrf.mxu1  ;;  %v3486_v45 = vpop.f32.mrf.mxu0 }
 0xc27   :  { %v3446_v33 = vadd.f32 %v3445_v1, %v7260_v57  ;;  %v3513_v1 = vsel %vm2629_vm12, %v3512_v27, %v3511_v61 }
 0xc28   :  { %v3447_v36 = vpop.f32.mrf.mxu1  ;;  %v3488_v29 = vpop.f32.mrf.mxu0 }
 0xc29   :  { %v3557_v28 = vadd.f32 %v9434_v22, %v3446_v33  ;;  %v3448_v23 = vadd.f32 %v3447_v36, %v7263_v6  ;;  %v3407_v33 = vadd.f32 %v3406_v41, %v7271_v9  ;;  %v3515_v36 = vsel %vm2632_vm13, %v3514_v26, %v3513_v1  ;;  %v9436_v22 = vld [vmem:[#allocation144_spill] sm:$0xff] }
 0xc2a   :  { %v3449_v25 = vpop.f32.mrf.mxu1  ;;  %v3490_v49 = vpop.f32.mrf.mxu0  ;;  %v3487_v41 = vadd.f32 %v3486_v45, %v7288_v24 }
 0xc2b   :  { %v5063_v19 = vmul.f32 -1.442695, %v3557_v28  ;;  %v3558_v14 = vadd.f32 %v9435_v53, %v3448_v23  ;;  %v3549_v25 = vrot.slane %v9436_v22, 2  ;;  %v9437_v49 = vld [vmem:[#allocation142_spill] sm:$0xff]  ;;  %v9438_v28 = vld [vmem:[#allocation164_spill] sm:$0xff]  ;;  %v3489_v23 = vadd.f32 %v3488_v29, %v7278_v16 }
 0xc2c   :  { %v3450_v48 = vpop.f32.mrf.mxu1  ;;  %v3491_v56 = vpop.f32.mrf.mxu0  ;;  %v3546_v13 = vrot.slane %v9437_v49, 4  ;;  %v3551_v12 = vrot.slane %v9438_v28, 1 }
 0xc2d   :  { %5448 = vpow2.f32 %v5063_v19  ;;  %v5064_v57 = vmul.f32 -1.442695, %v3558_v14  ;;  %v9439_v56 = vld [vmem:[#allocation141_spill] sm:$0xff]  ;;  %v9440_v48 = vld [vmem:[#allocation152_spill] sm:$0xff] }
 0xc2e   :  { %v3516_v27 = vsel %vm2635_vm14, %v9439_v56, %v3515_v36  ;;  %v3548_v61 = vsel %vm2629_vm12, %v3547_v47, %v3546_v13  ;;  %v3559_v1 = vadd.f32 %v9440_v48, %v3487_v41  ;;  %v9442_v48 = vld [vmem:[#allocation95_spill] sm:$0xff] }
 0xc2f   :  { %5450 = vpow2.f32 %v5064_v57  ;;  %v3524_v19 = vadd.f32 %v3516_v27, %v3407_v33  ;;  %v3550_v53 = vsel %vm2632_vm13, %v3549_v25, %v3548_v61 }
 0xc30   :  { %v3552_v26 = vsel %vm2635_vm14, %v3551_v12, %v3550_v53 }
 0xc31   :  { %v3560_v14 = vadd.f32 %v3552_v26, %v3489_v23  ;;  %v5062_v57 = vmul.f32 -1.442695, %v3524_v19 }
 0xc33   :  { %v5065_v9 = vmul.f32 -1.442695, %v3560_v14  ;;  %5452 = vpow2.f32 %v5062_v57 }
 0xc34   :  { %5454 = vtanh.f32 %v3559_v1  ;;  %v9443_v1 = vld [vmem:[#allocation96_spill] sm:$0xff] }
 0xc35   :  { %5456 = vpow2.f32 %v5065_v9 }
 0xc3a   :  { %v5449_v28 = vpop.eup %5448 }
 0xc3b   :  { %v3588_v29 = vadd.f32 1.0, %v5449_v28 }
 0xc3c   :  { %v5451_v16 = vpop.eup %5450 }
 0xc3d   :  { %5458 = vrcp.f32 %v3588_v29  ;;  %v3594_v13 = vadd.f32 1.0, %v5451_v16  ;;  %v9444_v29 = vld [vmem:[#allocation97_spill] sm:$0xff] }
 0xc3f   :  { %5460 = vrcp.f32 %v3594_v13  ;;  %v9445_v13 = vld [vmem:[#allocation98_spill] sm:$0xff] }
 0xc40   :  { %v5453_v47 = vpop.eup %5452  ;;  %5462 = vtanh.f32 %v7839_v3 }
 0xc41   :  { %v5455_v33 = vpop.eup %5454  ;;  %v3577_v25 = vadd.f32 1.0, %v5453_v47  ;;  %v9446_v47 = vld [vmem:[#allocation99_spill] sm:$0xff] }
 0xc42   :  { %v5457_v36 = vpop.eup %5456 }
 0xc43   :  { %v3601_v27 = vadd.f32 1.0, %v5457_v36  ;;  %5464 = vrcp.f32 %v3577_v25  ;;  %v9448_v36 = vld [vmem:[#allocation101_spill] sm:$0xff]  ;;  %v9450_v25 = vld [vmem:[#allocation103_spill] sm:$0xff] }
 0xc45   :  { %5466 = vrcp.f32 %v3601_v27  ;;  %v9453_v27 = vld [vmem:[#allocation106_spill] sm:$0xff] }
 0xc4a   :  { %v5459_v45 = vpop.eup %5458 }
 0xc4b   :  { %v3605_v12 = vmul.f32 %v5459_v45, %v5455_v33  ;;  %v9447_v33 = vld [vmem:[#allocation100_spill] sm:$0xff]  ;;  %v9449_v45 = vld [vmem:[#allocation102_spill] sm:$0xff] }
 0xc4c   :  { %v5461_v23 = vpop.eup %5460 }
 0xc4d   :  { %v3604_v61 = vmul.f32 %v5461_v23, %v7677_v32  ;;  %v5463_v9 = vpop.eup %5462  ;;  %v9441_v32 = vld [vmem:[#allocation94_spill] sm:$0xff]  ;;  %v9452_v23 = vld [vmem:[#allocation105_spill] sm:$0xff] }
 0xc4f   :  { %v7865_v28 = vadd.f32 %v3605_v12, %v3604_v61  ;;  %v9451_v12 = vld [vmem:[#allocation104_spill] sm:$0xff]  ;;  %v9454_v61 = vld [vmem:[#allocation107_spill] sm:$0xff] }
 0xc50   :  { %v5465_v16 = vpop.eup %5464 }
 0xc51   :  { %5468 = vtanh.f32 %v7865_v28  ;;  %v3584_v41 = vmul.f32 %v5465_v16, %v5463_v9  ;;  %v9455_v9 = vld [vmem:[#allocation108_spill] sm:$0xff]  ;;  %v9456_v16 = vld [vmem:[#allocation109_spill] sm:$0xff] }
 0xc52   :  { %v5467_v19 = vpop.eup %5466 }
 0xc53   :  { %v7868_v57 = vpack.c.bf16 %v3584_v41, %v3584_v41  ;;  %v9459_v41 = vld [vmem:[#allocation112_spill] sm:$0xff] }
 0xc5e   :  { %v5469_v53 = vpop.eup %5468 }
 0xc5f   :  { %v3608_v26 = vmul.f32 %v5469_v53, %v5467_v19  ;;  %v9457_v19 = vld [vmem:[#allocation110_spill] sm:$0xff]  ;;  %v9458_v53 = vld [vmem:[#allocation111_spill] sm:$0xff] }
 0xc61   :  { %v3610_v14 = vpack.c.bf16 %v3608_v26, %v3608_v26  ;;  %v9460_v26 = vld [vmem:[#allocation113_spill] sm:$0xff] }
 0xc63   :  { %3643 = vmatprep.mubr.bf16.mxu1 %v3610_v14  ;;  %3684 = vmatprep.mubr.bf16.mxu0 %v3610_v14 }
 0xc64   :  { %3644 = vmatmul.mubr.bf16.vlgmr.msra.gmra.mxu1 %v7868_v57  ;;  %3685 = vmatmul.mubr.bf16.vlgmr.msra.gmra.mxu0 %v7868_v57 }
 0xc65   :  { %3694 = vmatpush1.bf16.msra.mxu1 %v9073_v55  ;;  %3735 = vmatpush1.bf16.msra.mxu0 %v9074_v58 }
 0xc66   :  { %3725 = vmatprep.mubr.bf16.mxu1 %v3610_v14  ;;  %3766 = vmatprep.mubr.bf16.mxu0 %v3610_v14  ;;  %v9461_v14 = vld [vmem:[#allocation114_spill] sm:$0xff] }
 0xc67   :  { %3695 = vmatprep.subr.bf16.mxu1 %v9075_v21  ;;  %3736 = vmatprep.subr.bf16.mxu0 %v9076_v0 }
 0xc69   :  { %3696 = vmatpush1.bf16.msra.mxu1 %v9077_v17  ;;  %3737 = vmatpush1.bf16.msra.mxu0 %v9078_v30 }
 0xc6a   :  { %3697 = vmatprep.subr.bf16.mxu1 %v9079_v38  ;;  %3738 = vmatprep.subr.bf16.mxu0 %v9080_v62 }
 0xc6d   :  { %3698 = vmatpush1.bf16.msra.mxu1 %v9081_v51  ;;  %3739 = vmatpush1.bf16.msra.mxu0 %v9082_v40 }
 0xc6e   :  { %3699 = vmatprep.subr.bf16.mxu1 %v9083_v37  ;;  %3740 = vmatprep.subr.bf16.mxu0 %v9084_v39 }
 0xc71   :  { %3700 = vmatpush1.bf16.msra.mxu1 %v9085_v44  ;;  %3741 = vmatpush1.bf16.msra.mxu0 %v9086_v10 }
 0xc72   :  { %3701 = vmatprep.subr.bf16.mxu1 %v9087_v50  ;;  %3742 = vmatprep.subr.bf16.mxu0 %v9088_v42 }
 0xc75   :  { %3702 = vmatpush1.bf16.msra.mxu1 %v9089_v2  ;;  %3743 = vmatpush1.bf16.msra.mxu0 %v9090_v46 }
 0xc76   :  { %3703 = vmatprep.subr.bf16.mxu1 %v9200_v7  ;;  %3744 = vmatprep.subr.bf16.mxu0 %v9201_v31 }
 0xc79   :  { %3704 = vmatpush1.bf16.msra.mxu1 %v9202_v18  ;;  %3745 = vmatpush1.bf16.msra.mxu0 %v9203_v15 }
 0xc7a   :  { %3705 = vmatprep.subr.bf16.mxu1 %v9204_v34  ;;  %3746 = vmatprep.subr.bf16.mxu0 %v9321_v43 }
 0xc7d   :  { %3706 = vmatpush1.bf16.msra.mxu1 %v9322_v5  ;;  %3747 = vmatpush1.bf16.msra.mxu0 %v9323_v20 }
 0xc7e   :  { %3707 = vmatprep.subr.bf16.mxu1 %v9441_v32  ;;  %3748 = vmatprep.subr.bf16.mxu0 %v9442_v48 }
 0xc81   :  { %3708 = vmatpush1.bf16.msra.mxu1 %v9443_v1  ;;  %3749 = vmatpush1.bf16.msra.mxu0 %v9444_v29 }
 0xc82   :  { %3709 = vmatprep.subr.bf16.mxu1 %v9445_v13  ;;  %3750 = vmatprep.subr.bf16.mxu0 %v9446_v47  ;;  %v9548_v47 = vld [vmem:[#allocation131_spill] sm:$0xff] }
 0xc85   :  { %3710 = vmatpush2.bf16.msra.mxu1 %v9447_v33  ;;  %3751 = vmatpush2.bf16.msra.mxu0 %v9448_v36  ;;  %v9547_v36 = vld [vmem:[#allocation137_spill] sm:$0xff] }
 0xc86   :  { %3711 = vmatprep.subr.bf16.mxu1 %v9449_v45  ;;  %3752 = vmatprep.subr.bf16.mxu0 %v9450_v25  ;;  %v9545_v25 = vld [vmem:[#allocation130_spill] sm:$0xff] }
 0xc87   :  { %v9546_v45 = vld [vmem:[#allocation134_spill] sm:$0xff] }
 0xc89   :  { %3712 = vmatpush2.bf16.msra.mxu1 %v9451_v12  ;;  %3753 = vmatpush2.bf16.msra.mxu0 %v9452_v23  ;;  %v9462_v12 = vld [vmem:[#allocation115_spill] sm:$0xff]  ;;  %v9463_v23 = vld [vmem:[#allocation116_spill] sm:$0xff] }
 0xc8a   :  { %3713 = vmatprep.subr.bf16.mxu1 %v9453_v27  ;;  %3754 = vmatprep.subr.bf16.mxu0 %v9454_v61  ;;  %v9464_v27 = vld [vmem:[#allocation117_spill] sm:$0xff]  ;;  %v9465_v61 = vld [vmem:[#allocation118_spill] sm:$0xff] }
 0xc8d   :  { %3714 = vmatpush2.bf16.msra.mxu1 %v9455_v9  ;;  %3755 = vmatpush2.bf16.msra.mxu0 %v9456_v16  ;;  %v9466_v9 = vld [vmem:[#allocation119_spill] sm:$0xff]  ;;  %v9467_v16 = vld [vmem:[#allocation120_spill] sm:$0xff] }
 0xc8e   :  { %3715 = vmatprep.subr.bf16.mxu1 %v9457_v19  ;;  %3756 = vmatprep.subr.bf16.mxu0 %v9458_v53  ;;  %v9468_v19 = vld [vmem:[#allocation121_spill] sm:$0xff]  ;;  %v9469_v53 = vld [vmem:[#allocation122_spill] sm:$0xff] }
 0xc91   :  { %3716 = vmatpush2.bf16.msra.mxu1 %v9459_v41  ;;  %3757 = vmatpush2.bf16.msra.mxu0 %v9460_v26  ;;  %v9470_v41 = vld [vmem:[#allocation123_spill] sm:$0xff]  ;;  %v9471_v26 = vld [vmem:[#allocation124_spill] sm:$0xff] }
 0xc92   :  { %3717 = vmatprep.subr.bf16.mxu1 %v9461_v14  ;;  %3758 = vmatprep.subr.bf16.mxu0 %v9462_v12  ;;  %v9472_v14 = vld [vmem:[#allocation125_spill] sm:$0xff]  ;;  %v9473_v12 = vld [vmem:[#allocation126_spill] sm:$0xff] }
 0xc95   :  { %3718 = vmatpush2.bf16.msra.mxu1 %v9463_v23  ;;  %3759 = vmatpush2.bf16.msra.mxu0 %v9464_v27  ;;  %v9474_v23 = vld [vmem:[#allocation127_spill] sm:$0xff]  ;;  %v9475_v27 = vld [vmem:[#allocation128_spill] sm:$0xff] }
 0xc96   :  { %3719 = vmatprep.subr.bf16.mxu1 %v9465_v61  ;;  %3760 = vmatprep.subr.bf16.mxu0 %v9466_v9  ;;  %v9476_v61 = vld [vmem:[#allocation129_spill] sm:$0xff]  ;;  %v9477_v9 = vld [vmem:[#allocation2_spill] sm:$0xff] }
 0xc99   :  { %3720 = vmatpush2.bf16.msra.mxu1 %v9467_v16  ;;  %3761 = vmatpush2.bf16.msra.mxu0 %v9468_v19  ;;  %v9478_v16 = vld [vmem:[#allocation3_spill] sm:$0xff]  ;;  %v9544_v19 = vld [vmem:[#allocation136_spill] sm:$0xff] }
 0xc9a   :  { %3721 = vmatprep.subr.bf16.mxu1 %v9469_v53  ;;  %3762 = vmatprep.subr.bf16.mxu0 %v9470_v41  ;;  %v9479_v41 = vld [vmem:[#allocation4_spill] sm:$0xff]  ;;  %v9488_v53 = vld [vmem:[#allocation13_spill] sm:$0xff] }
 0xc9d   :  { %3722 = vmatpush2.bf16.msra.mxu1 %v9471_v26  ;;  %3763 = vmatpush2.bf16.msra.mxu0 %v9472_v14  ;;  %v9480_v26 = vld [vmem:[#allocation5_spill] sm:$0xff]  ;;  %v9481_v14 = vld [vmem:[#allocation6_spill] sm:$0xff] }
 0xc9e   :  { %3723 = vmatprep.subr.bf16.mxu1 %v9473_v12  ;;  %3764 = vmatprep.subr.bf16.mxu0 %v9474_v23  ;;  %v9482_v12 = vld [vmem:[#allocation7_spill] sm:$0xff]  ;;  %v9483_v23 = vld [vmem:[#allocation8_spill] sm:$0xff] }
 0xca1   :  { %3724 = vmatpush2.bf16.msra.mxu1 %v9475_v27  ;;  %3765 = vmatpush2.bf16.msra.mxu0 %v9476_v61  ;;  %v9484_v27 = vld [vmem:[#allocation9_spill] sm:$0xff]  ;;  %v9485_v61 = vld [vmem:[#allocation10_spill] sm:$0xff] }
 0xca2   :  { %3893 = vmatprep.subr.bf16.mxu1 %v9477_v9  ;;  %3934 = vmatprep.subr.bf16.mxu0 %v9478_v16  ;;  %v9486_v9 = vld [vmem:[#allocation11_spill] sm:$0xff]  ;;  %v9487_v16 = vld [vmem:[#allocation12_spill] sm:$0xff] }
 0xca4   :  { %3726 = vmatmul.mubr.bf16.vlgmr.msra.gmra.mxu1 %v7868_v57  ;;  %3767 = vmatmul.mubr.bf16.vlgmr.msra.gmra.mxu0 %v7868_v57  ;;  %v9489_v57 = vld [vmem:[#allocation14_spill] sm:$0xff] }
 0xca5   :  { %3894 = vmatpush1.bf16.msra.mxu1 %v9479_v41  ;;  %3935 = vmatpush1.bf16.msra.mxu0 %v9480_v26  ;;  %v9490_v41 = vld [vmem:[#allocation15_spill] sm:$0xff]  ;;  %v9491_v26 = vld [vmem:[#allocation16_spill] sm:$0xff] }
 0xca6   :  { %3895 = vmatprep.subr.bf16.mxu1 %v9481_v14  ;;  %3936 = vmatprep.subr.bf16.mxu0 %v9482_v12  ;;  %v9492_v14 = vld [vmem:[#allocation17_spill] sm:$0xff]  ;;  %v9493_v12 = vld [vmem:[#allocation18_spill] sm:$0xff] }
 0xca9   :  { %3896 = vmatpush1.bf16.msra.mxu1 %v9483_v23  ;;  %3937 = vmatpush1.bf16.msra.mxu0 %v9484_v27  ;;  %v9494_v23 = vld [vmem:[#allocation19_spill] sm:$0xff]  ;;  %v9495_v27 = vld [vmem:[#allocation20_spill] sm:$0xff] }
 0xcaa   :  { %3897 = vmatprep.subr.bf16.mxu1 %v9485_v61  ;;  %3938 = vmatprep.subr.bf16.mxu0 %v9486_v9  ;;  %v9496_v61 = vld [vmem:[#allocation21_spill] sm:$0xff]  ;;  %v9497_v9 = vld [vmem:[#allocation22_spill] sm:$0xff] }
 0xcad   :  { %3898 = vmatpush1.bf16.msra.mxu1 %v9487_v16  ;;  %3939 = vmatpush1.bf16.msra.mxu0 %v9488_v53  ;;  %v9498_v16 = vld [vmem:[#allocation23_spill] sm:$0xff]  ;;  %v9499_v53 = vld [vmem:[#allocation24_spill] sm:$0xff] }
 0xcae   :  { %3899 = vmatprep.subr.bf16.mxu1 %v9489_v57  ;;  %3940 = vmatprep.subr.bf16.mxu0 %v9490_v41  ;;  %v9500_v57 = vld [vmem:[#allocation25_spill] sm:$0xff]  ;;  %v9501_v41 = vld [vmem:[#allocation26_spill] sm:$0xff] }
 0xcb1   :  { %3900 = vmatpush1.bf16.msra.mxu1 %v9491_v26  ;;  %3941 = vmatpush1.bf16.msra.mxu0 %v9492_v14  ;;  %v9502_v26 = vld [vmem:[#allocation27_spill] sm:$0xff]  ;;  %v9503_v14 = vld [vmem:[#allocation28_spill] sm:$0xff] }
 0xcb2   :  { %3901 = vmatprep.subr.bf16.mxu1 %v9493_v12  ;;  %3942 = vmatprep.subr.bf16.mxu0 %v9494_v23  ;;  %v9504_v12 = vld [vmem:[#allocation29_spill] sm:$0xff]  ;;  %v9505_v23 = vld [vmem:[#allocation30_spill] sm:$0xff] }
 0xcb5   :  { %3902 = vmatpush1.bf16.msra.mxu1 %v9495_v27  ;;  %3943 = vmatpush1.bf16.msra.mxu0 %v9496_v61  ;;  %v9506_v27 = vld [vmem:[#allocation31_spill] sm:$0xff]  ;;  %v9507_v61 = vld [vmem:[#allocation32_spill] sm:$0xff] }
 0xcb6   :  { %3903 = vmatprep.subr.bf16.mxu1 %v9497_v9  ;;  %3944 = vmatprep.subr.bf16.mxu0 %v9498_v16  ;;  %v9508_v9 = vld [vmem:[#allocation33_spill] sm:$0xff]  ;;  %v9509_v16 = vld [vmem:[#allocation34_spill] sm:$0xff] }
 0xcb9   :  { %3904 = vmatpush1.bf16.msra.mxu1 %v9499_v53  ;;  %3945 = vmatpush1.bf16.msra.mxu0 %v9500_v57  ;;  %v9510_v53 = vld [vmem:[#allocation35_spill] sm:$0xff]  ;;  %v9511_v57 = vld [vmem:[#allocation36_spill] sm:$0xff] }
 0xcba   :  { %3905 = vmatprep.subr.bf16.mxu1 %v9501_v41  ;;  %3946 = vmatprep.subr.bf16.mxu0 %v9502_v26  ;;  %v9512_v41 = vld [vmem:[#allocation37_spill] sm:$0xff]  ;;  %v9513_v26 = vld [vmem:[#allocation38_spill] sm:$0xff] }
 0xcbd   :  { %3906 = vmatpush1.bf16.msra.mxu1 %v9503_v14  ;;  %3947 = vmatpush1.bf16.msra.mxu0 %v9504_v12  ;;  %v9514_v14 = vld [vmem:[#allocation39_spill] sm:$0xff]  ;;  %v9515_v12 = vld [vmem:[#allocation40_spill] sm:$0xff] }
 0xcbe   :  { %3907 = vmatprep.subr.bf16.mxu1 %v9505_v23  ;;  %3948 = vmatprep.subr.bf16.mxu0 %v9506_v27  ;;  %v9516_v23 = vld [vmem:[#allocation41_spill] sm:$0xff]  ;;  %v9517_v27 = vld [vmem:[#allocation42_spill] sm:$0xff] }
 0xcc1   :  { %3908 = vmatpush1.bf16.msra.mxu1 %v9507_v61  ;;  %3949 = vmatpush1.bf16.msra.mxu0 %v9508_v9  ;;  %v9518_v61 = vld [vmem:[#allocation43_spill] sm:$0xff]  ;;  %v9519_v9 = vld [vmem:[#allocation44_spill] sm:$0xff] }
 0xcc2   :  { %3909 = vmatprep.subr.bf16.mxu1 %v9509_v16  ;;  %3950 = vmatprep.subr.bf16.mxu0 %v9510_v53  ;;  %v9520_v16 = vld [vmem:[#allocation45_spill] sm:$0xff]  ;;  %v9521_v53 = vld [vmem:[#allocation46_spill] sm:$0xff] }
 0xcc5   :  { %3910 = vmatpush2.bf16.msra.mxu1 %v9511_v57  ;;  %3951 = vmatpush2.bf16.msra.mxu0 %v9512_v41  ;;  %v9522_v57 = vld [vmem:[#allocation47_spill] sm:$0xff]  ;;  %v9523_v41 = vld [vmem:[#allocation48_spill] sm:$0xff] }
 0xcc6   :  { %3911 = vmatprep.subr.bf16.mxu1 %v9513_v26  ;;  %3952 = vmatprep.subr.bf16.mxu0 %v9514_v14  ;;  %v9524_v26 = vld [vmem:[#allocation49_spill] sm:$0xff]  ;;  %v9525_v14 = vld [vmem:[#allocation50_spill] sm:$0xff] }
 0xcc9   :  { %3912 = vmatpush2.bf16.msra.mxu1 %v9515_v12  ;;  %3953 = vmatpush2.bf16.msra.mxu0 %v9516_v23  ;;  %v9526_v12 = vld [vmem:[#allocation51_spill] sm:$0xff]  ;;  %v9527_v23 = vld [vmem:[#allocation52_spill] sm:$0xff] }
 0xcca   :  { %3913 = vmatprep.subr.bf16.mxu1 %v9517_v27  ;;  %3954 = vmatprep.subr.bf16.mxu0 %v9518_v61  ;;  %v9528_v27 = vld [vmem:[#allocation53_spill] sm:$0xff]  ;;  %v9529_v61 = vld [vmem:[#allocation54_spill] sm:$0xff] }
 0xccd   :  { %3914 = vmatpush2.bf16.msra.mxu1 %v9519_v9  ;;  %3955 = vmatpush2.bf16.msra.mxu0 %v9520_v16  ;;  %v9530_v9 = vld [vmem:[#allocation55_spill] sm:$0xff]  ;;  %v9531_v16 = vld [vmem:[#allocation56_spill] sm:$0xff] }
 0xcce   :  { %3915 = vmatprep.subr.bf16.mxu1 %v9521_v53  ;;  %3956 = vmatprep.subr.bf16.mxu0 %v9522_v57  ;;  %v9532_v53 = vld [vmem:[#allocation57_spill] sm:$0xff]  ;;  %v9533_v57 = vld [vmem:[#allocation58_spill] sm:$0xff] }
 0xcd1   :  { %3916 = vmatpush2.bf16.msra.mxu1 %v9523_v41  ;;  %3957 = vmatpush2.bf16.msra.mxu0 %v9524_v26  ;;  %v9534_v41 = vld [vmem:[#allocation59_spill] sm:$0xff]  ;;  %v9535_v26 = vld [vmem:[#allocation60_spill] sm:$0xff] }
 0xcd2   :  { %3917 = vmatprep.subr.bf16.mxu1 %v9525_v14  ;;  %3958 = vmatprep.subr.bf16.mxu0 %v9526_v12  ;;  %v9536_v14 = vld [vmem:[#allocation61_spill] sm:$0xff]  ;;  %v9537_v12 = vld [vmem:[#allocation62_spill] sm:$0xff] }
 0xcd5   :  { %3918 = vmatpush2.bf16.msra.mxu1 %v9527_v23  ;;  %3959 = vmatpush2.bf16.msra.mxu0 %v9528_v27  ;;  %v9538_v23 = vld [vmem:[#allocation63_spill] sm:$0xff]  ;;  %v9539_v27 = vld [vmem:[#allocation64_spill] sm:$0xff] }
 0xcd6   :  { %3919 = vmatprep.subr.bf16.mxu1 %v9529_v61  ;;  %3960 = vmatprep.subr.bf16.mxu0 %v9530_v9  ;;  %v9540_v61 = vld [vmem:[#allocation65_spill] sm:$0xff]  ;;  %v9541_v9 = vld [vmem:[#allocation66_spill] sm:$0xff] }
 0xcd9   :  { %3920 = vmatpush2.bf16.msra.mxu1 %v9531_v16  ;;  %3961 = vmatpush2.bf16.msra.mxu0 %v9532_v53  ;;  %v9542_v16 = vld [vmem:[#allocation67_spill] sm:$0xff]  ;;  %v9543_v53 = vld [vmem:[#allocation133_spill] sm:$0xff] }
 0xcda   :  { %3921 = vmatprep.subr.bf16.mxu1 %v9533_v57  ;;  %3962 = vmatprep.subr.bf16.mxu0 %v9534_v41  ;;  %v3776_v57 = vrot.slane %v9543_v53, 3  ;;  %v3778_v41 = vrot.slane %v9544_v19, 2 }
 0xcdd   :  { %3922 = vmatpush2.bf16.msra.mxu1 %v9535_v26  ;;  %3963 = vmatpush2.bf16.msra.mxu0 %v9536_v14  ;;  %v3775_v26 = vrot.slane %v9545_v25, 4  ;;  %v3780_v14 = vrot.slane %v9431_v4, 1 }
 0xcde   :  { %3923 = vmatprep.subr.bf16.mxu1 %v9537_v12  ;;  %3964 = vmatprep.subr.bf16.mxu0 %v9538_v23  ;;  %v3783_v12 = vrot.slane %v9546_v45, 3  ;;  %v3785_v23 = vrot.slane %v9547_v36, 2 }
 0xce1   :  { %3924 = vmatpush2.bf16.msra.mxu1 %v9539_v27  ;;  %3965 = vmatpush2.bf16.msra.mxu0 %v9540_v61  ;;  %v3777_v27 = vsel %vm2629_vm12, %v3776_v57, %v3775_v26 }
 0xce2   :  { %3975 = vmatprep.subr.bf16.mxu1 %v9541_v9  ;;  %4016 = vmatprep.subr.bf16.mxu0 %v9542_v16  ;;  %v3782_v9 = vrot.slane %v9548_v47, 4  ;;  %v3787_v16 = vrot.slane %v9432_v59, 1  ;;  %v3779_v19 = vsel %vm2632_vm13, %v3778_v41, %v3777_v27 }
 0xce3   :  { %v3781_v25 = vsel %vm2635_vm14, %v3780_v14, %v3779_v19  ;;  %v3790_v19 = vrot.slane %v6918_v8, 3 }
 0xce4   :  { %v3784_v4 = vsel %vm2629_vm12, %v3783_v12, %v3782_v9  ;;  %v3792_v12 = vrot.slane %v6934_v60, 2 }
 0xce5   :  { %v3786_v26 = vsel %vm2632_vm13, %v3785_v23, %v3784_v4  ;;  %v9549_v4 = vld [vmem:[#allocation165_spill] sm:$0xff] }
 0xce6   :  { %v3788_v57 = vsel %vm2635_vm14, %v3787_v16, %v3786_v26 }
 0xd24   :  { %v3645_v33 = vpop.f32.mrf.mxu1  ;;  %v3686_v61 = vpop.f32.mrf.mxu0 }
 0xd25   :  { %v3646_v53 = vadd.f32 %v3645_v33, %v9430_v54  ;;  %v3687_v23 = vadd.f32 %v3686_v61, %v9549_v4 }
 0xd26   :  { %v3647_v13 = vpop.f32.mrf.mxu1  ;;  %v3688_v45 = vpop.f32.mrf.mxu0 }
 0xd27   :  { %v3807_v29 = vadd.f32 %v3781_v25, %v3646_v53  ;;  %v3648_v36 = vadd.f32 %v3647_v13, %v7200_v52  ;;  %v3789_v25 = vrot.slane %v6902_v35, 4  ;;  %v3794_v13 = vrot.slane %v6950_v63, 1 }
 0xd28   :  { %v3649_v47 = vpop.f32.mrf.mxu1  ;;  %v3690_v1 = vpop.f32.mrf.mxu0 }
 0xd29   :  { %v5066_v59 = vmul.f32 -1.442695, %v3807_v29  ;;  %v3808_v48 = vadd.f32 %v3788_v57, %v3648_v36  ;;  %v3791_v47 = vsel %vm2629_vm12, %v3790_v19, %v3789_v25 }
 0xd2a   :  { %v3650_v33 = vpop.f32.mrf.mxu1  ;;  %v3691_v54 = vpop.f32.mrf.mxu0  ;;  %v3793_v1 = vsel %vm2632_vm13, %v3792_v12, %v3791_v47 }
 0xd2b   :  { %5470 = vpow2.f32 %v5066_v59  ;;  %v5067_v27 = vmul.f32 -1.442695, %v3808_v48  ;;  %v3795_v29 = vsel %vm2635_vm14, %v3794_v13, %v3793_v1  ;;  %v9551_v13 = vld [vmem:[#allocation154_spill] sm:$0xff] }
 0xd2c   :  { %v3809_v54 = vadd.f32 %v3795_v29, %v3687_v23 }
 0xd2d   :  { %5472 = vpow2.f32 %v5067_v27  ;;  %v9550_v27 = vld [vmem:[#allocation169_spill] sm:$0xff] }
 0xd2e   :  { %5474 = vtanh.f32 %v3809_v54  ;;  %v9552_v54 = vld [vmem:[#allocation135_spill] sm:$0xff] }
 0xd38   :  { %v5471_v59 = vpop.eup %5470 }
 0xd39   :  { %v3846_v48 = vadd.f32 1.0, %v5471_v59  ;;  %v3797_v59 = vrot.slane %v9552_v54, 3 }
 0xd3a   :  { %v5473_v36 = vpop.eup %5472 }
 0xd3b   :  { %5476 = vrcp.f32 %v3846_v48  ;;  %v3852_v9 = vadd.f32 1.0, %v5473_v36  ;;  %v5475_v16 = vpop.eup %5474  ;;  %v9553_v36 = vld [vmem:[#allocation156_spill] sm:$0xff] }
 0xd3d   :  { %5478 = vrcp.f32 %v3852_v9 }
 0xd48   :  { %v5477_v53 = vpop.eup %5476 }
 0xd49   :  { %v3863_v41 = vmul.f32 %v5477_v53, %v5475_v16  ;;  %v9554_v16 = vld [vmem:[#allocation132_spill] sm:$0xff] }
 0xd4a   :  { %v5479_v14 = vpop.eup %5478  ;;  %v3796_v53 = vrot.slane %v9554_v16, 4 }
 0xd4b   :  { %v3862_v61 = vmul.f32 %v5479_v14, %v7839_v3  ;;  %v3830_v3 = vrot.slane %v6976_v11, 2 }
 0xd4d   :  { %v8027_v26 = vadd.f32 %v3863_v41, %v3862_v61  ;;  %v9555_v41 = vld [vmem:[#allocation138_spill] sm:$0xff]  ;;  %v3832_v61 = vrot.slane %v9436_v22, 1 }
 0xd4e   :  { %v3799_v14 = vrot.slane %v9555_v41, 2  ;;  %v9557_v41 = vld [vmem:[#allocation171_spill] sm:$0xff] }
 0xd64   :  { %v3727_v57 = vpop.f32.mrf.mxu1  ;;  %v3768_v33 = vpop.f32.mrf.mxu0 }
 0xd65   :  { %v3728_v19 = vadd.f32 %v3727_v57, %v9550_v27 }
 0xd66   :  { %v3729_v12 = vpop.f32.mrf.mxu1  ;;  %v3770_v25 = vpop.f32.mrf.mxu0 }
 0xd67   :  { %v3839_v23 = vadd.f32 %v9551_v13, %v3728_v19  ;;  %v3730_v47 = vadd.f32 %v3729_v12, %v7263_v6  ;;  %v3801_v19 = vrot.slane %v9439_v56, 1  ;;  %v3829_v13 = vrot.slane %v9437_v49, 3 }
 0xd68   :  { %v3731_v1 = vpop.f32.mrf.mxu1  ;;  %v3772_v29 = vpop.f32.mrf.mxu0  ;;  %v3771_v16 = vadd.f32 %v3770_v25, %v9557_v41 }
 0xd69   :  { %v5069_v48 = vmul.f32 -1.442695, %v3839_v23  ;;  %v3840_v9 = vadd.f32 %v9553_v36, %v3730_v47  ;;  %v9556_v1 = vld [vmem:[#allocation170_spill] sm:$0xff]  ;;  %v3798_v47 = vsel %vm2629_vm12, %v3797_v59, %v3796_v53  ;;  %v3831_v29 = vsel %vm2629_vm12, %v3830_v3, %v3829_v13  ;;  %v9559_v59 = vld [vmem:[#allocation155_spill] sm:$0xff] }
 0xd6a   :  { %v3732_v57 = vpop.f32.mrf.mxu1  ;;  %v3773_v27 = vpop.f32.mrf.mxu0  ;;  %v3689_v23 = vadd.f32 %v3688_v45, %v9556_v1  ;;  %v3800_v36 = vsel %vm2632_vm13, %v3799_v14, %v3798_v47 }
 0xd6b   :  { %5480 = vpow2.f32 %v5069_v48  ;;  %v5070_v12 = vmul.f32 -1.442695, %v3840_v9  ;;  %v3833_v57 = vsel %vm2632_vm13, %v3832_v61, %v3831_v29  ;;  %v3802_v27 = vsel %vm2635_vm14, %v3801_v19, %v3800_v36  ;;  %v9558_v9 = vld [vmem:[#allocation164_spill] sm:$0xff] }
 0xd6c   :  { %v3810_v22 = vadd.f32 %v3802_v27, %v3689_v23  ;;  %v3769_v48 = vadd.f32 %v3768_v33, %v7288_v24  ;;  %v3834_v49 = vsel %vm2635_vm14, %v9558_v9, %v3833_v57 }
 0xd6d   :  { %5482 = vpow2.f32 %v5070_v12  ;;  %v3842_v45 = vadd.f32 %v3834_v49, %v3771_v16 }
 0xd6e   :  { %v5068_v1 = vmul.f32 -1.442695, %v3810_v22  ;;  %v3841_v53 = vadd.f32 %v9559_v59, %v3769_v48 }
 0xd6f   :  { %v5071_v12 = vmul.f32 -1.442695, %v3842_v45 }
 0xd70   :  { %5484 = vpow2.f32 %v5068_v1 }
 0xd71   :  { %5486 = vtanh.f32 %v3841_v53 }
 0xd72   :  { %5488 = vpow2.f32 %v5071_v12 }
 0xd78   :  { %v5481_v3 = vpop.eup %5480 }
 0xd79   :  { %v3870_v14 = vadd.f32 1.0, %v5481_v3  ;;  %v9561_v3 = vld [vmem:[#allocation96_spill] sm:$0xff] }
 0xd7a   :  { %v5483_v25 = vpop.eup %5482 }
 0xd7b   :  { %5490 = vrcp.f32 %v3870_v14  ;;  %v3876_v61 = vadd.f32 1.0, %v5483_v25  ;;  %v9562_v14 = vld [vmem:[#allocation97_spill] sm:$0xff]  ;;  %v9563_v25 = vld [vmem:[#allocation98_spill] sm:$0xff] }
 0xd7d   :  { %5492 = vrcp.f32 %v3876_v61  ;;  %v5485_v19 = vpop.eup %5484  ;;  %v9564_v61 = vld [vmem:[#allocation99_spill] sm:$0xff] }
 0xd7e   :  { %v5487_v13 = vpop.eup %5486  ;;  %v3859_v47 = vadd.f32 1.0, %v5485_v19  ;;  %5494 = vtanh.f32 %v8027_v26  ;;  %v9565_v19 = vld [vmem:[#allocation100_spill] sm:$0xff] }
 0xd7f   :  { %v5489_v33 = vpop.eup %5488 }
 0xd80   :  { %v3883_v22 = vadd.f32 1.0, %v5489_v33  ;;  %5496 = vrcp.f32 %v3859_v47  ;;  %v9567_v33 = vld [vmem:[#allocation102_spill] sm:$0xff]  ;;  %v9569_v47 = vld [vmem:[#allocation104_spill] sm:$0xff] }
 0xd82   :  { %5498 = vrcp.f32 %v3883_v22  ;;  %v9572_v22 = vld [vmem:[#allocation107_spill] sm:$0xff] }
 0xd88   :  { %v5491_v23 = vpop.eup %5490 }
 0xd89   :  { %v3887_v29 = vmul.f32 %v5491_v23, %v5487_v13  ;;  %v9566_v13 = vld [vmem:[#allocation101_spill] sm:$0xff]  ;;  %v9568_v23 = vld [vmem:[#allocation103_spill] sm:$0xff] }
 0xd8a   :  { %v5493_v49 = vpop.eup %5492 }
 0xd8b   :  { %v3886_v16 = vmul.f32 %v5493_v49, %v7865_v28  ;;  %v5495_v36 = vpop.eup %5494  ;;  %v9560_v28 = vld [vmem:[#allocation95_spill] sm:$0xff]  ;;  %v9571_v49 = vld [vmem:[#allocation106_spill] sm:$0xff] }
 0xd8d   :  { %v8053_v1 = vadd.f32 %v3887_v29, %v3886_v16  ;;  %v5497_v57 = vpop.eup %5496  ;;  %v9570_v29 = vld [vmem:[#allocation105_spill] sm:$0xff]  ;;  %v9573_v16 = vld [vmem:[#allocation108_spill] sm:$0xff] }
 0xd8e   :  { %v3866_v45 = vmul.f32 %v5497_v57, %v5495_v36  ;;  %v9574_v36 = vld [vmem:[#allocation109_spill] sm:$0xff]  ;;  %v9575_v57 = vld [vmem:[#allocation110_spill] sm:$0xff] }
 0xd8f   :  { %5500 = vtanh.f32 %v8053_v1  ;;  %v5499_v27 = vpop.eup %5498 }
 0xd90   :  { %v8056_v12 = vpack.c.bf16 %v3866_v45, %v3866_v45  ;;  %v9578_v45 = vld [vmem:[#allocation113_spill] sm:$0xff] }
 0xd9c   :  { %v5501_v48 = vpop.eup %5500 }
 0xd9d   :  { %v3890_v59 = vmul.f32 %v5501_v48, %v5499_v27  ;;  %v9576_v27 = vld [vmem:[#allocation111_spill] sm:$0xff]  ;;  %v9577_v48 = vld [vmem:[#allocation112_spill] sm:$0xff] }
 0xd9f   :  { %v3892_v53 = vpack.c.bf16 %v3890_v59, %v3890_v59  ;;  %v9579_v59 = vld [vmem:[#allocation114_spill] sm:$0xff] }
 0xda1   :  { %3925 = vmatprep.mubr.bf16.mxu1 %v3892_v53  ;;  %3966 = vmatprep.mubr.bf16.mxu0 %v3892_v53 }
 0xda2   :  { %3926 = vmatmul.mubr.bf16.vlgmr.msra.gmra.mxu1 %v8056_v12  ;;  %3967 = vmatmul.mubr.bf16.vlgmr.msra.gmra.mxu0 %v8056_v12 }
 0xda3   :  { %3976 = vmatpush1.bf16.msra.mxu1 %v9073_v55  ;;  %4017 = vmatpush1.bf16.msra.mxu0 %v9074_v58 }
 0xda4   :  { %4007 = vmatprep.mubr.bf16.mxu1 %v3892_v53  ;;  %4048 = vmatprep.mubr.bf16.mxu0 %v3892_v53  ;;  %v9580_v53 = vld [vmem:[#allocation115_spill] sm:$0xff] }
 0xda5   :  { %3977 = vmatprep.subr.bf16.mxu1 %v9075_v21  ;;  %4018 = vmatprep.subr.bf16.mxu0 %v9076_v0 }
 0xda7   :  { %3978 = vmatpush1.bf16.msra.mxu1 %v9077_v17  ;;  %4019 = vmatpush1.bf16.msra.mxu0 %v9078_v30 }
 0xda8   :  { %3979 = vmatprep.subr.bf16.mxu1 %v9079_v38  ;;  %4020 = vmatprep.subr.bf16.mxu0 %v9080_v62 }
 0xdab   :  { %3980 = vmatpush1.bf16.msra.mxu1 %v9081_v51  ;;  %4021 = vmatpush1.bf16.msra.mxu0 %v9082_v40 }
 0xdac   :  { %3981 = vmatprep.subr.bf16.mxu1 %v9083_v37  ;;  %4022 = vmatprep.subr.bf16.mxu0 %v9084_v39 }
 0xdaf   :  { %3982 = vmatpush1.bf16.msra.mxu1 %v9085_v44  ;;  %4023 = vmatpush1.bf16.msra.mxu0 %v9086_v10 }
 0xdb0   :  { %3983 = vmatprep.subr.bf16.mxu1 %v9087_v50  ;;  %4024 = vmatprep.subr.bf16.mxu0 %v9088_v42 }
 0xdb3   :  { %3984 = vmatpush1.bf16.msra.mxu1 %v9089_v2  ;;  %4025 = vmatpush1.bf16.msra.mxu0 %v9090_v46 }
 0xdb4   :  { %3985 = vmatprep.subr.bf16.mxu1 %v9200_v7  ;;  %4026 = vmatprep.subr.bf16.mxu0 %v9201_v31 }
 0xdb7   :  { %3986 = vmatpush1.bf16.msra.mxu1 %v9202_v18  ;;  %4027 = vmatpush1.bf16.msra.mxu0 %v9203_v15 }
 0xdb8   :  { %3987 = vmatprep.subr.bf16.mxu1 %v9204_v34  ;;  %4028 = vmatprep.subr.bf16.mxu0 %v9321_v43 }
 0xdbb   :  { %3988 = vmatpush1.bf16.msra.mxu1 %v9322_v5  ;;  %4029 = vmatpush1.bf16.msra.mxu0 %v9323_v20 }
 0xdbc   :  { %3989 = vmatprep.subr.bf16.mxu1 %v9441_v32  ;;  %4030 = vmatprep.subr.bf16.mxu0 %v9560_v28 }
 0xdbf   :  { %3990 = vmatpush1.bf16.msra.mxu1 %v9561_v3  ;;  %4031 = vmatpush1.bf16.msra.mxu0 %v9562_v14  ;;  %v9669_v14 = vld [vmem:[#allocation162_spill] sm:$0xff] }
 0xdc0   :  { %3991 = vmatprep.subr.bf16.mxu1 %v9563_v25  ;;  %4032 = vmatprep.subr.bf16.mxu0 %v9564_v61  ;;  %v9667_v61 = vld [vmem:[#allocation131_spill] sm:$0xff]  ;;  %v9668_v25 = vld [vmem:[#allocation140_spill] sm:$0xff] }
 0xdc3   :  { %3992 = vmatpush2.bf16.msra.mxu1 %v9565_v19  ;;  %4033 = vmatpush2.bf16.msra.mxu0 %v9566_v13  ;;  %v9666_v13 = vld [vmem:[#allocation137_spill] sm:$0xff] }
 0xdc4   :  { %3993 = vmatprep.subr.bf16.mxu1 %v9567_v33  ;;  %4034 = vmatprep.subr.bf16.mxu0 %v9568_v23  ;;  %v9664_v23 = vld [vmem:[#allocation139_spill] sm:$0xff]  ;;  %v9665_v33 = vld [vmem:[#allocation134_spill] sm:$0xff] }
 0xdc7   :  { %3994 = vmatpush2.bf16.msra.mxu1 %v9569_v47  ;;  %4035 = vmatpush2.bf16.msra.mxu0 %v9570_v29  ;;  %v9581_v29 = vld [vmem:[#allocation116_spill] sm:$0xff]  ;;  %v9663_v47 = vld [vmem:[#allocation130_spill] sm:$0xff] }
 0xdc8   :  { %3995 = vmatprep.subr.bf16.mxu1 %v9571_v49  ;;  %4036 = vmatprep.subr.bf16.mxu0 %v9572_v22  ;;  %v9582_v49 = vld [vmem:[#allocation117_spill] sm:$0xff]  ;;  %v9583_v22 = vld [vmem:[#allocation118_spill] sm:$0xff] }
 0xdcb   :  { %3996 = vmatpush2.bf16.msra.mxu1 %v9573_v16  ;;  %4037 = vmatpush2.bf16.msra.mxu0 %v9574_v36  ;;  %v9584_v16 = vld [vmem:[#allocation119_spill] sm:$0xff]  ;;  %v9585_v36 = vld [vmem:[#allocation120_spill] sm:$0xff] }
 0xdcc   :  { %3997 = vmatprep.subr.bf16.mxu1 %v9575_v57  ;;  %4038 = vmatprep.subr.bf16.mxu0 %v9576_v27  ;;  %v9586_v57 = vld [vmem:[#allocation121_spill] sm:$0xff]  ;;  %v9587_v27 = vld [vmem:[#allocation122_spill] sm:$0xff] }
 0xdcf   :  { %3998 = vmatpush2.bf16.msra.mxu1 %v9577_v48  ;;  %4039 = vmatpush2.bf16.msra.mxu0 %v9578_v45  ;;  %v9588_v48 = vld [vmem:[#allocation123_spill] sm:$0xff]  ;;  %v9589_v45 = vld [vmem:[#allocation124_spill] sm:$0xff] }
 0xdd0   :  { %3999 = vmatprep.subr.bf16.mxu1 %v9579_v59  ;;  %4040 = vmatprep.subr.bf16.mxu0 %v9580_v53  ;;  %v9590_v59 = vld [vmem:[#allocation125_spill] sm:$0xff]  ;;  %v9591_v53 = vld [vmem:[#allocation126_spill] sm:$0xff] }
 0xdd3   :  { %4000 = vmatpush2.bf16.msra.mxu1 %v9581_v29  ;;  %4041 = vmatpush2.bf16.msra.mxu0 %v9582_v49  ;;  %v9592_v29 = vld [vmem:[#allocation127_spill] sm:$0xff]  ;;  %v9593_v49 = vld [vmem:[#allocation128_spill] sm:$0xff] }
 0xdd4   :  { %4001 = vmatprep.subr.bf16.mxu1 %v9583_v22  ;;  %4042 = vmatprep.subr.bf16.mxu0 %v9584_v16  ;;  %v9594_v22 = vld [vmem:[#allocation129_spill] sm:$0xff]  ;;  %v9595_v16 = vld [vmem:[#allocation2_spill] sm:$0xff] }
 0xdd7   :  { %4002 = vmatpush2.bf16.msra.mxu1 %v9585_v36  ;;  %4043 = vmatpush2.bf16.msra.mxu0 %v9586_v57  ;;  %v9596_v36 = vld [vmem:[#allocation3_spill] sm:$0xff]  ;;  %v9662_v57 = vld [vmem:[#allocation136_spill] sm:$0xff] }
 0xdd8   :  { %4003 = vmatprep.subr.bf16.mxu1 %v9587_v27  ;;  %4044 = vmatprep.subr.bf16.mxu0 %v9588_v48  ;;  %v9597_v48 = vld [vmem:[#allocation4_spill] sm:$0xff]  ;;  %v9606_v27 = vld [vmem:[#allocation13_spill] sm:$0xff] }
 0xddb   :  { %4004 = vmatpush2.bf16.msra.mxu1 %v9589_v45  ;;  %4045 = vmatpush2.bf16.msra.mxu0 %v9590_v59  ;;  %v9598_v45 = vld [vmem:[#allocation5_spill] sm:$0xff]  ;;  %v9599_v59 = vld [vmem:[#allocation6_spill] sm:$0xff] }
 0xddc   :  { %4005 = vmatprep.subr.bf16.mxu1 %v9591_v53  ;;  %4046 = vmatprep.subr.bf16.mxu0 %v9592_v29  ;;  %v9600_v53 = vld [vmem:[#allocation7_spill] sm:$0xff]  ;;  %v9601_v29 = vld [vmem:[#allocation8_spill] sm:$0xff] }
 0xddf   :  { %4006 = vmatpush2.bf16.msra.mxu1 %v9593_v49  ;;  %4047 = vmatpush2.bf16.msra.mxu0 %v9594_v22  ;;  %v9602_v49 = vld [vmem:[#allocation9_spill] sm:$0xff]  ;;  %v9603_v22 = vld [vmem:[#allocation10_spill] sm:$0xff] }
 0xde0   :  { %4175 = vmatprep.subr.bf16.mxu1 %v9595_v16  ;;  %4216 = vmatprep.subr.bf16.mxu0 %v9596_v36  ;;  %v9604_v16 = vld [vmem:[#allocation11_spill] sm:$0xff]  ;;  %v9605_v36 = vld [vmem:[#allocation12_spill] sm:$0xff] }
 0xde2   :  { %4008 = vmatmul.mubr.bf16.vlgmr.msra.gmra.mxu1 %v8056_v12  ;;  %4049 = vmatmul.mubr.bf16.vlgmr.msra.gmra.mxu0 %v8056_v12  ;;  %v9607_v12 = vld [vmem:[#allocation14_spill] sm:$0xff] }
 0xde3   :  { %4176 = vmatpush1.bf16.msra.mxu1 %v9597_v48  ;;  %4217 = vmatpush1.bf16.msra.mxu0 %v9598_v45  ;;  %v9608_v48 = vld [vmem:[#allocation15_spill] sm:$0xff]  ;;  %v9609_v45 = vld [vmem:[#allocation16_spill] sm:$0xff] }
 0xde4   :  { %4177 = vmatprep.subr.bf16.mxu1 %v9599_v59  ;;  %4218 = vmatprep.subr.bf16.mxu0 %v9600_v53  ;;  %v9610_v59 = vld [vmem:[#allocation17_spill] sm:$0xff]  ;;  %v9611_v53 = vld [vmem:[#allocation18_spill] sm:$0xff] }
 0xde7   :  { %4178 = vmatpush1.bf16.msra.mxu1 %v9601_v29  ;;  %4219 = vmatpush1.bf16.msra.mxu0 %v9602_v49  ;;  %v9612_v29 = vld [vmem:[#allocation19_spill] sm:$0xff]  ;;  %v9613_v49 = vld [vmem:[#allocation20_spill] sm:$0xff] }
 0xde8   :  { %4179 = vmatprep.subr.bf16.mxu1 %v9603_v22  ;;  %4220 = vmatprep.subr.bf16.mxu0 %v9604_v16  ;;  %v9614_v22 = vld [vmem:[#allocation21_spill] sm:$0xff]  ;;  %v9615_v16 = vld [vmem:[#allocation22_spill] sm:$0xff] }
 0xdeb   :  { %4180 = vmatpush1.bf16.msra.mxu1 %v9605_v36  ;;  %4221 = vmatpush1.bf16.msra.mxu0 %v9606_v27  ;;  %v9616_v36 = vld [vmem:[#allocation23_spill] sm:$0xff]  ;;  %v9617_v27 = vld [vmem:[#allocation24_spill] sm:$0xff] }
 0xdec   :  { %4181 = vmatprep.subr.bf16.mxu1 %v9607_v12  ;;  %4222 = vmatprep.subr.bf16.mxu0 %v9608_v48  ;;  %v9618_v12 = vld [vmem:[#allocation25_spill] sm:$0xff]  ;;  %v9619_v48 = vld [vmem:[#allocation26_spill] sm:$0xff] }
 0xdef   :  { %4182 = vmatpush1.bf16.msra.mxu1 %v9609_v45  ;;  %4223 = vmatpush1.bf16.msra.mxu0 %v9610_v59  ;;  %v9620_v45 = vld [vmem:[#allocation27_spill] sm:$0xff]  ;;  %v9621_v59 = vld [vmem:[#allocation28_spill] sm:$0xff] }
 0xdf0   :  { %4183 = vmatprep.subr.bf16.mxu1 %v9611_v53  ;;  %4224 = vmatprep.subr.bf16.mxu0 %v9612_v29  ;;  %v9622_v53 = vld [vmem:[#allocation29_spill] sm:$0xff]  ;;  %v9623_v29 = vld [vmem:[#allocation30_spill] sm:$0xff] }
 0xdf3   :  { %4184 = vmatpush1.bf16.msra.mxu1 %v9613_v49  ;;  %4225 = vmatpush1.bf16.msra.mxu0 %v9614_v22  ;;  %v9624_v49 = vld [vmem:[#allocation31_spill] sm:$0xff]  ;;  %v9625_v22 = vld [vmem:[#allocation32_spill] sm:$0xff] }
 0xdf4   :  { %4185 = vmatprep.subr.bf16.mxu1 %v9615_v16  ;;  %4226 = vmatprep.subr.bf16.mxu0 %v9616_v36  ;;  %v9626_v16 = vld [vmem:[#allocation33_spill] sm:$0xff]  ;;  %v9627_v36 = vld [vmem:[#allocation34_spill] sm:$0xff] }
 0xdf7   :  { %4186 = vmatpush1.bf16.msra.mxu1 %v9617_v27  ;;  %4227 = vmatpush1.bf16.msra.mxu0 %v9618_v12  ;;  %v9628_v27 = vld [vmem:[#allocation35_spill] sm:$0xff]  ;;  %v9629_v12 = vld [vmem:[#allocation36_spill] sm:$0xff] }
 0xdf8   :  { %4187 = vmatprep.subr.bf16.mxu1 %v9619_v48  ;;  %4228 = vmatprep.subr.bf16.mxu0 %v9620_v45  ;;  %v9630_v48 = vld [vmem:[#allocation37_spill] sm:$0xff]  ;;  %v9631_v45 = vld [vmem:[#allocation38_spill] sm:$0xff] }
 0xdfb   :  { %4188 = vmatpush1.bf16.msra.mxu1 %v9621_v59  ;;  %4229 = vmatpush1.bf16.msra.mxu0 %v9622_v53  ;;  %v9632_v59 = vld [vmem:[#allocation39_spill] sm:$0xff]  ;;  %v9633_v53 = vld [vmem:[#allocation40_spill] sm:$0xff] }
 0xdfc   :  { %4189 = vmatprep.subr.bf16.mxu1 %v9623_v29  ;;  %4230 = vmatprep.subr.bf16.mxu0 %v9624_v49  ;;  %v9634_v29 = vld [vmem:[#allocation41_spill] sm:$0xff]  ;;  %v9635_v49 = vld [vmem:[#allocation42_spill] sm:$0xff] }
 0xdff   :  { %4190 = vmatpush1.bf16.msra.mxu1 %v9625_v22  ;;  %4231 = vmatpush1.bf16.msra.mxu0 %v9626_v16  ;;  %v9636_v22 = vld [vmem:[#allocation43_spill] sm:$0xff]  ;;  %v9637_v16 = vld [vmem:[#allocation44_spill] sm:$0xff] }
 0xe00   :  { %4191 = vmatprep.subr.bf16.mxu1 %v9627_v36  ;;  %4232 = vmatprep.subr.bf16.mxu0 %v9628_v27  ;;  %v9638_v36 = vld [vmem:[#allocation45_spill] sm:$0xff]  ;;  %v9639_v27 = vld [vmem:[#allocation46_spill] sm:$0xff] }
 0xe03   :  { %4192 = vmatpush2.bf16.msra.mxu1 %v9629_v12  ;;  %4233 = vmatpush2.bf16.msra.mxu0 %v9630_v48  ;;  %v9640_v12 = vld [vmem:[#allocation47_spill] sm:$0xff]  ;;  %v9641_v48 = vld [vmem:[#allocation48_spill] sm:$0xff] }
 0xe04   :  { %4193 = vmatprep.subr.bf16.mxu1 %v9631_v45  ;;  %4234 = vmatprep.subr.bf16.mxu0 %v9632_v59  ;;  %v9642_v45 = vld [vmem:[#allocation49_spill] sm:$0xff]  ;;  %v9643_v59 = vld [vmem:[#allocation50_spill] sm:$0xff] }
 0xe07   :  { %4194 = vmatpush2.bf16.msra.mxu1 %v9633_v53  ;;  %4235 = vmatpush2.bf16.msra.mxu0 %v9634_v29  ;;  %v9644_v53 = vld [vmem:[#allocation51_spill] sm:$0xff]  ;;  %v9645_v29 = vld [vmem:[#allocation52_spill] sm:$0xff] }
 0xe08   :  { %4195 = vmatprep.subr.bf16.mxu1 %v9635_v49  ;;  %4236 = vmatprep.subr.bf16.mxu0 %v9636_v22  ;;  %v9646_v49 = vld [vmem:[#allocation53_spill] sm:$0xff]  ;;  %v9647_v22 = vld [vmem:[#allocation54_spill] sm:$0xff] }
 0xe0b   :  { %4196 = vmatpush2.bf16.msra.mxu1 %v9637_v16  ;;  %4237 = vmatpush2.bf16.msra.mxu0 %v9638_v36  ;;  %v9648_v16 = vld [vmem:[#allocation55_spill] sm:$0xff]  ;;  %v9649_v36 = vld [vmem:[#allocation56_spill] sm:$0xff] }
 0xe0c   :  { %4197 = vmatprep.subr.bf16.mxu1 %v9639_v27  ;;  %4238 = vmatprep.subr.bf16.mxu0 %v9640_v12  ;;  %v9650_v27 = vld [vmem:[#allocation57_spill] sm:$0xff]  ;;  %v9651_v12 = vld [vmem:[#allocation58_spill] sm:$0xff] }
 0xe0f   :  { %4198 = vmatpush2.bf16.msra.mxu1 %v9641_v48  ;;  %4239 = vmatpush2.bf16.msra.mxu0 %v9642_v45  ;;  %v9652_v48 = vld [vmem:[#allocation59_spill] sm:$0xff]  ;;  %v9653_v45 = vld [vmem:[#allocation60_spill] sm:$0xff] }
 0xe10   :  { %4199 = vmatprep.subr.bf16.mxu1 %v9643_v59  ;;  %4240 = vmatprep.subr.bf16.mxu0 %v9644_v53  ;;  %v9654_v59 = vld [vmem:[#allocation61_spill] sm:$0xff]  ;;  %v9655_v53 = vld [vmem:[#allocation62_spill] sm:$0xff] }
 0xe13   :  { %4200 = vmatpush2.bf16.msra.mxu1 %v9645_v29  ;;  %4241 = vmatpush2.bf16.msra.mxu0 %v9646_v49  ;;  %v9656_v29 = vld [vmem:[#allocation63_spill] sm:$0xff]  ;;  %v9657_v49 = vld [vmem:[#allocation64_spill] sm:$0xff] }
 0xe14   :  { %4201 = vmatprep.subr.bf16.mxu1 %v9647_v22  ;;  %4242 = vmatprep.subr.bf16.mxu0 %v9648_v16  ;;  %v9658_v22 = vld [vmem:[#allocation65_spill] sm:$0xff]  ;;  %v9659_v16 = vld [vmem:[#allocation66_spill] sm:$0xff] }
 0xe17   :  { %4202 = vmatpush2.bf16.msra.mxu1 %v9649_v36  ;;  %4243 = vmatpush2.bf16.msra.mxu0 %v9650_v27  ;;  %v9660_v36 = vld [vmem:[#allocation67_spill] sm:$0xff]  ;;  %v9661_v27 = vld [vmem:[#allocation133_spill] sm:$0xff] }
 0xe18   :  { %4203 = vmatprep.subr.bf16.mxu1 %v9651_v12  ;;  %4244 = vmatprep.subr.bf16.mxu0 %v9652_v48  ;;  %v4058_v12 = vrot.slane %v9661_v27, 4  ;;  %v4060_v48 = vrot.slane %v9662_v57, 3 }
 0xe1b   :  { %4204 = vmatpush2.bf16.msra.mxu1 %v9653_v45  ;;  %4245 = vmatpush2.bf16.msra.mxu0 %v9654_v59  ;;  %v4057_v45 = vrot.slane %v9663_v47, 5  ;;  %v4062_v59 = vrot.slane %v9664_v23, 2 }
 0xe1c   :  { %4205 = vmatprep.subr.bf16.mxu1 %v9655_v53  ;;  %4246 = vmatprep.subr.bf16.mxu0 %v9656_v29  ;;  %v4065_v53 = vrot.slane %v9665_v33, 4  ;;  %v4067_v29 = vrot.slane %v9666_v13, 3 }
 0xe1f   :  { %4206 = vmatpush2.bf16.msra.mxu1 %v9657_v49  ;;  %4247 = vmatpush2.bf16.msra.mxu0 %v9658_v22  ;;  %v4059_v49 = vsel %vm2629_vm12, %v4058_v12, %v4057_v45 }
 0xe20   :  { %4257 = vmatprep.subr.bf16.mxu1 %v9659_v16  ;;  %4298 = vmatprep.subr.bf16.mxu0 %v9660_v36  ;;  %v4064_v16 = vrot.slane %v9667_v61, 5  ;;  %v4069_v36 = vrot.slane %v9668_v25, 2  ;;  %v4061_v57 = vsel %vm2632_vm13, %v4060_v48, %v4059_v49 }
 0xe21   :  { %v4063_v47 = vsel %vm2635_vm14, %v4062_v59, %v4061_v57  ;;  %v4072_v57 = vrot.slane %v6918_v8, 4 }
 0xe22   :  { %v4066_v23 = vsel %vm2629_vm12, %v4065_v53, %v4064_v16  ;;  %v4074_v16 = vrot.slane %v6934_v60, 3 }
 0xe23   :  { %v4068_v45 = vsel %vm2632_vm13, %v4067_v29, %v4066_v23 }
 0xe24   :  { %v4070_v12 = vsel %vm2635_vm14, %v4069_v36, %v4068_v45 }
 0xe62   :  { %v3927_v19 = vpop.f32.mrf.mxu1  ;;  %v3968_v22 = vpop.f32.mrf.mxu0 }
 0xe63   :  { %v3928_v27 = vadd.f32 %v3927_v19, %v9669_v14  ;;  %v3969_v23 = vadd.f32 %v3968_v22, %v9549_v4 }
 0xe64   :  { %v3929_v3 = vpop.f32.mrf.mxu1  ;;  %v3970_v33 = vpop.f32.mrf.mxu0 }
 0xe65   :  { %v4089_v28 = vadd.f32 %v4063_v47, %v3928_v27  ;;  %v3930_v13 = vadd.f32 %v3929_v3, %v7200_v52  ;;  %v4071_v47 = vrot.slane %v6902_v35, 5  ;;  %v4076_v3 = vrot.slane %v6950_v63, 2 }
 0xe66   :  { %v3931_v61 = vpop.f32.mrf.mxu1  ;;  %v3972_v32 = vpop.f32.mrf.mxu0 }
 0xe67   :  { %v5072_v25 = vmul.f32 -1.442695, %v4089_v28  ;;  %v4090_v20 = vadd.f32 %v4070_v12, %v3930_v13  ;;  %v4073_v61 = vsel %vm2629_vm12, %v4072_v57, %v4071_v47  ;;  %v9671_v47 = vld [vmem:[#allocation157_spill] sm:$0xff] }
 0xe68   :  { %v3932_v19 = vpop.f32.mrf.mxu1  ;;  %v3973_v14 = vpop.f32.mrf.mxu0  ;;  %v4075_v32 = vsel %vm2632_vm13, %v4074_v16, %v4073_v61 }
 0xe69   :  { %5502 = vpow2.f32 %v5072_v25  ;;  %v5073_v49 = vmul.f32 -1.442695, %v4090_v20  ;;  %v4077_v28 = vsel %vm2635_vm14, %v4076_v3, %v4075_v32  ;;  %v9670_v19 = vld [vmem:[#allocation169_spill] sm:$0xff] }
 0xe6a   :  { %v4091_v14 = vadd.f32 %v4077_v28, %v3969_v23  ;;  %v4079_v28 = vrot.slane %v9552_v54, 4 }
 0xe6b   :  { %5504 = vpow2.f32 %v5073_v49 }
 0xe6c   :  { %5506 = vtanh.f32 %v4091_v14 }
 0xe76   :  { %v5503_v25 = vpop.eup %5502 }
 0xe77   :  { %v4128_v20 = vadd.f32 1.0, %v5503_v25  ;;  %v9672_v25 = vld [vmem:[#allocation159_spill] sm:$0xff] }
 0xe78   :  { %v5505_v13 = vpop.eup %5504 }
 0xe79   :  { %5508 = vrcp.f32 %v4128_v20  ;;  %v4134_v29 = vadd.f32 1.0, %v5505_v13  ;;  %v5507_v36 = vpop.eup %5506  ;;  %v9673_v13 = vld [vmem:[#allocation132_spill] sm:$0xff] }
 0xe7b   :  { %5510 = vrcp.f32 %v4134_v29  ;;  %v4078_v29 = vrot.slane %v9673_v13, 5 }
 0xe86   :  { %v5509_v27 = vpop.eup %5508 }
 0xe87   :  { %v4145_v48 = vmul.f32 %v5509_v27, %v5507_v36  ;;  %v9674_v36 = vld [vmem:[#allocation138_spill] sm:$0xff] }
 0xe88   :  { %v5511_v59 = vpop.eup %5510  ;;  %v4081_v27 = vrot.slane %v9674_v36, 3 }
 0xe89   :  { %v4144_v22 = vmul.f32 %v5511_v59, %v8027_v26  ;;  %v4112_v26 = vrot.slane %v6976_v11, 1 }
 0xe8b   :  { %v8215_v53 = vadd.f32 %v4145_v48, %v4144_v22  ;;  %v4083_v22 = vrot.slane %v9439_v56, 2 }
 0xea2   :  { %v4009_v45 = vpop.f32.mrf.mxu1  ;;  %v4050_v12 = vpop.f32.mrf.mxu0 }
 0xea3   :  { %v4010_v49 = vadd.f32 %v4009_v45, %v9670_v19 }
 0xea4   :  { %v4011_v57 = vpop.f32.mrf.mxu1  ;;  %v4052_v16 = vpop.f32.mrf.mxu0 }
 0xea5   :  { %v4121_v3 = vadd.f32 %v9671_v47, %v4010_v49  ;;  %v4012_v23 = vadd.f32 %v4011_v57, %v7263_v6  ;;  %v9675_v49 = vld [vmem:[#allocation142_spill] sm:$0xff] }
 0xea6   :  { %v4013_v61 = vpop.f32.mrf.mxu1  ;;  %v4054_v32 = vpop.f32.mrf.mxu0  ;;  %v4111_v57 = vrot.slane %v9675_v49, 2  ;;  %v9676_v47 = vld [vmem:[#allocation170_spill] sm:$0xff]  ;;  %v4051_v49 = vadd.f32 %v4050_v12, %v7288_v24 }
 0xea7   :  { %v5075_v14 = vmul.f32 -1.442695, %v4121_v3  ;;  %v4122_v20 = vadd.f32 %v9672_v25, %v4012_v23  ;;  %v3971_v61 = vadd.f32 %v3970_v33, %v9676_v47  ;;  %v4080_v3 = vsel %vm2629_vm12, %v4079_v28, %v4078_v29 }
 0xea8   :  { %v4014_v48 = vpop.f32.mrf.mxu1  ;;  %v4055_v59 = vpop.f32.mrf.mxu0  ;;  %v4113_v23 = vsel %vm2629_vm12, %v4112_v26, %v4111_v57  ;;  %v4115_v32 = vrot.slane %v9558_v9, 7  ;;  %v4082_v25 = vsel %vm2632_vm13, %v4081_v27, %v4080_v3 }
 0xea9   :  { %5512 = vpow2.f32 %v5075_v14  ;;  %v5076_v45 = vmul.f32 -1.442695, %v4122_v20  ;;  %v4053_v48 = vadd.f32 %v4052_v16, %v9557_v41  ;;  %v4084_v59 = vsel %vm2635_vm14, %v4083_v22, %v4082_v25  ;;  %v9677_v14 = vld [vmem:[#allocation144_spill] sm:$0xff] }
 0xeaa   :  { %v4092_v11 = vadd.f32 %v4084_v59, %v3971_v61  ;;  %v4114_v20 = vsel %vm2632_vm13, %v9677_v14, %v4113_v23 }
 0xeab   :  { %5514 = vpow2.f32 %v5076_v45  ;;  %v4116_v33 = vsel %vm2635_vm14, %v4115_v32, %v4114_v20  ;;  %v9678_v45 = vld [vmem:[#allocation158_spill] sm:$0xff] }
 0xeac   :  { %v4124_v28 = vadd.f32 %v4116_v33, %v4053_v48  ;;  %v5074_v29 = vmul.f32 -1.442695, %v4092_v11  ;;  %v4123_v26 = vadd.f32 %v9678_v45, %v4051_v49 }
 0xeae   :  { %v5077_v57 = vmul.f32 -1.442695, %v4124_v28  ;;  %5516 = vpow2.f32 %v5074_v29 }
 0xeaf   :  { %5518 = vtanh.f32 %v4123_v26 }
 0xeb0   :  { %5520 = vpow2.f32 %v5077_v57 }
 0xeb6   :  { %v5513_v9 = vpop.eup %5512 }
 0xeb7   :  { %v4152_v27 = vadd.f32 1.0, %v5513_v9 }
 0xeb8   :  { %v5515_v16 = vpop.eup %5514 }
 0xeb9   :  { %5522 = vrcp.f32 %v4152_v27  ;;  %v4158_v22 = vadd.f32 1.0, %v5515_v16  ;;  %v9680_v27 = vld [vmem:[#allocation94_spill] sm:$0xff]  ;;  %v9681_v16 = vld [vmem:[#allocation95_spill] sm:$0xff] }
 0xebb   :  { %5524 = vrcp.f32 %v4158_v22  ;;  %v5517_v61 = vpop.eup %5516  ;;  %v9682_v22 = vld [vmem:[#allocation96_spill] sm:$0xff] }
 0xebc   :  { %v5519_v3 = vpop.eup %5518  ;;  %v4141_v25 = vadd.f32 1.0, %v5517_v61  ;;  %5526 = vtanh.f32 %v8215_v53  ;;  %v9683_v61 = vld [vmem:[#allocation97_spill] sm:$0xff] }
 0xebd   :  { %v5521_v23 = vpop.eup %5520 }
 0xebe   :  { %v4165_v11 = vadd.f32 1.0, %v5521_v23  ;;  %5528 = vrcp.f32 %v4141_v25  ;;  %v9685_v23 = vld [vmem:[#allocation99_spill] sm:$0xff]  ;;  %v9687_v25 = vld [vmem:[#allocation101_spill] sm:$0xff] }
 0xec0   :  { %5530 = vrcp.f32 %v4165_v11  ;;  %v9690_v11 = vld [vmem:[#allocation104_spill] sm:$0xff] }
 0xec6   :  { %v5523_v12 = vpop.eup %5522 }
 0xec7   :  { %v4169_v32 = vmul.f32 %v5523_v12, %v5519_v3  ;;  %v9684_v3 = vld [vmem:[#allocation98_spill] sm:$0xff]  ;;  %v9686_v12 = vld [vmem:[#allocation100_spill] sm:$0xff] }
 0xec8   :  { %v5525_v48 = vpop.eup %5524 }
 0xec9   :  { %v4168_v49 = vmul.f32 %v5525_v48, %v8053_v1  ;;  %v5527_v59 = vpop.eup %5526  ;;  %v9679_v1 = vld [vmem:[#allocation93_spill] sm:$0xff]  ;;  %v9689_v48 = vld [vmem:[#allocation103_spill] sm:$0xff] }
 0xecb   :  { %v8241_v9 = vadd.f32 %v4169_v32, %v4168_v49  ;;  %v5529_v20 = vpop.eup %5528  ;;  %v9688_v32 = vld [vmem:[#allocation102_spill] sm:$0xff]  ;;  %v9691_v49 = vld [vmem:[#allocation105_spill] sm:$0xff] }
 0xecc   :  { %v4148_v29 = vmul.f32 %v5529_v20, %v5527_v59  ;;  %v9692_v59 = vld [vmem:[#allocation106_spill] sm:$0xff]  ;;  %v9693_v20 = vld [vmem:[#allocation107_spill] sm:$0xff] }
 0xecd   :  { %5532 = vtanh.f32 %v8241_v9  ;;  %v5531_v33 = vpop.eup %5530 }
 0xece   :  { %v8244_v57 = vpack.c.bf16 %v4148_v29, %v4148_v29  ;;  %v9696_v29 = vld [vmem:[#allocation110_spill] sm:$0xff] }
 0xeda   :  { %v5533_v28 = vpop.eup %5532 }
 0xedb   :  { %v4172_v45 = vmul.f32 %v5533_v28, %v5531_v33  ;;  %v9694_v33 = vld [vmem:[#allocation108_spill] sm:$0xff]  ;;  %v9695_v28 = vld [vmem:[#allocation109_spill] sm:$0xff] }
 0xedd   :  { %v4174_v26 = vpack.c.bf16 %v4172_v45, %v4172_v45  ;;  %v9697_v45 = vld [vmem:[#allocation111_spill] sm:$0xff] }
 0xedf   :  { %4207 = vmatprep.mubr.bf16.mxu1 %v4174_v26  ;;  %4248 = vmatprep.mubr.bf16.mxu0 %v4174_v26 }
 0xee0   :  { %4208 = vmatmul.mubr.bf16.vlgmr.msra.gmra.mxu1 %v8244_v57  ;;  %4249 = vmatmul.mubr.bf16.vlgmr.msra.gmra.mxu0 %v8244_v57 }
 0xee1   :  { %4258 = vmatpush1.bf16.msra.mxu1 %v9073_v55  ;;  %4299 = vmatpush1.bf16.msra.mxu0 %v9074_v58 }
 0xee2   :  { %4289 = vmatprep.mubr.bf16.mxu1 %v4174_v26  ;;  %4330 = vmatprep.mubr.bf16.mxu0 %v4174_v26  ;;  %v9698_v26 = vld [vmem:[#allocation112_spill] sm:$0xff] }
 0xee3   :  { %4259 = vmatprep.subr.bf16.mxu1 %v9075_v21  ;;  %4300 = vmatprep.subr.bf16.mxu0 %v9076_v0 }
 0xee5   :  { %4260 = vmatpush1.bf16.msra.mxu1 %v9077_v17  ;;  %4301 = vmatpush1.bf16.msra.mxu0 %v9078_v30 }
 0xee6   :  { %4261 = vmatprep.subr.bf16.mxu1 %v9079_v38  ;;  %4302 = vmatprep.subr.bf16.mxu0 %v9080_v62 }
 0xee9   :  { %4262 = vmatpush1.bf16.msra.mxu1 %v9081_v51  ;;  %4303 = vmatpush1.bf16.msra.mxu0 %v9082_v40 }
 0xeea   :  { %4263 = vmatprep.subr.bf16.mxu1 %v9083_v37  ;;  %4304 = vmatprep.subr.bf16.mxu0 %v9084_v39 }
 0xeed   :  { %4264 = vmatpush1.bf16.msra.mxu1 %v9085_v44  ;;  %4305 = vmatpush1.bf16.msra.mxu0 %v9086_v10 }
 0xeee   :  { %4265 = vmatprep.subr.bf16.mxu1 %v9087_v50  ;;  %4306 = vmatprep.subr.bf16.mxu0 %v9088_v42 }
 0xef1   :  { %4266 = vmatpush1.bf16.msra.mxu1 %v9089_v2  ;;  %4307 = vmatpush1.bf16.msra.mxu0 %v9090_v46 }
 0xef2   :  { %4267 = vmatprep.subr.bf16.mxu1 %v9200_v7  ;;  %4308 = vmatprep.subr.bf16.mxu0 %v9201_v31 }
 0xef5   :  { %4268 = vmatpush1.bf16.msra.mxu1 %v9202_v18  ;;  %4309 = vmatpush1.bf16.msra.mxu0 %v9203_v15 }
 0xef6   :  { %4269 = vmatprep.subr.bf16.mxu1 %v9204_v34  ;;  %4310 = vmatprep.subr.bf16.mxu0 %v9321_v43 }
 0xef9   :  { %4270 = vmatpush1.bf16.msra.mxu1 %v9322_v5  ;;  %4311 = vmatpush1.bf16.msra.mxu0 %v9679_v1 }
 0xefa   :  { %4271 = vmatprep.subr.bf16.mxu1 %v9680_v27  ;;  %4312 = vmatprep.subr.bf16.mxu0 %v9681_v16  ;;  %v9789_v16 = vld [vmem:[#allocation140_spill] sm:$0xff]  ;;  %v9790_v27 = vld [vmem:[#allocation162_spill] sm:$0xff] }
 0xefd   :  { %4272 = vmatpush1.bf16.msra.mxu1 %v9682_v22  ;;  %4313 = vmatpush1.bf16.msra.mxu0 %v9683_v61  ;;  %v9788_v22 = vld [vmem:[#allocation131_spill] sm:$0xff] }
 0xefe   :  { %4273 = vmatprep.subr.bf16.mxu1 %v9684_v3  ;;  %4314 = vmatprep.subr.bf16.mxu0 %v9685_v23  ;;  %v9786_v23 = vld [vmem:[#allocation134_spill] sm:$0xff]  ;;  %v9787_v3 = vld [vmem:[#allocation137_spill] sm:$0xff] }
 0xf01   :  { %4274 = vmatpush2.bf16.msra.mxu1 %v9686_v12  ;;  %4315 = vmatpush2.bf16.msra.mxu0 %v9687_v25  ;;  %v9784_v25 = vld [vmem:[#allocation130_spill] sm:$0xff]  ;;  %v9785_v12 = vld [vmem:[#allocation139_spill] sm:$0xff] }
 0xf02   :  { %4275 = vmatprep.subr.bf16.mxu1 %v9688_v32  ;;  %4316 = vmatprep.subr.bf16.mxu0 %v9689_v48  ;;  %v9699_v32 = vld [vmem:[#allocation113_spill] sm:$0xff]  ;;  %v9700_v48 = vld [vmem:[#allocation114_spill] sm:$0xff] }
 0xf05   :  { %4276 = vmatpush2.bf16.msra.mxu1 %v9690_v11  ;;  %4317 = vmatpush2.bf16.msra.mxu0 %v9691_v49  ;;  %v9701_v11 = vld [vmem:[#allocation115_spill] sm:$0xff]  ;;  %v9702_v49 = vld [vmem:[#allocation116_spill] sm:$0xff] }
 0xf06   :  { %4277 = vmatprep.subr.bf16.mxu1 %v9692_v59  ;;  %4318 = vmatprep.subr.bf16.mxu0 %v9693_v20  ;;  %v9703_v59 = vld [vmem:[#allocation117_spill] sm:$0xff]  ;;  %v9704_v20 = vld [vmem:[#allocation118_spill] sm:$0xff] }
 0xf09   :  { %4278 = vmatpush2.bf16.msra.mxu1 %v9694_v33  ;;  %4319 = vmatpush2.bf16.msra.mxu0 %v9695_v28  ;;  %v9705_v33 = vld [vmem:[#allocation119_spill] sm:$0xff]  ;;  %v9706_v28 = vld [vmem:[#allocation120_spill] sm:$0xff] }
 0xf0a   :  { %4279 = vmatprep.subr.bf16.mxu1 %v9696_v29  ;;  %4320 = vmatprep.subr.bf16.mxu0 %v9697_v45  ;;  %v9707_v29 = vld [vmem:[#allocation121_spill] sm:$0xff]  ;;  %v9708_v45 = vld [vmem:[#allocation122_spill] sm:$0xff] }
 0xf0d   :  { %4280 = vmatpush2.bf16.msra.mxu1 %v9698_v26  ;;  %4321 = vmatpush2.bf16.msra.mxu0 %v9699_v32  ;;  %v9709_v26 = vld [vmem:[#allocation123_spill] sm:$0xff]  ;;  %v9710_v32 = vld [vmem:[#allocation124_spill] sm:$0xff] }
 0xf0e   :  { %4281 = vmatprep.subr.bf16.mxu1 %v9700_v48  ;;  %4322 = vmatprep.subr.bf16.mxu0 %v9701_v11  ;;  %v9711_v48 = vld [vmem:[#allocation125_spill] sm:$0xff]  ;;  %v9712_v11 = vld [vmem:[#allocation126_spill] sm:$0xff] }
 0xf11   :  { %4282 = vmatpush2.bf16.msra.mxu1 %v9702_v49  ;;  %4323 = vmatpush2.bf16.msra.mxu0 %v9703_v59  ;;  %v9713_v49 = vld [vmem:[#allocation127_spill] sm:$0xff]  ;;  %v9714_v59 = vld [vmem:[#allocation128_spill] sm:$0xff] }
 0xf12   :  { %4283 = vmatprep.subr.bf16.mxu1 %v9704_v20  ;;  %4324 = vmatprep.subr.bf16.mxu0 %v9705_v33  ;;  %v9715_v20 = vld [vmem:[#allocation129_spill] sm:$0xff]  ;;  %v9716_v33 = vld [vmem:[#allocation2_spill] sm:$0xff] }
 0xf15   :  { %4284 = vmatpush2.bf16.msra.mxu1 %v9706_v28  ;;  %4325 = vmatpush2.bf16.msra.mxu0 %v9707_v29  ;;  %v9717_v28 = vld [vmem:[#allocation3_spill] sm:$0xff]  ;;  %v9783_v29 = vld [vmem:[#allocation136_spill] sm:$0xff] }
 0xf16   :  { %4285 = vmatprep.subr.bf16.mxu1 %v9708_v45  ;;  %4326 = vmatprep.subr.bf16.mxu0 %v9709_v26  ;;  %v9718_v26 = vld [vmem:[#allocation4_spill] sm:$0xff]  ;;  %v9727_v45 = vld [vmem:[#allocation13_spill] sm:$0xff] }
 0xf19   :  { %4286 = vmatpush2.bf16.msra.mxu1 %v9710_v32  ;;  %4327 = vmatpush2.bf16.msra.mxu0 %v9711_v48  ;;  %v9719_v32 = vld [vmem:[#allocation5_spill] sm:$0xff]  ;;  %v9720_v48 = vld [vmem:[#allocation6_spill] sm:$0xff] }
 0xf1a   :  { %4287 = vmatprep.subr.bf16.mxu1 %v9712_v11  ;;  %4328 = vmatprep.subr.bf16.mxu0 %v9713_v49  ;;  %v9721_v11 = vld [vmem:[#allocation7_spill] sm:$0xff]  ;;  %v9722_v49 = vld [vmem:[#allocation8_spill] sm:$0xff] }
 0xf1d   :  { %4288 = vmatpush2.bf16.msra.mxu1 %v9714_v59  ;;  %4329 = vmatpush2.bf16.msra.mxu0 %v9715_v20  ;;  %v9723_v59 = vld [vmem:[#allocation9_spill] sm:$0xff]  ;;  %v9724_v20 = vld [vmem:[#allocation10_spill] sm:$0xff] }
 0xf1e   :  { %4457 = vmatprep.subr.bf16.mxu1 %v9716_v33  ;;  %4498 = vmatprep.subr.bf16.mxu0 %v9717_v28  ;;  %v9725_v33 = vld [vmem:[#allocation11_spill] sm:$0xff]  ;;  %v9726_v28 = vld [vmem:[#allocation12_spill] sm:$0xff] }
 0xf20   :  { %4290 = vmatmul.mubr.bf16.vlgmr.msra.gmra.mxu1 %v8244_v57  ;;  %4331 = vmatmul.mubr.bf16.vlgmr.msra.gmra.mxu0 %v8244_v57  ;;  %v9728_v57 = vld [vmem:[#allocation14_spill] sm:$0xff] }
 0xf21   :  { %4458 = vmatpush1.bf16.msra.mxu1 %v9718_v26  ;;  %4499 = vmatpush1.bf16.msra.mxu0 %v9719_v32  ;;  %v9729_v26 = vld [vmem:[#allocation15_spill] sm:$0xff]  ;;  %v9730_v32 = vld [vmem:[#allocation16_spill] sm:$0xff] }
 0xf22   :  { %4459 = vmatprep.subr.bf16.mxu1 %v9720_v48  ;;  %4500 = vmatprep.subr.bf16.mxu0 %v9721_v11  ;;  %v9731_v48 = vld [vmem:[#allocation17_spill] sm:$0xff]  ;;  %v9732_v11 = vld [vmem:[#allocation18_spill] sm:$0xff] }
 0xf25   :  { %4460 = vmatpush1.bf16.msra.mxu1 %v9722_v49  ;;  %4501 = vmatpush1.bf16.msra.mxu0 %v9723_v59  ;;  %v9733_v49 = vld [vmem:[#allocation19_spill] sm:$0xff]  ;;  %v9734_v59 = vld [vmem:[#allocation20_spill] sm:$0xff] }
 0xf26   :  { %4461 = vmatprep.subr.bf16.mxu1 %v9724_v20  ;;  %4502 = vmatprep.subr.bf16.mxu0 %v9725_v33  ;;  %v9735_v20 = vld [vmem:[#allocation21_spill] sm:$0xff]  ;;  %v9736_v33 = vld [vmem:[#allocation22_spill] sm:$0xff] }
 0xf29   :  { %4462 = vmatpush1.bf16.msra.mxu1 %v9726_v28  ;;  %4503 = vmatpush1.bf16.msra.mxu0 %v9727_v45  ;;  %v9737_v28 = vld [vmem:[#allocation23_spill] sm:$0xff]  ;;  %v9738_v45 = vld [vmem:[#allocation24_spill] sm:$0xff] }
 0xf2a   :  { %4463 = vmatprep.subr.bf16.mxu1 %v9728_v57  ;;  %4504 = vmatprep.subr.bf16.mxu0 %v9729_v26  ;;  %v9739_v57 = vld [vmem:[#allocation25_spill] sm:$0xff]  ;;  %v9740_v26 = vld [vmem:[#allocation26_spill] sm:$0xff] }
 0xf2d   :  { %4464 = vmatpush1.bf16.msra.mxu1 %v9730_v32  ;;  %4505 = vmatpush1.bf16.msra.mxu0 %v9731_v48  ;;  %v9741_v32 = vld [vmem:[#allocation27_spill] sm:$0xff]  ;;  %v9742_v48 = vld [vmem:[#allocation28_spill] sm:$0xff] }
 0xf2e   :  { %4465 = vmatprep.subr.bf16.mxu1 %v9732_v11  ;;  %4506 = vmatprep.subr.bf16.mxu0 %v9733_v49  ;;  %v9743_v11 = vld [vmem:[#allocation29_spill] sm:$0xff]  ;;  %v9744_v49 = vld [vmem:[#allocation30_spill] sm:$0xff] }
 0xf31   :  { %4466 = vmatpush1.bf16.msra.mxu1 %v9734_v59  ;;  %4507 = vmatpush1.bf16.msra.mxu0 %v9735_v20  ;;  %v9745_v59 = vld [vmem:[#allocation31_spill] sm:$0xff]  ;;  %v9746_v20 = vld [vmem:[#allocation32_spill] sm:$0xff] }
 0xf32   :  { %4467 = vmatprep.subr.bf16.mxu1 %v9736_v33  ;;  %4508 = vmatprep.subr.bf16.mxu0 %v9737_v28  ;;  %v9747_v33 = vld [vmem:[#allocation33_spill] sm:$0xff]  ;;  %v9748_v28 = vld [vmem:[#allocation34_spill] sm:$0xff] }
 0xf35   :  { %4468 = vmatpush1.bf16.msra.mxu1 %v9738_v45  ;;  %4509 = vmatpush1.bf16.msra.mxu0 %v9739_v57  ;;  %v9749_v45 = vld [vmem:[#allocation35_spill] sm:$0xff]  ;;  %v9750_v57 = vld [vmem:[#allocation36_spill] sm:$0xff] }
 0xf36   :  { %4469 = vmatprep.subr.bf16.mxu1 %v9740_v26  ;;  %4510 = vmatprep.subr.bf16.mxu0 %v9741_v32  ;;  %v9751_v26 = vld [vmem:[#allocation37_spill] sm:$0xff]  ;;  %v9752_v32 = vld [vmem:[#allocation38_spill] sm:$0xff] }
 0xf39   :  { %4470 = vmatpush1.bf16.msra.mxu1 %v9742_v48  ;;  %4511 = vmatpush1.bf16.msra.mxu0 %v9743_v11  ;;  %v9753_v48 = vld [vmem:[#allocation39_spill] sm:$0xff]  ;;  %v9754_v11 = vld [vmem:[#allocation40_spill] sm:$0xff] }
 0xf3a   :  { %4471 = vmatprep.subr.bf16.mxu1 %v9744_v49  ;;  %4512 = vmatprep.subr.bf16.mxu0 %v9745_v59  ;;  %v9755_v49 = vld [vmem:[#allocation41_spill] sm:$0xff]  ;;  %v9756_v59 = vld [vmem:[#allocation42_spill] sm:$0xff] }
 0xf3d   :  { %4472 = vmatpush1.bf16.msra.mxu1 %v9746_v20  ;;  %4513 = vmatpush1.bf16.msra.mxu0 %v9747_v33  ;;  %v9757_v20 = vld [vmem:[#allocation43_spill] sm:$0xff]  ;;  %v9758_v33 = vld [vmem:[#allocation44_spill] sm:$0xff] }
 0xf3e   :  { %4473 = vmatprep.subr.bf16.mxu1 %v9748_v28  ;;  %4514 = vmatprep.subr.bf16.mxu0 %v9749_v45  ;;  %v9759_v28 = vld [vmem:[#allocation45_spill] sm:$0xff]  ;;  %v9760_v45 = vld [vmem:[#allocation46_spill] sm:$0xff] }
 0xf41   :  { %4474 = vmatpush2.bf16.msra.mxu1 %v9750_v57  ;;  %4515 = vmatpush2.bf16.msra.mxu0 %v9751_v26  ;;  %v9761_v57 = vld [vmem:[#allocation47_spill] sm:$0xff]  ;;  %v9762_v26 = vld [vmem:[#allocation48_spill] sm:$0xff] }
 0xf42   :  { %4475 = vmatprep.subr.bf16.mxu1 %v9752_v32  ;;  %4516 = vmatprep.subr.bf16.mxu0 %v9753_v48  ;;  %v9763_v32 = vld [vmem:[#allocation49_spill] sm:$0xff]  ;;  %v9764_v48 = vld [vmem:[#allocation50_spill] sm:$0xff] }
 0xf45   :  { %4476 = vmatpush2.bf16.msra.mxu1 %v9754_v11  ;;  %4517 = vmatpush2.bf16.msra.mxu0 %v9755_v49  ;;  %v9765_v11 = vld [vmem:[#allocation51_spill] sm:$0xff]  ;;  %v9766_v49 = vld [vmem:[#allocation52_spill] sm:$0xff] }
 0xf46   :  { %4477 = vmatprep.subr.bf16.mxu1 %v9756_v59  ;;  %4518 = vmatprep.subr.bf16.mxu0 %v9757_v20  ;;  %v9767_v59 = vld [vmem:[#allocation53_spill] sm:$0xff]  ;;  %v9768_v20 = vld [vmem:[#allocation54_spill] sm:$0xff] }
 0xf49   :  { %4478 = vmatpush2.bf16.msra.mxu1 %v9758_v33  ;;  %4519 = vmatpush2.bf16.msra.mxu0 %v9759_v28  ;;  %v9769_v33 = vld [vmem:[#allocation55_spill] sm:$0xff]  ;;  %v9770_v28 = vld [vmem:[#allocation56_spill] sm:$0xff] }
 0xf4a   :  { %4479 = vmatprep.subr.bf16.mxu1 %v9760_v45  ;;  %4520 = vmatprep.subr.bf16.mxu0 %v9761_v57  ;;  %v9771_v45 = vld [vmem:[#allocation57_spill] sm:$0xff]  ;;  %v9772_v57 = vld [vmem:[#allocation58_spill] sm:$0xff] }
 0xf4d   :  { %4480 = vmatpush2.bf16.msra.mxu1 %v9762_v26  ;;  %4521 = vmatpush2.bf16.msra.mxu0 %v9763_v32  ;;  %v9773_v26 = vld [vmem:[#allocation59_spill] sm:$0xff]  ;;  %v9774_v32 = vld [vmem:[#allocation60_spill] sm:$0xff] }
 0xf4e   :  { %4481 = vmatprep.subr.bf16.mxu1 %v9764_v48  ;;  %4522 = vmatprep.subr.bf16.mxu0 %v9765_v11  ;;  %v9775_v48 = vld [vmem:[#allocation61_spill] sm:$0xff]  ;;  %v9776_v11 = vld [vmem:[#allocation62_spill] sm:$0xff] }
 0xf51   :  { %4482 = vmatpush2.bf16.msra.mxu1 %v9766_v49  ;;  %4523 = vmatpush2.bf16.msra.mxu0 %v9767_v59  ;;  %v9777_v49 = vld [vmem:[#allocation63_spill] sm:$0xff]  ;;  %v9778_v59 = vld [vmem:[#allocation64_spill] sm:$0xff] }
 0xf52   :  { %4483 = vmatprep.subr.bf16.mxu1 %v9768_v20  ;;  %4524 = vmatprep.subr.bf16.mxu0 %v9769_v33  ;;  %v9779_v20 = vld [vmem:[#allocation65_spill] sm:$0xff]  ;;  %v9780_v33 = vld [vmem:[#allocation66_spill] sm:$0xff] }
 0xf55   :  { %4484 = vmatpush2.bf16.msra.mxu1 %v9770_v28  ;;  %4525 = vmatpush2.bf16.msra.mxu0 %v9771_v45  ;;  %v9781_v28 = vld [vmem:[#allocation67_spill] sm:$0xff]  ;;  %v9782_v45 = vld [vmem:[#allocation133_spill] sm:$0xff] }
 0xf56   :  { %4485 = vmatprep.subr.bf16.mxu1 %v9772_v57  ;;  %4526 = vmatprep.subr.bf16.mxu0 %v9773_v26  ;;  %v4340_v57 = vrot.slane %v9782_v45, 5  ;;  %v4342_v26 = vrot.slane %v9783_v29, 4 }
 0xf59   :  { %4486 = vmatpush2.bf16.msra.mxu1 %v9774_v32  ;;  %4527 = vmatpush2.bf16.msra.mxu0 %v9775_v48  ;;  %v4339_v32 = vrot.slane %v9784_v25, 6  ;;  %v4344_v48 = vrot.slane %v9785_v12, 3 }
 0xf5a   :  { %4487 = vmatprep.subr.bf16.mxu1 %v9776_v11  ;;  %4528 = vmatprep.subr.bf16.mxu0 %v9777_v49  ;;  %v4347_v11 = vrot.slane %v9786_v23, 5  ;;  %v4349_v49 = vrot.slane %v9787_v3, 4 }
 0xf5d   :  { %4488 = vmatpush2.bf16.msra.mxu1 %v9778_v59  ;;  %4529 = vmatpush2.bf16.msra.mxu0 %v9779_v20  ;;  %v4341_v59 = vsel %vm2629_vm12, %v4340_v57, %v4339_v32 }
 0xf5e   :  { %4539 = vmatprep.subr.bf16.mxu1 %v9780_v33  ;;  %4580 = vmatprep.subr.bf16.mxu0 %v9781_v28  ;;  %v4346_v33 = vrot.slane %v9788_v22, 6  ;;  %v4351_v28 = vrot.slane %v9789_v16, 3  ;;  %v4343_v29 = vsel %vm2632_vm13, %v4342_v26, %v4341_v59 }
 0xf5f   :  { %v4345_v25 = vsel %vm2635_vm14, %v4344_v48, %v4343_v29  ;;  %v4354_v29 = vrot.slane %v6918_v8, 5  ;;  %v4356_v48 = vrot.slane %v6934_v60, 4 }
 0xf60   :  { %v4348_v12 = vsel %vm2629_vm12, %v4347_v11, %v4346_v33 }
 0xf61   :  { %v4350_v57 = vsel %vm2632_vm13, %v4349_v49, %v4348_v12 }
 0xf62   :  { %v4352_v32 = vsel %vm2635_vm14, %v4351_v28, %v4350_v57 }
 0xfa0   :  { %v4209_v61 = vpop.f32.mrf.mxu1  ;;  %v4250_v20 = vpop.f32.mrf.mxu0 }
 0xfa1   :  { %v4210_v45 = vadd.f32 %v4209_v61, %v9790_v27  ;;  %v4251_v12 = vadd.f32 %v4250_v20, %v9549_v4 }
 0xfa2   :  { %v4211_v1 = vpop.f32.mrf.mxu1  ;;  %v4252_v23 = vpop.f32.mrf.mxu0 }
 0xfa3   :  { %v4371_v5 = vadd.f32 %v4345_v25, %v4210_v45  ;;  %v4212_v3 = vadd.f32 %v4211_v1, %v7200_v52  ;;  %v4353_v25 = vrot.slane %v6902_v35, 6  ;;  %v4358_v1 = vrot.slane %v6950_v63, 3 }
 0xfa4   :  { %v4213_v22 = vpop.f32.mrf.mxu1  ;;  %v4254_v43 = vpop.f32.mrf.mxu0 }
 0xfa5   :  { %v5078_v16 = vmul.f32 -1.442695, %v4371_v5  ;;  %v4372_v34 = vadd.f32 %v4352_v32, %v4212_v3  ;;  %v4355_v22 = vsel %vm2629_vm12, %v4354_v29, %v4353_v25 }
 0xfa6   :  { %v4214_v61 = vpop.f32.mrf.mxu1  ;;  %v4255_v27 = vpop.f32.mrf.mxu0  ;;  %v4357_v43 = vsel %vm2632_vm13, %v4356_v48, %v4355_v22  ;;  %v9791_v48 = vld [vmem:[#allocation160_spill] sm:$0xff] }
 0xfa7   :  { %5534 = vpow2.f32 %v5078_v16  ;;  %v5079_v26 = vmul.f32 -1.442695, %v4372_v34  ;;  %v4359_v5 = vsel %vm2635_vm14, %v4358_v1, %v4357_v43  ;;  %v4361_v43 = vrot.slane %v9552_v54, 5 }
 0xfa8   :  { %v4373_v27 = vadd.f32 %v4359_v5, %v4251_v12 }
 0xfa9   :  { %5536 = vpow2.f32 %v5079_v26 }
 0xfaa   :  { %5538 = vtanh.f32 %v4373_v27  ;;  %v9792_v27 = vld [vmem:[#allocation163_spill] sm:$0xff] }
 0xfb4   :  { %v5535_v16 = vpop.eup %5534 }
 0xfb5   :  { %v4410_v34 = vadd.f32 1.0, %v5535_v16 }
 0xfb6   :  { %v5537_v3 = vpop.eup %5536 }
 0xfb7   :  { %5540 = vrcp.f32 %v4410_v34  ;;  %v4416_v45 = vadd.f32 1.0, %v5537_v3  ;;  %v5539_v11 = vpop.eup %5538 }
 0xfb9   :  { %5542 = vrcp.f32 %v4416_v45  ;;  %v4360_v45 = vrot.slane %v9673_v13, 6 }
 0xfc4   :  { %v5541_v49 = vpop.eup %5540 }
 0xfc5   :  { %v4427_v59 = vmul.f32 %v5541_v49, %v5539_v11  ;;  %v4365_v11 = vrot.slane %v9439_v56, 3 }
 0xfc6   :  { %v5543_v33 = vpop.eup %5542 }
 0xfc7   :  { %v4426_v20 = vmul.f32 %v5543_v33, %v8215_v53  ;;  %v4363_v53 = vrot.slane %v9674_v36, 4  ;;  %v4395_v33 = vrot.slane %v9677_v14, 7 }
 0xfc9   :  { %v8403_v28 = vadd.f32 %v4427_v59, %v4426_v20  ;;  %v4253_v59 = vadd.f32 %v4252_v23, %v9676_v47  ;;  %v4362_v20 = vsel %vm2629_vm12, %v4361_v43, %v4360_v45  ;;  %v9796_v45 = vld [vmem:[#allocation161_spill] sm:$0xff] }
 0xfe0   :  { %v4291_v57 = vpop.f32.mrf.mxu1  ;;  %v4332_v32 = vpop.f32.mrf.mxu0 }
 0xfe1   :  { %v4292_v61 = vadd.f32 %v4291_v57, %v9670_v19  ;;  %v9793_v57 = vld [vmem:[#allocation142_spill] sm:$0xff] }
 0xfe2   :  { %v4293_v26 = vpop.f32.mrf.mxu1  ;;  %v4334_v29 = vpop.f32.mrf.mxu0 }
 0xfe3   :  { %v4403_v25 = vadd.f32 %v9791_v48, %v4292_v61  ;;  %v4294_v1 = vadd.f32 %v4293_v26, %v7263_v6  ;;  %v4393_v61 = vrot.slane %v9793_v57, 1  ;;  %v9794_v26 = vld [vmem:[#allocation164_spill] sm:$0xff] }
 0xfe4   :  { %v4295_v12 = vpop.f32.mrf.mxu1  ;;  %v4336_v22 = vpop.f32.mrf.mxu0  ;;  %v4397_v48 = vrot.slane %v9794_v26, 6 }
 0xfe5   :  { %v5081_v5 = vmul.f32 -1.442695, %v4403_v25  ;;  %v4404_v16 = vadd.f32 %v9792_v27, %v4294_v1  ;;  %v4364_v25 = vsel %vm2632_vm13, %v4363_v53, %v4362_v20  ;;  %v4335_v1 = vadd.f32 %v4334_v29, %v9557_v41  ;;  %v9795_v22 = vld [vmem:[#allocation143_spill] sm:$0xff] }
 0xfe6   :  { %v4296_v34 = vpop.f32.mrf.mxu1  ;;  %v4337_v3 = vpop.f32.mrf.mxu0  ;;  %v4366_v12 = vsel %vm2635_vm14, %v4365_v11, %v4364_v25 }
 0xfe7   :  { %5544 = vpow2.f32 %v5081_v5  ;;  %v5082_v49 = vmul.f32 -1.442695, %v4404_v16  ;;  %v4394_v5 = vsel %vm2629_vm12, %v9795_v22, %v4393_v61  ;;  %v4374_v27 = vadd.f32 %v4366_v12, %v4253_v59 }
 0xfe8   :  { %v4396_v23 = vsel %vm2632_vm13, %v4395_v33, %v4394_v5  ;;  %v4333_v16 = vadd.f32 %v4332_v32, %v7288_v24 }
 0xfe9   :  { %5546 = vpow2.f32 %v5082_v49  ;;  %v4398_v43 = vsel %vm2635_vm14, %v4397_v48, %v4396_v23  ;;  %v5080_v3 = vmul.f32 -1.442695, %v4374_v27 }
 0xfea   :  { %v4406_v34 = vadd.f32 %v4398_v43, %v4335_v1  ;;  %v4405_v49 = vadd.f32 %v9796_v45, %v4333_v16 }
 0xfeb   :  { %5548 = vpow2.f32 %v5080_v3 }
 0xfec   :  { %v5083_v57 = vmul.f32 -1.442695, %v4406_v34  ;;  %5550 = vtanh.f32 %v4405_v49 }
 0xfee   :  { %5552 = vpow2.f32 %v5083_v57 }
 0xff4   :  { %v5545_v53 = vpop.eup %5544 }
 0xff5   :  { %v4434_v29 = vadd.f32 1.0, %v5545_v53  ;;  %v9820_v53 = vld [vmem:[#allocation113_spill] sm:$0xff] }
 0xff6   :  { %v5547_v11 = vpop.eup %5546 }
 0xff7   :  { %5554 = vrcp.f32 %v4434_v29  ;;  %v4440_v20 = vadd.f32 1.0, %v5547_v11  ;;  %v9821_v29 = vld [vmem:[#allocation114_spill] sm:$0xff]  ;;  %v9822_v11 = vld [vmem:[#allocation115_spill] sm:$0xff] }
 0xff8   :  { %v5549_v59 = vpop.eup %5548 }
 0xff9   :  { %5556 = vrcp.f32 %v4440_v20  ;;  %v5551_v33 = vpop.eup %5550  ;;  %v4423_v25 = vadd.f32 1.0, %v5549_v59  ;;  %v9823_v20 = vld [vmem:[#allocation116_spill] sm:$0xff]  ;;  %v9824_v59 = vld [vmem:[#allocation117_spill] sm:$0xff] }
 0xffa   :  { %5558 = vtanh.f32 %v8403_v28 }
 0xffb   :  { %v5553_v61 = vpop.eup %5552  ;;  %5560 = vrcp.f32 %v4423_v25  ;;  %v9828_v25 = vld [vmem:[#allocation121_spill] sm:$0xff] }
 0xffc   :  { %v4447_v12 = vadd.f32 1.0, %v5553_v61  ;;  %v9826_v61 = vld [vmem:[#allocation119_spill] sm:$0xff] }
 0xffe   :  { %5562 = vrcp.f32 %v4447_v12  ;;  %v9831_v12 = vld [vmem:[#allocation124_spill] sm:$0xff] }
0x1004   :  { %v5555_v32 = vpop.eup %5554 }
0x1005   :  { %v4451_v48 = vmul.f32 %v5555_v32, %v5551_v33  ;;  %v9825_v33 = vld [vmem:[#allocation118_spill] sm:$0xff]  ;;  %v9827_v32 = vld [vmem:[#allocation120_spill] sm:$0xff] }
0x1006   :  { %v5557_v1 = vpop.eup %5556 }
0x1007   :  { %v4450_v5 = vmul.f32 %v5557_v1, %v8241_v9  ;;  %v5559_v57 = vpop.eup %5558  ;;  %v9819_v9 = vld [vmem:[#allocation112_spill] sm:$0xff]  ;;  %v9830_v1 = vld [vmem:[#allocation123_spill] sm:$0xff] }
0x1008   :  { %v5561_v23 = vpop.eup %5560 }
0x1009   :  { %v8429_v27 = vadd.f32 %v4451_v48, %v4450_v5  ;;  %v4430_v34 = vmul.f32 %v5561_v23, %v5559_v57  ;;  %v9829_v48 = vld [vmem:[#allocation122_spill] sm:$0xff]  ;;  %v9832_v5 = vld [vmem:[#allocation125_spill] sm:$0xff]  ;;  %v9834_v23 = vld [vmem:[#allocation127_spill] sm:$0xff] }
0x100a   :  { %v9833_v57 = vld [vmem:[#allocation126_spill] sm:$0xff] }
0x100b   :  { %5564 = vtanh.f32 %v8429_v27  ;;  %v5563_v16 = vpop.eup %5562  ;;  %v8432_v49 = vpack.c.bf16 %v4430_v34, %v4430_v34  ;;  %v9837_v34 = vld [vmem:[#allocation133_spill] sm:$0xff] }
0x1018   :  { %v5565_v43 = vpop.eup %5564 }
0x1019   :  { %v4454_v3 = vmul.f32 %v5565_v43, %v5563_v16  ;;  %v9835_v16 = vld [vmem:[#allocation128_spill] sm:$0xff]  ;;  %v9836_v43 = vld [vmem:[#allocation129_spill] sm:$0xff] }
0x101b   :  { %v4456_v45 = vpack.c.bf16 %v4454_v3, %v4454_v3  ;;  %v4622_v3 = vrot.slane %v9837_v34, 6  ;;  %v4635_v34 = vrot.slane %v6902_v35, 7 }
0x101d   :  { %4489 = vmatprep.mubr.bf16.mxu1 %v4456_v45  ;;  %4530 = vmatprep.mubr.bf16.mxu0 %v4456_v45 }
0x101e   :  { %4490 = vmatmul.mubr.bf16.vlgmr.msra.gmra.mxu1 %v8432_v49  ;;  %4531 = vmatmul.mubr.bf16.vlgmr.msra.gmra.mxu0 %v8432_v49 }
0x101f   :  { %4540 = vmatpush1.bf16.msra.mxu1 %v9073_v55  ;;  %4581 = vmatpush1.bf16.msra.mxu0 %v9074_v58  ;;  %v9797_v55 = vld [vmem:[#allocation90_spill] sm:$0xff]  ;;  %v9798_v58 = vld [vmem:[#allocation91_spill] sm:$0xff] }
0x1020   :  { %4571 = vmatprep.mubr.bf16.mxu1 %v4456_v45  ;;  %4612 = vmatprep.mubr.bf16.mxu0 %v4456_v45  ;;  %v9838_v45 = vld [vmem:[#allocation136_spill] sm:$0xff] }
0x1021   :  { %4541 = vmatprep.subr.bf16.mxu1 %v9075_v21  ;;  %4582 = vmatprep.subr.bf16.mxu0 %v9076_v0  ;;  %v9799_v21 = vld [vmem:[#allocation92_spill] sm:$0xff]  ;;  %v9800_v0 = vld [vmem:[#allocation93_spill] sm:$0xff] }
0x1023   :  { %4542 = vmatpush1.bf16.msra.mxu1 %v9077_v17  ;;  %4583 = vmatpush1.bf16.msra.mxu0 %v9078_v30  ;;  %v9801_v17 = vld [vmem:[#allocation94_spill] sm:$0xff]  ;;  %v9802_v30 = vld [vmem:[#allocation95_spill] sm:$0xff] }
0x1024   :  { %4543 = vmatprep.subr.bf16.mxu1 %v9079_v38  ;;  %4584 = vmatprep.subr.bf16.mxu0 %v9080_v62  ;;  %v9803_v38 = vld [vmem:[#allocation96_spill] sm:$0xff]  ;;  %v9804_v62 = vld [vmem:[#allocation97_spill] sm:$0xff] }
0x1027   :  { %4544 = vmatpush1.bf16.msra.mxu1 %v9081_v51  ;;  %4585 = vmatpush1.bf16.msra.mxu0 %v9082_v40  ;;  %v9805_v51 = vld [vmem:[#allocation98_spill] sm:$0xff]  ;;  %v9806_v40 = vld [vmem:[#allocation99_spill] sm:$0xff] }
0x1028   :  { %4545 = vmatprep.subr.bf16.mxu1 %v9083_v37  ;;  %4586 = vmatprep.subr.bf16.mxu0 %v9084_v39  ;;  %v9807_v37 = vld [vmem:[#allocation100_spill] sm:$0xff]  ;;  %v9808_v39 = vld [vmem:[#allocation101_spill] sm:$0xff] }
0x102b   :  { %4546 = vmatpush1.bf16.msra.mxu1 %v9085_v44  ;;  %4587 = vmatpush1.bf16.msra.mxu0 %v9086_v10  ;;  %v9809_v44 = vld [vmem:[#allocation102_spill] sm:$0xff]  ;;  %v9810_v10 = vld [vmem:[#allocation103_spill] sm:$0xff] }
0x102c   :  { %4547 = vmatprep.subr.bf16.mxu1 %v9087_v50  ;;  %4588 = vmatprep.subr.bf16.mxu0 %v9088_v42  ;;  %v9811_v50 = vld [vmem:[#allocation104_spill] sm:$0xff]  ;;  %v9812_v42 = vld [vmem:[#allocation105_spill] sm:$0xff] }
0x102f   :  { %4548 = vmatpush1.bf16.msra.mxu1 %v9089_v2  ;;  %4589 = vmatpush1.bf16.msra.mxu0 %v9090_v46  ;;  %v9813_v2 = vld [vmem:[#allocation106_spill] sm:$0xff]  ;;  %v9814_v46 = vld [vmem:[#allocation107_spill] sm:$0xff] }
0x1030   :  { %4549 = vmatprep.subr.bf16.mxu1 %v9200_v7  ;;  %4590 = vmatprep.subr.bf16.mxu0 %v9201_v31  ;;  %v9815_v7 = vld [vmem:[#allocation108_spill] sm:$0xff]  ;;  %v9816_v31 = vld [vmem:[#allocation109_spill] sm:$0xff] }
0x1033   :  { %4550 = vmatpush1.bf16.msra.mxu1 %v9202_v18  ;;  %4591 = vmatpush1.bf16.msra.mxu0 %v9203_v15  ;;  %v9817_v18 = vld [vmem:[#allocation110_spill] sm:$0xff]  ;;  %v9818_v15 = vld [vmem:[#allocation111_spill] sm:$0xff] }
0x1034   :  { %4551 = vmatprep.subr.bf16.mxu1 %v9797_v55  ;;  %4592 = vmatprep.subr.bf16.mxu0 %v9798_v58  ;;  %v4624_v55 = vrot.slane %v9838_v45, 5  ;;  %v9839_v58 = vld [vmem:[#allocation130_spill] sm:$0xff] }
0x1037   :  { %4552 = vmatpush1.bf16.msra.mxu1 %v9799_v21  ;;  %4593 = vmatpush1.bf16.msra.mxu0 %v9800_v0  ;;  %v4621_v21 = vrot.slane %v9839_v58, 7  ;;  %v9840_v0 = vld [vmem:[#allocation139_spill] sm:$0xff] }
0x1038   :  { %4553 = vmatprep.subr.bf16.mxu1 %v9801_v17  ;;  %4594 = vmatprep.subr.bf16.mxu0 %v9802_v30  ;;  %v4626_v17 = vrot.slane %v9840_v0, 4  ;;  %v9841_v30 = vld [vmem:[#allocation134_spill] sm:$0xff] }
0x103b   :  { %4554 = vmatpush1.bf16.msra.mxu1 %v9803_v38  ;;  %4595 = vmatpush1.bf16.msra.mxu0 %v9804_v62  ;;  %v4629_v38 = vrot.slane %v9841_v30, 6  ;;  %v9842_v62 = vld [vmem:[#allocation137_spill] sm:$0xff] }
0x103c   :  { %4555 = vmatprep.subr.bf16.mxu1 %v9805_v51  ;;  %4596 = vmatprep.subr.bf16.mxu0 %v9806_v40  ;;  %v4631_v51 = vrot.slane %v9842_v62, 5 }
0x103f   :  { %4556 = vmatpush2.bf16.msra.mxu1 %v9807_v37  ;;  %4597 = vmatpush2.bf16.msra.mxu0 %v9808_v39  ;;  %v4623_v37 = vsel %vm2629_vm12, %v4622_v3, %v4621_v21  ;;  %v4640_v3 = vrot.slane %v6950_v63, 4 }
0x1040   :  { %4557 = vmatprep.subr.bf16.mxu1 %v9809_v44  ;;  %4598 = vmatprep.subr.bf16.mxu0 %v9810_v10  ;;  %v9843_v44 = vld [vmem:[#allocation131_spill] sm:$0xff] }
0x1041   :  { %v4628_v10 = vrot.slane %v9843_v44, 7 }
0x1043   :  { %4558 = vmatpush2.bf16.msra.mxu1 %v9811_v50  ;;  %4599 = vmatpush2.bf16.msra.mxu0 %v9812_v42  ;;  %v9844_v50 = vld [vmem:[#allocation140_spill] sm:$0xff]  ;;  %v9845_v42 = vld [vmem:[#allocation162_spill] sm:$0xff] }
0x1044   :  { %4559 = vmatprep.subr.bf16.mxu1 %v9813_v2  ;;  %4600 = vmatprep.subr.bf16.mxu0 %v9814_v46  ;;  %v4625_v46 = vsel %vm2632_vm13, %v4624_v55, %v4623_v37 }
0x1047   :  { %4560 = vmatpush2.bf16.msra.mxu1 %v9815_v7  ;;  %4601 = vmatpush2.bf16.msra.mxu0 %v9816_v31  ;;  %v4627_v7 = vsel %vm2635_vm14, %v4626_v17, %v4625_v46  ;;  %v9846_v46 = vld [vmem:[#allocation166_spill] sm:$0xff] }
0x1048   :  { %4561 = vmatprep.subr.bf16.mxu1 %v9817_v18  ;;  %4602 = vmatprep.subr.bf16.mxu0 %v9818_v15  ;;  %v4630_v18 = vsel %vm2629_vm12, %v4629_v38, %v4628_v10 }
0x104b   :  { %4562 = vmatpush2.bf16.msra.mxu1 %v9819_v9  ;;  %4603 = vmatpush2.bf16.msra.mxu0 %v9820_v53 }
0x104c   :  { %4563 = vmatprep.subr.bf16.mxu1 %v9821_v29  ;;  %4604 = vmatprep.subr.bf16.mxu0 %v9822_v11  ;;  %v4632_v29 = vsel %vm2632_vm13, %v4631_v51, %v4630_v18 }
0x104f   :  { %4564 = vmatpush2.bf16.msra.mxu1 %v9823_v20  ;;  %4605 = vmatpush2.bf16.msra.mxu0 %v9824_v59 }
0x1050   :  { %4565 = vmatprep.subr.bf16.mxu1 %v9825_v33  ;;  %4606 = vmatprep.subr.bf16.mxu0 %v9826_v61 }
0x1053   :  { %4566 = vmatpush2.bf16.msra.mxu1 %v9827_v32  ;;  %4607 = vmatpush2.bf16.msra.mxu0 %v9828_v25 }
0x1054   :  { %4567 = vmatprep.subr.bf16.mxu1 %v9829_v48  ;;  %4608 = vmatprep.subr.bf16.mxu0 %v9830_v1  ;;  %v4643_v1 = vrot.slane %v9552_v54, 6 }
0x1057   :  { %4568 = vmatpush2.bf16.msra.mxu1 %v9831_v12  ;;  %4609 = vmatpush2.bf16.msra.mxu0 %v9832_v5  ;;  %v4645_v12 = vrot.slane %v9674_v36, 5  ;;  %v4642_v5 = vrot.slane %v9673_v13, 7 }
0x1058   :  { %4569 = vmatprep.subr.bf16.mxu1 %v9833_v57  ;;  %4610 = vmatprep.subr.bf16.mxu0 %v9834_v23  ;;  %v4636_v57 = vrot.slane %v6918_v8, 6 }
0x105b   :  { %4570 = vmatpush2.bf16.msra.mxu1 %v9835_v16  ;;  %4611 = vmatpush2.bf16.msra.mxu0 %v9836_v43  ;;  %v4638_v16 = vrot.slane %v6934_v60, 5  ;;  %v4644_v43 = vsel %vm2629_vm12, %v4643_v1, %v4642_v5  ;;  %v9849_v5 = vld [vmem:[#allocation167_spill] sm:$0xff] }
0x105c   :  { %v4646_v54 = vsel %vm2632_vm13, %v4645_v12, %v4644_v43 }
0x105e   :  { %4572 = vmatmul.mubr.bf16.vlgmr.msra.gmra.mxu1 %v8432_v49  ;;  %4613 = vmatmul.mubr.bf16.vlgmr.msra.gmra.mxu0 %v8432_v49  ;;  %v4633_v49 = vrot.slane %v9844_v50, 4 }
0x1060   :  { %v4634_v11 = vsel %vm2635_vm14, %v4633_v49, %v4632_v29 }
0x10de   :  { %v4491_v40 = vpop.f32.mrf.mxu1  ;;  %v4532_v39 = vpop.f32.mrf.mxu0 }
0x10df   :  { %v4492_v2 = vadd.f32 %v4491_v40, %v9845_v42  ;;  %v4533_v36 = vadd.f32 %v4532_v39, %v9549_v4 }
0x10e0   :  { %v4493_v31 = vpop.f32.mrf.mxu1  ;;  %v4534_v15 = vpop.f32.mrf.mxu0 }
0x10e1   :  { %v4653_v9 = vadd.f32 %v4627_v7, %v4492_v2  ;;  %v4494_v53 = vadd.f32 %v4493_v31, %v7200_v52  ;;  %v4647_v52 = vrot.slane %v9439_v56, 4  ;;  %v4535_v23 = vadd.f32 %v4534_v15, %v9676_v47 }
0x10e2   :  { %v4495_v20 = vpop.f32.mrf.mxu1  ;;  %v4536_v59 = vpop.f32.mrf.mxu0  ;;  %v4637_v56 = vsel %vm2629_vm12, %v4636_v57, %v4635_v34 }
0x10e3   :  { %v5084_v33 = vmul.f32 -1.442695, %v4653_v9  ;;  %v4654_v61 = vadd.f32 %v4634_v11, %v4494_v53  ;;  %v4648_v13 = vsel %vm2635_vm14, %v4647_v52, %v4646_v54  ;;  %v4639_v8 = vsel %vm2632_vm13, %v4638_v16, %v4637_v56 }
0x10e4   :  { %v4496_v32 = vpop.f32.mrf.mxu1  ;;  %v4537_v25 = vpop.f32.mrf.mxu0  ;;  %v4656_v45 = vadd.f32 %v4648_v13, %v4535_v23  ;;  %v4641_v47 = vsel %vm2635_vm14, %v4640_v3, %v4639_v8  ;;  %v4675_v59 = vrot.slane %v9795_v22, 7 }
0x10e5   :  { %5566 = vpow2.f32 %v5084_v33  ;;  %v5085_v48 = vmul.f32 -1.442695, %v4654_v61  ;;  %v4655_v60 = vadd.f32 %v4641_v47, %v4533_v36  ;;  %v4677_v33 = vrot.slane %v9677_v14, 6  ;;  %v9848_v32 = vld [vmem:[#allocation142_spill] sm:$0xff] }
0x10e6   :  { %v5086_v55 = vmul.f32 -1.442695, %v4656_v45 }
0x10e7   :  { %5568 = vpow2.f32 %v5085_v48 }
0x10e8   :  { %5570 = vtanh.f32 %v4655_v60 }
0x10e9   :  { %5572 = vpow2.f32 %v5086_v55 }
0x10f2   :  { %v5567_v58 = vpop.eup %5566 }
0x10f3   :  { %v4692_v21 = vadd.f32 1.0, %v5567_v58 }
0x10f4   :  { %v5569_v35 = vpop.eup %5568 }
0x10f5   :  { %5574 = vrcp.f32 %v4692_v21  ;;  %v4698_v63 = vadd.f32 1.0, %v5569_v35  ;;  %v5571_v4 = vpop.eup %5570 }
0x10f6   :  { %v5573_v0 = vpop.eup %5572 }
0x10f7   :  { %5576 = vrcp.f32 %v4698_v63  ;;  %v4705_v62 = vadd.f32 1.0, %v5573_v0 }
0x10f9   :  { %5578 = vrcp.f32 %v4705_v62 }
0x1102   :  { %v5575_v17 = vpop.eup %5574 }
0x1103   :  { %v4709_v30 = vmul.f32 %v5575_v17, %v5571_v4 }
0x1104   :  { %v5577_v38 = vpop.eup %5576 }
0x1105   :  { %v4708_v51 = vmul.f32 %v5577_v38, %v8403_v28  ;;  %v9847_v28 = vld [vmem:[#allocation168_spill] sm:$0xff] }
0x1106   :  { %v5579_v37 = vpop.eup %5578 }
0x1107   :  { %v4710_v40 = vadd.f32 %v4709_v30, %v4708_v51 }
0x1109   :  { %5580 = vtanh.f32 %v4710_v40 }
0x1116   :  { %v5581_v39 = vpop.eup %5580 }
0x1117   :  { %v4712_v44 = vmul.f32 %v5581_v39, %v5579_v37 }
0x1119   :  { %v4739_v56 = vrot.slane %v4712_v44, 2  ;;  %v4751_v8 = vmul.f32 %v4712_v44, %v4712_v44 }
0x111b   :  { %v4743_v58 = vmul.f32 %v4739_v56, %v4712_v44  ;;  %v4767_v21 = vsel %vm4766_vm15, %v4751_v8, 0.0  ;;  %v4753_v63 = vsel %vm4745_vm0, %v4751_v8, 0.0 }
0x111d   :  { %v4746_v30 = vsel %vm4745_vm0, %v4743_v58, 0.0 }
0x111e   :  { %v4573_v10 = vpop.f32.mrf.mxu1  ;;  %v4614_v50 = vpop.f32.mrf.mxu0 }
0x111f   :  { %v4574_v49 = vadd.f32 %v4573_v10, %v9670_v19  ;;  %v4679_v19 = vrot.slane %v9794_v26, 5  ;;  %v4615_v48 = vadd.f32 %v4614_v50, %v7288_v24 }
0x1120   :  { %v4575_v42 = vpop.f32.mrf.mxu1  ;;  %v4616_v2 = vpop.f32.mrf.mxu0 }
0x1121   :  { %v4685_v7 = vadd.f32 %v9846_v46, %v4574_v49  ;;  %v4576_v31 = vadd.f32 %v4575_v42, %v7263_v6  ;;  %v4617_v61 = vadd.f32 %v4616_v2, %v9557_v41  ;;  %v4676_v6 = vsel %vm2629_vm12, %v4675_v59, %v9848_v32 }
0x1122   :  { %v4577_v18 = vpop.f32.mrf.mxu1  ;;  %v4618_v15 = vpop.f32.mrf.mxu0  ;;  %v4678_v25 = vsel %vm2632_vm13, %v4677_v33, %v4676_v6  ;;  %v4687_v52 = vadd.f32 %v9849_v5, %v4615_v48 }
0x1123   :  { %v5087_v9 = vmul.f32 -1.442695, %v4685_v7  ;;  %v4686_v53 = vadd.f32 %v9847_v28, %v4576_v31  ;;  %v4680_v1 = vsel %vm2635_vm14, %v4679_v19, %v4678_v25 }
0x1124   :  { %v4578_v29 = vpop.f32.mrf.mxu1  ;;  %v4619_v11 = vpop.f32.mrf.mxu0  ;;  %v4688_v12 = vadd.f32 %v4680_v1, %v4617_v61 }
0x1125   :  { %5582 = vpow2.f32 %v5087_v9  ;;  %v5088_v20 = vmul.f32 -1.442695, %v4686_v53 }
0x1126   :  { %v5089_v22 = vmul.f32 -1.442695, %v4688_v12 }
0x1127   :  { %5584 = vpow2.f32 %v5088_v20 }
0x1128   :  { %5586 = vtanh.f32 %v4687_v52 }
0x1129   :  { %5588 = vpow2.f32 %v5089_v22 }
0x1132   :  { %v5583_v57 = vpop.eup %5582 }
0x1133   :  { %v4716_v14 = vadd.f32 1.0, %v5583_v57 }
0x1134   :  { %v5585_v23 = vpop.eup %5584 }
0x1135   :  { %5590 = vrcp.f32 %v4716_v14  ;;  %v4722_v41 = vadd.f32 1.0, %v5585_v23  ;;  %v5587_v26 = vpop.eup %5586 }
0x1136   :  { %v5589_v16 = vpop.eup %5588 }
0x1137   :  { %5592 = vrcp.f32 %v4722_v41  ;;  %v4729_v24 = vadd.f32 1.0, %v5589_v16 }
0x1139   :  { %5594 = vrcp.f32 %v4729_v24 }
0x1142   :  { %v5591_v43 = vpop.eup %5590 }
0x1143   :  { %v4733_v34 = vmul.f32 %v5591_v43, %v5587_v26 }
0x1144   :  { %v5593_v3 = vpop.eup %5592 }
0x1145   :  { %v4732_v54 = vmul.f32 %v5593_v3, %v8429_v27 }
0x1146   :  { %v5595_v13 = vpop.eup %5594 }
0x1147   :  { %v4734_v36 = vadd.f32 %v4733_v34, %v4732_v54 }
0x1149   :  { %5596 = vtanh.f32 %v4734_v36 }
0x1156   :  { %v5597_v45 = vpop.eup %5596 }
0x1157   :  { %v4736_v47 = vmul.f32 %v5597_v45, %v5595_v13 }
0x1159   :  { %v4752_v60 = vmul.f32 %v4736_v47, %v4736_v47  ;;  %v4740_v55 = vrot.slane %v4736_v47, 2 }
0x115b   :  { %v4768_v35 = vsel %vm4766_vm15, %v4752_v60, 0.0  ;;  %v4754_v4 = vsel %vm4745_vm0, %v4752_v60, 0.0  ;;  %v4744_v27 = vmul.f32 %v4740_v55, %v4736_v47 }
0x115c   :  { %v4769_v0 = vadd.f32 %v4768_v35, %v4767_v21  ;;  %v4755_v17 = vadd.f32 %v4754_v4, %v4753_v63 }
0x115d   :  { %v4747_v38 = vsel %vm4745_vm0, %v4744_v27, 0.0 }
0x115e   :  { %4770 = vadd.xlane.f32.xlu1 %v4769_v0  ;;  %v4748_v62 = vadd.f32 %v4747_v38, %v4746_v30 }
0x1162   :  { %4756 = vadd.xlane.f32.xlu1 %v4755_v17 }
0x1166   :  { %4749 = vadd.xlane.f32.xlu1 %v4748_v62 }
0x11e7   :  { %v4771_v51 = vpop.xlane.xlu1 %4770 }
0x11e8   :  { %5598 = vrsqrt.f32 %v4771_v51  ;;  %vm4774_vm1 = vcmp.eq.f32.partialorder %v4771_v51, inf  ;;  %v4777_v44 = vand.u32 2147483648, %v4771_v51  ;;  %vm4776_vm2 = vcmp.eq.f32.partialorder %v4771_v51, 0.0 }
0x11eb   :  { %v4757_v40 = vpop.xlane.xlu1 %4756 }
0x11ec   :  { %5600 = vrsqrt.f32 %v4757_v40  ;;  %vm4760_vm3 = vcmp.eq.f32.partialorder %v4757_v40, inf  ;;  %v4763_v46 = vand.u32 2147483648, %v4757_v40  ;;  %vm4762_vm4 = vcmp.eq.f32.partialorder %v4757_v40, 0.0 }
0x11ef   :  { %v4750_v53 = vpop.xlane.xlu1 %4749 }
0x11f5   :  { %v5599_v37 = vpop.eup %5598 }
0x11f6   :  { %v4773_v39 = vmul.f32 %v5599_v37, %v4771_v51 }
0x11f8   :  { %v4775_v10 = vsel %vm4774_vm1, %v4771_v51, %v4773_v39 }
0x11f9   :  { %v5601_v50 = vpop.eup %5600  ;;  %v4778_v49 = vsel %vm4776_vm2, %v4777_v44, %v4775_v10 }
0x11fa   :  { %v4779_v42 = vmax.f32 %v4778_v49, 1e-08  ;;  %v4759_v2 = vmul.f32 %v5601_v50, %v4757_v40 }
0x11fc   :  { %v4761_v7 = vsel %vm4760_vm3, %v4757_v40, %v4759_v2  ;;  %v4781_v18 = vrot.slane %v4779_v42, 2 }
0x11fd   :  { %v4764_v31 = vsel %vm4762_vm4, %v4763_v46, %v4761_v7 }
0x11fe   :  { %v4765_v15 = vmax.f32 %v4764_v31, 1e-08 }
0x1200   :  { %v4783_v9 = vmul.f32 %v4781_v18, %v4765_v15 }
0x1202   :  { %5602 = vrcp.f32 %v4783_v9 }
0x120f   :  { %v5603_v28 = vpop.eup %5602 }
0x1210   :  { %v4785_v29 = vmul.f32 %v5603_v28, %v4750_v53 }
0x1212   :  { %v4786_v11 = vsel %vm4745_vm0, %v4785_v29, 0.0 }
0x1213   :  { %4789 = vperm.xlu1 %5274, %v4786_v11  }
0x128e   :  { %v4790_v20 = vpop.permute.xlu1 %4789 }
0x128f   :  { %4792 = vst [vmem:[%s8564_s8] sm:$0xff] %v4790_v20 }

</bundles_post_ra>
